<compile_context>
chip_gen: v7x
topology: tpu7x:2x2x1
jax: 0.10.0
libtpu: 0.0.40
codegen_flags: <defaults>
</compile_context>

<pallas_src>
import functools

import jax
import jax.numpy as jnp
from jax.experimental import pallas as pl
from jax.experimental.pallas import tpu as pltpu


# ----------------------------------------------------------------------------
# Kernel A: fused conv1 + ReLU -> conv2 + ReLU -> conv3 (one batch element).
# ----------------------------------------------------------------------------
def _fused_convs_kernel(x_ref, w1_ref, b1_ref, w2_ref, b2_ref, w3_ref, b3_ref,
                        o_ref, x1p_ref, x2p_ref, *, H, W, Cout):
    # x_ref : (1, H+2, W+2, Cin)  bf16, zero padded input (NHWC)
    # w*_ref: (9*Cin_l, Cout_l)   bf16 im2col weights;  b*_ref: (1, Cout_l) f32
    # o_ref : (1, H, W, Cout)     f32 conv3 output
    # x1p_ref / x2p_ref: zero-padded bf16 VMEM scratch for hidden activations.

    def conv3x3(window, w_ref, b_ref, relu):
        # im2col: build one (H*W, 9*C) slab and do a single MXU matmul
        # (instead of 9 tiny K=C matmuls + 9 strided reshapes).
        cols = [window(dh, dw) for dh in range(3) for dw in range(3)]
        c = cols[0].shape[-1]
        patches = jnp.concatenate(cols, axis=-1)               # (H, W, 9C) bf16
        acc = jnp.dot(patches.reshape(H * W, 9 * c), w_ref[...],
                      preferred_element_type=jnp.float32)      # f32 accumulate
        out = acc + b_ref[...]                                  # bias in f32
        if relu:
            out = jnp.maximum(out, 0.0)
        return out                                              # (H*W, Co) f32

    def stash_padded(dst_ref, val_f32, c):
        # Store activation into zero-padded scratch so the next conv can read
        # halo windows directly from VMEM (pad=1 handled in-kernel).
        dst_ref[...] = jnp.zeros(dst_ref.shape, dst_ref.dtype)
        dst_ref[1:H + 1, 1:W + 1, :] = (
            val_f32.reshape(H, W, c).astype(dst_ref.dtype))

    c1 = w1_ref.shape[-1]
    c2 = w2_ref.shape[-1]

    # conv1 + ReLU
    x1 = conv3x3(lambda dh, dw: x_ref[0, dh:dh + H, dw:dw + W, :],
                 w1_ref, b1_ref, relu=True)
    stash_padded(x1p_ref, x1, c1)

    # conv2 + ReLU
    x2 = conv3x3(lambda dh, dw: x1p_ref[dh:dh + H, dw:dw + W, :],
                 w2_ref, b2_ref, relu=True)
    stash_padded(x2p_ref, x2, c2)

    # conv3 (no ReLU); weights are lane-padded -> slice back to Cout.
    x3 = conv3x3(lambda dh, dw: x2p_ref[dh:dh + H, dw:dw + W, :],
                 w3_ref, b3_ref, relu=False)
    o_ref[...] = x3[:, :Cout].reshape(1, H, W, Cout).astype(o_ref.dtype)


def fused_convs(xp, w1, b1, w2, b2, w3, b3, *, H, W, Cout):
    """xp: (B, H+2, W+2, Cin) bf16 padded NHWC -> (B, H, W, Cout) f32."""
    B, Hp, Wp, Cin = xp.shape
    c1 = w1.shape[-1]
    c2 = w2.shape[-1]
    c3p = w3.shape[-1]
    kern = functools.partial(_fused_convs_kernel, H=H, W=W, Cout=Cout)
    return pl.pallas_call(
        kern,
        out_shape=jax.ShapeDtypeStruct((B, H, W, Cout), jnp.float32),
        grid=(B,),
        in_specs=[
            pl.BlockSpec((1, Hp, Wp, Cin), lambda b: (b, 0, 0, 0)),
            pl.BlockSpec((9 * Cin, c1), lambda b: (0, 0)),
            pl.BlockSpec((1, c1), lambda b: (0, 0)),
            pl.BlockSpec((9 * c1, c2), lambda b: (0, 0)),
            pl.BlockSpec((1, c2), lambda b: (0, 0)),
            pl.BlockSpec((9 * c2, c3p), lambda b: (0, 0)),
            pl.BlockSpec((1, c3p), lambda b: (0, 0)),
        ],
        out_specs=pl.BlockSpec((1, H, W, Cout), lambda b: (b, 0, 0, 0)),
        scratch_shapes=[
            pltpu.VMEM((Hp, Wp, c1), jnp.bfloat16),   # padded conv1 activation
            pltpu.VMEM((Hp, Wp, c2), jnp.bfloat16),   # padded conv2 activation
        ],
        compiler_params=pltpu.CompilerParams(
            dimension_semantics=("parallel",)),
    )(xp, w1, b1, w2, b2, w3, b3)


# ----------------------------------------------------------------------------
# Kernel B: bilinear x2 upsample (align_corners=False), per (batch, channel)
# plane so both matmuls are lane-dense and the output is written in NCHW.
# ----------------------------------------------------------------------------
def _upsample_plane_kernel(x_ref, uh_ref, uwt_ref, o_ref, *, H, W):
    # x_ref: (1, 1, H, W) f32; uh: (2H, H); uwt: (W, 2W); o: (1, 1, 2H, 2W)
    plane = x_ref[0, 0]                                              # (H, W)
    tmp = jnp.dot(uh_ref[...], plane, preferred_element_type=jnp.float32)
    out = jnp.dot(tmp, uwt_ref[...], preferred_element_type=jnp.float32)
    o_ref[...] = out.reshape(1, 1, 2 * H, 2 * W).astype(o_ref.dtype)


def _bilinear_matrix(n):
    """(2n, n) interpolation matrix matching PyTorch align_corners=False."""
    m = 2 * n
    src = jnp.maximum((jnp.arange(m, dtype=jnp.float32) + 0.5) * 0.5 - 0.5, 0.0)
    i0 = jnp.floor(src).astype(jnp.int32)
    i1 = jnp.minimum(i0 + 1, n - 1)
    lam = src - i0.astype(jnp.float32)
    e0 = jax.nn.one_hot(i0, n, dtype=jnp.float32)
    e1 = jax.nn.one_hot(i1, n, dtype=jnp.float32)
    return e0 * (1.0 - lam)[:, None] + e1 * lam[:, None]


def upsample2x_nchw(x_nchw):
    """(B, C, H, W) -> (B, C, 2H, 2W), PyTorch bilinear align_corners=False."""
    B, C, H, W = x_nchw.shape
    uh = _bilinear_matrix(H)            # (2H, H)
    uwt = _bilinear_matrix(W).T         # (W, 2W)
    kern = functools.partial(_upsample_plane_kernel, H=H, W=W)
    return pl.pallas_call(
        kern,
        out_shape=jax.ShapeDtypeStruct((B, C, 2 * H, 2 * W), jnp.float32),
        grid=(B, C),
        in_specs=[
            pl.BlockSpec((1, 1, H, W), lambda b, c: (b, c, 0, 0)),
            pl.BlockSpec((2 * H, H), lambda b, c: (0, 0)),
            pl.BlockSpec((W, 2 * W), lambda b, c: (0, 0)),
        ],
        out_specs=pl.BlockSpec((1, 1, 2 * H, 2 * W), lambda b, c: (b, c, 0, 0)),
        compiler_params=pltpu.CompilerParams(
            dimension_semantics=("parallel", "parallel")),
    )(x_nchw, uh, uwt)


# ----------------------------------------------------------------------------
# Parameter init (deterministic, mimics PyTorch Conv2d default uniform bound).
# ----------------------------------------------------------------------------
def init_fcn_params(key, in_channels, out_channels):
    def conv_init(k, cin, cout):
        kw, kb = jax.random.split(k)
        bound = 1.0 / jnp.sqrt(jnp.float32(cin * 9))
        w = jax.random.uniform(kw, (3, 3, cin, cout), jnp.float32, -bound, bound)
        b = jax.random.uniform(kb, (cout,), jnp.float32, -bound, bound)
        return w, b

    k1, k2, k3 = jax.random.split(key, 3)
    return {
        "conv1": conv_init(k1, in_channels, 64),
        "conv2": conv_init(k2, 64, 128),
        "conv3": conv_init(k3, 128, out_channels),
    }


def fcn_forward(params, x_nchw):
    """Input (B, Cin, H, W) f32 -> output (B, Cout, 2H, 2W) f32 (NCHW)."""
    B, Cin, H, W = x_nchw.shape
    (w1, b1), (w2, b2), (w3, b3) = (params["conv1"], params["conv2"],
                                    params["conv3"])
    c1, c2, Cout = w1.shape[-1], w2.shape[-1], w3.shape[-1]

    # NCHW -> NHWC (channels on lanes), zero pad=1, bf16 for the MXU inputs.
    x = jnp.transpose(x_nchw, (0, 2, 3, 1))
    xp = jnp.pad(x, ((0, 0), (1, 1), (1, 1), (0, 0))).astype(jnp.bfloat16)

    # Weights in im2col layout (9*Cin, Cout) bf16; conv3 lane-padded to >=8.
    c3p = max(8, ((Cout + 7) // 8) * 8)
    w1f = w1.reshape(9 * Cin, c1).astype(jnp.bfloat16)
    w2f = w2.reshape(9 * c1, c2).astype(jnp.bfloat16)
    w3f = jnp.pad(w3.reshape(9 * c2, Cout),
                  ((0, 0), (0, c3p - Cout))).astype(jnp.bfloat16)
    b1f = b1.reshape(1, c1).astype(jnp.float32)
    b2f = b2.reshape(1, c2).astype(jnp.float32)
    b3f = jnp.pad(b3, (0, c3p - Cout)).reshape(1, c3p).astype(jnp.float32)

    # Fused conv stack: only the tiny Cout-channel conv3 output hits HBM.
    x3 = fused_convs(xp, w1f, b1f, w2f, b2f, w3f, b3f, H=H, W=W, Cout=Cout)
    # Transposing the 3-channel conv3 output is a cheap pass over a tiny
    # tensor; it lets the upsample run on lane-dense (H, W) planes and write
    # the final NCHW result with no output transpose.
    x3_nchw = jnp.transpose(x3, (0, 3, 1, 2))
    return upsample2x_nchw(x3_nchw)


if __name__ == "__main__":
    key = jax.random.PRNGKey(0)
    k_params, k_x = jax.random.split(key)

    B, Cin, H, W = 2, 4, 16, 16
    Cout = 3

    params = init_fcn_params(k_params, Cin, Cout)
    x = jax.random.normal(k_x, (B, Cin, H, W), jnp.float32)

    out = jax.jit(fcn_forward)(params, x)
    out = jax.block_until_ready(out)

    assert out.shape == (B, Cout, 2 * H, 2 * W), out.shape
    assert out.dtype == jnp.float32
    assert bool(jnp.all(jnp.isfinite(out)))
    print("KERNEL_OK")
</pallas_src>

<mosaic_0001>
module attributes {stable_mosaic.version = 11 : i64} {
  func.func @_upsample_plane_kernel(%arg0: i32, %arg1: i32, %arg2: memref<1x1x16x16xf32, #tpu.memory_space<vmem>>, %arg3: memref<32x16xf32, #tpu.memory_space<vmem>>, %arg4: memref<16x32xf32, #tpu.memory_space<vmem>>, %arg5: memref<1x1x32x32xf32, #tpu.memory_space<vmem>>) attributes {dimension_semantics = [#tpu.dimension_semantics<parallel>, #tpu.dimension_semantics<parallel>], iteration_bounds = array<i64: 2, 3>, scalar_prefetch = 0 : i64, scratch_operands = 0 : i64, tpu.core_type = #tpu.core_type<tc>, window_params = [{transform_indices = @transform_0, window_bounds = array<i64: 1, 1, 16, 16>}, {pipeline_mode = #tpu.pipeline_mode<synchronous>, transform_indices = @transform_1, window_bounds = array<i64: 32, 16>}, {pipeline_mode = #tpu.pipeline_mode<synchronous>, transform_indices = @transform_2, window_bounds = array<i64: 16, 32>}, {transform_indices = @transform_3, window_bounds = array<i64: 1, 1, 32, 32>}]} {
    %c0 = arith.constant 0 : index
    %c0_0 = arith.constant 0 : index
    %c0_1 = arith.constant 0 : index
    %c0_2 = arith.constant 0 : index
    %0 = vector.load %arg2[%c0, %c0_0, %c0_1, %c0_2] : memref<1x1x16x16xf32, #tpu.memory_space<vmem>>, vector<1x1x16x16xf32>
    %1 = vector.shape_cast %0 : vector<1x1x16x16xf32> to vector<16x16xf32>
    %c0_3 = arith.constant 0 : index
    %c0_4 = arith.constant 0 : index
    %2 = vector.load %arg3[%c0_3, %c0_4] : memref<32x16xf32, #tpu.memory_space<vmem>>, vector<32x16xf32>
    %cst = arith.constant dense<0.000000e+00> : vector<32x16xf32>
    %3 = tpu.matmul %2, %1, %cst {dimension_numbers = #tpu.dot_dimension_numbers<[1], [0], [0], [1], [0, 0, 1, 1], [], []>} : vector<32x16xf32>, vector<16x16xf32>, vector<32x16xf32> -> vector<32x16xf32>
    %c0_5 = arith.constant 0 : index
    %c0_6 = arith.constant 0 : index
    %4 = vector.load %arg4[%c0_5, %c0_6] : memref<16x32xf32, #tpu.memory_space<vmem>>, vector<16x32xf32>
    %cst_7 = arith.constant dense<0.000000e+00> : vector<32x32xf32>
    %5 = tpu.matmul %3, %4, %cst_7 {dimension_numbers = #tpu.dot_dimension_numbers<[1], [0], [0], [1], [0, 0, 1, 1], [], []>} : vector<32x16xf32>, vector<16x32xf32>, vector<32x32xf32> -> vector<32x32xf32>
    %6 = vector.shape_cast %5 : vector<32x32xf32> to vector<1x1x32x32xf32>
    %c0_8 = arith.constant 0 : index
    %c0_9 = arith.constant 0 : index
    %c0_10 = arith.constant 0 : index
    %c0_11 = arith.constant 0 : index
    %7 = vector.load %arg5[%c0_8, %c0_9, %c0_10, %c0_11] : memref<1x1x32x32xf32, #tpu.memory_space<vmem>>, vector<1x1x32x32xf32>
    tpu.vector_store %arg5[%c0_8, %c0_9, %c0_10, %c0_11], %6 {strides = array<i32>} : memref<1x1x32x32xf32, #tpu.memory_space<vmem>>, vector<1x1x32x32xf32>,
    return
  }
  func.func @transform_0(%arg0: i32, %arg1: i32) -> (i32, i32, i32, i32) {
    %c0_i32 = arith.constant 0 : i32
    %c0_i32_0 = arith.constant 0 : i32
    %c0_i32_1 = arith.constant 0 : i32
    return %arg0, %arg1, %c0_i32, %c0_i32_0 : i32, i32, i32, i32
  }
  func.func @transform_1(%arg0: i32, %arg1: i32) -> (i32, i32) {
    %c0_i32 = arith.constant 0 : i32
    %c0_i32_0 = arith.constant 0 : i32
    %c0_i32_1 = arith.constant 0 : i32
    return %c0_i32, %c0_i32_0 : i32, i32
  }
  func.func @transform_2(%arg0: i32, %arg1: i32) -> (i32, i32) {
    %c0_i32 = arith.constant 0 : i32
    %c0_i32_0 = arith.constant 0 : i32
    %c0_i32_1 = arith.constant 0 : i32
    return %c0_i32, %c0_i32_0 : i32, i32
  }
  func.func @transform_3(%arg0: i32, %arg1: i32) -> (i32, i32, i32, i32) {
    %c0_i32 = arith.constant 0 : i32
    %c0_i32_0 = arith.constant 0 : i32
    %c0_i32_1 = arith.constant 0 : i32
    return %arg0, %arg1, %c0_i32, %c0_i32_0 : i32, i32, i32, i32
  }
}

module attributes {stable_mosaic.version = 11 : i64} {
  func.func @_fused_convs_kernel(%arg0: i32, %arg1: memref<1x18x18x4xbf16, #tpu.memory_space<vmem>>, %arg2: memref<36x64xbf16, #tpu.memory_space<vmem>>, %arg3: memref<1x64xf32, #tpu.memory_space<vmem>>, %arg4: memref<576x128xbf16, #tpu.memory_space<vmem>>, %arg5: memref<1x128xf32, #tpu.memory_space<vmem>>, %arg6: memref<1152x8xbf16, #tpu.memory_space<vmem>>, %arg7: memref<1x8xf32, #tpu.memory_space<vmem>>, %arg8: memref<1x16x16x3xf32, #tpu.memory_space<vmem>>, %arg9: memref<18x18x64xbf16, #tpu.memory_space<vmem>>, %arg10: memref<18x18x128xbf16, #tpu.memory_space<vmem>>) attributes {dimension_semantics = [#tpu.dimension_semantics<parallel>], iteration_bounds = array<i64: 2>, scalar_prefetch = 0 : i64, scratch_operands = 2 : i64, tpu.core_type = #tpu.core_type<tc>, window_params = [{transform_indices = @transform_0, window_bounds = array<i64: 1, 18, 18, 4>}, {pipeline_mode = #tpu.pipeline_mode<synchronous>, transform_indices = @transform_1, window_bounds = array<i64: 36, 64>}, {pipeline_mode = #tpu.pipeline_mode<synchronous>, transform_indices = @transform_2, window_bounds = array<i64: 1, 64>}, {pipeline_mode = #tpu.pipeline_mode<synchronous>, transform_indices = @transform_3, window_bounds = array<i64: 576, 128>}, {pipeline_mode = #tpu.pipeline_mode<synchronous>, transform_indices = @transform_4, window_bounds = array<i64: 1, 128>}, {pipeline_mode = #tpu.pipeline_mode<synchronous>, transform_indices = @transform_5, window_bounds = array<i64: 1152, 8>}, {pipeline_mode = #tpu.pipeline_mode<synchronous>, transform_indices = @transform_6, window_bounds = array<i64: 1, 8>}, {transform_indices = @transform_7, window_bounds = array<i64: 1, 16, 16, 3>}]} {
    %c0 = arith.constant 0 : index
    %c0_0 = arith.constant 0 : index
    %c0_1 = arith.constant 0 : index
    %c0_2 = arith.constant 0 : index
    %0 = vector.load %arg1[%c0, %c0_0, %c0_1, %c0_2] : memref<1x18x18x4xbf16, #tpu.memory_space<vmem>>, vector<1x16x16x4xbf16>
    %1 = vector.shape_cast %0 : vector<1x16x16x4xbf16> to vector<16x16x4xbf16>
    %c0_3 = arith.constant 0 : index
    %c0_4 = arith.constant 0 : index
    %c1 = arith.constant 1 : index
    %c0_5 = arith.constant 0 : index
    %2 = vector.load %arg1[%c0_3, %c0_4, %c1, %c0_5] : memref<1x18x18x4xbf16, #tpu.memory_space<vmem>>, vector<1x16x16x4xbf16>
    %3 = vector.shape_cast %2 : vector<1x16x16x4xbf16> to vector<16x16x4xbf16>
    %c0_6 = arith.constant 0 : index
    %c0_7 = arith.constant 0 : index
    %c2 = arith.constant 2 : index
    %c0_8 = arith.constant 0 : index
    %4 = vector.load %arg1[%c0_6, %c0_7, %c2, %c0_8] : memref<1x18x18x4xbf16, #tpu.memory_space<vmem>>, vector<1x16x16x4xbf16>
    %5 = vector.shape_cast %4 : vector<1x16x16x4xbf16> to vector<16x16x4xbf16>
    %c0_9 = arith.constant 0 : index
    %c1_10 = arith.constant 1 : index
    %c0_11 = arith.constant 0 : index
    %c0_12 = arith.constant 0 : index
    %6 = vector.load %arg1[%c0_9, %c1_10, %c0_11, %c0_12] : memref<1x18x18x4xbf16, #tpu.memory_space<vmem>>, vector<1x16x16x4xbf16>
    %7 = vector.shape_cast %6 : vector<1x16x16x4xbf16> to vector<16x16x4xbf16>
    %c0_13 = arith.constant 0 : index
    %c1_14 = arith.constant 1 : index
    %c1_15 = arith.constant 1 : index
    %c0_16 = arith.constant 0 : index
    %8 = vector.load %arg1[%c0_13, %c1_14, %c1_15, %c0_16] : memref<1x18x18x4xbf16, #tpu.memory_space<vmem>>, vector<1x16x16x4xbf16>
    %9 = vector.shape_cast %8 : vector<1x16x16x4xbf16> to vector<16x16x4xbf16>
    %c0_17 = arith.constant 0 : index
    %c1_18 = arith.constant 1 : index
    %c2_19 = arith.constant 2 : index
    %c0_20 = arith.constant 0 : index
    %10 = vector.load %arg1[%c0_17, %c1_18, %c2_19, %c0_20] : memref<1x18x18x4xbf16, #tpu.memory_space<vmem>>, vector<1x16x16x4xbf16>
    %11 = vector.shape_cast %10 : vector<1x16x16x4xbf16> to vector<16x16x4xbf16>
    %c0_21 = arith.constant 0 : index
    %c2_22 = arith.constant 2 : index
    %c0_23 = arith.constant 0 : index
    %c0_24 = arith.constant 0 : index
    %12 = vector.load %arg1[%c0_21, %c2_22, %c0_23, %c0_24] : memref<1x18x18x4xbf16, #tpu.memory_space<vmem>>, vector<1x16x16x4xbf16>
    %13 = vector.shape_cast %12 : vector<1x16x16x4xbf16> to vector<16x16x4xbf16>
    %c0_25 = arith.constant 0 : index
    %c2_26 = arith.constant 2 : index
    %c1_27 = arith.constant 1 : index
    %c0_28 = arith.constant 0 : index
    %14 = vector.load %arg1[%c0_25, %c2_26, %c1_27, %c0_28] : memref<1x18x18x4xbf16, #tpu.memory_space<vmem>>, vector<1x16x16x4xbf16>
    %15 = vector.shape_cast %14 : vector<1x16x16x4xbf16> to vector<16x16x4xbf16>
    %c0_29 = arith.constant 0 : index
    %c2_30 = arith.constant 2 : index
    %c2_31 = arith.constant 2 : index
    %c0_32 = arith.constant 0 : index
    %16 = vector.load %arg1[%c0_29, %c2_30, %c2_31, %c0_32] : memref<1x18x18x4xbf16, #tpu.memory_space<vmem>>, vector<1x16x16x4xbf16>
    %17 = vector.shape_cast %16 : vector<1x16x16x4xbf16> to vector<16x16x4xbf16>
    %18 = tpu.concatenate %1, %3, %5, %7, %9, %11, %13, %15, %17 in 2 : vector<16x16x4xbf16>, vector<16x16x4xbf16>, vector<16x16x4xbf16>, vector<16x16x4xbf16>, vector<16x16x4xbf16>, vector<16x16x4xbf16>, vector<16x16x4xbf16>, vector<16x16x4xbf16>, vector<16x16x4xbf16> -> vector<16x16x36xbf16>
    %19 = vector.shape_cast %18 : vector<16x16x36xbf16> to vector<256x36xbf16>
    %c0_33 = arith.constant 0 : index
    %c0_34 = arith.constant 0 : index
    %20 = vector.load %arg2[%c0_33, %c0_34] : memref<36x64xbf16, #tpu.memory_space<vmem>>, vector<36x64xbf16>
    %cst = arith.constant dense<0.000000e+00> : vector<256x64xf32>
    %21 = tpu.matmul %19, %20, %cst {dimension_numbers = #tpu.dot_dimension_numbers<[1], [0], [0], [1], [0, 0, 1, 1], [], []>} : vector<256x36xbf16>, vector<36x64xbf16>, vector<256x64xf32> -> vector<256x64xf32>
    %c0_35 = arith.constant 0 : index
    %c0_36 = arith.constant 0 : index
    %22 = vector.load %arg3[%c0_35, %c0_36] : memref<1x64xf32, #tpu.memory_space<vmem>>, vector<1x64xf32>
    %23 = vector.broadcast %22 : vector<1x64xf32> to vector<256x64xf32>
    %24 = arith.addf %21, %23 : vector<256x64xf32>
    %cst_37 = arith.constant 0.000000e+00 : f32
    %25 = vector.broadcast %cst_37 : f32 to vector<256x64xf32>
    %26 = arith.maximumf %24, %25 : vector<256x64xf32>
    %cst_38 = arith.constant 0.000000e+00 : bf16
    %27 = vector.broadcast %cst_38 : bf16 to vector<18x18x64xbf16>
    %c0_39 = arith.constant 0 : index
    %c0_40 = arith.constant 0 : index
    %c0_41 = arith.constant 0 : index
    %28 = vector.load %arg9[%c0_39, %c0_40, %c0_41] : memref<18x18x64xbf16, #tpu.memory_space<vmem>>, vector<18x18x64xbf16>
    tpu.vector_store %arg9[%c0_39, %c0_40, %c0_41], %27 {strides = array<i32>} : memref<18x18x64xbf16, #tpu.memory_space<vmem>>, vector<18x18x64xbf16>,
    %29 = vector.shape_cast %26 : vector<256x64xf32> to vector<16x16x64xf32>
    %30 = arith.truncf %29 : vector<16x16x64xf32> to vector<16x16x64xbf16>
    %c1_42 = arith.constant 1 : index
    %c1_43 = arith.constant 1 : index
    %c0_44 = arith.constant 0 : index
    %31 = vector.load %arg9[%c1_42, %c1_43, %c0_44] : memref<18x18x64xbf16, #tpu.memory_space<vmem>>, vector<16x16x64xbf16>
    tpu.vector_store %arg9[%c1_42, %c1_43, %c0_44], %30 {strides = array<i32>} : memref<18x18x64xbf16, #tpu.memory_space<vmem>>, vector<16x16x64xbf16>,
    %c0_45 = arith.constant 0 : index
    %c0_46 = arith.constant 0 : index
    %c0_47 = arith.constant 0 : index
    %32 = vector.load %arg9[%c0_45, %c0_46, %c0_47] : memref<18x18x64xbf16, #tpu.memory_space<vmem>>, vector<16x16x64xbf16>
    %c0_48 = arith.constant 0 : index
    %c1_49 = arith.constant 1 : index
    %c0_50 = arith.constant 0 : index
    %33 = vector.load %arg9[%c0_48, %c1_49, %c0_50] : memref<18x18x64xbf16, #tpu.memory_space<vmem>>, vector<16x16x64xbf16>
    %c0_51 = arith.constant 0 : index
    %c2_52 = arith.constant 2 : index
    %c0_53 = arith.constant 0 : index
    %34 = vector.load %arg9[%c0_51, %c2_52, %c0_53] : memref<18x18x64xbf16, #tpu.memory_space<vmem>>, vector<16x16x64xbf16>
    %c1_54 = arith.constant 1 : index
    %c0_55 = arith.constant 0 : index
    %c0_56 = arith.constant 0 : index
    %35 = vector.load %arg9[%c1_54, %c0_55, %c0_56] : memref<18x18x64xbf16, #tpu.memory_space<vmem>>, vector<16x16x64xbf16>
    %c1_57 = arith.constant 1 : index
    %c1_58 = arith.constant 1 : index
    %c0_59 = arith.constant 0 : index
    %36 = vector.load %arg9[%c1_57, %c1_58, %c0_59] : memref<18x18x64xbf16, #tpu.memory_space<vmem>>, vector<16x16x64xbf16>
    %c1_60 = arith.constant 1 : index
    %c2_61 = arith.constant 2 : index
    %c0_62 = arith.constant 0 : index
    %37 = vector.load %arg9[%c1_60, %c2_61, %c0_62] : memref<18x18x64xbf16, #tpu.memory_space<vmem>>, vector<16x16x64xbf16>
    %c2_63 = arith.constant 2 : index
    %c0_64 = arith.constant 0 : index
    %c0_65 = arith.constant 0 : index
    %38 = vector.load %arg9[%c2_63, %c0_64, %c0_65] : memref<18x18x64xbf16, #tpu.memory_space<vmem>>, vector<16x16x64xbf16>
    %c2_66 = arith.constant 2 : index
    %c1_67 = arith.constant 1 : index
    %c0_68 = arith.constant 0 : index
    %39 = vector.load %arg9[%c2_66, %c1_67, %c0_68] : memref<18x18x64xbf16, #tpu.memory_space<vmem>>, vector<16x16x64xbf16>
    %c2_69 = arith.constant 2 : index
    %c2_70 = arith.constant 2 : index
    %c0_71 = arith.constant 0 : index
    %40 = vector.load %arg9[%c2_69, %c2_70, %c0_71] : memref<18x18x64xbf16, #tpu.memory_space<vmem>>, vector<16x16x64xbf16>
    %41 = tpu.concatenate %32, %33, %34, %35, %36, %37, %38, %39, %40 in 2 : vector<16x16x64xbf16>, vector<16x16x64xbf16>, vector<16x16x64xbf16>, vector<16x16x64xbf16>, vector<16x16x64xbf16>, vector<16x16x64xbf16>, vector<16x16x64xbf16>, vector<16x16x64xbf16>, vector<16x16x64xbf16> -> vector<16x16x576xbf16>
    %42 = vector.shape_cast %41 : vector<16x16x576xbf16> to vector<256x576xbf16>
    %c0_72 = arith.constant 0 : index
    %c0_73 = arith.constant 0 : index
    %43 = vector.load %arg4[%c0_72, %c0_73] : memref<576x128xbf16, #tpu.memory_space<vmem>>, vector<576x128xbf16>
    %cst_74 = arith.constant dense<0.000000e+00> : vector<256x128xf32>
    %44 = tpu.matmul %42, %43, %cst_74 {dimension_numbers = #tpu.dot_dimension_numbers<[1], [0], [0], [1], [0, 0, 1, 1], [], []>} : vector<256x576xbf16>, vector<576x128xbf16>, vector<256x128xf32> -> vector<256x128xf32>
    %c0_75 = arith.constant 0 : index
    %c0_76 = arith.constant 0 : index
    %45 = vector.load %arg5[%c0_75, %c0_76] : memref<1x128xf32, #tpu.memory_space<vmem>>, vector<1x128xf32>
    %46 = vector.broadcast %45 : vector<1x128xf32> to vector<256x128xf32>
    %47 = arith.addf %44, %46 : vector<256x128xf32>
    %cst_77 = arith.constant 0.000000e+00 : f32
    %48 = vector.broadcast %cst_77 : f32 to vector<256x128xf32>
    %49 = arith.maximumf %47, %48 : vector<256x128xf32>
    %cst_78 = arith.constant 0.000000e+00 : bf16
    %50 = vector.broadcast %cst_78 : bf16 to vector<18x18x128xbf16>
    %c0_79 = arith.constant 0 : index
    %c0_80 = arith.constant 0 : index
    %c0_81 = arith.constant 0 : index
    %51 = vector.load %arg10[%c0_79, %c0_80, %c0_81] : memref<18x18x128xbf16, #tpu.memory_space<vmem>>, vector<18x18x128xbf16>
    tpu.vector_store %arg10[%c0_79, %c0_80, %c0_81], %50 {strides = array<i32>} : memref<18x18x128xbf16, #tpu.memory_space<vmem>>, vector<18x18x128xbf16>,
    %52 = vector.shape_cast %49 : vector<256x128xf32> to vector<16x16x128xf32>
    %53 = arith.truncf %52 : vector<16x16x128xf32> to vector<16x16x128xbf16>
    %c1_82 = arith.constant 1 : index
    %c1_83 = arith.constant 1 : index
    %c0_84 = arith.constant 0 : index
    %54 = vector.load %arg10[%c1_82, %c1_83, %c0_84] : memref<18x18x128xbf16, #tpu.memory_space<vmem>>, vector<16x16x128xbf16>
    tpu.vector_store %arg10[%c1_82, %c1_83, %c0_84], %53 {strides = array<i32>} : memref<18x18x128xbf16, #tpu.memory_space<vmem>>, vector<16x16x128xbf16>,
    %c0_85 = arith.constant 0 : index
    %c0_86 = arith.constant 0 : index
    %c0_87 = arith.constant 0 : index
    %55 = vector.load %arg10[%c0_85, %c0_86, %c0_87] : memref<18x18x128xbf16, #tpu.memory_space<vmem>>, vector<16x16x128xbf16>
    %c0_88 = arith.constant 0 : index
    %c1_89 = arith.constant 1 : index
    %c0_90 = arith.constant 0 : index
    %56 = vector.load %arg10[%c0_88, %c1_89, %c0_90] : memref<18x18x128xbf16, #tpu.memory_space<vmem>>, vector<16x16x128xbf16>
    %c0_91 = arith.constant 0 : index
    %c2_92 = arith.constant 2 : index
    %c0_93 = arith.constant 0 : index
    %57 = vector.load %arg10[%c0_91, %c2_92, %c0_93] : memref<18x18x128xbf16, #tpu.memory_space<vmem>>, vector<16x16x128xbf16>
    %c1_94 = arith.constant 1 : index
    %c0_95 = arith.constant 0 : index
    %c0_96 = arith.constant 0 : index
    %58 = vector.load %arg10[%c1_94, %c0_95, %c0_96] : memref<18x18x128xbf16, #tpu.memory_space<vmem>>, vector<16x16x128xbf16>
    %c1_97 = arith.constant 1 : index
    %c1_98 = arith.constant 1 : index
    %c0_99 = arith.constant 0 : index
    %59 = vector.load %arg10[%c1_97, %c1_98, %c0_99] : memref<18x18x128xbf16, #tpu.memory_space<vmem>>, vector<16x16x128xbf16>
    %c1_100 = arith.constant 1 : index
    %c2_101 = arith.constant 2 : index
    %c0_102 = arith.constant 0 : index
    %60 = vector.load %arg10[%c1_100, %c2_101, %c0_102] : memref<18x18x128xbf16, #tpu.memory_space<vmem>>, vector<16x16x128xbf16>
    %c2_103 = arith.constant 2 : index
    %c0_104 = arith.constant 0 : index
    %c0_105 = arith.constant 0 : index
    %61 = vector.load %arg10[%c2_103, %c0_104, %c0_105] : memref<18x18x128xbf16, #tpu.memory_space<vmem>>, vector<16x16x128xbf16>
    %c2_106 = arith.constant 2 : index
    %c1_107 = arith.constant 1 : index
    %c0_108 = arith.constant 0 : index
    %62 = vector.load %arg10[%c2_106, %c1_107, %c0_108] : memref<18x18x128xbf16, #tpu.memory_space<vmem>>, vector<16x16x128xbf16>
    %c2_109 = arith.constant 2 : index
    %c2_110 = arith.constant 2 : index
    %c0_111 = arith.constant 0 : index
    %63 = vector.load %arg10[%c2_109, %c2_110, %c0_111] : memref<18x18x128xbf16, #tpu.memory_space<vmem>>, vector<16x16x128xbf16>
    %64 = tpu.concatenate %55, %56, %57, %58, %59, %60, %61, %62, %63 in 2 : vector<16x16x128xbf16>, vector<16x16x128xbf16>, vector<16x16x128xbf16>, vector<16x16x128xbf16>, vector<16x16x128xbf16>, vector<16x16x128xbf16>, vector<16x16x128xbf16>, vector<16x16x128xbf16>, vector<16x16x128xbf16> -> vector<16x16x1152xbf16>
    %65 = vector.shape_cast %64 : vector<16x16x1152xbf16> to vector<256x1152xbf16>
    %c0_112 = arith.constant 0 : index
    %c0_113 = arith.constant 0 : index
    %66 = vector.load %arg6[%c0_112, %c0_113] : memref<1152x8xbf16, #tpu.memory_space<vmem>>, vector<1152x8xbf16>
    %cst_114 = arith.constant dense<0.000000e+00> : vector<256x8xf32>
    %67 = tpu.matmul %65, %66, %cst_114 {dimension_numbers = #tpu.dot_dimension_numbers<[1], [0], [0], [1], [0, 0, 1, 1], [], []>} : vector<256x1152xbf16>, vector<1152x8xbf16>, vector<256x8xf32> -> vector<256x8xf32>
    %c0_115 = arith.constant 0 : index
    %c0_116 = arith.constant 0 : index
    %68 = vector.load %arg7[%c0_115, %c0_116] : memref<1x8xf32, #tpu.memory_space<vmem>>, vector<1x8xf32>
    %69 = vector.broadcast %68 : vector<1x8xf32> to vector<256x8xf32>
    %70 = arith.addf %67, %69 : vector<256x8xf32>
    %71 = vector.extract_strided_slice %70 {offsets = [0, 0], sizes = [256, 3], strides = [1, 1]} : vector<256x8xf32> to vector<256x3xf32>
    %72 = vector.shape_cast %71 : vector<256x3xf32> to vector<1x16x16x3xf32>
    %c0_117 = arith.constant 0 : index
    %c0_118 = arith.constant 0 : index
    %c0_119 = arith.constant 0 : index
    %c0_120 = arith.constant 0 : index
    %73 = vector.load %arg8[%c0_117, %c0_118, %c0_119, %c0_120] : memref<1x16x16x3xf32, #tpu.memory_space<vmem>>, vector<1x16x16x3xf32>
    tpu.vector_store %arg8[%c0_117, %c0_118, %c0_119, %c0_120], %72 {strides = array<i32>} : memref<1x16x16x3xf32, #tpu.memory_space<vmem>>, vector<1x16x16x3xf32>,
    return
  }
  func.func @transform_0(%arg0: i32) -> (i32, i32, i32, i32) {
    %c0_i32 = arith.constant 0 : i32
    %c0_i32_0 = arith.constant 0 : i32
    %c0_i32_1 = arith.constant 0 : i32
    %c0_i32_2 = arith.constant 0 : i32
    return %arg0, %c0_i32, %c0_i32_0, %c0_i32_1 : i32, i32, i32, i32
  }
  func.func @transform_1(%arg0: i32) -> (i32, i32) {
    %c0_i32 = arith.constant 0 : i32
    %c0_i32_0 = arith.constant 0 : i32
    %c0_i32_1 = arith.constant 0 : i32
    return %c0_i32, %c0_i32_0 : i32, i32
  }
  func.func @transform_2(%arg0: i32) -> (i32, i32) {
    %c0_i32 = arith.constant 0 : i32
    %c0_i32_0 = arith.constant 0 : i32
    %c0_i32_1 = arith.constant 0 : i32
    return %c0_i32, %c0_i32_0 : i32, i32
  }
  func.func @transform_3(%arg0: i32) -> (i32, i32) {
    %c0_i32 = arith.constant 0 : i32
    %c0_i32_0 = arith.constant 0 : i32
    %c0_i32_1 = arith.constant 0 : i32
    return %c0_i32, %c0_i32_0 : i32, i32
  }
  func.func @transform_4(%arg0: i32) -> (i32, i32) {
    %c0_i32 = arith.constant 0 : i32
    %c0_i32_0 = arith.constant 0 : i32
    %c0_i32_1 = arith.constant 0 : i32
    return %c0_i32, %c0_i32_0 : i32, i32
  }
  func.func @transform_5(%arg0: i32) -> (i32, i32) {
    %c0_i32 = arith.constant 0 : i32
    %c0_i32_0 = arith.constant 0 : i32
    %c0_i32_1 = arith.constant 0 : i32
    return %c0_i32, %c0_i32_0 : i32, i32
  }
  func.func @transform_6(%arg0: i32) -> (i32, i32) {
    %c0_i32 = arith.constant 0 : i32
    %c0_i32_0 = arith.constant 0 : i32
    %c0_i32_1 = arith.constant 0 : i32
    return %c0_i32, %c0_i32_0 : i32, i32
  }
  func.func @transform_7(%arg0: i32) -> (i32, i32, i32, i32) {
    %c0_i32 = arith.constant 0 : i32
    %c0_i32_0 = arith.constant 0 : i32
    %c0_i32_1 = arith.constant 0 : i32
    %c0_i32_2 = arith.constant 0 : i32
    return %arg0, %c0_i32, %c0_i32_0, %c0_i32_1 : i32, i32, i32, i32
  }
}

</mosaic_0001>

<bundles_post_ra>
// kernel: fcn_forward.3
= control target key start
LH: loop header
LB: loop body
LE: loop exit
PB: predicated region body
PF: predicated region fallthrough
CT: control target
= control target key end

     0   :  { %8 = vsyncpa [#allocation3], 0  ;;  %s927_s0 = inlined_call_operand.vmem [shape: f32[2,3,16,16], index: 0, kind: input, shape index: {}]   ;;  %s928_s1 = inlined_call_operand.vmem [shape: f32[32,16], index: 1, kind: input, shape index: {}]   ;;  %s929_s2 = inlined_call_operand.vmem [shape: f32[16,32], index: 2, kind: input, shape index: {}]   ;;  %s930_s3 = inlined_call_operand.hbm [shape: f32[2,3,32,32], index: 3, kind: output, shape index: {}]  }
   0x1   :  { %10 = vsyncpa [#allocation3 + $0x1], 0  ;;  %s761_s12 = smov 0   ;;  %s763_s13 = smov 0  }
   0x2   :  { %s765_s14 = smov 0   ;;  %s767_s15 = smov 0  }
   0x3   :  { %s769_s16 = smov 0   ;;  %s771_s17 = smov 0  }
   0x4   :  { %s773_s18 = smov 0   ;;  %s775_s19 = smov 0  }
   0x5 LB: > { %s506_s20 = sadd.s32 4294967295, %s736_s19   ;;  %s507_s21 = sadd.s32 4294967294, %s736_s19   ;;  %s736_s19 = sphi %s775_s19, %s16_s19   ;;  %s732_s18 = sphi %s773_s18, %s939_s18   ;;  %s728_s17 = sphi %s771_s17, %s938_s17   ;;  %s724_s16 = sphi %s769_s16, %s937_s16   ;;  %s720_s15 = sphi %s767_s15, %s936_s15   ;;  %s716_s14 = sphi %s765_s14, %s935_s14   ;;  %s712_s13 = sphi %s763_s13, %s934_s13   ;;  %s708_s12 = sphi %s761_s12, %s933_s12  }
   0x6   : > { %s25_s22 = sadd.s32 1, %s728_s17  ;;  %s28_s23 = sadd.s32 1, %s732_s18 }
   0x7   : > { %p26_p0 = scmp.ge.s32.totalorder %s25_s22, 3  ;;  %p117_p1 = scmp.ne.s32.totalorder %s716_s14, %s712_s13 }
   0x8   : > { %p118_p2 = scmp.eq.s32.totalorder %s506_s20, 5  ;;  %p123_p5 = scmp.ne.s32.totalorder %s712_s13, %s708_s12 }
   0x9   : > { %s941_s22 = smov (%p26_p0, %s25_s22), 0  ;;  %s943_s23 = smov (!%p26_p0, %s28_s23), %s732_s18 }
   0xa   : > { %s103_s24 = ssub.s32 %s728_s17, %s941_s22  ;;  %p812_p3 = por %p118_p2, %p117_p1 }
   0xb   : > { %p30_p4 = scmp.ge.s32.totalorder %s943_s23, 2  ;;  %p124_p6 = scmp.eq.s32.totalorder %s507_s21, 5 }
   0xc   : > { %p510_p7 = scmp.ge.s32.totalorder %s736_s19, 1  ;;  %p160_p9 = scmp.lt.s32.totalorder %s736_s19, 7 }
   0xd   : > { %s945_s23 = smov (%p30_p4, %s943_s23), 0  ;;  %p821_p8 = por %p124_p6, %p123_p5 }
   0xe   : > { %s102_s27 = ssub.s32 %s732_s18, %s945_s23  ;;  %s107_s28 = sadd.s32 1, %s716_s14 }
   0xf   : > { %s104_s29 = sor.u32 %s103_s24, %s102_s27  ;;  %p161_p10 = pnand %p510_p7, %p160_p9 }
  0x10   : > { %p105_p11 = scmp.eq.s32.totalorder %s104_s29, 0  ;;  %p188_p12 = scmp.lt.s32.totalorder (!%p161_p10), %s724_s16, 1  ;;  %v199_v0 = vld [vmem:[%s928_s1] sm:$0xff] (!%p161_p10)  ;;  %vm203_vm0 = vcmask (!%p161_p10), 130048   ;;  %v302_v2 = vld [vmem:[%s929_s2 + $0x8] sm:$0xff] (!%p161_p10)  ;;  %v201_v8 = vld [vmem:[%s928_s1 + $0x10] sm:$0xff] (!%p161_p10) }
  0x11   : > { %164 = sbr.rel (%p161_p10) target bundleno = 484 (0x1e4), region = 32  ;;  %p190_p13 = scmp.lt.s32.totalorder (!%p161_p10), %s720_s15, 2  ;;  %543 = vmatprep.mubr.msk.f32.mxu0 (!%p161_p10), %vm203_vm0, %v199_v0  ;;  %v301_v1 = vld [vmem:[%s929_s2] sm:$0xff] (!%p161_p10)  ;;  %v200_v7 = vld [vmem:[%s928_s1 + $0x8] sm:$0xff] (!%p161_p10)  ;;  %v202_v9 = vld [vmem:[%s928_s1 + $0x18] sm:$0xff] (!%p161_p10)  ;;  %vm400_vm1 = vcmask (!%p161_p10), 261120  }
  0x12   : > { %s830_s30 = scalar_select %p105_p11, %s716_s14, %s107_s28  }
  0x13   : > { %v563_v3 = vpack.c.bf16 (!%p161_p10), %v302_v2, %v301_v1  ;;  %s738_s8 = smov (!%p161_p10), [#allocation2]  }
  0x14   : > { %s646_s9 = sshll.u32 (!%p161_p10), %s738_s8, 4  ;;  %s647_s9 = int_to_ptr.vmem [resolvable:$false] %s646_s9 }
  0x15   : > { %564 = vmatprep.subr.bf16.mxu1 (!%p161_p10), %v563_v3 }
  0x16   : > { %566 = vmatpush3.bf16.msra.mxu1 (!%p161_p10), %v563_v3 }
  0x18   : > { %s189_s10 = scalar_select %p188_p12, %s724_s16, 1 }
  0x19   : > { %s191_s11 = scalar_select %p190_p13, %s720_s15, 2 }
  0x1a   : > { %s567_s20 = smul.u32 6, %s189_s10  ;;  %s648_s10 = scalar_lea.vmem %s647_s9, 1024 }
  0x1b   : > { %s512_s21 = sshll.u32 %s191_s11, 1  ;;  %s185_s11 = sand.u32 1, %s712_s13  }
  0x1c   : > { %s194_s24 = sadd.s32 %s567_s20, %s512_s21  ;;  %s568_s20 = smul.u32 12, %s724_s16 }
  0x1d   : > { %s513_s27 = sshll.u32 %s194_s24, 3  ;;  %s523_s21 = sshll.u32 %s720_s15, 2 }
  0x1e   : > { %s196_s4 = scalar_lea.vmem %s927_s0, %s513_s27  ;;  %s511_s24 = sshll.u32 %s185_s11, 5 }
  0x1f   : > { %v197_v4 = vld [vmem:[%s196_s4] sm:$0xff]  ;;  %v198_v5 = vld [vmem:[%s196_s4 + $0x8] sm:$0xff]  ;;  %s418_s27 = sadd.s32 %s568_s20, %s523_s21  ;;  %s187_s28 = scalar_lea.vmem [#allocation2], %s511_s24 }
  0x20   : > { %v559_v6 = vpack.c.bf16 %v198_v5, %v197_v4  ;;  %s421_s29 = sshll.u32 %s187_s28, 4  ;;  %s524_s4 = sshll.u32 %s418_s27, 7  ;;  %s868_s29 = int_to_ptr.vmem [resolvable:$true] %s421_s29 }
  0x21   : > { %s873_s15 = scalar_lea.hbm %s930_s3, %s524_s4  ;;  %s875_s16 = scalar_lea.sflag [#allocation3], %s185_s11 }
  0x22   : > { %560 = vmatprep.subr.bf16.mxu0 %v559_v6  ;;  %s642_s7 = scalar_lea.vmem %s868_s29, 512  ;;  %p649_p4 = scmp.lt.s32.totalorder %s868_s29, %s647_s9 }
  0x23   : > { %562 = vmatpush3.bf16.msra.mxu0 %v559_v6  ;;  %p643_p0 = scmp.ne.s32.totalorder %s868_s29, %s642_s7  ;;  %p650_p5 = scmp.lt.s32.totalorder %s648_s10, %s642_s7 }
  0x25   : > { %p644_p1 = pnand %p643_p0, %p812_p3  ;;  %p651_p6 = por %p650_p5, %p649_p4 }
  0x26   : > { %544 = vmatmul.mubr.msk.f32.vlgmr.msra.gmra.mrb[0].mxu0 %vm203_vm0, %v200_v7 }
  0x27   : > { %546 = vmatprep.mubr.msk.f32.mxu0 %vm203_vm0, %v201_v8  ;;  %p645_p2 = pneg %p644_p1 }
  0x29   : > { %p652_p7 = pnand %p651_p6, %p645_p2 }
  0x2a   : > { %547 = vmatmul.mubr.msk.f32.gmra.mrb[2].mxu0 %vm203_vm0, %v202_v9 }
  0xf9   : > { %v545_v10 = vpop.f32.mrb[0].mxu0 }
  0xfa   : > { %v282_v11 = vpop.f32.mrb[1].mxu0 }
  0xfb   : > { %553 = vmatprep.mubr.msk.f32.mxu1 %vm203_vm0, %v282_v11 }
  0xfc   : > { %554 = vmatmul.mubr.msk.f32.vlgmr.msra.gmra.mrb[0].mxu1 %vm203_vm0, %v545_v10 }
  0xfd   : > { %v548_v12 = vpop.f32.mrb[2].mxu0 }
  0xfe   : > { %v292_v13 = vpop.f32.mrb[3].mxu0 }
  0xff   : > { %556 = vmatprep.mubr.msk.f32.mxu1 %vm203_vm0, %v292_v13 }
 0x100   : > { %557 = vmatmul.mubr.msk.f32.gmra.mrb[2].mxu1 %vm203_vm0, %v548_v12 }
 0x1cf   : > { %v555_v14 = vpop.f32.mrb[0].mxu1 }
 0x1d0   : > { %402 = vst.msk [vmem:[%s187_s28 + $0x8] sm:$0xff] %vm400_vm1, %v555_v14  ;;  %v381_v15 = vpop.f32.mrb[1].mxu1 }
 0x1d1   : > { %401 = vst.msk [vmem:[%s187_s28] sm:$0xff] %vm400_vm1, %v381_v15 }
 0x1d3   : > { %v558_v16 = vpop.f32.mrb[2].mxu1 }
 0x1d4   : > { %404 = vst.msk [vmem:[%s187_s28 + $0x18] sm:$0xff] %vm400_vm1, %v558_v16  ;;  %v391_v17 = vpop.f32.mrb[3].mxu1 }
 0x1d5   : > { %403 = vst.msk [vmem:[%s187_s28 + $0x10] sm:$0xff] %vm400_vm1, %v391_v17 }
 0x1d6   : > { %655 = shalt.err (!%p652_p7)
}
 0x1d7   : > { %s656_s11 = scalar_lea.hbm %s873_s15, 512  ;;  %s660_s24 = scalar_lea.hbm %s930_s3, 3072 }
 0x1d8   : > { %p657_p9 = scmp.ne.s32.totalorder %s873_s15, %s656_s11  ;;  %p661_p12 = scmp.lt.u32.totalorder %s873_s15, %s930_s3 }
 0x1d9   : > { %p662_p13 = scmp.lt.u32.totalorder %s660_s24, %s656_s11  ;;  %p664_p1 = scmp.lt.u32.totalorder %s656_s11, %s873_s15 }
 0x1da   : > { %p658_p10 = pnand %p657_p9, %p812_p3 }
 0x1db   : > { %p663_p0 = por %p662_p13, %p661_p12 }
 0x1dc   : > { %p659_p11 = pneg %p658_p10 }
 0x1dd   : > { %p665_p2 = por %p664_p1, %p663_p0 }
 0x1df   : > { %p666_p4 = pnand %p665_p2, %p659_p11 }
 0x1e1   : > { %669 = shalt.err (!%p666_p4)
}
 0x1e2   : > { %s739_s4 = smov 128   ;;  %s740_s5 = smov 8  }
 0x1e3   : > { %569 = dma.vmem_to_hbm [thread:$0]  (%p812_p3), %s868_s29, 512, %s873_s15, %s875_s16, %s739_s4, %s739_s4, %s740_s5  }
 0x1e4 PF: > { %p575_p5 = scmp.ge.s32.totalorder %s736_s19, 2  ;;  %s436_s6 = sand.u32 1, %s708_s12  }
 0x1e5   : > { %s437_s7 = scalar_lea.sflag [#allocation3], %s436_s6 }
 0x1e6   : > { %p572_p6 = pnand %p575_p5, %p821_p8 }
 0x1e8   : > { %703 = dma.done.wait (!%p572_p6), %s437_s7, 512  }
 0x1e9   : > { %705 = vsyncadd (!%p572_p6), %s437_s7, 4294966784  ;;  %s16_s19 = sadd.s32 1, %s736_s19   ;;  %s933_s12 = smov %s712_s13 }
 0x1ea   : > { %p13_p7 = scmp.ge.s32.totalorder %s16_s19, 8   ;;  %s934_s13 = smov %s716_s14 }
 0x1eb   : > { %s935_s14 = smov %s830_s30  ;;  %s936_s15 = smov %s728_s17 }
 0x1ec   : > { %s937_s16 = smov %s732_s18  ;;  %s938_s17 = smov %s941_s22 }
 0x1ed   : > { %s939_s18 = smov %s945_s23  ;;  %15 = sbr.rel (!%p13_p7) target bundleno = 5 (0x5), region = 67 }
 0x1f4   :  { %442 = vsyncpa [#allocation3], 1 }
 0x1f5   :  { %444 = vsyncpa [#allocation3 + $0x1], 1 }

// kernel: fcn_forward.2
= control target key start
LH: loop header
LB: loop body
LE: loop exit
PB: predicated region body
PF: predicated region fallthrough
CT: control target
= control target key end

     0   :  { %s11765_s24 = smov 0   ;;  %s16147_s0 = inlined_call_operand.vmem [shape: bf16[2,18,18,4], index: 0, kind: input, shape index: {}]   ;;  %s16148_s1 = inlined_call_operand.vmem [shape: bf16[36,64], index: 1, kind: input, shape index: {}]   ;;  %s16149_s2 = inlined_call_operand.vmem [shape: f32[1,64], index: 2, kind: input, shape index: {}]   ;;  %s16150_s3 = inlined_call_operand.vmem [shape: bf16[576,128], index: 3, kind: input, shape index: {}]   ;;  %s16151_s4 = inlined_call_operand.vmem [shape: f32[1,128], index: 4, kind: input, shape index: {}]   ;;  %s16152_s5 = inlined_call_operand.vmem [shape: bf16[1152,8], index: 5, kind: input, shape index: {}]   ;;  %s16153_s6 = inlined_call_operand.vmem [shape: f32[1,8], index: 6, kind: input, shape index: {}]   ;;  %s16154_s7 = inlined_call_operand.vmem [shape: f32[2,16,16,3], index: 7, kind: output, shape index: {}]  }
   0x1 LB: > { %s9394_s25 = sadd.s32 4294967295, %s11713_s24   ;;  %p9398_p0 = scmp.ge.s32.totalorder %s11713_s24, 1  ;;  %s11713_s24 = sphi %s11765_s24, %s17_s24  }
   0x2   : > { %p237_p1 = scmp.lt.s32.totalorder %s11713_s24, 3 }
   0x4   : > { %p238_p2 = pnand %p9398_p0, %p237_p1 }
   0x6   : > { %241 = sbr.rel (%p238_p2) target bundleno = 1569 (0x621), region = 48 }
   0xd   : > { %p269_p3 = scmp.lt.s32.totalorder %s9394_s25, 1  ;;  %vm875_vm0 = vcmask 1046528   ;;  %s11715_s30 = smov 12   ;;  %vm602_vm1 = vsmask.f32 7424  ;;  %v11205_v58 = vld [vmem:[%s16148_s1] sm:$0xff]  }
   0xe   : > { %s11716_s8 = smov 20   ;;  %s11717_s9 = smov 8   ;;  %v11210_v63 = vld [vmem:[%s16148_s1 + $0x8] sm:$0xff]   ;;  %10974 = vmatprep.subr.bf16.mxu0 %v11205_v58  ;;  %11100 = vmatprep.subr.bf16.mxu1 %v11205_v58  ;;  %vm2304_vm2 = vcmask 1041408   ;;  %vm1980_vm3 = vcmask 31744   ;;  %vm2013_vm4 = vcmask 64512  }
   0xf   : > { %s16458_s25 = smov (!%p269_p3, %s9394_s25), 1  ;;  %s11718_s14 = smov 4   ;;  %10975 = vmatpush3.bf16.msra.mxu0 %v11205_v58  ;;  %11103 = vmatpush3.bf16.msra.mxu1 %v11205_v58  ;;  %vm2046_vm5 = vcmask 97280   ;;  %vm2079_vm6 = vcmask 130048   ;;  %vm2112_vm7 = vcmask 162816   ;;  %vm2145_vm8 = vcmask 195584  }
  0x10   : > { %s11108_s26 = smul.u32 216, %s16458_s25  ;;  %10976 = vmatprep.subr.bf16.mxu0 %v11210_v63  ;;  %11101 = vmatprep.subr.bf16.mxu1 %v11210_v63  ;;  %s11719_s15 = smov 16   ;;  %vm2178_vm9 = vcmask 228352   ;;  %vm2211_vm10 = vcmask 261120   ;;  %vm2271_vm11 = vcmask 293888   ;;  %vm2501_vm12 = vcmask 519168  }
  0x11   : > { %s11720_s16 = smov 24   ;;  %s11721_s17 = smov 28   ;;  %vm2504_vm13 = vcmask 516096   ;;  %vm2978_vm14 = vsmask.f32 7938 }
  0x12   : > { %s11779_s29 = scalar_lea.vmem %s16147_s0, %s11108_s26  ;;  %s11722_s18 = smov 32   ;;  %vm2653_vm15 = vsmask.f32 256 }
  0x13   : > { %v9404_v0 = vld [vmem:[%s11779_s29 + $0x18] sm:$0xf]  ;;  %v9405_v1 = vld [vmem:[%s11779_s29 + $0x1c] sm:$0xf]  ;;  %v9402_v5 = vld [vmem:[%s11779_s29 + $0xc] sm:$0xf]  ;;  %10977 = vmatpush3.bf16.msra.mxu0 %v11210_v63  ;;  %11104 = vmatpush3.bf16.msra.mxu1 %v11210_v63 }
  0x14   : > { %v9451_v2 = vld [vmem:[%s11779_s29 + $0x18] sm:$0xe]  ;;  %v11784_v3 = vcombine.low %v9404_v0, %v9405_v1  ;;  %v9403_v6 = vld [vmem:[%s11779_s29 + $0x10] sm:$0xf]  ;;  %v9450_v7 = vld [vmem:[%s11779_s29 + $0xc] sm:$0xe] }
  0x15   : > { %v9611_v4 = vcombine.low %v9451_v2, %v9405_v1  ;;  %v11789_v8 = vcombine.low %v9402_v5, %v9403_v6  ;;  %v9610_v9 = vcombine.low %v9450_v7, %v9403_v6  ;;  %v11792_v10 = vld [vmem:[%s11779_s29 + $0x14] ss:$0 sps:$4 sm:$0x11]   ;;  %v281_v12 = vld [vmem:[%s11779_s29 + $0x4] sm:$0xf]  ;;  %s11724_s21 = smov 64  }
  0x16   : > { %1038 = vrot.lane.b32.xlu1 %v11784_v3, %s11715_s30  ;;  %v1131_v11 = vshll.u32 %v11784_v3, 16  ;;  %v1389_v15 = vrot.slane %v11792_v10, 1  ;;  %v328_v16 = vld [vmem:[%s11779_s29] sm:$0xe]  ;;  %v1129_v21 = vshrl.u32 %v11784_v3, 16  ;;  %v1124_v61 = vshll.u32 %v11792_v10, 16 }
  0x17   : > { %1036 = vrot.lane.b32.xlu0 %v11789_v8, %s11715_s30  ;;  %v1119_v13 = vshll.u32 %v11789_v8, 16  ;;  %v1388_v14 = vrot.slane %v9610_v9, 1  ;;  %v1391_v17 = vrot.slane %v9611_v4, 1  ;;  %v11132_v18 = vld [vmem:[%s11779_s29 + $0x8] ss:$0 sps:$4 sm:$0x11]   ;;  %v9562_v19 = vcombine.low %v328_v16, %v281_v12 }
  0x18   : > { %v280_v20 = vld [vmem:[%s11779_s29] sm:$0xf]  ;;  %v282_v24 = vld [vmem:[%s11779_s29 + $0xc] sm:$0xf]  ;;  %v283_v25 = vld [vmem:[%s11779_s29 + $0x10] sm:$0xf] }
  0x19   : > { %v1390_v22 = vsel %vm875_vm0, %v1388_v14, %v1389_v15  ;;  %v11807_v23 = vcombine.low %v280_v20, %v281_v12  ;;  %v876_v26 = vrot.slane %v9562_v19, 1  ;;  %v877_v27 = vrot.slane %v11132_v18, 1  ;;  %v329_v28 = vld [vmem:[%s11779_s29 + $0xc] sm:$0xe]  ;;  %v9468_v43 = vld [vmem:[%s11779_s29 + $0x24] sm:$0xf] }
  0x1a   : > { %v11812_v29 = vcombine.low %v282_v24, %v283_v25  ;;  %v611_v30 = vshll.u32 %v11132_v18, 16  ;;  %v11136_v31 = vld [vmem:[%s11779_s29 + $0x14] ss:$0 sps:$4 sm:$0x11]   ;;  %v9563_v32 = vcombine.low %v329_v28, %v283_v25  ;;  %v1133_v35 = vrot.slane %v1131_v11, 1  ;;  %s10174_s26 = sshll.u32 %s16458_s25, 8 }
  0x1b   : > { %1436 = vrot.lane.b32.xlu0 %v1390_v22, %s11716_s8  ;;  %v604_v33 = vshrl.u32 %v11807_v23, 16  ;;  %v606_v34 = vshll.u32 %v11807_v23, 16  ;;  %v878_v36 = vsel %vm875_vm0, %v876_v26, %v877_v27  ;;  %v11138_v38 = vld [vmem:[%s11779_s29 + $0x20] ss:$0 sps:$4 sm:$0x11]   ;;  %v880_v40 = vrot.slane %v11136_v31, 1 }
  0x1c   : > { %v613_v37 = vrot.slane %v611_v30, 1  ;;  %924 = vrot.lane.b32.xlu1 %v878_v36, %s11717_s9  ;;  %v879_v39 = vrot.slane %v9563_v32, 1  ;;  %v616_v42 = vshrl.u32 %v11812_v29, 16  ;;  %v1392_v44 = vrot.slane %v11138_v38, 1  ;;  %v11825_v48 = vld [vmem:[%s11779_s29 + $0x28] sm:$0xf] }
  0x1d   : > { %v608_v41 = vrot.slane %v606_v34, 1  ;;  %v618_v45 = vshll.u32 %v11812_v29, 16  ;;  %v623_v46 = vshll.u32 %v11136_v31, 16  ;;  %v1136_v47 = vshll.u32 %v11138_v38, 16  ;;  %v9466_v53 = vld [vmem:[%s11779_s29 + $0x18] sm:$0xf] }
  0x1e   : > { %v881_v49 = vsel %vm875_vm0, %v879_v39, %v880_v40  ;;  %v1117_v51 = vshrl.u32 %v11789_v8, 16  ;;  %v1121_v52 = vrot.slane %v1119_v13, 1  ;;  %v1134_v56 = vor.u32 %v1133_v35, %v1129_v21  ;;  %v11831_v57 = vld [vmem:[%s11779_s29 + $0x1c] sm:$0xf]  ;;  %v286_v10 = vld [vmem:[%s11779_s29 + $0x24] sm:$0xf] }
  0x1f   : > { %v609_v50 = vor.u32 %v608_v41, %v604_v33  ;;  %v620_v54 = vrot.slane %v618_v45, 1  ;;  %v625_v55 = vrot.slane %v623_v46, 1  ;;  %v1138_v60 = vrot.slane %v1136_v47, 1  ;;  %v11847_v3 = vld [vmem:[%s11779_s29 + $0x2c] ss:$0 sps:$4 sm:$0x11]  }
  0x20   : > { %926 = vrot.lane.b32.xlu1 %v881_v49, %s11717_s9  ;;  %v9627_v62 = vcombine.low %v9468_v43, %v11825_v48  ;;  %v1393_v0 = vsel %vm875_vm0, %v1391_v17, %v1392_v44  ;;  %v9626_v2 = vcombine.low %v9466_v53, %v11831_v57  ;;  %v1122_v4 = vor.u32 %v1121_v52, %v1117_v51  ;;  %v11850_v7 = vld [vmem:[%s11779_s29 + $0x20] ss:$0 sps:$4 sm:$0x11]   ;;  %v9515_v12 = vld [vmem:[%s11779_s29 + $0x24] sm:$0xe] }
  0x21   : > { %v614_v59 = vsel %vm602_vm1, %v609_v50, %v613_v37  ;;  %v621_v1 = vor.u32 %v620_v54, %v616_v42  ;;  %v1126_v5 = vrot.slane %v1124_v61, 1  ;;  %v1139_v11 = vsel %vm602_vm1, %v1134_v56, %v1138_v60  ;;  %v9514_v13 = vld [vmem:[%s11779_s29 + $0x18] sm:$0xe]  ;;  %v11859_v14 = vld [vmem:[%s11779_s29 + $0x28] sm:$0xf] }
  0x22   : > { %795 = vrot.lane.b32.xlu0 %v614_v59, %s11718_s14  ;;  %v1643_v6 = vshll.u32 %v9627_v62, 16  ;;  %v1631_v9 = vshll.u32 %v9626_v2, 16  ;;  %v1641_v15 = vshrl.u32 %v9627_v62, 16  ;;  %v1648_v17 = vshll.u32 %v11847_v3, 16  ;;  %v284_v25 = vld [vmem:[%s11779_s29 + $0x18] sm:$0xf] }
  0x23   : > { %v626_v8 = vsel %vm602_vm1, %v621_v1, %v625_v55  ;;  %v1629_v18 = vshrl.u32 %v9626_v2, 16  ;;  %v1127_v19 = vsel %vm602_vm1, %v1122_v4, %v1126_v5  ;;  %v1636_v21 = vshll.u32 %v11850_v7, 16  ;;  %v285_v26 = vld [vmem:[%s11779_s29 + $0x1c] sm:$0xf]  ;;  %v331_v44 = vld [vmem:[%s11779_s29 + $0x24] sm:$0xe] }
  0x24   : > { %1438 = vrot.lane.b32.xlu1 %v1393_v0, %s11716_s8  ;;  %v1645_v16 = vrot.slane %v1643_v6, 1  ;;  %v1633_v20 = vrot.slane %v1631_v9, 1  ;;  %v11866_v22 = vcombine.low %v286_v10, %v11859_v14  ;;  %v9659_v24 = vcombine.low %v9515_v12, %v11825_v48  ;;  %v11874_v28 = vld [vmem:[%s11779_s29 + $0x2c] ss:$0 sps:$4 sm:$0x11]  }
  0x25   : > { %v9658_v27 = vcombine.low %v9514_v13, %v11831_v57  ;;  %v1650_v31 = vrot.slane %v1648_v17, 1  ;;  %v11878_v33 = vcombine.low %v284_v25, %v285_v26  ;;  %v11881_v34 = vld [vmem:[%s11779_s29 + $0x20] ss:$0 sps:$4 sm:$0x11]   ;;  %v1638_v36 = vrot.slane %v1636_v21, 1 }
  0x26   : > { %797 = vrot.lane.b32.xlu0 %v626_v8, %s11718_s14  ;;  %16205 = vst [vmem:[#allocation4_spill] sm:$0xff] %v11866_v22  ;;  %v1646_v30 = vor.u32 %v1645_v16, %v1641_v15  ;;  %v642_v32 = vshll.u32 %v11866_v22, 16  ;;  %v1634_v35 = vor.u32 %v1633_v20, %v1629_v18  ;;  %v1903_v37 = vrot.slane %v9659_v24, 1  ;;  %v330_v48 = vld [vmem:[%s11779_s29 + $0x18] sm:$0xe] }
  0x27   : > { %16206 = vst [vmem:[#allocation5_spill] sm:$0xff] %v11878_v33  ;;  %v1904_v38 = vrot.slane %v11847_v3, 1  ;;  %v630_v39 = vshll.u32 %v11878_v33, 16  ;;  %v1900_v40 = vrot.slane %v9658_v27, 1  ;;  %v1901_v41 = vrot.slane %v11850_v7, 1 }
  0x28   : > { %1310 = vrot.lane.b32.xlu1 %v1139_v11, %s11719_s15  ;;  %v640_v42 = vshrl.u32 %v11866_v22, 16  ;;  %v647_v43 = vshll.u32 %v11874_v28, 16  ;;  %v1651_v45 = vsel %vm602_vm1, %v1646_v30, %v1650_v31  ;;  %v644_v46 = vrot.slane %v642_v32, 1  ;;  %v9408_v49 = vld [vmem:[%s11779_s29 + $0x30] sm:$0xf] }
  0x29   : > { %v635_v47 = vshll.u32 %v11881_v34, 16  ;;  %v1639_v50 = vsel %vm602_vm1, %v1634_v35, %v1638_v36  ;;  %v628_v51 = vshrl.u32 %v11878_v33, 16  ;;  %v632_v52 = vrot.slane %v630_v39, 1  ;;  %v9409_v53 = vld [vmem:[%s11779_s29 + $0x34] sm:$0xf] }
  0x2a   : > { %1308 = vrot.lane.b32.xlu0 %v1127_v19, %s11719_s15  ;;  %v9406_v54 = vld [vmem:[%s11779_s29 + $0x24] sm:$0xf]  ;;  %v9407_v55 = vld [vmem:[%s11779_s29 + $0x28] sm:$0xf]  ;;  %v1905_v56 = vsel %vm875_vm0, %v1903_v37, %v1904_v38  ;;  %v1902_v57 = vsel %vm875_vm0, %v1900_v40, %v1901_v41  ;;  %v645_v58 = vor.u32 %v644_v46, %v640_v42  ;;  %v649_v59 = vrot.slane %v647_v43, 1 }
  0x2b   : > { %v9565_v60 = vcombine.low %v331_v44, %v11859_v14  ;;  %v9581_v61 = vcombine.low %v9408_v49, %v9409_v53  ;;  %v637_v63 = vrot.slane %v635_v47, 1  ;;  %v9564_v0 = vcombine.low %v330_v48, %v285_v26  ;;  %v11156_v11 = vld [vmem:[%s11779_s29 + $0x2c] ss:$0 sps:$4 sm:$0x11]   ;;  %v9453_v12 = vld [vmem:[%s11779_s29 + $0x30] sm:$0xe] }
  0x2c   : > { %1550 = vrot.lane.b32.xlu1 %v9627_v62, %s11720_s16  ;;  %v633_v62 = vor.u32 %v632_v52, %v628_v51  ;;  %v9580_v1 = vcombine.low %v9406_v54, %v9407_v55  ;;  %v650_v3 = vsel %vm602_vm1, %v645_v58, %v649_v59  ;;  %v886_v5 = vrot.slane %v11874_v28, 1  ;;  %v9452_v13 = vld [vmem:[%s11779_s29 + $0x24] sm:$0xe]  ;;  %v9472_v16 = vld [vmem:[%s11779_s29 + $0x3c] sm:$0xf] }
  0x2d   : > { %v885_v4 = vrot.slane %v9565_v60, 1  ;;  %v1155_v6 = vshll.u32 %v9581_v61, 16  ;;  %v882_v8 = vrot.slane %v9564_v0, 1  ;;  %v883_v9 = vrot.slane %v11881_v34, 1  ;;  %v9473_v20 = vld [vmem:[%s11779_s29 + $0x40] sm:$0xf] }
  0x2e   : > { %1548 = vrot.lane.b32.xlu0 %v9626_v2, %s11720_s16  ;;  %v11155_v2 = vld [vmem:[%s11779_s29 + $0x38] ss:$0 sps:$4 sm:$0x11]   ;;  %v638_v7 = vsel %vm602_vm1, %v633_v62, %v637_v63  ;;  %v1143_v10 = vshll.u32 %v9580_v1, 16  ;;  %v1153_v14 = vshrl.u32 %v9581_v61, 16  ;;  %v1141_v19 = vshrl.u32 %v9580_v1, 16 }
  0x2f   : > { %v1160_v15 = vshll.u32 %v11155_v2, 16  ;;  %v887_v17 = vsel %vm875_vm0, %v885_v4, %v886_v5  ;;  %v1157_v18 = vrot.slane %v1155_v6, 1  ;;  %v884_v21 = vsel %vm875_vm0, %v882_v8, %v883_v9  ;;  %v9470_v26 = vld [vmem:[%s11779_s29 + $0x30] sm:$0xf]  ;;  %v9471_v27 = vld [vmem:[%s11779_s29 + $0x34] sm:$0xf] }
  0x30   : > { %1822 = vrot.lane.b32.xlu1 %v1651_v45, %s11721_s17  ;;  %v1145_v24 = vrot.slane %v1143_v10, 1  ;;  %v1148_v25 = vshll.u32 %v11156_v11, 16  ;;  %v9613_v28 = vcombine.low %v9453_v12, %v9409_v53  ;;  %v9612_v30 = vcombine.low %v9452_v13, %v9407_v55  ;;  %v9517_v38 = vld [vmem:[%s11779_s29 + $0x3c] sm:$0xe]  ;;  %v9516_v43 = vld [vmem:[%s11779_s29 + $0x30] sm:$0xe] }
  0x31   : > { %v11924_v31 = vcombine.low %v9472_v16, %v9473_v20  ;;  %v1158_v32 = vor.u32 %v1157_v18, %v1153_v14  ;;  %v1162_v34 = vrot.slane %v1160_v15, 1  ;;  %v11927_v35 = vcombine.low %v9470_v26, %v9471_v27  ;;  %v11931_v39 = vld [vmem:[%s11779_s29 + $0x44] ss:$0 sps:$4 sm:$0x11]   ;;  %v290_v46 = vld [vmem:[%s11779_s29 + $0x3c] sm:$0xf] }
  0x32   : > { %1820 = vrot.lane.b32.xlu0 %v1639_v50, %s11721_s17  ;;  %v1146_v36 = vor.u32 %v1145_v24, %v1141_v19  ;;  %v1150_v37 = vrot.slane %v1148_v25, 1  ;;  %v1397_v40 = vrot.slane %v9613_v28, 1  ;;  %v1398_v41 = vrot.slane %v11155_v2, 1  ;;  %v11938_v47 = vld [vmem:[%s11779_s29 + $0x40] sm:$0xf] }
  0x33   : > { %v1394_v42 = vrot.slane %v9612_v30, 1  ;;  %v1395_v44 = vrot.slane %v11156_v11, 1  ;;  %v1667_v45 = vshll.u32 %v11924_v31, 16  ;;  %v1163_v48 = vsel %vm602_vm1, %v1158_v32, %v1162_v34  ;;  %v11944_v51 = vld [vmem:[%s11779_s29 + $0x38] ss:$0 sps:$4 sm:$0x11]  }
  0x34   : > { %1950 = vrot.lane.b32.xlu1 %v1905_v56, %s11722_s18  ;;  %v9661_v49 = vcombine.low %v9517_v38, %v9473_v20  ;;  %v1655_v50 = vshll.u32 %v11927_v35, 16  ;;  %v1151_v52 = vsel %vm602_vm1, %v1146_v36, %v1150_v37  ;;  %v9660_v53 = vcombine.low %v9516_v43, %v9471_v27  ;;  %v11954_v58 = vld [vmem:[%s11779_s29 + $0x34] sm:$0xf]  ;;  %v11965_v6 = vld [vmem:[%s11779_s29 + $0x44] ss:$0 sps:$4 sm:$0x11]  }
  0x35   : > { %v1672_v54 = vshll.u32 %v11931_v39, 16  ;;  %v1399_v55 = vsel %vm875_vm0, %v1397_v40, %v1398_v41  ;;  %v11950_v56 = vcombine.low %v290_v46, %v11938_v47  ;;  %v1396_v59 = vsel %vm875_vm0, %v1394_v42, %v1395_v44  ;;  %v11972_v9 = vld [vmem:[%s11779_s29 + $0x38] ss:$0 sps:$4 sm:$0x11]   ;;  %v333_v10 = vld [vmem:[%s11779_s29 + $0x3c] sm:$0xe] }
  0x36   : > { %1948 = vrot.lane.b32.xlu0 %v1902_v57, %s11722_s18  ;;  %v288_v57 = vld [vmem:[%s11779_s29 + $0x30] sm:$0xf]  ;;  %v1665_v60 = vshrl.u32 %v11924_v31, 16  ;;  %v1653_v62 = vshrl.u32 %v11927_v35, 16  ;;  %v1657_v63 = vrot.slane %v1655_v50, 1  ;;  %v1660_v0 = vshll.u32 %v11944_v51, 16 }
  0x37   : > { %16207 = vst [vmem:[#allocation6_spill] sm:$0xff] %v11950_v56  ;;  %v1910_v2 = vrot.slane %v11931_v39, 1  ;;  %v1906_v4 = vrot.slane %v9660_v53, 1  ;;  %v1907_v5 = vrot.slane %v11944_v51, 1  ;;  %v666_v8 = vshll.u32 %v11950_v56, 16 }
  0x38   : > { %801 = vrot.lane.b32.xlu1 %v650_v3, %s11718_s14  ;;  %v1674_v3 = vrot.slane %v1672_v54, 1  ;;  %v9412_v11 = vld [vmem:[%s11779_s29 + $0x48] sm:$0xf]  ;;  %v9413_v12 = vld [vmem:[%s11779_s29 + $0x4c] sm:$0xf]  ;;  %v1658_v14 = vor.u32 %v1657_v63, %v1653_v62  ;;  %v664_v18 = vshrl.u32 %v11950_v56, 16  ;;  %v9567_v25 = vcombine.low %v333_v10, %v11938_v47 }
  0x39   : > { %v9410_v15 = vld [vmem:[%s11779_s29 + $0x3c] sm:$0xf]  ;;  %v9411_v16 = vld [vmem:[%s11779_s29 + $0x40] sm:$0xf]  ;;  %v671_v19 = vshll.u32 %v11965_v6, 16  ;;  %v668_v24 = vrot.slane %v666_v8, 1  ;;  %v11987_v27 = vcombine.low %v9412_v11, %v9413_v12 }
  0x3a   : > { %799 = vrot.lane.b32.xlu0 %v638_v7, %s11718_s14  ;;  %v11968_v7 = vcombine.low %v288_v57, %v11954_v58  ;;  %v892_v26 = vrot.slane %v11965_v6, 1  ;;  %v659_v30 = vshll.u32 %v11972_v9, 16  ;;  %v9455_v32 = vld [vmem:[%s11779_s29 + $0x48] sm:$0xe]  ;;  %v11994_v34 = vcombine.low %v9410_v15, %v9411_v16  ;;  %v9454_v38 = vld [vmem:[%s11779_s29 + $0x3c] sm:$0xe] }
  0x3b   : > { %v9476_v39 = vld [vmem:[%s11779_s29 + $0x54] sm:$0xf]  ;;  %v9477_v40 = vld [vmem:[%s11779_s29 + $0x58] sm:$0xf]  ;;  %v669_v44 = vor.u32 %v668_v24, %v664_v18  ;;  %v891_v46 = vrot.slane %v9567_v25, 1  ;;  %v9614_v57 = vcombine.low %v9454_v38, %v9411_v16 }
  0x3c   : > { %930 = vrot.lane.b32.xlu1 %v887_v17, %s11717_s9  ;;  %16208 = vst [vmem:[#allocation7_spill] sm:$0xff] %v11968_v7  ;;  %v1662_v17 = vrot.slane %v1660_v0, 1  ;;  %v654_v20 = vshll.u32 %v11968_v7, 16  ;;  %v652_v28 = vshrl.u32 %v11968_v7, 16  ;;  %v1167_v50 = vshll.u32 %v11994_v34, 16 }
  0x3d   : > { %v12006_v43 = vld [vmem:[%s11779_s29 + $0x50] ss:$0 sps:$4 sm:$0x11]   ;;  %v12010_v47 = vld [vmem:[%s11779_s29 + $0x44] ss:$0 sps:$4 sm:$0x11]   ;;  %v12015_v51 = vcombine.low %v9476_v39, %v9477_v40 }
  0x3e   : > { %928 = vrot.lane.b32.xlu0 %v884_v21, %s11717_s9  ;;  %v332_v21 = vld [vmem:[%s11779_s29 + $0x30] sm:$0xe]  ;;  %v656_v42 = vrot.slane %v654_v20, 1  ;;  %v9475_v53 = vld [vmem:[%s11779_s29 + $0x4c] sm:$0xf]  ;;  %v661_v54 = vrot.slane %v659_v30, 1  ;;  %v893_v30 = vsel %vm875_vm0, %v891_v46, %v892_v26 }
  0x3f   : > { %v9566_v37 = vcombine.low %v332_v21, %v11954_v58  ;;  %v1177_v58 = vshrl.u32 %v11987_v27, 16  ;;  %v9519_v62 = vld [vmem:[%s11779_s29 + $0x54] sm:$0xe]  ;;  %v12025_v63 = vld [vmem:[%s11779_s29 + $0x5c] ss:$0 sps:$4 sm:$0x11]  }
  0x40   : > { %1042 = vrot.lane.b32.xlu1 %v9581_v61, %s11715_s30  ;;  %v1669_v61 = vrot.slane %v1667_v45, 1  ;;  %v673_v45 = vrot.slane %v671_v19, 1  ;;  %v1691_v10 = vshll.u32 %v12015_v51, 16  ;;  %v1696_v18 = vshll.u32 %v12025_v63, 16  ;;  %v294_v19 = vld [vmem:[%s11779_s29 + $0x54] sm:$0xf] }
  0x41   : > { %v295_v20 = vld [vmem:[%s11779_s29 + $0x58] sm:$0xf]  ;;  %v1401_v24 = vrot.slane %v12010_v47, 1  ;;  %v12060_v38 = vld [vmem:[%s11779_s29 + $0x4c] sm:$0xf]  ;;  %v1916_v6 = vrot.slane %v12025_v63, 1 }
  0x42   : > { %1040 = vrot.lane.b32.xlu0 %v9580_v1, %s11715_s30  ;;  %v1909_v1 = vrot.slane %v9661_v49, 1  ;;  %v1670_v13 = vor.u32 %v1669_v61, %v1665_v60  ;;  %v9615_v49 = vcombine.low %v9455_v32, %v9413_v12  ;;  %v657_v60 = vor.u32 %v656_v42, %v652_v28  ;;  %v12070_v26 = vld [vmem:[%s11779_s29 + $0x5c] ss:$0 sps:$4 sm:$0x11]   ;;  %v9417_v46 = vld [vmem:[%s11779_s29 + $0x64] sm:$0xf] }
  0x43   : > { %v1184_v61 = vshll.u32 %v12006_v43, 16  ;;  %v674_v11 = vsel %vm602_vm1, %v669_v44, %v673_v45  ;;  %v12039_v12 = vrot.slane %v9614_v57, 1  ;;  %v1689_v28 = vshrl.u32 %v12015_v51, 16  ;;  %v9416_v45 = vld [vmem:[%s11779_s29 + $0x60] sm:$0xf] }
  0x44   : > { %1314 = vrot.lane.b32.xlu1 %v1163_v48, %s11719_s15  ;;  %v1675_v36 = vsel %vm602_vm1, %v1670_v13, %v1674_v3  ;;  %v1911_v41 = vsel %vm875_vm0, %v1909_v1, %v1910_v2  ;;  %v889_v48 = vrot.slane %v11972_v9, 1  ;;  %v1165_v1 = vshrl.u32 %v11994_v34, 16  ;;  %v9518_v3 = vld [vmem:[%s11779_s29 + $0x48] sm:$0xe]  ;;  %v9425_v22 = vld [vmem:[%s11779_s29 + $0x94] sm:$0xf] }
  0x45   : > { %v1172_v2 = vshll.u32 %v12010_v47, 16  ;;  %v1404_v9 = vrot.slane %v12006_v43, 1  ;;  %v9663_v13 = vcombine.low %v9519_v62, %v9477_v40  ;;  %v662_v15 = vsel %vm602_vm1, %v657_v60, %v661_v54  ;;  %v12225_v47 = vld [vmem:[%s11779_s29 + $0x74] ss:$0 sps:$4 sm:$0x11]  }
  0x46   : > { %1312 = vrot.lane.b32.xlu0 %v1151_v52, %s11719_s15  ;;  %v9474_v52 = vld [vmem:[%s11779_s29 + $0x48] sm:$0xf]  ;;  %v1186_v16 = vrot.slane %v1184_v61, 1  ;;  %v12055_v32 = vrot.slane %v1691_v10, 1  ;;  %v12073_v42 = vrot.slane %v1696_v18, 1  ;;  %v695_v60 = vshll.u32 %v12070_v26, 16 }
  0x47   : > { %v12030_v8 = vcombine.low %v9474_v52, %v9475_v53  ;;  %v1174_v21 = vrot.slane %v1172_v2, 1  ;;  %v12064_v40 = vrot.slane %v9663_v13, 1  ;;  %v12095_v61 = vld [vmem:[%s11779_s29 + $0x50] ss:$0 sps:$4 sm:$0x11]   ;;  %v898_v62 = vrot.slane %v12070_v26, 1 }
  0x48   : > { %1442 = vrot.lane.b32.xlu1 %v1399_v55, %s11716_s8  ;;  %v888_v55 = vrot.slane %v9566_v37, 1  ;;  %v292_v37 = vld [vmem:[%s11779_s29 + $0x48] sm:$0xf]  ;;  %v12101_v2 = vcombine.low %v9416_v45, %v9417_v46  ;;  %v9480_v18 = vld [vmem:[%s11779_s29 + $0x6c] sm:$0xf]  ;;  %v895_v45 = vrot.slane %v12095_v61, 1 }
  0x49   : > { %v1679_v25 = vshll.u32 %v12030_v8, 16  ;;  %v12372_v56 = vld [vmem:[%s11779_s29 + $0x80] ss:$0 sps:$4 sm:$0x11]   ;;  %v9422_v33 = vld [vmem:[%s11779_s29 + $0x84] sm:$0xf] }
  0x4a   : > { %1440 = vrot.lane.b32.xlu0 %v1396_v59, %s11716_s8  ;;  %v1908_v59 = vsel %vm875_vm0, %v1906_v4, %v1907_v5  ;;  %v1169_v4 = vrot.slane %v1167_v50, 1  ;;  %v12033_v5 = vrot.slane %v9615_v49, 1  ;;  %v9414_v49 = vld [vmem:[%s11779_s29 + $0x54] sm:$0xf]  ;;  %v9415_v50 = vld [vmem:[%s11779_s29 + $0x58] sm:$0xf] }
  0x4b   : > { %v12085_v54 = vrot.slane %v1679_v25, 1  ;;  %16216 = vst [vmem:[#allocation13_spill] sm:$0xff] %v12372_v56 }
  0x4c   : > { %1554 = vrot.lane.b32.xlu1 %v11924_v31, %s11720_s16  ;;  %v1663_v31 = vsel %vm602_vm1, %v1658_v14, %v1662_v17  ;;  %v12042_v14 = vld [vmem:[%s11779_s29 + $0x50] ss:$0 sps:$4 sm:$0x11]   ;;  %v9662_v17 = vcombine.low %v9518_v3, %v9475_v53  ;;  %v1170_v53 = vor.u32 %v1169_v4, %v1165_v1  ;;  %v9457_v1 = vld [vmem:[%s11779_s29 + $0x60] sm:$0xe]  ;;  %v12103_v3 = vcombine.low %v9414_v49, %v9415_v50 }
  0x4d   : > { %v1684_v39 = vshll.u32 %v12042_v14, 16 }
  0x4e   : > { %1552 = vrot.lane.b32.xlu0 %v11927_v35, %s11720_s16  ;;  %v1179_v35 = vshll.u32 %v11987_v27, 16  ;;  %v12075_v44 = vrot.slane %v9662_v17, 1  ;;  %v9456_v17 = vld [vmem:[%s11779_s29 + $0x54] sm:$0xe] }
  0x4f   : > { %v12090_v57 = vrot.slane %v1684_v39, 1  ;;  %v1191_v39 = vshll.u32 %v12103_v3, 16  ;;  %v9616_v49 = vcombine.low %v9456_v17, %v9415_v50  ;;  %v12150_v50 = vld [vmem:[%s11779_s29 + $0x64] sm:$0xf] }
  0x50   : > { %1826 = vrot.lane.b32.xlu1 %v1675_v36, %s11721_s17  ;;  %v1181_v0 = vrot.slane %v1179_v35, 1  ;;  %v1677_v36 = vshrl.u32 %v12030_v8, 16  ;;  %v12080_v35 = vcombine.low %v292_v37, %v12060_v38  ;;  %v9617_v37 = vcombine.low %v9457_v1, %v9417_v46 }
  0x51   : > { %v1402_v46 = vsel %vm875_vm0, %v12039_v12, %v1401_v24  ;;  %v12161_v12 = vrot.slane %v1191_v39, 1 }
  0x52   : > { %1824 = vrot.lane.b32.xlu0 %v1663_v31, %s11721_s17  ;;  %v12067_v31 = vcombine.low %v294_v19, %v295_v20  ;;  %16210 = vst [vmem:[#allocation9_spill] sm:$0xff] %v12080_v35  ;;  %v1182_v52 = vor.u32 %v1181_v0, %v1177_v58  ;;  %v334_v0 = vld [vmem:[%s11779_s29 + $0x48] sm:$0xe]  ;;  %v678_v4 = vshll.u32 %v12080_v35, 16  ;;  %v12116_v19 = vld [vmem:[%s11779_s29 + $0x70] sm:$0xf] }
  0x54   : > { %1954 = vrot.lane.b32.xlu1 %v1911_v41, %s11722_s18  ;;  %16209 = vst [vmem:[#allocation8_spill] sm:$0xff] %v12067_v31  ;;  %v890_v41 = vsel %vm875_vm0, %v888_v55, %v889_v48  ;;  %v1913_v48 = vrot.slane %v12042_v14, 1  ;;  %v335_v55 = vld [vmem:[%s11779_s29 + $0x54] sm:$0xe]  ;;  %v688_v58 = vshrl.u32 %v12067_v31, 16  ;;  %v1187_v13 = vsel %vm602_vm1, %v1182_v52, %v1186_v16 }
  0x55   : > { %v9569_v10 = vcombine.low %v335_v55, %v295_v20  ;;  %v12122_v20 = vrot.slane %v695_v60, 1  ;;  %v676_v16 = vshrl.u32 %v12080_v35, 16  ;;  %v12136_v52 = vcombine.low %v9480_v18, %v12116_v19  ;;  %v12180_v18 = vld [vmem:[%s11779_s29 + $0x74] ss:$0 sps:$4 sm:$0x11]  }
  0x56   : > { %1952 = vrot.lane.b32.xlu0 %v1908_v59, %s11722_s18  ;;  %v690_v59 = vshll.u32 %v12067_v31, 16  ;;  %v9522_v35 = vld [vmem:[%s11779_s29 + $0x78] sm:$0xe] }
  0x58   : > { %805 = vrot.lane.b32.xlu1 %v674_v11, %s11718_s14  ;;  %v12107_v11 = vld [vmem:[%s11779_s29 + $0x68] ss:$0 sps:$4 sm:$0x11]   ;;  %v12120_v25 = vrot.slane %v690_v59, 1  ;;  %v9478_v59 = vld [vmem:[%s11779_s29 + $0x60] sm:$0xf] }
  0x59   : > { %v1208_v55 = vshll.u32 %v12107_v11, 16 }
  0x5a   : > { %803 = vrot.lane.b32.xlu0 %v662_v15, %s11718_s14  ;;  %v1175_v15 = vsel %vm602_vm1, %v1170_v53, %v1174_v21  ;;  %v1203_v21 = vshll.u32 %v12101_v2, 16  ;;  %v680_v53 = vrot.slane %v678_v4, 1  ;;  %v12167_v4 = vrot.slane %v9616_v49, 1 }
  0x5b   : > { %v12177_v17 = vrot.slane %v1208_v55, 1  ;;  %v298_v55 = vld [vmem:[%s11779_s29 + $0x6c] sm:$0xf]  ;;  %v693_v63 = vor.u32 %v12120_v25, %v688_v58 }
  0x5c   : > { %934 = vrot.lane.b32.xlu1 %v893_v30, %s11717_s9  ;;  %v683_v30 = vshll.u32 %v12095_v61, 16  ;;  %v337_v25 = vld [vmem:[%s11779_s29 + $0x6c] sm:$0xe] }
  0x5e   : > { %932 = vrot.lane.b32.xlu0 %v890_v41, %s11717_s9  ;;  %v12130_v41 = vld [vmem:[%s11779_s29 + $0x5c] ss:$0 sps:$4 sm:$0x11]   ;;  %v12153_v60 = vrot.slane %v683_v30, 1  ;;  %v12220_v30 = vld [vmem:[%s11779_s29 + $0x64] sm:$0xf] }
  0x5f   : > { %v1196_v24 = vshll.u32 %v12130_v41, 16 }
  0x60   : > { %1046 = vrot.lane.b32.xlu1 %v11987_v27, %s11715_s30  ;;  %v9568_v27 = vcombine.low %v334_v0, %v12060_v38  ;;  %v1405_v38 = vsel %vm875_vm0, %v12033_v5, %v1404_v9  ;;  %v12159_v9 = vrot.slane %v1203_v21, 1  ;;  %v12164_v0 = vrot.slane %v9617_v37, 1  ;;  %v12186_v21 = vld [vmem:[%s11779_s29 + $0x68] ss:$0 sps:$4 sm:$0x11]  }
  0x61   : > { %v1682_v37 = vor.u32 %v12085_v54, %v1677_v36  ;;  %v12191_v39 = vrot.slane %v1196_v24, 1  ;;  %v1720_v54 = vshll.u32 %v12180_v18, 16  ;;  %v12346_v5 = vld [vmem:[%s11779_s29 + $0x8c] ss:$0 sps:$4 sm:$0x11]  }
  0x62   : > { %1044 = vrot.lane.b32.xlu0 %v11994_v34, %s11715_s30  ;;  %v12132_v34 = vrot.slane %v9569_v10, 1  ;;  %v12155_v43 = vrot.slane %v9568_v27, 1  ;;  %v1715_v10 = vshll.u32 %v12136_v52, 16  ;;  %v9521_v27 = vld [vmem:[%s11779_s29 + $0x6c] sm:$0xe]  ;;  %16213 = vst [vmem:[#allocation12_spill] sm:$0xff] %v12346_v5 }
  0x63   : > { %v1687_v1 = vsel %vm602_vm1, %v1682_v37, %v12090_v57  ;;  %v1914_v57 = vsel %vm875_vm0, %v12075_v44, %v1913_v48  ;;  %v12253_v37 = vld [vmem:[%s11779_s29 + $0x7c] sm:$0xf]  ;;  %v12260_v14 = vrot.slane %v1720_v54, 1  ;;  %v719_v54 = vshll.u32 %v12225_v47, 16 }
  0x64   : > { %1318 = vrot.lane.b32.xlu1 %v1187_v13, %s11719_s15  ;;  %v12171_v13 = vcombine.low %v9478_v59, %v12150_v50  ;;  %v12208_v59 = vld [vmem:[%s11779_s29 + $0x70] sm:$0xf]  ;;  %v12295_v48 = vld [vmem:[%s11779_s29 + $0x74] ss:$0 sps:$4 sm:$0x11]  }
  0x65   : > { %v12316_v61 = vrot.slane %v719_v54, 1  ;;  %v9482_v54 = vld [vmem:[%s11779_s29 + $0x78] sm:$0xf] }
  0x66   : > { %1316 = vrot.lane.b32.xlu0 %v1175_v15, %s11719_s15  ;;  %v1694_v15 = vor.u32 %v12055_v32, %v1689_v28  ;;  %v9520_v28 = vld [vmem:[%s11779_s29 + $0x60] sm:$0xe]  ;;  %v11213_v32 = vld [vmem:[%s16148_s1 + $0x10] ss:$0 sps:$4 sm:$0x33]   ;;  %v1703_v49 = vshll.u32 %v12171_v13, 16 }
  0x67   : > { %11106 = vmatprep.subr.msk.bf16.mxu0 %vm2304_vm2, %v11213_v32  ;;  %v2306_v24 = vsel %vm2304_vm2, %v11213_v32, 0  ;;  %11107 = vmatprep.subr.msk.bf16.mxu1 %vm2304_vm2, %v11213_v32  ;;  %v12257_v32 = vld [vmem:[%s11779_s29 + $0x70] sm:$0xf]  ;;  %vm2654_vm2 = vsmask.f32 4368 }
  0x68   : > { %1446 = vrot.lane.b32.xlu1 %v1405_v38, %s11716_s8  ;;  %v1699_v36 = vsel %vm602_vm1, %v1694_v15, %v12073_v42  ;;  %v1708_v15 = vshll.u32 %v12186_v21, 16  ;;  %v296_v38 = vld [vmem:[%s11779_s29 + $0x60] sm:$0xf]  ;;  %10979 = vmatpush3.bf16.msra.mxu0 %v2306_v24 }
  0x69   : > { %11105 = vmatpush3.bf16.msra.mxu1 %v2306_v24 }
  0x6a   : > { %1444 = vrot.lane.b32.xlu0 %v1402_v46, %s11716_s8  ;;  %v12199_v46 = vrot.slane %v1715_v10, 1  ;;  %v9664_v10 = vcombine.low %v9520_v28, %v12150_v50  ;;  %v12236_v50 = vcombine.low %v298_v55, %v12208_v59  ;;  %v9418_v28 = vld [vmem:[%s11779_s29 + $0x6c] sm:$0xf]  ;;  %v336_v55 = vld [vmem:[%s11779_s29 + $0x60] sm:$0xe] }
  0x6c   : > { %1558 = vrot.lane.b32.xlu1 %v12015_v51, %s11720_s16  ;;  %v9665_v51 = vcombine.low %v9521_v27, %v12116_v19  ;;  %v1917_v19 = vsel %vm875_vm0, %v12064_v40, %v1916_v6  ;;  %16211 = vst [vmem:[#allocation10_spill] sm:$0xff] %v12236_v50  ;;  %v9420_v27 = vld [vmem:[%s11779_s29 + $0x78] sm:$0xf]  ;;  %v681_v40 = vor.u32 %v680_v53, %v676_v16  ;;  %v12265_v58 = vrot.slane %v9664_v10, 1 }
  0x6d   : > { %v12250_v6 = vcombine.low %v296_v38, %v12220_v30  ;;  %v12268_v16 = vrot.slane %v1703_v49, 1  ;;  %v12270_v53 = vrot.slane %v1708_v15, 1  ;;  %v12278_v24 = vcombine.low %v9420_v27, %v12253_v37  ;;  %v12292_v27 = vld [vmem:[%s11779_s29 + $0x80] ss:$0 sps:$4 sm:$0x11]  }
  0x6e   : > { %1556 = vrot.lane.b32.xlu0 %v12030_v8, %s11720_s16  ;;  %v12228_v8 = vld [vmem:[%s11779_s29 + $0x68] ss:$0 sps:$4 sm:$0x11]   ;;  %v12262_v44 = vrot.slane %v9665_v51, 1  ;;  %v12281_v49 = vcombine.low %v9418_v28, %v12257_v32  ;;  %v9571_v15 = vcombine.low %v337_v25, %v12208_v59  ;;  %v698_v38 = vsel %vm602_vm1, %v693_v63, %v12122_v20 }
  0x6f   : > { %16212 = vst [vmem:[#allocation11_spill] sm:$0xff] %v12250_v6  ;;  %v702_v51 = vshll.u32 %v12250_v6, 16  ;;  %v707_v10 = vshll.u32 %v12228_v8, 16  ;;  %v899_v28 = vsel %vm875_vm0, %v12132_v34, %v898_v62  ;;  %v896_v59 = vsel %vm875_vm0, %v12155_v43, %v895_v45  ;;  %v9485_v63 = vld [vmem:[%s11779_s29 + $0x88] sm:$0xf] }
  0x70   : > { %1830 = vrot.lane.b32.xlu1 %v1699_v36, %s11721_s17  ;;  %v714_v36 = vshll.u32 %v12236_v50, 16  ;;  %v9570_v20 = vcombine.low %v336_v55, %v12220_v30  ;;  %v1227_v26 = vshll.u32 %v12278_v24, 16  ;;  %v12319_v34 = vrot.slane %v9571_v15, 1  ;;  %v9458_v43 = vld [vmem:[%s11779_s29 + $0x6c] sm:$0xe] }
  0x71   : > { %v12324_v30 = vrot.slane %v702_v51, 1  ;;  %v1232_v55 = vshll.u32 %v12292_v27, 16  ;;  %v12332_v15 = vrot.slane %v707_v10, 1  ;;  %v9523_v51 = vld [vmem:[%s11779_s29 + $0x84] sm:$0xe] }
  0x72   : > { %1828 = vrot.lane.b32.xlu0 %v1687_v1, %s11721_s17  ;;  %v9459_v1 = vld [vmem:[%s11779_s29 + $0x78] sm:$0xe]  ;;  %v12310_v25 = vrot.slane %v714_v36, 1  ;;  %v12334_v62 = vrot.slane %v9570_v20, 1  ;;  %v302_v20 = vld [vmem:[%s11779_s29 + $0x84] sm:$0xf] }
  0x73   : > { %v9619_v36 = vcombine.low %v9459_v1, %v12253_v37  ;;  %v9618_v37 = vcombine.low %v9458_v43, %v12257_v32  ;;  %v12340_v1 = vrot.slane %v1227_v26, 1  ;;  %v12353_v45 = vld [vmem:[%s11779_s29 + $0x88] sm:$0xf]  ;;  %v16214_v32 = vshrl.u32 %v12101_v2, 16 }
  0x74   : > { %1958 = vrot.lane.b32.xlu1 %v1917_v19, %s11722_s18  ;;  %v686_v19 = vsel %vm602_vm1, %v681_v40, %v12153_v60  ;;  %v1215_v40 = vshll.u32 %v12281_v49, 16  ;;  %v9483_v60 = vld [vmem:[%s11779_s29 + $0x7c] sm:$0xf]  ;;  %v12359_v43 = vrot.slane %v1232_v55, 1 }
  0x75   : > { %v12349_v10 = vcombine.low %v9482_v54, %v9483_v60  ;;  %v1206_v26 = vor.u32 %v12159_v9, %v16214_v32  ;;  %v12368_v7 = vrot.slane %v9619_v36, 1  ;;  %v12374_v9 = vrot.slane %v9618_v37, 1  ;;  %v12382_v32 = vld [vmem:[%s11779_s29 + $0x8c] ss:$0 sps:$4 sm:$0x11]  }
  0x76   : > { %1956 = vrot.lane.b32.xlu0 %v1914_v57, %s11722_s18  ;;  %v9484_v57 = vld [vmem:[%s11779_s29 + $0x84] sm:$0xf]  ;;  %v12343_v42 = vrot.slane %v1215_v40, 1  ;;  %16218 = vst [vmem:[#allocation15_spill] sm:$0xff] %v12382_v32  ;;  %v9666_v36 = vcombine.low %v9522_v35, %v9483_v60  ;;  %v300_v37 = vld [vmem:[%s11779_s29 + $0x78] sm:$0xf] }
  0x77   : > { %v1732_v60 = vshll.u32 %v12372_v56, 16  ;;  %v16230_v56 = vshrl.u32 %v12171_v13, 16 }
  0x78   : > { %809 = vrot.lane.b32.xlu1 %v698_v38, %s11718_s14  ;;  %v12328_v38 = vcombine.low %v9484_v57, %v9485_v63  ;;  %v9667_v57 = vcombine.low %v9523_v51, %v9485_v63  ;;  %v12379_v51 = vcombine.low %v302_v20, %v12353_v45  ;;  %v1211_v20 = vsel %vm602_vm1, %v1206_v26, %v12177_v17 }
  0x79   : > { %v743_v26 = vshll.u32 %v12382_v32, 16 }
  0x7a   : > { %807 = vrot.lane.b32.xlu0 %v686_v19, %s11718_s14  ;;  %v1220_v19 = vshll.u32 %v12295_v48, 16  ;;  %v1739_v40 = vshll.u32 %v12328_v38, 16  ;;  %16217 = vst [vmem:[#allocation14_spill] sm:$0xff] %v12379_v51  ;;  %v738_v17 = vshll.u32 %v12379_v51, 16 }
  0x7b   : > { %v12478_v51 = vld [vmem:[%s11779_s29 + $0x8c] ss:$0 sps:$4 sm:$0x11]  }
  0x7c   : > { %938 = vrot.lane.b32.xlu1 %v899_v28, %s11717_s9  ;;  %v16215_v28 = vshrl.u32 %v12103_v3, 16  ;;  %v12366_v31 = vrot.slane %v1220_v19, 1  ;;  %v1744_v19 = vshll.u32 %v12346_v5, 16  ;;  %v12394_v55 = vrot.slane %v1739_v40, 1  ;;  %v339_v40 = vld [vmem:[%s11779_s29 + $0x84] sm:$0xe] }
  0x7d   : > { %v16223_v5 = vrot.slane %v12130_v41, 1 }
  0x7e   : > { %936 = vrot.lane.b32.xlu0 %v896_v59, %s11717_s9  ;;  %v1194_v54 = vor.u32 %v12161_v12, %v16215_v28  ;;  %v1727_v12 = vshll.u32 %v12349_v10, 16  ;;  %v301_v28 = vld [vmem:[%s11779_s29 + $0x7c] sm:$0xf]  ;;  %v12400_v59 = vld [vmem:[%s11779_s29 + $0x80] ss:$0 sps:$4 sm:$0x11]  }
  0x7f   : > { %v12414_v63 = vrot.slane %v1744_v19, 1  ;;  %v1408_v19 = vsel %vm875_vm0, %v12167_v4, %v16223_v5  ;;  %v9461_v4 = vld [vmem:[%s11779_s29 + $0x90] sm:$0xe] }
  0x80   : > { %1050 = vrot.lane.b32.xlu1 %v12101_v2, %s11715_s30  ;;  %v12397_v2 = vrot.slane %v9667_v57, 1  ;;  %v1199_v35 = vsel %vm602_vm1, %v1194_v54, %v12191_v39  ;;  %v12410_v57 = vcombine.low %v300_v37, %v301_v28  ;;  %v12416_v39 = vrot.slane %v1727_v12, 1 }
  0x81   : > { %16220 = vst [vmem:[#allocation17_spill] sm:$0xff] %v12414_v63  ;;  %v12418_v54 = vrot.slane %v9666_v36, 1  ;;  %v338_v36 = vld [vmem:[%s11779_s29 + $0x78] sm:$0xe]  ;;  %v9486_v63 = vld [vmem:[%s11779_s29 + $0x90] sm:$0xf] }
  0x82   : > { %1048 = vrot.lane.b32.xlu0 %v12103_v3, %s11715_s30  ;;  %16219 = vst [vmem:[#allocation16_spill] sm:$0xff] %v12397_v2  ;;  %v9424_v3 = vld [vmem:[%s11779_s29 + $0x90] sm:$0xf]  ;;  %v16222_v2 = vrot.slane %v12107_v11, 1  ;;  %v12440_v11 = vrot.slane %v1732_v60, 1 }
  0x83   : > { %16221 = vst [vmem:[#allocation18_spill] sm:$0xff] %v12418_v54  ;;  %v12434_v54 = vcombine.low %v9424_v3, %v9425_v22  ;;  %v726_v3 = vshll.u32 %v12410_v57, 16 }
  0x84   : > { %1322 = vrot.lane.b32.xlu1 %v1211_v20, %s11719_s15  ;;  %v1411_v37 = vsel %vm875_vm0, %v12164_v0, %v16222_v2  ;;  %v16224_v20 = vshrl.u32 %v12136_v52, 16  ;;  %16225 = vst [vmem:[#allocation19_spill] sm:$0xff] %v12440_v11  ;;  %v9573_v0 = vcombine.low %v339_v40, %v12353_v45  ;;  %v12448_v2 = vrot.slane %v743_v26, 1  ;;  %v9460_v40 = vld [vmem:[%s11779_s29 + $0x84] sm:$0xe] }
  0x85   : > { %v9572_v45 = vcombine.low %v338_v36, %v301_v28  ;;  %v12463_v26 = vld [vmem:[%s11779_s29 + $0xa0] sm:$0xf]  ;;  %v1251_v32 = vshll.u32 %v12434_v54, 16  ;;  %v1706_v28 = vor.u32 %v12268_v16, %v16230_v56  ;;  %v12482_v11 = vrot.slane %v726_v3, 1  ;;  %v12491_v56 = vld [vmem:[%s11779_s29 + $0x94] sm:$0xf] }
  0x86   : > { %1320 = vrot.lane.b32.xlu0 %v1199_v35, %s11719_s15  ;;  %v1718_v12 = vor.u32 %v12199_v46, %v16224_v20  ;;  %v12438_v35 = vld [vmem:[%s11779_s29 + $0x88] sm:$0xf]  ;;  %v12446_v46 = vrot.slane %v738_v17, 1  ;;  %16227 = vst [vmem:[#allocation21_spill] sm:$0xff] %v12448_v2  ;;  %v731_v20 = vshll.u32 %v12400_v59, 16 }
  0x87   : > { %v12459_v5 = vcombine.low %v9422_v33, %v12438_v35  ;;  %v9488_v17 = vld [vmem:[%s11779_s29 + $0x9c] sm:$0xf]  ;;  %v12468_v2 = vld [vmem:[%s11779_s29 + $0x98] ss:$0 sps:$4 sm:$0x11]   ;;  %v12474_v33 = vrot.slane %v9573_v0, 1 }
  0x88   : > { %16226 = vst [vmem:[#allocation20_spill] sm:$0xff] %v12446_v46  ;;  %1450 = vrot.lane.b32.xlu1 %v1411_v37, %s11716_s8  ;;  %v12453_v60 = vpop.permute.xlu1 %1038  ;;  %v9621_v37 = vcombine.low %v9461_v4, %v9425_v22  ;;  %16229 = vst [vmem:[#allocation23_spill] sm:$0xff] %v12468_v2  ;;  %v12484_v22 = vrot.slane %v731_v20, 1  ;;  %v12487_v4 = vcombine.low %v9488_v17, %v12463_v26  ;;  %v12495_v16 = vrot.slane %v9572_v45, 1 }
  0x89   : > { %v12455_v41 = vpop.permute.xlu0 %1036  ;;  %16228 = vst [vmem:[#allocation22_spill] sm:$0xff] %v12459_v5  ;;  %v1239_v0 = vshll.u32 %v12459_v5, 16  ;;  %v12504_v20 = vrot.slane %v1251_v32, 1  ;;  %v1256_v17 = vshll.u32 %v12468_v2, 16  ;;  %v12518_v32 = vcombine.low %v9486_v63, %v12491_v56 }
  0x8a   : > { %1448 = vrot.lane.b32.xlu0 %v1408_v19, %s11716_s8  ;;  %v1723_v19 = vsel %vm602_vm1, %v1718_v12, %v12260_v14  ;;  %v9620_v14 = vcombine.low %v9460_v40, %v12438_v35  ;;  %v12508_v45 = vrot.slane %v9621_v37, 1  ;;  %v1711_v35 = vsel %vm602_vm1, %v1706_v28, %v12270_v53  ;;  %v9525_v12 = vld [vmem:[%s11779_s29 + $0x9c] sm:$0xe]  ;;  %v9524_v37 = vld [vmem:[%s11779_s29 + $0x90] sm:$0xe] }
  0x8b   : > { %16231 = vst [vmem:[#allocation24_spill] sm:$0xff] %v12504_v20  ;;  %v1244_v40 = vshll.u32 %v12478_v51, 16  ;;  %16233 = vst [vmem:[#allocation26_spill] sm:$0xff] %v12518_v32  ;;  %v12523_v36 = vld [vmem:[%s11779_s29 + $0xa4] ss:$0 sps:$4 sm:$0x11]  }
  0x8c   : > { %1562 = vrot.lane.b32.xlu1 %v12136_v52, %s11720_s16  ;;  %16232 = vst [vmem:[#allocation25_spill] sm:$0xff] %v12508_v45  ;;  %v1763_v52 = vshll.u32 %v12487_v4, 16  ;;  %16234 = vst [vmem:[#allocation27_spill] sm:$0xff] %v12523_v36  ;;  %v16235_v53 = vrot.slane %v12180_v18, 1  ;;  %v12534_v45 = vrot.slane %v1239_v0, 1  ;;  %v16237_v5 = vshrl.u32 %v12236_v50, 16 }
  0x8d   : > { %v12502_v3 = vpop.permute.xlu0 %1436  ;;  %v12537_v2 = vld [vmem:[%s11779_s29 + $0x98] ss:$0 sps:$4 sm:$0x11]   ;;  %v16238_v18 = vshrl.u32 %v12250_v6, 16  ;;  %v12552_v0 = vld [vmem:[%s11779_s29 + $0xa0] sm:$0xf] }
  0x8e   : > { %1560 = vrot.lane.b32.xlu0 %v12171_v13, %s11720_s16  ;;  %v12510_v46 = vpop.permute.xlu1 %924  ;;  %v1923_v28 = vsel %vm875_vm0, %v12262_v44, %v16235_v53  ;;  %v16236_v13 = vrot.slane %v12186_v21, 1  ;;  %v12546_v44 = vrot.slane %v1256_v17, 1  ;;  %v12548_v21 = vrot.slane %v9620_v14, 1  ;;  %v304_v50 = vld [vmem:[%s11779_s29 + $0x90] sm:$0xf] }
  0x8f   : > { %v705_v20 = vor.u32 %v12324_v30, %v16238_v18  ;;  %v9669_v53 = vcombine.low %v9525_v12, %v12463_v26  ;;  %v9668_v14 = vcombine.low %v9524_v37, %v12491_v56  ;;  %v12561_v18 = vrot.slane %v1763_v52, 1  ;;  %v12573_v30 = vld [vmem:[%s11779_s29 + $0xa4] ss:$0 sps:$4 sm:$0x11]   ;;  %v341_v12 = vld [vmem:[%s11779_s29 + $0x9c] sm:$0xe] }
  0x90   : > { %1834 = vrot.lane.b32.xlu1 %v1723_v19, %s11721_s17  ;;  %v1920_v63 = vsel %vm875_vm0, %v12265_v58, %v16236_v13  ;;  %v717_v19 = vor.u32 %v12310_v25, %v16237_v5  ;;  %16239 = vst [vmem:[#allocation28_spill] sm:$0xff] %v12548_v21  ;;  %v306_v58 = vld [vmem:[%s11779_s29 + $0x9c] sm:$0xf]  ;;  %v1751_v5 = vshll.u32 %v12518_v32, 16  ;;  %v1768_v6 = vshll.u32 %v12523_v36, 16 }
  0x91   : > { %16240 = vst [vmem:[#allocation29_spill] sm:$0xff] %v12561_v18  ;;  %v12566_v21 = vld [vmem:[%s11779_s29 + $0x94] sm:$0xf]  ;;  %v12576_v26 = vld [vmem:[%s11779_s29 + $0x98] ss:$0 sps:$4 sm:$0x11]  }
  0x92   : > { %1832 = vrot.lane.b32.xlu0 %v1711_v35, %s11721_s17  ;;  %v927_v13 = vpop.permute.xlu1 %926  ;;  %v12554_v35 = vrot.slane %v1244_v40, 1  ;;  %v12570_v40 = vcombine.low %v306_v58, %v12552_v0  ;;  %v722_v56 = vsel %vm602_vm1, %v717_v19, %v12316_v61  ;;  %v1756_v52 = vshll.u32 %v12537_v2, 16  ;;  %v9428_v32 = vld [vmem:[%s11779_s29 + $0xa8] sm:$0xf]  ;;  %v12601_v18 = vld [vmem:[%s11779_s29 + $0xac] sm:$0xf] }
  0x93   : > { %v16241_v58 = vrot.slane %v12225_v47, 1  ;;  %v12596_v19 = vcombine.low %v304_v50, %v12566_v21  ;;  %v12605_v47 = vrot.slane %v9669_v53, 1  ;;  %v12613_v50 = vrot.slane %v1751_v5, 1 }
  0x94   : > { %v796_v17 = vpop.permute.xlu0 %795  ;;  %1962 = vrot.lane.b32.xlu1 %v1923_v28, %s11722_s18  ;;  %v710_v28 = vsel %vm602_vm1, %v705_v20, %v12332_v15  ;;  %v12603_v20 = vrot.slane %v1768_v6, 1  ;;  %v767_v6 = vshll.u32 %v12573_v30, 16  ;;  %v16246_v53 = vshrl.u32 %v12278_v24, 16 }
  0x95   : > { %v905_v25 = vsel %vm875_vm0, %v12319_v34, %v16241_v58  ;;  %16244 = vst [vmem:[#allocation31_spill] sm:$0xff] %v12605_v47  ;;  %v12608_v34 = vrot.slane %v9668_v14, 1  ;;  %v762_v58 = vshll.u32 %v12570_v40, 16  ;;  %v12627_v5 = vcombine.low %v9428_v32, %v12601_v18 }
  0x96   : > { %1960 = vrot.lane.b32.xlu0 %v1920_v63, %s11722_s18  ;;  %v12583_v37 = vpop.permute.xlu1 %1438  ;;  %v16242_v63 = vrot.slane %v12228_v8, 1  ;;  %16243 = vst [vmem:[#allocation30_spill] sm:$0xff] %v12603_v20  ;;  %v1230_v14 = vor.u32 %v12340_v1, %v16246_v53  ;;  %v16247_v8 = vshrl.u32 %v12281_v49, 16  ;;  %v750_v1 = vshll.u32 %v12596_v19, 16 }
  0x97   : > { %16245 = vst [vmem:[#allocation32_spill] sm:$0xff] %v12608_v34  ;;  %16248 = vst [vmem:[#allocation33_spill] sm:$0xff] %v12627_v5  ;;  %v12631_v34 = vld [vmem:[%s11779_s29 + $0xa0] sm:$0xf]  ;;  %v755_v53 = vshll.u32 %v12576_v26, 16  ;;  %v12649_v36 = vrot.slane %v767_v6, 1 }
  0x98   : > { %v902_v61 = vsel %vm875_vm0, %v12334_v62, %v16242_v63  ;;  %v798_v15 = vpop.permute.xlu0 %797  ;;  %813 = vrot.lane.b32.xlu1 %v722_v56, %s11718_s14  ;;  %v340_v63 = vld [vmem:[%s11779_s29 + $0x90] sm:$0xe]  ;;  %v9575_v56 = vcombine.low %v341_v12, %v12552_v0  ;;  %v12644_v20 = vld [vmem:[%s11779_s29 + $0xb0] ss:$0 sps:$4 sm:$0x11]  }
  0x99   : > { %v1984_v62 = vsel %vm1980_vm3, %v11812_v29, %v798_v15  ;;  %v1218_v29 = vor.u32 %v12343_v42, %v16247_v8  ;;  %v9426_v15 = vld [vmem:[%s11779_s29 + $0x9c] sm:$0xf]  ;;  %v1982_v42 = vsel %vm1980_vm3, %v11807_v23, %v796_v17  ;;  %v9574_v8 = vcombine.low %v340_v63, %v12566_v21 }
  0x9a   : > { %811 = vrot.lane.b32.xlu0 %v710_v28, %s11718_s14  ;;  %v1311_v47 = vpop.permute.xlu1 %1310  ;;  %v12633_v28 = vrot.slane %v1756_v52, 1  ;;  %v2017_v0 = vsel %vm2013_vm4, %v1984_v62, %v927_v13  ;;  %v12647_v52 = vrot.slane %v762_v58, 1  ;;  %v12653_v13 = vcombine.low %v9426_v15, %v12631_v34 }
  0x9b   : > { %v12657_v17 = vrot.slane %v9575_v56, 1  ;;  %v1275_v62 = vshll.u32 %v12627_v5, 16  ;;  %v2015_v58 = vsel %vm2013_vm4, %v1982_v42, %v12510_v46  ;;  %v2050_v6 = vsel %vm2046_vm5, %v2017_v0, %v12453_v60  ;;  %v9463_v56 = vld [vmem:[%s11779_s29 + $0xa8] sm:$0xe]  ;;  %v9492_v42 = vld [vmem:[%s11779_s29 + $0xb4] sm:$0xf] }
  0x9c   : > { %v1309_v32 = vpop.permute.xlu0 %1308  ;;  %942 = vrot.lane.b32.xlu1 %v905_v25, %s11717_s9  ;;  %16249 = vst [vmem:[#allocation34_spill] sm:$0xff] %v12653_v13  ;;  %v12667_v15 = vrot.slane %v755_v53, 1  ;;  %v12670_v21 = vrot.slane %v9574_v8, 1  ;;  %v1280_v12 = vshll.u32 %v12644_v20, 16  ;;  %v1235_v60 = vsel %vm602_vm1, %v1230_v14, %v12359_v43  ;;  %v12685_v0 = vld [vmem:[%s11779_s29 + $0xb8] sm:$0xf] }
  0x9d   : > { %v12675_v46 = vld [vmem:[%s11779_s29 + $0xa4] ss:$0 sps:$4 sm:$0x11]   ;;  %v1263_v53 = vshll.u32 %v12653_v13, 16  ;;  %v2083_v8 = vsel %vm2079_vm6, %v2050_v6, %v1311_v47  ;;  %v2048_v25 = vsel %vm2046_vm5, %v2015_v58, %v12455_v41  ;;  %v9623_v43 = vcombine.low %v9463_v56, %v12601_v18  ;;  %v9462_v5 = vld [vmem:[%s11779_s29 + $0x9c] sm:$0xe] }
  0x9e   : > { %940 = vrot.lane.b32.xlu0 %v902_v61, %s11717_s9  ;;  %v1551_v63 = vpop.permute.xlu1 %1550  ;;  %v12665_v61 = vrot.slane %v750_v1, 1  ;;  %16250 = vst [vmem:[#allocation35_spill] sm:$0xff] %v12670_v21  ;;  %v2081_v14 = vsel %vm2079_vm6, %v2048_v25, %v1309_v32  ;;  %v1223_v13 = vsel %vm602_vm1, %v1218_v29, %v12366_v31  ;;  %v9490_v21 = vld [vmem:[%s11779_s29 + $0xa8] sm:$0xf]  ;;  %v12701_v47 = vld [vmem:[%s11779_s29 + $0xac] sm:$0xf]  ;;  %v12713_v25 = vcombine.low %v9492_v42, %v12685_v0 }
  0x9f   : > { %v16251_v41 = vrot.slane %v12292_v27, 1  ;;  %v12716_v31 = vld [vmem:[%s11779_s29 + $0xbc] ss:$0 sps:$4 sm:$0x11]   ;;  %v2116_v29 = vsel %vm2112_vm7, %v2083_v8, %v12583_v37  ;;  %v1268_v27 = vshll.u32 %v12675_v46, 16  ;;  %v2114_v58 = vsel %vm2112_vm7, %v2081_v14, %v12502_v3  ;;  %v16262_v32 = vld [vmem:[#allocation19_spill] sm:$0xff] }
  0xa0   : > { %v1549_v23 = vpop.permute.xlu0 %1548  ;;  %1054 = vrot.lane.b32.xlu1 %v12278_v24, %s11715_s30  ;;  %v12692_v24 = vrot.slane %v1275_v62, 1  ;;  %v16252_v62 = vrot.slane %v12295_v48, 1  ;;  %16253 = vst [vmem:[#allocation36_spill] sm:$0xff] %v12716_v31  ;;  %v12723_v48 = vrot.slane %v1263_v53, 1  ;;  %v12730_v56 = vrot.slane %v9623_v43, 1 }
  0xa1   : > { %v12733_v37 = vcombine.low %v9490_v21, %v12701_v47  ;;  %v12740_v42 = vld [vmem:[%s11779_s29 + $0xb0] ss:$0 sps:$4 sm:$0x11]   ;;  %v310_v14 = vld [vmem:[%s11779_s29 + $0xb4] sm:$0xf] }
  0xa2   : > { %1052 = vrot.lane.b32.xlu0 %v12281_v49, %s11715_s30  ;;  %v1823_v1 = vpop.permute.xlu1 %1822  ;;  %v1417_v49 = vsel %vm875_vm0, %v12368_v7, %v16251_v41  ;;  %v1414_v18 = vsel %vm875_vm0, %v12374_v9, %v16252_v62  ;;  %v12721_v7 = vrot.slane %v1280_v12, 1  ;;  %v2149_v9 = vsel %vm2145_vm8, %v2116_v29, %v1551_v63  ;;  %16254 = vst [vmem:[#allocation37_spill] sm:$0xff] %v12740_v42  ;;  %v12749_v41 = vld [vmem:[%s11779_s29 + $0xb8] sm:$0xf]  ;;  %v12755_v62 = vld [vmem:[%s11779_s29 + $0xac] sm:$0xf] }
  0xa3   : > { %v2147_v12 = vsel %vm2145_vm8, %v2114_v58, %v1549_v23  ;;  %v9622_v63 = vcombine.low %v9462_v5, %v12631_v34  ;;  %v1787_v23 = vshll.u32 %v12713_v25, 16  ;;  %16255 = vst [vmem:[#allocation38_spill] sm:$0xff] %v12749_v41  ;;  %v308_v5 = vld [vmem:[%s11779_s29 + $0xa8] sm:$0xf]  ;;  %16256 = vst [vmem:[#allocation39_spill] sm:$0xff] %v12755_v62 }
  0xa4   : > { %v1821_v6 = vpop.permute.xlu0 %1820  ;;  %1326 = vrot.lane.b32.xlu1 %v1235_v60, %s11719_s15  ;;  %v2182_v60 = vsel %vm2178_vm9, %v2149_v9, %v1823_v1  ;;  %v1792_v1 = vshll.u32 %v12716_v31, 16  ;;  %v16258_v9 = vshrl.u32 %v12349_v10, 16  ;;  %v12788_v3 = vld [vmem:[%s11779_s29 + $0xb0] ss:$0 sps:$4 sm:$0x11]  }
  0xa5   : > { %v2180_v8 = vsel %vm2178_vm9, %v2147_v12, %v1821_v6  ;;  %v16257_v6 = vshrl.u32 %v12328_v38, 16  ;;  %v9526_v12 = vld [vmem:[%s11779_s29 + $0xa8] sm:$0xe]  ;;  %16260 = vst [vmem:[#allocation41_spill] sm:$0xff] %v12788_v3 }
  0xa6   : > { %1324 = vrot.lane.b32.xlu0 %v1223_v13, %s11719_s15  ;;  %v1951_v53 = vpop.permute.xlu1 %1950  ;;  %v9527_v13 = vld [vmem:[%s11779_s29 + $0xb4] sm:$0xe]  ;;  %v1730_v58 = vor.u32 %v12416_v39, %v16258_v9 }
  0xa7   : > { %v2215_v21 = vsel %vm2211_vm10, %v2182_v60, %v1951_v53  ;;  %v1742_v29 = vor.u32 %v12394_v55, %v16257_v6  ;;  %v12768_v60 = vld [vmem:[%s11779_s29 + $0xbc] ss:$0 sps:$4 sm:$0x11]   ;;  %v1780_v55 = vshll.u32 %v12740_v42, 16  ;;  %v9671_v9 = vcombine.low %v9527_v13, %v12685_v0 }
  0xa8   : > { %v1949_v43 = vpop.permute.xlu0 %1948  ;;  %1454 = vrot.lane.b32.xlu1 %v1417_v49, %s11716_s8  ;;  %v1775_v49 = vshll.u32 %v12733_v37, 16  ;;  %16259 = vst [vmem:[#allocation40_spill] sm:$0xff] %v12768_v60  ;;  %v16261_v6 = vld [vmem:[#allocation17_spill] sm:$0xff] }
  0xa9   : > { %v2213_v34 = vsel %vm2211_vm10, %v2180_v8, %v1949_v43  ;;  %v12775_v8 = vrot.slane %v9622_v63, 1  ;;  %v12779_v43 = vcombine.low %v310_v14, %v12749_v41  ;;  %v12794_v63 = vrot.slane %v1792_v1, 1 }
  0xaa   : > { %1452 = vrot.lane.b32.xlu0 %v1414_v18, %s11716_s8  ;;  %10980 = vmatprep.mubr.msk.bf16.mxu0 %vm2271_vm11, %v2213_v34  ;;  %v12771_v53 = vpop.permute.xlu1 %801  ;;  %v12773_v18 = vrot.slane %v1268_v27, 1  ;;  %v12792_v27 = vrot.slane %v1787_v23, 1  ;;  %v9670_v14 = vcombine.low %v9526_v12, %v12701_v47  ;;  %v1747_v0 = vsel %vm602_vm1, %v1742_v29, %v16261_v6 }
  0xab   : > { %10981 = vmatmul.mubr.msk.bf16.vlgmr.msra.gmra.mrb[0].mxu0 %vm2271_vm11, %v2215_v21  ;;  %v12785_v21 = vcombine.low %v308_v5, %v12755_v62  ;;  %v12801_v13 = vrot.slane %v1775_v49, 1  ;;  %v791_v5 = vshll.u32 %v12768_v60, 16  ;;  %v12806_v23 = vrot.slane %v1780_v55, 1  ;;  %v16268_v55 = vld [vmem:[#allocation16_spill] sm:$0xff]  ;;  %v16269_v60 = vld [vmem:[#allocation14_spill] sm:$0xff] }
  0xac   : > { %v800_v34 = vpop.permute.xlu0 %799  ;;  %1566 = vrot.lane.b32.xlu1 %v12328_v38, %s11720_s16  ;;  %v1735_v38 = vsel %vm602_vm1, %v1730_v58, %v16262_v32  ;;  %v786_v1 = vshll.u32 %v12779_v43, 16  ;;  %v12809_v47 = vrot.slane %v9671_v9, 1  ;;  %v779_v29 = vshll.u32 %v12788_v3, 16  ;;  %v16266_v32 = vld [vmem:[#allocation12_spill] sm:$0xff] }
  0xad   : > { %16263 = vst [vmem:[#allocation17_spill] sm:$0xff] %v12806_v23  ;;  %v774_v12 = vshll.u32 %v12785_v21, 16  ;;  %v12815_v49 = vrot.slane %v9670_v14, 1  ;;  %v16267_v58 = vrot.slane %v16266_v32, 1  ;;  %v16270_v41 = vshrl.u32 %v16269_v60, 16  ;;  %v16272_v14 = vld [vmem:[#allocation13_spill] sm:$0xff] }
  0xae   : > { %1564 = vrot.lane.b32.xlu0 %v12349_v10, %s11720_s16  ;;  %v931_v39 = vpop.permute.xlu1 %930  ;;  %16264 = vst [vmem:[#allocation19_spill] sm:$0xff] %v12809_v47  ;;  %v16271_v10 = vld [vmem:[#allocation20_spill] sm:$0xff]  ;;  %v784_v31 = vshrl.u32 %v12779_v43, 16  ;;  %v12827_v3 = vrot.slane %v791_v5, 1  ;;  %v16274_v23 = vld [vmem:[#allocation18_spill] sm:$0xff]  ;;  %v12836_v42 = vrot.slane %v786_v1, 1 }
  0xaf   : > { %16265 = vst [vmem:[#allocation42_spill] sm:$0xff] %v12815_v49  ;;  %v1929_v9 = vsel %vm875_vm0, %v16268_v55, %v16267_v58  ;;  %v741_v47 = vor.u32 %v16271_v10, %v16270_v41  ;;  %v16273_v49 = vrot.slane %v16272_v14, 1  ;;  %v12839_v41 = vrot.slane %v774_v12, 1  ;;  %v16276_v5 = vld [vmem:[#allocation21_spill] sm:$0xff]  ;;  %v16277_v12 = vld [vmem:[#allocation15_spill] sm:$0xff] }
  0xb0   : > { %v929_v62 = vpop.permute.xlu0 %928  ;;  %1838 = vrot.lane.b32.xlu1 %v1747_v0, %s11721_s17  ;;  %v12841_v10 = vrot.slane %v779_v29, 1  ;;  %v16278_v14 = vrot.slane %v16277_v12, 1 }
  0xb1   : > { %v1926_v6 = vsel %vm875_vm0, %v16274_v23, %v16273_v49  ;;  %v746_v23 = vsel %vm602_vm1, %v741_v47, %v16276_v5 }
  0xb2   : > { %1836 = vrot.lane.b32.xlu0 %v1735_v38, %s11721_s17  ;;  %v1043_v0 = vpop.permute.xlu1 %1042  ;;  %v16275_v38 = vshrl.u32 %v12410_v57, 16  ;;  %v911_v29 = vsel %vm875_vm0, %v12474_v33, %v16278_v14 }
  0xb4   : > { %v729_v32 = vor.u32 %v12482_v11, %v16275_v38  ;;  %v1041_v55 = vpop.permute.xlu0 %1040  ;;  %1966 = vrot.lane.b32.xlu1 %v1929_v9, %s11722_s18 }
  0xb6   : > { %1964 = vrot.lane.b32.xlu0 %v1926_v6, %s11722_s18  ;;  %v1315_v49 = vpop.permute.xlu1 %1314  ;;  %v734_v11 = vsel %vm602_vm1, %v729_v32, %v12484_v22  ;;  %v16279_v6 = vrot.slane %v12400_v59, 1  ;;  %v16280_v22 = vshrl.u32 %v12434_v54, 16  ;;  %v16281_v32 = vld [vmem:[#allocation24_spill] sm:$0xff] }
  0xb7   : > { %v16284_v59 = vld [vmem:[#allocation4_spill] sm:$0xff] }
  0xb8   : > { %v1313_v1 = vpop.permute.xlu0 %1312  ;;  %817 = vrot.lane.b32.xlu1 %v746_v23, %s11718_s14  ;;  %v908_v47 = vsel %vm875_vm0, %v12495_v16, %v16279_v6  ;;  %v1254_v5 = vor.u32 %v16281_v32, %v16280_v22  ;;  %v1988_v58 = vsel %vm1980_vm3, %v16284_v59, %v12771_v53  ;;  %v16285_v16 = vld [vmem:[#allocation5_spill] sm:$0xff] }
  0xb9   : > { %v2021_v6 = vsel %vm2013_vm4, %v1988_v58, %v931_v39 }
  0xba   : > { %815 = vrot.lane.b32.xlu0 %v734_v11, %s11718_s14  ;;  %v1443_v9 = vpop.permute.xlu1 %1442  ;;  %v16282_v11 = vld [vmem:[#allocation22_spill] sm:$0xff]  ;;  %v2054_v22 = vsel %vm2046_vm5, %v2021_v6, %v1043_v0  ;;  %v16286_v0 = vld [vmem:[#allocation23_spill] sm:$0xff]  ;;  %v16292_v6 = vld [vmem:[#allocation29_spill] sm:$0xff] }
  0xbb   : > { %v16283_v12 = vshrl.u32 %v16282_v11, 16 }
  0xbc   : > { %v1441_v38 = vpop.permute.xlu0 %1440  ;;  %946 = vrot.lane.b32.xlu1 %v911_v29, %s11717_s9  ;;  %v1986_v29 = vsel %vm1980_vm3, %v16285_v16, %v800_v34  ;;  %v2087_v34 = vsel %vm2079_vm6, %v2054_v22, %v1315_v49 }
  0xbd   : > { %v1242_v33 = vor.u32 %v12534_v45, %v16283_v12  ;;  %v2019_v45 = vsel %vm2013_vm4, %v1986_v29, %v929_v62  ;;  %v2120_v58 = vsel %vm2112_vm7, %v2087_v34, %v1443_v9  ;;  %v16289_v9 = vrot.slane %v12478_v51, 1 }
  0xbe   : > { %944 = vrot.lane.b32.xlu0 %v908_v47, %s11717_s9  ;;  %v1555_v23 = vpop.permute.xlu1 %1554  ;;  %v1259_v47 = vsel %vm602_vm1, %v1254_v5, %v12546_v44  ;;  %v16287_v5 = vrot.slane %v16286_v0, 1  ;;  %v16299_v0 = vshrl.u32 %v12570_v40, 16 }
  0xbf   : > { %v1247_v53 = vsel %vm602_vm1, %v1242_v33, %v12554_v35  ;;  %v2153_v62 = vsel %vm2145_vm8, %v2120_v58, %v1555_v23  ;;  %v16288_v35 = vld [vmem:[#allocation25_spill] sm:$0xff]  ;;  %v16290_v33 = vld [vmem:[#allocation28_spill] sm:$0xff] }
  0xc0   : > { %v1553_v14 = vpop.permute.xlu0 %1552  ;;  %1058 = vrot.lane.b32.xlu1 %v12434_v54, %s11715_s30  ;;  %v2052_v54 = vsel %vm2046_vm5, %v2019_v45, %v1041_v55  ;;  %v1423_v55 = vsel %vm875_vm0, %v16288_v35, %v16287_v5  ;;  %v1420_v59 = vsel %vm875_vm0, %v16290_v33, %v16289_v9  ;;  %v16293_v45 = vld [vmem:[#allocation26_spill] sm:$0xff]  ;;  %v765_v5 = vor.u32 %v12647_v52, %v16299_v0 }
  0xc1   : > { %v2085_v39 = vsel %vm2079_vm6, %v2052_v54, %v1313_v1  ;;  %v16294_v22 = vshrl.u32 %v16293_v45, 16  ;;  %v16295_v54 = vld [vmem:[#allocation30_spill] sm:$0xff] }
  0xc2   : > { %1056 = vrot.lane.b32.xlu0 %v16282_v11, %s11715_s30  ;;  %v1827_v32 = vpop.permute.xlu1 %1826  ;;  %v2118_v44 = vsel %vm2112_vm7, %v2085_v39, %v1441_v38  ;;  %v770_v33 = vsel %vm602_vm1, %v765_v5, %v12649_v36 }
  0xc3   : > { %v2151_v49 = vsel %vm2145_vm8, %v2118_v44, %v1553_v14  ;;  %v2186_v11 = vsel %vm2178_vm9, %v2153_v62, %v1827_v32  ;;  %v16291_v14 = vshrl.u32 %v12487_v4, 16  ;;  %v1754_v32 = vor.u32 %v12613_v50, %v16294_v22  ;;  %v16296_v50 = vld [vmem:[#allocation27_spill] sm:$0xff] }
  0xc4   : > { %v1825_v12 = vpop.permute.xlu0 %1824  ;;  %1330 = vrot.lane.b32.xlu1 %v1259_v47, %s11719_s15  ;;  %v16297_v44 = vrot.slane %v16296_v50, 1  ;;  %v16298_v62 = vld [vmem:[#allocation31_spill] sm:$0xff] }
  0xc5   : > { %v2184_v38 = vsel %vm2178_vm9, %v2151_v49, %v1825_v12  ;;  %v1766_v51 = vor.u32 %v16292_v6, %v16291_v14  ;;  %v1759_v39 = vsel %vm602_vm1, %v1754_v32, %v12633_v28  ;;  %v16301_v49 = vld [vmem:[#allocation32_spill] sm:$0xff] }
  0xc6   : > { %1328 = vrot.lane.b32.xlu0 %v1247_v53, %s11719_s15  ;;  %v1955_v1 = vpop.permute.xlu1 %1954 }
  0xc7   : > { %v2219_v23 = vsel %vm2211_vm10, %v2186_v11, %v1955_v1  ;;  %v1771_v34 = vsel %vm602_vm1, %v1766_v51, %v16295_v54  ;;  %v16302_v11 = vshrl.u32 %v12596_v19, 16  ;;  %v16310_v54 = vld [vmem:[#allocation6_spill] sm:$0xff] }
  0xc8   : > { %v1953_v16 = vpop.permute.xlu0 %1952  ;;  %1458 = vrot.lane.b32.xlu1 %v1423_v55, %s11716_s8  ;;  %v16300_v55 = vrot.slane %v12537_v2, 1 }
  0xc9   : > { %v2217_v29 = vsel %vm2211_vm10, %v2184_v38, %v1953_v16  ;;  %v753_v1 = vor.u32 %v12665_v61, %v16302_v11  ;;  %v16303_v38 = vrot.slane %v12573_v30, 1  ;;  %v16304_v16 = vrot.slane %v12576_v26, 1  ;;  %v16308_v30 = vld [vmem:[#allocation34_spill] sm:$0xff] }
  0xca   : > { %1456 = vrot.lane.b32.xlu0 %v1420_v59, %s11716_s8  ;;  %10984 = vmatprep.mubr.msk.bf16.mxu0 %vm2271_vm11, %v2217_v29  ;;  %v806_v47 = vpop.permute.xlu1 %805  ;;  %v1932_v28 = vsel %vm875_vm0, %v16301_v49, %v16300_v55  ;;  %v16305_v29 = vld [vmem:[#allocation35_spill] sm:$0xff]  ;;  %v16309_v22 = vshrl.u32 %v16308_v30, 16  ;;  %v16313_v11 = vrot.slane %v12675_v46, 1  ;;  %v16314_v46 = vshrl.u32 %v12713_v25, 16 }
  0xcb   : > { %10985 = vmatmul.mubr.msk.bf16.gmra.mrb[4].mxu0 %vm2271_vm11, %v2219_v23  ;;  %v758_v52 = vsel %vm602_vm1, %v753_v1, %v12667_v15  ;;  %v917_v61 = vsel %vm875_vm0, %v12657_v17, %v16303_v38  ;;  %v914_v36 = vsel %vm875_vm0, %v16305_v29, %v16304_v16  ;;  %v16306_v15 = vld [vmem:[#allocation33_spill] sm:$0xff]  ;;  %v1992_v26 = vsel %vm1980_vm3, %v16310_v54, %v806_v47  ;;  %v13017_v16 = vld [vmem:[%s11779_s29 + $0xc4] sm:$0xf]  ;;  %v342_v29 = vld [vmem:[%s11779_s29 + $0xa8] sm:$0xe] }
  0xcc   : > { %v804_v53 = vpop.permute.xlu0 %803  ;;  %1570 = vrot.lane.b32.xlu1 %v12487_v4, %s11720_s16  ;;  %v1935_v4 = vsel %vm875_vm0, %v16298_v62, %v16297_v44  ;;  %v16307_v6 = vshrl.u32 %v16306_v15, 16  ;;  %v1266_v17 = vor.u32 %v12723_v48, %v16309_v22  ;;  %v1426_v1 = vsel %vm875_vm0, %v12775_v8, %v16313_v11  ;;  %v16320_v22 = vld [vmem:[#allocation38_spill] sm:$0xff] }
  0xcd   : > { %v1790_v8 = vor.u32 %v12792_v27, %v16314_v46  ;;  %v9465_v11 = vld [vmem:[%s11779_s29 + $0xc0] sm:$0xe] }
  0xce   : > { %1568 = vrot.lane.b32.xlu0 %v16293_v45, %s11720_s16  ;;  %v935_v12 = vpop.permute.xlu1 %934  ;;  %v1278_v51 = vor.u32 %v12692_v24, %v16307_v6  ;;  %v1271_v47 = vsel %vm602_vm1, %v1266_v17, %v12773_v18 }
  0xcf   : > { %v2025_v50 = vsel %vm2013_vm4, %v1992_v26, %v935_v12  ;;  %v1795_v27 = vsel %vm602_vm1, %v1790_v8, %v12794_v63  ;;  %v16321_v26 = vld [vmem:[#allocation37_spill] sm:$0xff] }
  0xd0   : > { %v933_v58 = vpop.permute.xlu0 %932  ;;  %1842 = vrot.lane.b32.xlu1 %v1771_v34, %s11721_s17  ;;  %v16311_v34 = vld [vmem:[#allocation7_spill] sm:$0xff]  ;;  %v1283_v24 = vsel %vm602_vm1, %v1278_v51, %v12721_v7  ;;  %v16317_v51 = vld [vmem:[#allocation36_spill] sm:$0xff] }
  0xd2   : > { %1840 = vrot.lane.b32.xlu0 %v1759_v39, %s11721_s17  ;;  %v1047_v35 = vpop.permute.xlu1 %1046  ;;  %v1990_v39 = vsel %vm1980_vm3, %v16311_v34, %v804_v53  ;;  %v16322_v34 = vrot.slane %v16321_v26, 1 }
  0xd3   : > { %v2023_v48 = vsel %vm2013_vm4, %v1990_v39, %v933_v58  ;;  %v2058_v44 = vsel %vm2046_vm5, %v2025_v50, %v1047_v35  ;;  %v16312_v35 = vrot.slane %v12644_v20, 1  ;;  %v16323_v39 = vld [vmem:[#allocation42_spill] sm:$0xff] }
  0xd4   : > { %v1045_v9 = vpop.permute.xlu0 %1044  ;;  %1970 = vrot.lane.b32.xlu1 %v1935_v4, %s11722_s18  ;;  %v1938_v50 = vsel %vm875_vm0, %v16323_v39, %v16322_v34  ;;  %v16328_v39 = vld [vmem:[#allocation8_spill] sm:$0xff] }
  0xd5   : > { %v2056_v4 = vsel %vm2046_vm5, %v2023_v48, %v1045_v9  ;;  %v1429_v18 = vsel %vm875_vm0, %v12730_v56, %v16312_v35 }
  0xd6   : > { %1968 = vrot.lane.b32.xlu0 %v1932_v28, %s11722_s18  ;;  %v1319_v59 = vpop.permute.xlu1 %1318 }
  0xd7   : > { %v2091_v53 = vsel %vm2079_vm6, %v2058_v44, %v1319_v59  ;;  %v16325_v44 = vld [vmem:[#allocation39_spill] sm:$0xff] }
  0xd8   : > { %v1317_v2 = vpop.permute.xlu0 %1316  ;;  %821 = vrot.lane.b32.xlu1 %v770_v33, %s11718_s14 }
  0xd9   : > { %v2089_v12 = vsel %vm2079_vm6, %v2056_v4, %v1317_v2 }
  0xda   : > { %819 = vrot.lane.b32.xlu0 %v758_v52, %s11718_s14  ;;  %v1447_v23 = vpop.permute.xlu1 %1446  ;;  %v16315_v52 = vshrl.u32 %v12733_v37, 16 }
  0xdb   : > { %v2124_v5 = vsel %vm2112_vm7, %v2091_v53, %v1447_v23  ;;  %v9432_v23 = vld [vmem:[%s11779_s29 + $0xc0] sm:$0xf] }
  0xdc   : > { %v1445_v14 = vpop.permute.xlu0 %1444  ;;  %950 = vrot.lane.b32.xlu1 %v917_v61, %s11717_s9  ;;  %v1778_v2 = vor.u32 %v12801_v13, %v16315_v52  ;;  %v343_v61 = vld [vmem:[%s11779_s29 + $0xb4] sm:$0xe]  ;;  %v16316_v13 = vld [vmem:[#allocation17_spill] sm:$0xff] }
  0xdd   : > { %v2122_v7 = vsel %vm2112_vm7, %v2089_v12, %v1445_v14  ;;  %v9431_v14 = vld [vmem:[%s11779_s29 + $0xb8] sm:$0xf]  ;;  %v9577_v17 = vcombine.low %v343_v61, %v16320_v22  ;;  %v13085_v61 = vld [vmem:[%s11779_s29 + $0xd0] sm:$0xf] }
  0xde   : > { %948 = vrot.lane.b32.xlu0 %v914_v36, %s11717_s9  ;;  %v1559_v45 = vpop.permute.xlu1 %1558  ;;  %v9430_v36 = vld [vmem:[%s11779_s29 + $0xb4] sm:$0xf]  ;;  %v1783_v6 = vsel %vm602_vm1, %v1778_v2, %v16316_v13  ;;  %v9496_v2 = vld [vmem:[%s11779_s29 + $0xcc] sm:$0xf]  ;;  %v13092_v13 = vld [vmem:[%s11779_s29 + $0xc4] sm:$0xf] }
  0xdf   : > { %v2157_v58 = vsel %vm2145_vm8, %v2124_v5, %v1559_v45  ;;  %v16319_v45 = vld [vmem:[#allocation19_spill] sm:$0xff]  ;;  %v921_v53 = vrot.slane %v9577_v17, 1  ;;  %v13064_v5 = vld [vmem:[%s11779_s29 + $0xbc] ss:$0 sps:$4 sm:$0x11]  }
  0xe0   : > { %v1557_v32 = vpop.permute.xlu0 %1556  ;;  %1062 = vrot.lane.b32.xlu1 %v16306_v15, %s11715_s30  ;;  %v1431_v34 = vrot.slane %v13064_v5, 1 }
  0xe1   : > { %v2155_v55 = vsel %vm2145_vm8, %v2122_v7, %v1557_v32  ;;  %v9593_v32 = vcombine.low %v9432_v23, %v13017_v16 }
  0xe2   : > { %1060 = vrot.lane.b32.xlu0 %v16308_v30, %s11715_s30  ;;  %v1831_v62 = vpop.permute.xlu1 %1830  ;;  %v789_v30 = vor.u32 %v12836_v42, %v784_v31  ;;  %v13057_v42 = vld [vmem:[%s11779_s29 + $0xc8] ss:$0 sps:$4 sm:$0x11]  }
  0xe3   : > { %v2190_v49 = vsel %vm2178_vm9, %v2157_v58, %v1831_v62  ;;  %v9576_v62 = vcombine.low %v342_v29, %v16325_v44  ;;  %v1434_v17 = vrot.slane %v13057_v42, 1  ;;  %v16329_v44 = vld [vmem:[#allocation9_spill] sm:$0xff] }
  0xe4   : > { %v1829_v0 = vpop.permute.xlu0 %1828  ;;  %1334 = vrot.lane.b32.xlu1 %v1283_v24, %s11719_s15  ;;  %v16324_v24 = vshrl.u32 %v12785_v21, 16  ;;  %v794_v4 = vsel %vm602_vm1, %v789_v30, %v12827_v3  ;;  %v1304_v3 = vshll.u32 %v13057_v42, 16 }
  0xe5   : > { %v2188_v9 = vsel %vm2178_vm9, %v2155_v55, %v1829_v0  ;;  %v16326_v0 = vld [vmem:[#allocation40_spill] sm:$0xff]  ;;  %v918_v35 = vrot.slane %v9576_v62, 1 }
  0xe6   : > { %1332 = vrot.lane.b32.xlu0 %v1271_v47, %s11719_s15  ;;  %v1959_v28 = vpop.permute.xlu1 %1958  ;;  %v777_v48 = vor.u32 %v12839_v41, %v16324_v24  ;;  %v9592_v47 = vcombine.low %v9430_v36, %v9431_v14  ;;  %v922_v12 = vrot.slane %v16326_v0, 1  ;;  %v1299_v41 = vshll.u32 %v9593_v32, 16  ;;  %v9494_v36 = vld [vmem:[%s11779_s29 + $0xc0] sm:$0xf] }
  0xe7   : > { %v2223_v20 = vsel %vm2211_vm10, %v2190_v49, %v1959_v28  ;;  %v13121_v24 = vld [vmem:[%s11779_s29 + $0xd4] ss:$0 sps:$4 sm:$0x11]  }
  0xe8   : > { %v1957_v33 = vpop.permute.xlu0 %1956  ;;  %1462 = vrot.lane.b32.xlu1 %v1429_v18, %s11716_s8  ;;  %v782_v58 = vsel %vm602_vm1, %v777_v48, %v12841_v10  ;;  %v16327_v18 = vld [vmem:[#allocation41_spill] sm:$0xff]  ;;  %v1287_v49 = vshll.u32 %v9592_v47, 16  ;;  %v923_v10 = vsel %vm875_vm0, %v921_v53, %v922_v12  ;;  %v1285_v8 = vshrl.u32 %v9592_v47, 16  ;;  %v13274_v12 = vld [vmem:[%s11779_s29 + $0xc8] ss:$0 sps:$4 sm:$0x11]  }
  0xe9   : > { %v2221_v56 = vsel %vm2211_vm10, %v2188_v9, %v1957_v33  ;;  %v919_v55 = vrot.slane %v16327_v18, 1  ;;  %v1297_v9 = vshrl.u32 %v9593_v32, 16  ;;  %v1292_v33 = vshll.u32 %v13064_v5, 16 }
  0xea   : > { %1460 = vrot.lane.b32.xlu0 %v1426_v1, %s11716_s8  ;;  %10988 = vmatprep.mubr.msk.bf16.mxu0 %vm2271_vm11, %v2221_v56  ;;  %v13005_v59 = vpop.permute.xlu1 %809  ;;  %v9464_v1 = vld [vmem:[%s11779_s29 + $0xb4] sm:$0xe]  ;;  %v1289_v52 = vrot.slane %v1287_v49, 1  ;;  %v11723_v53 = vmov 0   ;;  %v1816_v42 = vshll.u32 %v13121_v24, 16 }
  0xeb   : > { %10989 = vmatmul.mubr.msk.bf16.gmra.mrb[8].mxu0 %vm2271_vm11, %v2223_v20  ;;  %v1301_v20 = vrot.slane %v1299_v41, 1  ;;  %v920_v46 = vsel %vm875_vm0, %v918_v35, %v919_v55  ;;  %v9624_v29 = vcombine.low %v9464_v1, %v9431_v14  ;;  %v13103_v30 = vrot.slane %v1292_v33, 1  ;;  %2509 = vst.msk [vmem:[#allocation2 + $0x18] sm:$0xf] %vm2501_vm12, %v11723_v53  ;;  %2502 = vst.msk [vmem:[#allocation2] sm:$0xf] %vm2501_vm12, %v11723_v53 }
  0xec   : > { %v13010_v38 = vpop.permute.xlu0 %807  ;;  %1574 = vrot.lane.b32.xlu1 %v12713_v25, %s11720_s16  ;;  %2503 = vst.msk [vmem:[#allocation2 + $0x4] sm:$0xf] %vm2501_vm12, %v11723_v53  ;;  %2506 = vst.msk [vmem:[#allocation2 + $0xc] sm:$0xf] %vm2501_vm12, %v11723_v53 }
  0xed   : > { %v13113_v26 = vrot.slane %v9624_v29, 1  ;;  %v13127_v62 = vsel %vm1980_vm3, %v16329_v44, %v13010_v38  ;;  %2507 = vst.msk [vmem:[#allocation2 + $0x10] sm:$0xf] %vm2501_vm12, %v11723_v53  ;;  %2510 = vst.msk [vmem:[#allocation2 + $0x1c] sm:$0xf] %vm2501_vm12, %v11723_v53 }
  0xee   : > { %1572 = vrot.lane.b32.xlu0 %v12733_v37, %s11720_s16  ;;  %v13026_v15 = vpop.permute.xlu1 %938  ;;  %v16318_v37 = vrot.slane %v16317_v51, 1  ;;  %v1306_v51 = vrot.slane %v1304_v3, 1  ;;  %2512 = vst.msk [vmem:[#allocation2 + $0x24] sm:$0xf] %vm2501_vm12, %v11723_v53  ;;  %2513 = vst.msk [vmem:[#allocation2 + $0x28] sm:$0xf] %vm2501_vm12, %v11723_v53 }
  0xef   : > { %2515 = vst.msk [vmem:[#allocation2 + $0x30] sm:$0xf] %vm2501_vm12, %v11723_v53  ;;  %2516 = vst.msk [vmem:[#allocation2 + $0x34] sm:$0xf] %vm2501_vm12, %v11723_v53 }
  0xf0   : > { %v13030_v25 = vpop.permute.xlu0 %936  ;;  %1846 = vrot.lane.b32.xlu1 %v1795_v27, %s11721_s17  ;;  %v1941_v63 = vsel %vm875_vm0, %v16319_v45, %v16318_v37  ;;  %v9625_v27 = vcombine.low %v9465_v11, %v13017_v16  ;;  %v13097_v37 = vcombine.low %v9496_v2, %v13085_v61  ;;  %v13106_v16 = vcombine.low %v9494_v36, %v13092_v13 }
  0xf1   : > { %2518 = vst.msk [vmem:[#allocation2 + $0x3c] sm:$0xf] %vm2501_vm12, %v11723_v53  ;;  %2519 = vst.msk [vmem:[#allocation2 + $0x40] sm:$0xf] %vm2501_vm12, %v11723_v53  ;;  %v2027_v38 = vsel %vm2013_vm4, %v13127_v62, %v13030_v25 }
  0xf2   : > { %1844 = vrot.lane.b32.xlu0 %v1783_v6, %s11721_s17  ;;  %v13043_v54 = vpop.permute.xlu1 %1050  ;;  %v1302_v6 = vor.u32 %v1301_v20, %v1297_v9  ;;  %v13110_v22 = vrot.slane %v9625_v27, 1  ;;  %v1809_v48 = vshrl.u32 %v13097_v37, 16  ;;  %2521 = vst.msk [vmem:[#allocation2 + $0x48] sm:$0xf] %vm2501_vm12, %v11723_v53  ;;  %2522 = vst.msk [vmem:[#allocation2 + $0x4c] sm:$0xf] %vm2501_vm12, %v11723_v53 }
  0xf3   : > { %2524 = vst.msk [vmem:[#allocation2 + $0x54] sm:$0xf] %vm2501_vm12, %v11723_v53  ;;  %2525 = vst.msk [vmem:[#allocation2 + $0x58] sm:$0xf] %vm2501_vm12, %v11723_v53  ;;  %v1799_v41 = vshll.u32 %v13106_v16, 16  ;;  %v1804_v9 = vshll.u32 %v13274_v12, 16 }
  0xf4   : > { %v13053_v31 = vpop.permute.xlu0 %1048  ;;  %1974 = vrot.lane.b32.xlu1 %v1941_v63, %s11722_s18  ;;  %v13101_v63 = vor.u32 %v1289_v52, %v1285_v8  ;;  %2527 = vst.msk [vmem:[#allocation2 + $0x60] sm:$0xf] %vm2501_vm12, %v11723_v53  ;;  %2528 = vst.msk [vmem:[#allocation2 + $0x64] sm:$0xf] %vm2501_vm12, %v11723_v53  ;;  %v9529_v20 = vld [vmem:[%s11779_s29 + $0xcc] sm:$0xe] }
  0xf5   : > { %2530 = vst.msk [vmem:[#allocation2 + $0x6c] sm:$0xf] %vm2501_vm12, %v11723_v53  ;;  %2531 = vst.msk [vmem:[#allocation2 + $0x70] sm:$0xf] %vm2501_vm12, %v11723_v53  ;;  %v9528_v8 = vld [vmem:[%s11779_s29 + $0xc0] sm:$0xe]  ;;  %v9673_v27 = vcombine.low %v9529_v20, %v13085_v61  ;;  %s16044_s29 = scalar_lea.vmem %s16154_s7, %s10174_s26 }
  0xf6   : > { %1972 = vrot.lane.b32.xlu0 %v1938_v50, %s11722_s18  ;;  %v13066_v7 = vpop.permute.xlu1 %1322  ;;  %v1996_v50 = vsel %vm1980_vm3, %v16328_v39, %v13005_v59  ;;  %v13135_v59 = vsel %vm602_vm1, %v1302_v6, %v1306_v51  ;;  %2533 = vst.msk [vmem:[#allocation2 + $0x78] sm:$0xf] %vm2501_vm12, %v11723_v53  ;;  %2534 = vst.msk [vmem:[#allocation2 + $0x7c] sm:$0xf] %vm2501_vm12, %v11723_v53  ;;  %v1295_v0 = vsel %vm602_vm1, %v13101_v63, %v13103_v30  ;;  %v3095_v39 = vld [vmem:[#allocation2 + $0x4] sm:$0xf] }
  0xf7   : > { %2536 = vst.msk [vmem:[#allocation2 + $0x84] sm:$0xf] %vm2501_vm12, %v11723_v53  ;;  %2537 = vst.msk [vmem:[#allocation2 + $0x88] sm:$0xf] %vm2501_vm12, %v11723_v53  ;;  %v1806_v6 = vrot.slane %v1804_v9, 1  ;;  %v9672_v51 = vcombine.low %v9528_v8, %v13092_v13  ;;  %v1945_v30 = vrot.slane %v9673_v27, 1 }
  0xf8   : > { %v13071_v28 = vpop.permute.xlu0 %1320  ;;  %825 = vrot.lane.b32.xlu1 %v794_v4, %s11718_s14  ;;  %v13131_v4 = vsel %vm2013_vm4, %v1996_v50, %v13026_v15  ;;  %2539 = vst.msk [vmem:[#allocation2 + $0x90] sm:$0xf] %vm2501_vm12, %v11723_v53  ;;  %2540 = vst.msk [vmem:[#allocation2 + $0x94] sm:$0xf] %vm2501_vm12, %v11723_v53  ;;  %v3094_v13 = vld [vmem:[#allocation2] sm:$0xf] }
  0xf9   : > { %2542 = vst.msk [vmem:[#allocation2 + $0x9c] sm:$0xf] %vm2501_vm12, %v11723_v53  ;;  %2543 = vst.msk [vmem:[#allocation2 + $0xa0] sm:$0xf] %vm2501_vm12, %v11723_v53  ;;  %v2062_v15 = vsel %vm2046_vm5, %v13131_v4, %v13043_v54  ;;  %v1435_v54 = vsel %vm875_vm0, %v13110_v22, %v1434_v17  ;;  %v1942_v17 = vrot.slane %v9672_v51, 1 }
  0xfa   : > { %823 = vrot.lane.b32.xlu0 %v782_v58, %s11718_s14  ;;  %v13080_v56 = vpop.permute.xlu1 %1450  ;;  %2545 = vst.msk [vmem:[#allocation2 + $0xa8] sm:$0xf] %vm2501_vm12, %v11723_v53  ;;  %2546 = vst.msk [vmem:[#allocation2 + $0xac] sm:$0xf] %vm2501_vm12, %v11723_v53  ;;  %v2060_v58 = vsel %vm2046_vm5, %v2027_v38, %v13053_v31  ;;  %v2095_v35 = vsel %vm2079_vm6, %v2062_v15, %v13066_v7  ;;  %v1432_v31 = vsel %vm875_vm0, %v13113_v26, %v1431_v34 }
  0xfb   : > { %2548 = vst.msk [vmem:[#allocation2 + $0xb4] sm:$0xf] %vm2501_vm12, %v11723_v53  ;;  %2549 = vst.msk [vmem:[#allocation2 + $0xb8] sm:$0xf] %vm2501_vm12, %v11723_v53  ;;  %v2093_v18 = vsel %vm2079_vm6, %v2060_v58, %v13071_v28  ;;  %v2128_v55 = vsel %vm2112_vm7, %v2095_v35, %v13080_v56  ;;  %v1797_v28 = vshrl.u32 %v13106_v16, 16  ;;  %v1943_v26 = vrot.slane %v13274_v12, 1 }
  0xfc   : > { %v13087_v23 = vpop.permute.xlu0 %1448  ;;  %954 = vrot.lane.b32.xlu1 %v923_v10, %s11717_s9  ;;  %2551 = vst.msk [vmem:[#allocation2 + $0xc0] sm:$0xf] %vm2501_vm12, %v11723_v53  ;;  %2552 = vst.msk [vmem:[#allocation2 + $0xc4] sm:$0xf] %vm2501_vm12, %v11723_v53  ;;  %v1801_v10 = vrot.slane %v1799_v41, 1 }
  0xfd   : > { %2554 = vst.msk [vmem:[#allocation2 + $0xcc] sm:$0xf] %vm2501_vm12, %v11723_v53  ;;  %2555 = vst.msk [vmem:[#allocation2 + $0xd0] sm:$0xf] %vm2501_vm12, %v11723_v53  ;;  %v2126_v5 = vsel %vm2112_vm7, %v2093_v18, %v13087_v23  ;;  %v1818_v23 = vrot.slane %v1816_v42, 1  ;;  %v16331_v18 = vld [vmem:[#allocation11_spill] sm:$0xff] }
  0xfe   : > { %952 = vrot.lane.b32.xlu0 %v920_v46, %s11717_s9  ;;  %v13099_v45 = vpop.permute.xlu1 %1562  ;;  %5746 = vst [vmem:[#allocation3] sm:$0xf] %v11723_v53  ;;  %5747 = vst [vmem:[#allocation3 + $0x4] sm:$0xf] %v11723_v53  ;;  %v1802_v36 = vor.u32 %v1801_v10, %v1797_v28 }
  0xff   : > { %5748 = vst [vmem:[#allocation3 + $0x8] sm:$0x1] %v11723_v53  ;;  %5749 = vst [vmem:[#allocation3 + $0xc] sm:$0xf] %v11723_v53  ;;  %v2161_v7 = vsel %vm2145_vm8, %v2128_v55, %v13099_v45 }
 0x100   : > { %v13108_v14 = vpop.permute.xlu0 %1560  ;;  %1066 = vrot.lane.b32.xlu1 %v9593_v32, %s11715_s30  ;;  %v1811_v32 = vshll.u32 %v13097_v37, 16  ;;  %5750 = vst [vmem:[#allocation3 + $0x10] sm:$0xf] %v11723_v53  ;;  %5751 = vst [vmem:[#allocation3 + $0x14] sm:$0x1] %v11723_v53  ;;  %v1807_v22 = vsel %vm602_vm1, %v1802_v36, %v1806_v6 }
 0x101   : > { %5752 = vst [vmem:[#allocation3 + $0x18] sm:$0xf] %v11723_v53  ;;  %5753 = vst [vmem:[#allocation3 + $0x1c] sm:$0xf] %v11723_v53  ;;  %v2159_v3 = vsel %vm2145_vm8, %v2126_v5, %v13108_v14  ;;  %v1946_v14 = vrot.slane %v13121_v24, 1  ;;  %v1944_v24 = vsel %vm875_vm0, %v1942_v17, %v1943_v26 }
 0x102   : > { %1064 = vrot.lane.b32.xlu0 %v9592_v47, %s11715_s30  ;;  %5754 = vst [vmem:[#allocation3 + $0x20] sm:$0x1] %v11723_v53  ;;  %5755 = vst [vmem:[#allocation3 + $0x24] sm:$0xf] %v11723_v53  ;;  %v1835_v47 = vpop.permute.xlu1 %1834  ;;  %v1813_v49 = vrot.slane %v1811_v32, 1 }
 0x103   : > { %5756 = vst [vmem:[#allocation3 + $0x28] sm:$0xf] %v11723_v53  ;;  %5757 = vst [vmem:[#allocation3 + $0x2c] sm:$0x1] %v11723_v53  ;;  %v2194_v11 = vsel %vm2178_vm9, %v2161_v7, %v1835_v47 }
 0x104   : > { %5758 = vst [vmem:[#allocation3 + $0x30] sm:$0xf] %v11723_v53  ;;  %5759 = vst [vmem:[#allocation3 + $0x34] sm:$0xf] %v11723_v53  ;;  %v1833_v25 = vpop.permute.xlu0 %1832  ;;  %1338 = vrot.lane.b32.xlu1 %v13135_v59, %s11719_s15  ;;  %v1814_v2 = vor.u32 %v1813_v49, %v1809_v48 }
 0x105   : > { %5760 = vst [vmem:[#allocation3 + $0x38] sm:$0x1] %v11723_v53  ;;  %5761 = vst [vmem:[#allocation3 + $0x3c] sm:$0xf] %v11723_v53  ;;  %v2192_v33 = vsel %vm2178_vm9, %v2159_v3, %v1833_v25  ;;  %v16330_v25 = vld [vmem:[#allocation10_spill] sm:$0xff] }
 0x106   : > { %5762 = vst [vmem:[#allocation3 + $0x40] sm:$0xf] %v11723_v53  ;;  %5763 = vst [vmem:[#allocation3 + $0x44] sm:$0x1] %v11723_v53  ;;  %1336 = vrot.lane.b32.xlu0 %v1295_v0, %s11719_s15  ;;  %v1963_v1 = vpop.permute.xlu1 %1962  ;;  %v1819_v63 = vsel %vm602_vm1, %v1814_v2, %v1818_v23 }
 0x107   : > { %5764 = vst [vmem:[#allocation3 + $0x48] sm:$0xf] %v11723_v53  ;;  %5765 = vst [vmem:[#allocation3 + $0x4c] sm:$0xf] %v11723_v53  ;;  %v2227_v56 = vsel %vm2211_vm10, %v2194_v11, %v1963_v1 }
 0x108   : > { %5766 = vst [vmem:[#allocation3 + $0x50] sm:$0x1] %v11723_v53  ;;  %5767 = vst [vmem:[#allocation3 + $0x54] sm:$0xf] %v11723_v53  ;;  %v1961_v46 = vpop.permute.xlu0 %1960  ;;  %1466 = vrot.lane.b32.xlu1 %v1435_v54, %s11716_s8 }
 0x109   : > { %5768 = vst [vmem:[#allocation3 + $0x58] sm:$0xf] %v11723_v53  ;;  %5769 = vst [vmem:[#allocation3 + $0x5c] sm:$0x1] %v11723_v53  ;;  %v2225_v52 = vsel %vm2211_vm10, %v2192_v33, %v1961_v46 }
 0x10a   : > { %5770 = vst [vmem:[#allocation3 + $0x60] sm:$0xf] %v11723_v53  ;;  %5771 = vst [vmem:[#allocation3 + $0x64] sm:$0xf] %v11723_v53  ;;  %1464 = vrot.lane.b32.xlu0 %v1432_v31, %s11716_s8  ;;  %10992 = vmatprep.mubr.msk.bf16.mxu0 %vm2271_vm11, %v2225_v52  ;;  %v814_v29 = vpop.permute.xlu1 %813 }
 0x10b   : > { %5772 = vst [vmem:[#allocation3 + $0x68] sm:$0x1] %v11723_v53  ;;  %5773 = vst [vmem:[#allocation3 + $0x6c] sm:$0xf] %v11723_v53  ;;  %10993 = vmatmul.mubr.msk.bf16.gmra.mrb[12].mxu0 %vm2271_vm11, %v2227_v56  ;;  %v2000_v54 = vsel %vm1980_vm3, %v16330_v25, %v814_v29 }
 0x10c   : > { %5774 = vst [vmem:[#allocation3 + $0x70] sm:$0xf] %v11723_v53  ;;  %5775 = vst [vmem:[#allocation3 + $0x74] sm:$0x1] %v11723_v53  ;;  %v812_v45 = vpop.permute.xlu0 %811  ;;  %1578 = vrot.lane.b32.xlu1 %v13097_v37, %s11720_s16  ;;  %v13366_v37 = vcombine.low %v3094_v13, %v3095_v39 }
 0x10d   : > { %5776 = vst [vmem:[#allocation3 + $0x78] sm:$0xf] %v11723_v53  ;;  %5777 = vst [vmem:[#allocation3 + $0x7c] sm:$0xf] %v11723_v53  ;;  %v1998_v55 = vsel %vm1980_vm3, %v16331_v18, %v812_v45 }
 0x10e   : > { %5778 = vst [vmem:[#allocation3 + $0x80] sm:$0x1] %v11723_v53  ;;  %5779 = vst [vmem:[#allocation3 + $0x84] sm:$0xf] %v11723_v53  ;;  %1576 = vrot.lane.b32.xlu0 %v13106_v16, %s11720_s16  ;;  %v943_v61 = vpop.permute.xlu1 %942  ;;  %v1947_v16 = vsel %vm875_vm0, %v1945_v30, %v1946_v14  ;;  %v3418_v44 = vshll.u32 %v13366_v37, 16  ;;  %v3416_v4 = vshrl.u32 %v13366_v37, 16 }
 0x10f   : > { %5780 = vst [vmem:[#allocation3 + $0x88] sm:$0xf] %v11723_v53  ;;  %5781 = vst [vmem:[#allocation3 + $0x8c] sm:$0x1] %v11723_v53  ;;  %v2033_v31 = vsel %vm2013_vm4, %v2000_v54, %v943_v61 }
 0x110   : > { %5782 = vst [vmem:[#allocation3 + $0x90] sm:$0xf] %v11723_v53  ;;  %5783 = vst [vmem:[#allocation3 + $0x94] sm:$0xf] %v11723_v53  ;;  %v941_v34 = vpop.permute.xlu0 %940  ;;  %1850 = vrot.lane.b32.xlu1 %v1819_v63, %s11721_s17  ;;  %v3420_v59 = vrot.slane %v3418_v44, 1 }
 0x111   : > { %5784 = vst [vmem:[#allocation3 + $0x98] sm:$0x1] %v11723_v53  ;;  %5785 = vst [vmem:[#allocation3 + $0x9c] sm:$0xf] %v11723_v53  ;;  %v2031_v42 = vsel %vm2013_vm4, %v1998_v55, %v941_v34 }
 0x112   : > { %5786 = vst [vmem:[#allocation3 + $0xa0] sm:$0xf] %v11723_v53  ;;  %5787 = vst [vmem:[#allocation3 + $0xa4] sm:$0x1] %v11723_v53  ;;  %1848 = vrot.lane.b32.xlu0 %v1807_v22, %s11721_s17  ;;  %v1055_v50 = vpop.permute.xlu1 %1054  ;;  %v3421_v38 = vor.u32 %v3420_v59, %v3416_v4 }
 0x113   : > { %5788 = vst [vmem:[#allocation3 + $0xa8] sm:$0xf] %v11723_v53  ;;  %5789 = vst [vmem:[#allocation3 + $0xac] sm:$0xf] %v11723_v53  ;;  %v2066_v5 = vsel %vm2046_vm5, %v2033_v31, %v1055_v50 }
 0x114   : > { %5790 = vst [vmem:[#allocation3 + $0xb0] sm:$0x1] %v11723_v53  ;;  %5791 = vst [vmem:[#allocation3 + $0xb4] sm:$0xf] %v11723_v53  ;;  %v1053_v62 = vpop.permute.xlu0 %1052  ;;  %1978 = vrot.lane.b32.xlu1 %v1947_v16, %s11722_s18 }
 0x115   : > { %5792 = vst [vmem:[#allocation3 + $0xb8] sm:$0xf] %v11723_v53  ;;  %5793 = vst [vmem:[#allocation3 + $0xbc] sm:$0x1] %v11723_v53  ;;  %v2064_v49 = vsel %vm2046_vm5, %v2031_v42, %v1053_v62 }
 0x116   : > { %5794 = vst [vmem:[#allocation3 + $0xc0] sm:$0xf] %v11723_v53  ;;  %5795 = vst [vmem:[#allocation3 + $0xc4] sm:$0xf] %v11723_v53  ;;  %1976 = vrot.lane.b32.xlu0 %v1944_v24, %s11722_s18 }
 0x117   : > { %5796 = vst [vmem:[#allocation3 + $0xc8] sm:$0x1] %v11723_v53  ;;  %5797 = vst [vmem:[#allocation3 + $0xcc] sm:$0xf] %v11723_v53 }
 0x118   : > { %5798 = vst [vmem:[#allocation3 + $0xd0] sm:$0xf] %v11723_v53  ;;  %5799 = vst [vmem:[#allocation3 + $0xd4] sm:$0x1] %v11723_v53  ;;  %v1325_v47 = vpop.permute.xlu0 %1324 }
 0x119   : > { %2511 = vst.msk [vmem:[#allocation2 + $0x20] sm:$0x1] %vm2504_vm13, %v11723_v53  ;;  %2505 = vst.msk [vmem:[#allocation2 + $0x8] sm:$0x1] %vm2504_vm13, %v11723_v53  ;;  %v2097_v11 = vsel %vm2079_vm6, %v2064_v49, %v1325_v47 }
 0x11a   : > { %2508 = vst.msk [vmem:[#allocation2 + $0x14] sm:$0x1] %vm2504_vm13, %v11723_v53  ;;  %2514 = vst.msk [vmem:[#allocation2 + $0x2c] sm:$0x1] %vm2504_vm13, %v11723_v53 }
 0x11b   : > { %2517 = vst.msk [vmem:[#allocation2 + $0x38] sm:$0x1] %vm2504_vm13, %v11723_v53  ;;  %2520 = vst.msk [vmem:[#allocation2 + $0x44] sm:$0x1] %vm2504_vm13, %v11723_v53 }
 0x11c   : > { %2523 = vst.msk [vmem:[#allocation2 + $0x50] sm:$0x1] %vm2504_vm13, %v11723_v53  ;;  %2526 = vst.msk [vmem:[#allocation2 + $0x5c] sm:$0x1] %vm2504_vm13, %v11723_v53  ;;  %v1453_v41 = vpop.permute.xlu0 %1452 }
 0x11d   : > { %2529 = vst.msk [vmem:[#allocation2 + $0x68] sm:$0x1] %vm2504_vm13, %v11723_v53  ;;  %2532 = vst.msk [vmem:[#allocation2 + $0x74] sm:$0x1] %vm2504_vm13, %v11723_v53  ;;  %v2130_v10 = vsel %vm2112_vm7, %v2097_v11, %v1453_v41 }
 0x11e   : > { %2535 = vst.msk [vmem:[#allocation2 + $0x80] sm:$0x1] %vm2504_vm13, %v11723_v53  ;;  %2538 = vst.msk [vmem:[#allocation2 + $0x8c] sm:$0x1] %vm2504_vm13, %v11723_v53 }
 0x11f   : > { %2541 = vst.msk [vmem:[#allocation2 + $0x98] sm:$0x1] %vm2504_vm13, %v11723_v53  ;;  %2544 = vst.msk [vmem:[#allocation2 + $0xa4] sm:$0x1] %vm2504_vm13, %v11723_v53 }
 0x120   : > { %2547 = vst.msk [vmem:[#allocation2 + $0xb0] sm:$0x1] %vm2504_vm13, %v11723_v53  ;;  %2550 = vst.msk [vmem:[#allocation2 + $0xbc] sm:$0x1] %vm2504_vm13, %v11723_v53  ;;  %v1565_v35 = vpop.permute.xlu0 %1564 }
 0x121   : > { %2553 = vst.msk [vmem:[#allocation2 + $0xc8] sm:$0x1] %vm2504_vm13, %v11723_v53  ;;  %2556 = vst.msk [vmem:[#allocation2 + $0xd4] sm:$0x1] %vm2504_vm13, %v11723_v53  ;;  %v1327_v53 = vpop.permute.xlu1 %1326  ;;  %v2163_v20 = vsel %vm2145_vm8, %v2130_v10, %v1565_v35 }
 0x122   : > { %v11276_v48 = vld [vmem:[#allocation2 + $0x8] ss:$0 sps:$4 sm:$0x11]   ;;  %v2099_v28 = vsel %vm2079_vm6, %v2066_v5, %v1327_v53 }
 0x123   : > { %v3423_v32 = vshll.u32 %v11276_v48, 16 }
 0x124   : > { %v1837_v3 = vpop.permute.xlu0 %1836 }
 0x125   : > { %v3425_v15 = vrot.slane %v3423_v32, 1  ;;  %v1455_v12 = vpop.permute.xlu1 %1454  ;;  %v2196_v46 = vsel %vm2178_vm9, %v2163_v20, %v1837_v3 }
 0x126   : > { %v2132_v1 = vsel %vm2112_vm7, %v2099_v28, %v1455_v12 }
 0x127   : > { %v3426_v0 = vsel %vm602_vm1, %v3421_v38, %v3425_v15 }
 0x128   : > { %3607 = vrot.lane.b32.xlu1 %v3426_v0, %s11724_s21  ;;  %v1965_v52 = vpop.permute.xlu0 %1964 }
 0x129   : > { %v1567_v58 = vpop.permute.xlu1 %1566  ;;  %v2229_v2 = vsel %vm2211_vm10, %v2196_v46, %v1965_v52 }
 0x12a   : > { %v2165_v9 = vsel %vm2145_vm8, %v2132_v1, %v1567_v58  ;;  %10996 = vmatprep.mubr.msk.bf16.mxu1 %vm2271_vm11, %v2229_v2 }
 0x12c   : > { %v816_v27 = vpop.permute.xlu0 %815 }
 0x12d   : > { %v1839_v7 = vpop.permute.xlu1 %1838  ;;  %v2002_v26 = vsel %vm1980_vm3, %v12410_v57, %v816_v27 }
 0x12e   : > { %v2198_v33 = vsel %vm2178_vm9, %v2165_v9, %v1839_v7 }
 0x130   : > { %v945_v36 = vpop.permute.xlu0 %944 }
 0x131   : > { %v1967_v56 = vpop.permute.xlu1 %1966  ;;  %v2035_v13 = vsel %vm2013_vm4, %v2002_v26, %v945_v36 }
 0x132   : > { %v2231_v8 = vsel %vm2211_vm10, %v2198_v33, %v1967_v56 }
 0x133   : > { %10997 = vmatmul.mubr.msk.bf16.vlgmr.msra.gmra.mrb[0].mxu1 %vm2271_vm11, %v2231_v8 }
 0x134   : > { %v1057_v51 = vpop.permute.xlu0 %1056 }
 0x135   : > { %v818_v23 = vpop.permute.xlu1 %817  ;;  %v2068_v50 = vsel %vm2046_vm5, %v2035_v13, %v1057_v51  ;;  %v11294_v51 = vld [vmem:[%s16150_s3 + $0x40] sm:$0xff]  }
 0x136   : > { %v2004_v17 = vsel %vm1980_vm3, %v16269_v60, %v818_v23  ;;  %10258 = vmatprep.subr.bf16.mxu1 %v11294_v51 }
 0x138   : > { %v1329_v63 = vpop.permute.xlu0 %1328 }
 0x139   : > { %v947_v29 = vpop.permute.xlu1 %946  ;;  %v2101_v44 = vsel %vm2079_vm6, %v2068_v50, %v1329_v63  ;;  %v11295_v63 = vld [vmem:[%s16150_s3] sm:$0xff]   ;;  %v11302_v50 = vld [vmem:[%s16150_s3 + $0x18] sm:$0xff]  }
 0x13a   : > { %v2037_v34 = vsel %vm2013_vm4, %v2004_v17, %v947_v29  ;;  %10259 = vmatpush3.bf16.msra.mxu1 %v11295_v63 }
 0x13c   : > { %v1457_v14 = vpop.permute.xlu0 %1456 }
 0x13d   : > { %v1059_v6 = vpop.permute.xlu1 %1058  ;;  %v2134_v60 = vsel %vm2112_vm7, %v2101_v44, %v1457_v14  ;;  %v13464_v44 = vld [vmem:[%s16149_s2] ss:$0 sm:$0xff] }
 0x13e   : > { %v2070_v39 = vsel %vm2046_vm5, %v2037_v34, %v1059_v6  ;;  %v11299_v34 = vld [vmem:[%s16150_s3 + $0x10] sm:$0xff]  }
 0x140   : > { %v1569_v22 = vpop.permute.xlu0 %1568 }
 0x141   : > { %v1331_v45 = vpop.permute.xlu1 %1330  ;;  %v2167_v4 = vsel %vm2145_vm8, %v2134_v60, %v1569_v22  ;;  %v11298_v22 = vld [vmem:[%s16150_s3 + $0x50] sm:$0xff]   ;;  %v11304_v60 = vld [vmem:[%s16150_s3 + $0x60] sm:$0xff]  }
 0x142   : > { %v2103_v24 = vsel %vm2079_vm6, %v2070_v39, %v1331_v45 }
 0x144   : > { %v1841_v48 = vpop.permute.xlu0 %1840 }
 0x145   : > { %v1459_v30 = vpop.permute.xlu1 %1458  ;;  %v2200_v53 = vsel %vm2178_vm9, %v2167_v4, %v1841_v48 }
 0x146   : > { %v2136_v62 = vsel %vm2112_vm7, %v2103_v24, %v1459_v30  ;;  %v11296_v30 = vld [vmem:[%s16150_s3 + $0x48] sm:$0xff]  }
 0x147   : > { %10260 = vmatprep.subr.bf16.mxu1 %v11296_v30 }
 0x148   : > { %v1969_v15 = vpop.permute.xlu0 %1968 }
 0x149   : > { %v1571_v61 = vpop.permute.xlu1 %1570  ;;  %v2233_v47 = vsel %vm2211_vm10, %v2200_v53, %v1969_v15 }
 0x14a   : > { %v2169_v57 = vsel %vm2145_vm8, %v2136_v62, %v1571_v61  ;;  %11000 = vmatprep.mubr.msk.bf16.mxu1 %vm2271_vm11, %v2233_v47  ;;  %v11297_v61 = vld [vmem:[%s16150_s3 + $0x8] sm:$0xff]  }
 0x14b   : > { %10261 = vmatpush3.bf16.msra.mxu1 %v11297_v61 }
 0x14c   : > { %v820_v12 = vpop.permute.xlu0 %819  ;;  %10262 = vmatprep.subr.bf16.mxu1 %v11298_v22 }
 0x14d   : > { %v1843_v16 = vpop.permute.xlu1 %1842  ;;  %v2006_v49 = vsel %vm1980_vm3, %v12596_v19, %v820_v12 }
 0x14e   : > { %v2202_v59 = vsel %vm2178_vm9, %v2169_v57, %v1843_v16  ;;  %v11301_v16 = vld [vmem:[%s16150_s3 + $0x58] sm:$0xff]  }
 0x14f   : > { %10263 = vmatpush3.bf16.msra.mxu1 %v11299_v34  ;;  %v16334_v34 = vmov 0 }
 0x150   : > { %v949_v58 = vpop.permute.xlu0 %948  ;;  %10264 = vmatprep.subr.bf16.mxu1 %v11301_v16 }
 0x151   : > { %v1971_v32 = vpop.permute.xlu1 %1970  ;;  %v2039_v3 = vsel %vm2013_vm4, %v2006_v49, %v949_v58  ;;  %v11309_v49 = vld [vmem:[%s16150_s3 + $0x28] sm:$0xff]  }
 0x152   : > { %v2235_v38 = vsel %vm2211_vm10, %v2202_v59, %v1971_v32  ;;  %v11305_v32 = vld [vmem:[%s16150_s3 + $0x20] sm:$0xff]  }
 0x153   : > { %11001 = vmatmul.mubr.msk.bf16.gmra.mrb[4].mxu1 %vm2271_vm11, %v2235_v38 }
 0x154   : > { %v1061_v25 = vpop.permute.xlu0 %1060  ;;  %10265 = vmatpush3.bf16.msra.mxu1 %v11302_v50 }
 0x155   : > { %v822_v0 = vpop.permute.xlu1 %821  ;;  %v2072_v10 = vsel %vm2046_vm5, %v2039_v3, %v1061_v25  ;;  %10266 = vmatprep.subr.bf16.mxu1 %v11304_v60 }
 0x156   : > { %v2008_v7 = vsel %vm1980_vm3, %v12570_v40, %v822_v0 }
 0x158   : > { %v1333_v18 = vpop.permute.xlu0 %1332  ;;  %10267 = vmatpush3.bf16.msra.mxu1 %v11305_v32 }
 0x159   : > { %v951_v41 = vpop.permute.xlu1 %950  ;;  %v2105_v33 = vsel %vm2079_vm6, %v2072_v10, %v1333_v18 }
 0x15a   : > { %v2041_v28 = vsel %vm2013_vm4, %v2008_v7, %v951_v41 }
 0x15c   : > { %v1461_v31 = vpop.permute.xlu0 %1460 }
 0x15d   : > { %v1063_v35 = vpop.permute.xlu1 %1062  ;;  %v2138_v40 = vsel %vm2112_vm7, %v2105_v33, %v1461_v31 }
 0x15e   : > { %v2074_v11 = vsel %vm2046_vm5, %v2041_v28, %v1063_v35 }
 0x160   : > { %v1573_v5 = vpop.permute.xlu0 %1572 }
 0x161   : > { %v1335_v54 = vpop.permute.xlu1 %1334  ;;  %v2171_v46 = vsel %vm2145_vm8, %v2138_v40, %v1573_v5 }
 0x162   : > { %v2107_v9 = vsel %vm2079_vm6, %v2074_v11, %v1335_v54 }
 0x164   : > { %v1845_v20 = vpop.permute.xlu0 %1844 }
 0x165   : > { %v1463_v55 = vpop.permute.xlu1 %1462  ;;  %v2204_v2 = vsel %vm2178_vm9, %v2171_v46, %v1845_v20 }
 0x166   : > { %v2140_v56 = vsel %vm2112_vm7, %v2107_v9, %v1463_v55  ;;  %v11308_v55 = vld [vmem:[%s16150_s3 + $0x68] sm:$0xff]  }
 0x167   : > { %10268 = vmatprep.subr.bf16.mxu1 %v11308_v55 }
 0x168   : > { %v1973_v27 = vpop.permute.xlu0 %1972  ;;  %10269 = vmatpush3.bf16.msra.mxu1 %v11309_v49 }
 0x169   : > { %v1575_v42 = vpop.permute.xlu1 %1574  ;;  %v2237_v29 = vsel %vm2211_vm10, %v2204_v2, %v1973_v27 }
 0x16a   : > { %v2173_v19 = vsel %vm2145_vm8, %v2140_v56, %v1575_v42  ;;  %11004 = vmatprep.mubr.msk.bf16.mxu1 %vm2271_vm11, %v2237_v29 }
 0x16c   : > { %v824_v6 = vpop.permute.xlu0 %823 }
 0x16d   : > { %v1847_v1 = vpop.permute.xlu1 %1846  ;;  %v2010_v0 = vsel %vm1980_vm3, %v12785_v21, %v824_v6  ;;  %v11313_v6 = vld [vmem:[%s16150_s3 + $0x30] sm:$0xff]  }
 0x16e   : > { %v2206_v8 = vsel %vm2178_vm9, %v2173_v19, %v1847_v1 }
 0x170   : > { %v953_v14 = vpop.permute.xlu0 %952 }
 0x171   : > { %v1975_v52 = vpop.permute.xlu1 %1974  ;;  %v2043_v25 = vsel %vm2013_vm4, %v2010_v0, %v953_v14 }
 0x172   : > { %v2239_v23 = vsel %vm2211_vm10, %v2206_v8, %v1975_v52  ;;  %v11312_v52 = vld [vmem:[%s16150_s3 + $0x70] sm:$0xff]  }
 0x173   : > { %11005 = vmatmul.mubr.msk.bf16.gmra.mrb[8].mxu1 %vm2271_vm11, %v2239_v23  ;;  %10270 = vmatprep.subr.bf16.mxu1 %v11312_v52 }
 0x174   : > { %v1065_v26 = vpop.permute.xlu0 %1064  ;;  %10271 = vmatpush3.bf16.msra.mxu1 %v11313_v6 }
 0x175   : > { %v826_v36 = vpop.permute.xlu1 %825  ;;  %v2076_v21 = vsel %vm2046_vm5, %v2043_v25, %v1065_v26  ;;  %v2980_v26 = vld [vmem:[#allocation2 + $0xc] sm:$0xf] }
 0x176   : > { %v2012_v53 = vsel %vm1980_vm3, %v12779_v43, %v826_v36  ;;  %vm13506_vm3 = vmand %vm2501_vm12, %vm2978_vm14 }
 0x178   : > { %v1337_v39 = vpop.permute.xlu0 %1336 }
 0x179   : > { %v955_v45 = vpop.permute.xlu1 %954  ;;  %v2109_v28 = vsel %vm2079_vm6, %v2076_v21, %v1337_v39 }
 0x17a   : > { %v2045_v12 = vsel %vm2013_vm4, %v2012_v53, %v955_v45  ;;  %v2989_v45 = vld [vmem:[#allocation2 + $0x18] sm:$0xf]  ;;  %vm13513_vm4 = vmor %vm2653_vm15, %vm2654_vm2 }
 0x17b   : > { %v16335_v34 = vsel %vm13513_vm4, 4294967295, %v16334_v34 }
 0x17c   : > { %v1465_v48 = vpop.permute.xlu0 %1464  ;;  %16336 = vst [vmem:[#allocation12_spill] sm:$0xff] %v16335_v34 }
 0x17d   : > { %v1067_v17 = vpop.permute.xlu1 %1066  ;;  %v2142_v9 = vsel %vm2112_vm7, %v2109_v28, %v1465_v48  ;;  %v2993_v48 = vld [vmem:[#allocation2 + $0x20] sm:$0x1] }
 0x17e   : > { %v10982_v62 = vpop.f32.mrb[0].mxu0  ;;  %v2078_v43 = vsel %vm2046_vm5, %v2045_v12, %v1067_v17  ;;  %vm13520_vm5 = vmand %vm2504_vm13, %vm2653_vm15 }
 0x17f   : > { %v2351_v57 = vadd.f32 %v10982_v62, %v13464_v44  ;;  %v2342_v4 = vpop.f32.mrb[1].mxu0 }
 0x180   : > { %v2343_v38 = vadd.f32 %v13464_v44, %v2342_v4  ;;  %v10983_v15 = vpop.f32.mrb[2].mxu0  ;;  %v1577_v47 = vpop.permute.xlu0 %1576 }
 0x181   : > { %v1339_v13 = vpop.permute.xlu1 %1338  ;;  %v2471_v41 = vmax.f32 %v2351_v57, 0.0  ;;  %v2354_v58 = vadd.f32 %v10983_v15, %v13464_v44  ;;  %v2345_v35 = vpop.f32.mrb[3].mxu0  ;;  %v2175_v19 = vsel %vm2145_vm8, %v2142_v9, %v1577_v47  ;;  %v11314_v57 = vld [vmem:[%s16150_s3 + $0x78] sm:$0xff]  }
 0x182   : > { %v2469_v54 = vmax.f32 %v2343_v38, 0.0  ;;  %v2346_v18 = vadd.f32 %v13464_v44, %v2345_v35  ;;  %v2111_v31 = vsel %vm2079_vm6, %v2078_v43, %v1339_v13  ;;  %v2986_v38 = vld [vmem:[#allocation2 + $0x14] sm:$0x1]  ;;  %v11315_v15 = vld [vmem:[%s16150_s3 + $0x38] sm:$0xff]   ;;  %10272 = vmatprep.subr.bf16.mxu1 %v11314_v57  ;;  %vm4663_vm6 = vcmask 523264  }
 0x183   : > { %v10177_v42 = vpack.c.bf16 %v2471_v41, %v2471_v41  ;;  %v2472_v5 = vmax.f32 %v2354_v58, 0.0  ;;  %10273 = vmatpush3.bf16.msra.mxu1 %v11315_v15 }
 0x184   : > { %v10175_v11 = vpack.c.bf16 %v2469_v54, %v2469_v54  ;;  %v2470_v1 = vmax.f32 %v2346_v18, 0.0  ;;  %v1849_v10 = vpop.permute.xlu0 %1848 }
 0x185   : > { %v1467_v24 = vpop.permute.xlu1 %1466  ;;  %v2674_v20 = vshrl.u32 %v10177_v42, 16  ;;  %v10178_v56 = vpack.c.bf16 %v2472_v5, %v2472_v5  ;;  %v2677_v23 = vshll.u32 %v10177_v42, 16  ;;  %v2208_v29 = vsel %vm2178_vm9, %v2175_v19, %v1849_v10 }
 0x186   : > { %v2144_v3 = vsel %vm2112_vm7, %v2111_v31, %v1467_v24  ;;  %v2657_v40 = vshrl.u32 %v10175_v11, 16  ;;  %v10176_v46 = vpack.c.bf16 %v2470_v1, %v2470_v1  ;;  %v2660_v30 = vshll.u32 %v10175_v11, 16 }
 0x187   : > { %v2676_v2 = vrot.slane %v2674_v20, 7  ;;  %v2682_v27 = vshrl.u32 %v10178_v56, 16  ;;  %v2685_v39 = vshll.u32 %v10178_v56, 16  ;;  %vm6217_vm7 = vcmask 1043456  }
 0x188   : > { %v2659_v63 = vrot.slane %v2657_v40, 7  ;;  %v2665_v14 = vshrl.u32 %v10176_v46, 16  ;;  %v1977_v22 = vpop.permute.xlu0 %1976  ;;  %v2668_v60 = vshll.u32 %v10176_v46, 16 }
 0x189   : > { %v1579_v59 = vpop.permute.xlu1 %1578  ;;  %v2679_v17 = vor.u32 %v2677_v23, %v2676_v2  ;;  %v2684_v13 = vrot.slane %v2682_v27, 7  ;;  %v2241_v16 = vsel %vm2211_vm10, %v2208_v29, %v1977_v22  ;;  %v2680_v4 = vrot.slane %v2676_v2, 4 }
 0x18a   : > { %v2177_v33 = vsel %vm2145_vm8, %v2144_v3, %v1579_v59  ;;  %v2662_v50 = vor.u32 %v2660_v30, %v2659_v63  ;;  %v2667_v62 = vrot.slane %v2665_v14, 7  ;;  %11008 = vmatprep.mubr.msk.bf16.mxu1 %vm2271_vm11, %v2241_v16  ;;  %v2663_v47 = vrot.slane %v2659_v63, 4  ;;  %vm14779_vm8 = vmand %vm6217_vm7, %vm2978_vm14 }
 0x18b   : > { %v2990_v59 = vsel %vm13506_vm3, %v2679_v17, %v2989_v45  ;;  %v2687_v32 = vor.u32 %v2685_v39, %v2684_v13  ;;  %v2689_v53 = vrot.slane %v2684_v13, 4 }
 0x18c   : > { %2991 = vst [vmem:[#allocation2 + $0x18] sm:$0xf] %v2990_v59  ;;  %v2981_v0 = vsel %vm13506_vm3, %v2662_v50, %v2980_v26  ;;  %v2670_v12 = vor.u32 %v2668_v60, %v2667_v62  ;;  %v2672_v41 = vrot.slane %v2667_v62, 4 }
 0x18d   : > { %v1851_v7 = vpop.permute.xlu1 %1850  ;;  %2982 = vst [vmem:[#allocation2 + $0xc] sm:$0xf] %v2981_v0  ;;  %v2688_v58 = vsel %vm13513_vm4, %v2680_v4, %v2687_v32  ;;  %v2994_v35 = vsel %vm13520_vm5, %v2689_v53, %v2993_v48 }
 0x18e   : > { %v2210_v8 = vsel %vm2178_vm9, %v2177_v33, %v1851_v7  ;;  %2992 = vst.msk [vmem:[#allocation2 + $0x1c] sm:$0xf] %vm2501_vm12, %v2688_v58  ;;  %2995 = vst [vmem:[#allocation2 + $0x20] sm:$0x1] %v2994_v35  ;;  %v2671_v25 = vsel %vm13513_vm4, %v2663_v47, %v2670_v12  ;;  %v2987_v43 = vsel %vm13520_vm5, %v2672_v41, %v2986_v38  ;;  %vm6223_vm9 = vcmask 1040384  }
 0x18f   : > { %2983 = vst.msk [vmem:[#allocation2 + $0x10] sm:$0xf] %vm2501_vm12, %v2671_v25  ;;  %2988 = vst [vmem:[#allocation2 + $0x14] sm:$0x1] %v2987_v43 }
 0x191   : > { %v1979_v36 = vpop.permute.xlu1 %1978 }
 0x192   : > { %v2243_v61 = vsel %vm2211_vm10, %v2210_v8, %v1979_v36  ;;  %vm14789_vm10 = vmand %vm6223_vm9, %vm2653_vm15 }
 0x193   : > { %11009 = vmatmul.mubr.msk.bf16.gmra.mrb[12].mxu1 %vm2271_vm11, %v2243_v61  ;;  %v3098_v54 = vld [vmem:[#allocation2 + $0x18] sm:$0xf] }
 0x194   : > { %v3158_v18 = vld [vmem:[#allocation2 + $0xc] sm:$0xf]  ;;  %v3144_v21 = vld [vmem:[#allocation2 + $0x18] sm:$0xe] }
 0x195   : > { %v3096_v55 = vld [vmem:[#allocation2 + $0xc] sm:$0xf]  ;;  %v3099_v31 = vld [vmem:[#allocation2 + $0x1c] sm:$0xf]  ;;  %v3160_v40 = vld [vmem:[#allocation2 + $0x18] sm:$0xf] }
 0x196   : > { %v3143_v42 = vld [vmem:[#allocation2 + $0xc] sm:$0xe]  ;;  %v3159_v5 = vld [vmem:[#allocation2 + $0x10] sm:$0xf]  ;;  %v13546_v49 = vcombine.low %v3098_v54, %v3099_v31  ;;  %v9760_v28 = vcombine.low %v3144_v21, %v3099_v31  ;;  %v3161_v20 = vld [vmem:[#allocation2 + $0x1c] sm:$0xf] }
 0x197   : > { %v3097_v7 = vld [vmem:[#allocation2 + $0x10] sm:$0xf]  ;;  %v13548_v3 = vcombine.low %v3158_v18, %v3159_v5  ;;  %v11279_v1 = vld [vmem:[#allocation2 + $0x14] ss:$0 sps:$4 sm:$0x11]   ;;  %v13556_v23 = vcombine.low %v3160_v40, %v3161_v20 }
 0x198   : > { %v13550_v11 = vcombine.low %v3096_v55, %v3097_v7  ;;  %v11281_v10 = vld [vmem:[#allocation2 + $0x20] ss:$0 sps:$4 sm:$0x11]   ;;  %v9759_v9 = vcombine.low %v3143_v42, %v3097_v7  ;;  %v3442_v33 = vshll.u32 %v13546_v49, 16  ;;  %v3693_v56 = vrot.slane %v9760_v28, 1 }
 0x199   : > { %3815 = vrot.lane.b32.xlu0 %v13548_v3, %s11724_s21  ;;  %v3435_v46 = vshll.u32 %v11279_v1, 16  ;;  %v3691_v52 = vrot.slane %v11279_v1, 1  ;;  %v3694_v2 = vrot.slane %v11281_v10, 1  ;;  %v3440_v14 = vshrl.u32 %v13546_v49, 16  ;;  %v3224_v43 = vld [vmem:[#allocation2 + $0x1c] sm:$0xf] }
 0x19a   : > { %v3430_v19 = vshll.u32 %v13550_v11, 16  ;;  %v3690_v8 = vrot.slane %v9759_v9, 1  ;;  %v3428_v27 = vshrl.u32 %v13550_v11, 16  ;;  %v3444_v36 = vrot.slane %v3442_v33, 1  ;;  %v3003_v18 = vld [vmem:[#allocation2 + $0x30] sm:$0xf] }
 0x19b   : > { %v13563_v45 = vsel %vm875_vm0, %v3693_v56, %v3694_v2  ;;  %v3437_v30 = vrot.slane %v3435_v46, 1  ;;  %v3447_v61 = vshll.u32 %v11281_v10, 16  ;;  %v11341_v4 = vld [vmem:[#allocation2 + $0x14] ss:$0 sps:$4 sm:$0x11]   ;;  %v3896_v12 = vshrl.u32 %v13548_v3, 16 }
 0x19c   : > { %v3432_v29 = vrot.slane %v3430_v19, 1  ;;  %v13560_v6 = vsel %vm875_vm0, %v3690_v8, %v3691_v52  ;;  %v3445_v39 = vor.u32 %v3444_v36, %v3440_v14  ;;  %v3898_v41 = vshll.u32 %v13548_v3, 16  ;;  %v11340_v42 = vld [vmem:[#allocation2 + $0x20] ss:$0 sps:$4 sm:$0x11]  }
 0x19d   : > { %3817 = vrot.lane.b32.xlu0 %v13556_v23, %s11724_s21  ;;  %v3449_v57 = vrot.slane %v3447_v61, 1  ;;  %v3903_v54 = vshll.u32 %v11341_v4, 16  ;;  %v2996_v28 = vld [vmem:[#allocation2 + $0x24] sm:$0xf]  ;;  %v3271_v40 = vld [vmem:[#allocation2 + $0x18] sm:$0xe] }
 0x19e   : > { %v3433_v63 = vor.u32 %v3432_v29, %v3428_v27  ;;  %v10986_v22 = vpop.f32.mrb[4].mxu0  ;;  %v3900_v5 = vrot.slane %v3898_v41, 1  ;;  %v11344_v52 = vld [vmem:[#allocation2 + $0x20] ss:$0 sps:$4 sm:$0x11]   ;;  %v9854_v2 = vcombine.low %v3271_v40, %v3224_v43 }
 0x19f   : > { %v2367_v17 = vadd.f32 %v10986_v22, %v13464_v44  ;;  %v2358_v26 = vpop.f32.mrb[5].mxu0  ;;  %v3450_v15 = vsel %vm602_vm1, %v3445_v39, %v3449_v57  ;;  %v3905_v9 = vrot.slane %v3903_v54, 1  ;;  %v3007_v36 = vld [vmem:[#allocation2 + $0x38] sm:$0x1]  ;;  %v3915_v57 = vshll.u32 %v11344_v52, 16 }
 0x1a0   : > { %v3438_v13 = vsel %vm602_vm1, %v3433_v63, %v3437_v30  ;;  %v2359_v16 = vadd.f32 %v13464_v44, %v2358_v26  ;;  %v10987_v50 = vpop.f32.mrb[6].mxu0  ;;  %v3901_v3 = vor.u32 %v3900_v5, %v3896_v12  ;;  %v4615_v26 = vrot.slane %v9854_v2, 1 }
 0x1a1   : > { %3609 = vrot.lane.b32.xlu1 %v3438_v13, %s11724_s21  ;;  %v2475_v48 = vmax.f32 %v2367_v17, 0.0  ;;  %v2370_v62 = vadd.f32 %v10987_v50, %v13464_v44  ;;  %v2361_v60 = vpop.f32.mrb[7].mxu0  ;;  %v3000_v17 = vld [vmem:[#allocation2 + $0x2c] sm:$0x1]  ;;  %v4616_v50 = vrot.slane %v11340_v42, 1 }
 0x1a2   : > { %v2473_v59 = vmax.f32 %v2359_v16, 0.0  ;;  %v2362_v32 = vadd.f32 %v13464_v44, %v2361_v60  ;;  %v13579_v30 = vsel %vm602_vm1, %v3901_v3, %v3905_v9  ;;  %v3910_v60 = vshll.u32 %v13556_v23, 16 }
 0x1a3   : > { %v10181_v53 = vpack.c.bf16 %v2475_v48, %v2475_v48  ;;  %v2476_v38 = vmax.f32 %v2370_v62, 0.0  ;;  %16339 = vst [vmem:[#allocation16_spill] sm:$0xff] %v13579_v30 }
 0x1a4   : > { %v10179_v47 = vpack.c.bf16 %v2473_v59, %v2473_v59  ;;  %v2474_v0 = vmax.f32 %v2362_v32, 0.0  ;;  %v13596_v32 = vsel %vm875_vm0, %v4615_v26, %v4616_v50 }
 0x1a5   : > { %3611 = vrot.lane.b32.xlu1 %v3450_v15, %s11724_s21  ;;  %v2708_v58 = vshrl.u32 %v10181_v53, 16  ;;  %v2711_v35 = vshll.u32 %v10181_v53, 16  ;;  %v10182_v25 = vpack.c.bf16 %v2476_v38, %v2476_v38  ;;  %16340 = vst [vmem:[#allocation14_spill] sm:$0xff] %v13596_v32  ;;  %v3908_v53 = vshrl.u32 %v13556_v23, 16  ;;  %v3080_v32 = vld [vmem:[#allocation2 + $0xb4] sm:$0xf] }
 0x1a6   : > { %v2691_v55 = vshrl.u32 %v10179_v47, 16  ;;  %v2694_v21 = vshll.u32 %v10179_v47, 16  ;;  %v10180_v31 = vpack.c.bf16 %v2474_v0, %v2474_v0  ;;  %v3912_v38 = vrot.slane %v3910_v60, 1 }
 0x1a7   : > { %v2710_v7 = vrot.slane %v2708_v58, 7  ;;  %v2716_v1 = vshrl.u32 %v10182_v25, 16  ;;  %v2719_v10 = vshll.u32 %v10182_v25, 16  ;;  %v3917_v47 = vrot.slane %v3915_v57, 1 }
 0x1a8   : > { %v2693_v20 = vrot.slane %v2691_v55, 7  ;;  %v2699_v33 = vshrl.u32 %v10180_v31, 16  ;;  %v2702_v56 = vshll.u32 %v10180_v31, 16  ;;  %v3913_v15 = vor.u32 %v3912_v38, %v3908_v53 }
 0x1a9   : > { %v2713_v19 = vor.u32 %v2711_v35, %v2710_v7  ;;  %v2714_v46 = vrot.slane %v2710_v7, 4  ;;  %v2718_v8 = vrot.slane %v2716_v1, 7 }
 0x1aa   : > { %v2696_v27 = vor.u32 %v2694_v21, %v2693_v20  ;;  %v2697_v29 = vrot.slane %v2693_v20, 4  ;;  %v2701_v63 = vrot.slane %v2699_v33, 7  ;;  %v13601_v12 = vsel %vm602_vm1, %v3913_v15, %v3917_v47 }
 0x1ab   : > { %v3004_v14 = vsel %vm13506_vm3, %v2713_v19, %v3003_v18  ;;  %v2721_v61 = vor.u32 %v2719_v10, %v2718_v8  ;;  %v2723_v22 = vrot.slane %v2718_v8, 4  ;;  %16341 = vst [vmem:[#allocation20_spill] sm:$0xff] %v13601_v12 }
 0x1ac   : > { %3005 = vst [vmem:[#allocation2 + $0x30] sm:$0xf] %v3004_v14  ;;  %v2997_v13 = vsel %vm13506_vm3, %v2696_v27, %v2996_v28  ;;  %v2704_v39 = vor.u32 %v2702_v56, %v2701_v63  ;;  %v2706_v16 = vrot.slane %v2701_v63, 4 }
 0x1ad   : > { %2998 = vst [vmem:[#allocation2 + $0x24] sm:$0xf] %v2997_v13  ;;  %v2722_v48 = vsel %vm13513_vm4, %v2714_v46, %v2721_v61  ;;  %v3008_v62 = vsel %vm13520_vm5, %v2723_v22, %v3007_v36 }
 0x1ae   : > { %3006 = vst.msk [vmem:[#allocation2 + $0x34] sm:$0xf] %vm2501_vm12, %v2722_v48  ;;  %3009 = vst [vmem:[#allocation2 + $0x38] sm:$0x1] %v3008_v62  ;;  %v2705_v4 = vsel %vm13513_vm4, %v2697_v29, %v2704_v39  ;;  %v3001_v59 = vsel %vm13520_vm5, %v2706_v16, %v3000_v17 }
 0x1af   : > { %2999 = vst.msk [vmem:[#allocation2 + $0x28] sm:$0xf] %vm2501_vm12, %v2705_v4  ;;  %3002 = vst [vmem:[#allocation2 + $0x2c] sm:$0x1] %v3001_v59 }
 0x1b3   : > { %v3102_v0 = vld [vmem:[#allocation2 + $0x30] sm:$0xf] }
 0x1b4   : > { %v3162_v41 = vld [vmem:[#allocation2 + $0x24] sm:$0xf]  ;;  %v3146_v35 = vld [vmem:[#allocation2 + $0x30] sm:$0xe] }
 0x1b5   : > { %v3100_v58 = vld [vmem:[#allocation2 + $0x24] sm:$0xf]  ;;  %v3103_v25 = vld [vmem:[#allocation2 + $0x34] sm:$0xf]  ;;  %v3164_v9 = vld [vmem:[#allocation2 + $0x30] sm:$0xf] }
 0x1b6   : > { %v3145_v43 = vld [vmem:[#allocation2 + $0x24] sm:$0xe]  ;;  %v3163_v54 = vld [vmem:[#allocation2 + $0x28] sm:$0xf]  ;;  %v13603_v55 = vcombine.low %v3102_v0, %v3103_v25  ;;  %v9762_v21 = vcombine.low %v3146_v35, %v3103_v25  ;;  %v3165_v28 = vld [vmem:[#allocation2 + $0x34] sm:$0xf] }
 0x1b7   : > { %v3101_v18 = vld [vmem:[#allocation2 + $0x28] sm:$0xf]  ;;  %v13605_v31 = vcombine.low %v3162_v41, %v3163_v54  ;;  %v11285_v42 = vld [vmem:[#allocation2 + $0x2c] ss:$0 sps:$4 sm:$0x11]   ;;  %v13613_v19 = vcombine.low %v3164_v9, %v3165_v28 }
 0x1b8   : > { %v13607_v23 = vcombine.low %v3100_v58, %v3101_v18  ;;  %v11287_v5 = vld [vmem:[#allocation2 + $0x38] ss:$0 sps:$4 sm:$0x11]   ;;  %v9761_v7 = vcombine.low %v3145_v43, %v3101_v18  ;;  %v3466_v1 = vshll.u32 %v13603_v55, 16  ;;  %v3699_v10 = vrot.slane %v9762_v21, 1 }
 0x1b9   : > { %3819 = vrot.lane.b32.xlu0 %v13605_v31, %s11724_s21  ;;  %v3459_v33 = vshll.u32 %v11285_v42, 16  ;;  %v3697_v3 = vrot.slane %v11285_v42, 1  ;;  %v3700_v40 = vrot.slane %v11287_v5, 1  ;;  %v3464_v63 = vshrl.u32 %v13603_v55, 16  ;;  %v3017_v35 = vld [vmem:[#allocation2 + $0x48] sm:$0xf] }
 0x1ba   : > { %v3454_v20 = vshll.u32 %v13607_v23, 16  ;;  %v3696_v56 = vrot.slane %v9761_v7, 1  ;;  %v3452_v46 = vshrl.u32 %v13607_v23, 16  ;;  %v3468_v52 = vrot.slane %v3466_v1, 1  ;;  %v3226_v54 = vld [vmem:[#allocation2 + $0x28] sm:$0xf] }
 0x1bb   : > { %v13620_v27 = vsel %vm875_vm0, %v3699_v10, %v3700_v40  ;;  %v3461_v36 = vrot.slane %v3459_v33, 1  ;;  %v3471_v14 = vshll.u32 %v11287_v5, 16  ;;  %v11343_v0 = vld [vmem:[#allocation2 + $0x2c] ss:$0 sps:$4 sm:$0x11]  }
 0x1bc   : > { %v3456_v8 = vrot.slane %v3454_v20, 1  ;;  %v13617_v2 = vsel %vm875_vm0, %v3696_v56, %v3697_v3  ;;  %v3469_v13 = vor.u32 %v3468_v52, %v3464_v63  ;;  %v3010_v42 = vld [vmem:[#allocation2 + $0x3c] sm:$0xf]  ;;  %v11346_v7 = vld [vmem:[#allocation2 + $0x38] ss:$0 sps:$4 sm:$0x11]  }
 0x1bd   : > { %3821 = vrot.lane.b32.xlu0 %v13613_v19, %s11724_s21  ;;  %v3473_v60 = vrot.slane %v3471_v14, 1  ;;  %v3021_v10 = vld [vmem:[#allocation2 + $0x50] sm:$0x1]  ;;  %v4619_v20 = vrot.slane %v11343_v0, 1  ;;  %v3228_v33 = vld [vmem:[#allocation2 + $0x34] sm:$0xf] }
 0x1be   : > { %v3457_v29 = vor.u32 %v3456_v8, %v3452_v46  ;;  %v10990_v61 = vpop.f32.mrb[8].mxu0  ;;  %v3014_v8 = vld [vmem:[#allocation2 + $0x44] sm:$0x1]  ;;  %v3272_v52 = vld [vmem:[#allocation2 + $0x24] sm:$0xe] }
 0x1bf   : > { %v2383_v22 = vadd.f32 %v10990_v61, %v13464_v44  ;;  %v2374_v17 = vpop.f32.mrb[9].mxu0  ;;  %v3474_v38 = vsel %vm602_vm1, %v3469_v13, %v3473_v60  ;;  %v11347_v14 = vld [vmem:[#allocation2 + $0x2c] ss:$0 sps:$4 sm:$0x11]   ;;  %v9855_v61 = vcombine.low %v3272_v52, %v3226_v54  ;;  %v3273_v60 = vld [vmem:[#allocation2 + $0x30] sm:$0xe] }
 0x1c0   : > { %v3462_v26 = vsel %vm602_vm1, %v3457_v29, %v3461_v36  ;;  %v2375_v39 = vadd.f32 %v13464_v44, %v2374_v17  ;;  %v10991_v16 = vpop.f32.mrb[10].mxu0 }
 0x1c1   : > { %3613 = vrot.lane.b32.xlu1 %v3462_v26, %s11724_s21  ;;  %v2479_v50 = vmax.f32 %v2383_v22, 0.0  ;;  %v2386_v48 = vadd.f32 %v10991_v16, %v13464_v44  ;;  %v2377_v62 = vpop.f32.mrb[11].mxu0 }
 0x1c2   : > { %v2477_v57 = vmax.f32 %v2375_v39, 0.0  ;;  %v2378_v4 = vadd.f32 %v13464_v44, %v2377_v62  ;;  %v11350_v39 = vld [vmem:[#allocation2 + $0x38] ss:$0 sps:$4 sm:$0x11]   ;;  %v4618_v62 = vrot.slane %v9855_v61, 1 }
 0x1c3   : > { %v10185_v59 = vpack.c.bf16 %v2479_v50, %v2479_v50  ;;  %v2480_v53 = vmax.f32 %v2386_v48, 0.0 }
 0x1c4   : > { %v10183_v15 = vpack.c.bf16 %v2477_v57, %v2477_v57  ;;  %v2478_v47 = vmax.f32 %v2378_v4, 0.0 }
 0x1c5   : > { %3615 = vrot.lane.b32.xlu1 %v3474_v38, %s11724_s21  ;;  %v2742_v41 = vshrl.u32 %v10185_v59, 16  ;;  %v10186_v58 = vpack.c.bf16 %v2480_v53, %v2480_v53  ;;  %v2745_v21 = vshll.u32 %v10185_v59, 16  ;;  %v9856_v59 = vcombine.low %v3273_v60, %v3228_v33 }
 0x1c6   : > { %v2725_v25 = vshrl.u32 %v10183_v15, 16  ;;  %v10184_v43 = vpack.c.bf16 %v2478_v47, %v2478_v47  ;;  %v2728_v1 = vshll.u32 %v10183_v15, 16  ;;  %v4622_v53 = vrot.slane %v11346_v7, 1 }
 0x1c7   : > { %v2744_v18 = vrot.slane %v2742_v41, 7  ;;  %v2750_v5 = vshrl.u32 %v10186_v58, 16  ;;  %v2753_v40 = vshll.u32 %v10186_v58, 16  ;;  %v13647_v47 = vsel %vm875_vm0, %v4618_v62, %v4619_v20 }
 0x1c8   : > { %v2727_v28 = vrot.slane %v2725_v25, 7  ;;  %v2733_v9 = vshrl.u32 %v10184_v43, 16  ;;  %v2736_v46 = vshll.u32 %v10184_v43, 16  ;;  %16342 = vst [vmem:[#allocation13_spill] sm:$0xff] %v13647_v47  ;;  %v4621_v0 = vrot.slane %v9856_v59, 1 }
 0x1c9   : > { %v2747_v56 = vor.u32 %v2745_v21, %v2744_v18  ;;  %v2752_v3 = vrot.slane %v2750_v5, 7  ;;  %v2748_v29 = vrot.slane %v2744_v18, 4  ;;  %v3922_v41 = vshll.u32 %v13605_v31, 16 }
 0x1ca   : > { %v2730_v36 = vor.u32 %v2728_v1, %v2727_v28  ;;  %v2735_v63 = vrot.slane %v2733_v9, 7  ;;  %v2731_v17 = vrot.slane %v2727_v28, 4  ;;  %v3927_v58 = vshll.u32 %v11347_v14, 16 }
 0x1cb   : > { %v3018_v22 = vsel %vm13506_vm3, %v2747_v56, %v3017_v35  ;;  %v2755_v26 = vor.u32 %v2753_v40, %v2752_v3  ;;  %v2757_v13 = vrot.slane %v2752_v3, 4  ;;  %v3934_v35 = vshll.u32 %v13613_v19, 16 }
 0x1cc   : > { %3019 = vst [vmem:[#allocation2 + $0x48] sm:$0xf] %v3018_v22  ;;  %v3011_v16 = vsel %vm13506_vm3, %v2730_v36, %v3010_v42  ;;  %v2738_v50 = vor.u32 %v2736_v46, %v2735_v63  ;;  %v2740_v48 = vrot.slane %v2735_v63, 4  ;;  %v3932_v25 = vshrl.u32 %v13613_v19, 16 }
 0x1cd   : > { %3012 = vst [vmem:[#allocation2 + $0x3c] sm:$0xf] %v3011_v16  ;;  %v2756_v57 = vsel %vm13513_vm4, %v2748_v29, %v2755_v26  ;;  %v3022_v4 = vsel %vm13520_vm5, %v2757_v13, %v3021_v10  ;;  %v3939_v43 = vshll.u32 %v11350_v39, 16  ;;  %v13654_v54 = vsel %vm875_vm0, %v4621_v0, %v4622_v53 }
 0x1ce   : > { %3020 = vst.msk [vmem:[#allocation2 + $0x4c] sm:$0xf] %vm2501_vm12, %v2756_v57  ;;  %3023 = vst [vmem:[#allocation2 + $0x50] sm:$0x1] %v3022_v4  ;;  %v2739_v38 = vsel %vm13513_vm4, %v2731_v17, %v2738_v50  ;;  %v3015_v15 = vsel %vm13520_vm5, %v2740_v48, %v3014_v8  ;;  %v3920_v18 = vshrl.u32 %v13605_v31, 16  ;;  %v3924_v21 = vrot.slane %v3922_v41, 1 }
 0x1cf   : > { %3013 = vst.msk [vmem:[#allocation2 + $0x40] sm:$0xf] %vm2501_vm12, %v2739_v38  ;;  %3016 = vst [vmem:[#allocation2 + $0x44] sm:$0x1] %v3015_v15  ;;  %v3936_v42 = vrot.slane %v3934_v35, 1  ;;  %v3929_v28 = vrot.slane %v3927_v58, 1 }
 0x1d0   : > { %16343 = vst [vmem:[#allocation18_spill] sm:$0xff] %v13654_v54  ;;  %v3925_v7 = vor.u32 %v3924_v21, %v3920_v18  ;;  %v3941_v10 = vrot.slane %v3939_v43, 1 }
 0x1d1   : > { %v3937_v1 = vor.u32 %v3936_v42, %v3932_v25 }
 0x1d2   : > { %v13658_v19 = vsel %vm602_vm1, %v3925_v7, %v3929_v28 }
 0x1d3   : > { %v3106_v5 = vld [vmem:[#allocation2 + $0x48] sm:$0xf]  ;;  %16344 = vst [vmem:[#allocation21_spill] sm:$0xff] %v13658_v19  ;;  %v13661_v40 = vsel %vm602_vm1, %v3937_v1, %v3941_v10 }
 0x1d4   : > { %v3166_v9 = vld [vmem:[#allocation2 + $0x3c] sm:$0xf]  ;;  %v3148_v33 = vld [vmem:[#allocation2 + $0x48] sm:$0xe]  ;;  %16345 = vst [vmem:[#allocation15_spill] sm:$0xff] %v13661_v40 }
 0x1d5   : > { %v3104_v20 = vld [vmem:[#allocation2 + $0x3c] sm:$0xf]  ;;  %v3107_v56 = vld [vmem:[#allocation2 + $0x4c] sm:$0xf]  ;;  %v3168_v13 = vld [vmem:[#allocation2 + $0x48] sm:$0xf] }
 0x1d6   : > { %v3147_v3 = vld [vmem:[#allocation2 + $0x3c] sm:$0xe]  ;;  %v3167_v46 = vld [vmem:[#allocation2 + $0x40] sm:$0xf]  ;;  %v13663_v8 = vcombine.low %v3106_v5, %v3107_v56  ;;  %v9764_v52 = vcombine.low %v3148_v33, %v3107_v56  ;;  %v3169_v22 = vld [vmem:[#allocation2 + $0x4c] sm:$0xf] }
 0x1d7   : > { %v3105_v31 = vld [vmem:[#allocation2 + $0x40] sm:$0xf]  ;;  %v13665_v29 = vcombine.low %v3166_v9, %v3167_v46  ;;  %v11291_v63 = vld [vmem:[#allocation2 + $0x44] ss:$0 sps:$4 sm:$0x11]   ;;  %v13673_v60 = vcombine.low %v3168_v13, %v3169_v22 }
 0x1d8   : > { %v13667_v36 = vcombine.low %v3104_v20, %v3105_v31  ;;  %v11293_v14 = vld [vmem:[#allocation2 + $0x50] ss:$0 sps:$4 sm:$0x11]   ;;  %v9763_v61 = vcombine.low %v3147_v3, %v3105_v31  ;;  %v3490_v17 = vshll.u32 %v13663_v8, 16  ;;  %v3705_v26 = vrot.slane %v9764_v52, 1 }
 0x1d9   : > { %3823 = vrot.lane.b32.xlu0 %v13665_v29, %s11724_s21  ;;  %v3483_v16 = vshll.u32 %v11291_v63, 16  ;;  %v3703_v48 = vrot.slane %v11291_v63, 1  ;;  %v3706_v62 = vrot.slane %v11293_v14, 1  ;;  %v3488_v41 = vshrl.u32 %v13663_v8, 16 }
 0x1da   : > { %v3478_v39 = vshll.u32 %v13667_v36, 16  ;;  %v3702_v50 = vrot.slane %v9763_v61, 1  ;;  %v3476_v57 = vshrl.u32 %v13667_v36, 16  ;;  %v3492_v59 = vrot.slane %v3490_v17, 1  ;;  %v3031_v61 = vld [vmem:[#allocation2 + $0x60] sm:$0xf] }
 0x1db   : > { %v13680_v38 = vsel %vm875_vm0, %v3705_v26, %v3706_v62  ;;  %v3485_v0 = vrot.slane %v3483_v16, 1  ;;  %v3495_v58 = vshll.u32 %v11293_v14, 16  ;;  %v11349_v52 = vld [vmem:[#allocation2 + $0x44] ss:$0 sps:$4 sm:$0x11]  }
 0x1dc   : > { %v3480_v4 = vrot.slane %v3478_v39, 1  ;;  %v13677_v53 = vsel %vm875_vm0, %v3702_v50, %v3703_v48  ;;  %v3493_v21 = vor.u32 %v3492_v59, %v3488_v41  ;;  %v3230_v26 = vld [vmem:[#allocation2 + $0x40] sm:$0xf]  ;;  %v3024_v16 = vld [vmem:[#allocation2 + $0x54] sm:$0xf] }
 0x1dd   : > { %3825 = vrot.lane.b32.xlu0 %v13673_v60, %s11724_s21  ;;  %v3497_v10 = vrot.slane %v3495_v58, 1  ;;  %v3232_v59 = vld [vmem:[#allocation2 + $0x4c] sm:$0xf] }
 0x1de   : > { %v3481_v15 = vor.u32 %v3480_v4, %v3476_v57  ;;  %v10994_v35 = vpop.f32.mrb[12].mxu0  ;;  %v3035_v57 = vld [vmem:[#allocation2 + $0x68] sm:$0x1] }
 0x1df   : > { %v2399_v25 = vadd.f32 %v10994_v35, %v13464_v44  ;;  %v2390_v43 = vpop.f32.mrb[13].mxu0  ;;  %v3498_v3 = vsel %vm602_vm1, %v3493_v21, %v3497_v10 }
 0x1e0   : > { %v3486_v18 = vsel %vm602_vm1, %v3481_v15, %v3485_v0  ;;  %v2391_v42 = vadd.f32 %v13464_v44, %v2390_v43  ;;  %v10995_v5 = vpop.f32.mrb[14].mxu0  ;;  %v4625_v15 = vrot.slane %v11349_v52, 1  ;;  %v3274_v43 = vld [vmem:[#allocation2 + $0x3c] sm:$0xe] }
 0x1e1   : > { %3617 = vrot.lane.b32.xlu1 %v3486_v18, %s11724_s21  ;;  %v2483_v7 = vmax.f32 %v2399_v25, 0.0  ;;  %v2402_v28 = vadd.f32 %v10995_v5, %v13464_v44  ;;  %v2393_v1 = vpop.f32.mrb[15].mxu0  ;;  %v3028_v25 = vld [vmem:[#allocation2 + $0x5c] sm:$0x1] }
 0x1e2   : > { %v2481_v9 = vmax.f32 %v2391_v42, 0.0  ;;  %v2394_v20 = vadd.f32 %v13464_v44, %v2393_v1  ;;  %v11352_v44 = vld [vmem:[#allocation2 + $0x50] ss:$0 sps:$4 sm:$0x11]  }
 0x1e3   : > { %v10189_v33 = vpack.c.bf16 %v2483_v7, %v2483_v7  ;;  %v2484_v56 = vmax.f32 %v2402_v28, 0.0  ;;  %v11353_v5 = vld [vmem:[#allocation2 + $0x44] ss:$0 sps:$4 sm:$0x11]   ;;  %v9857_v7 = vcombine.low %v3274_v43, %v3230_v26 }
 0x1e4   : > { %v10187_v46 = vpack.c.bf16 %v2481_v9, %v2481_v9  ;;  %v2482_v31 = vmax.f32 %v2394_v20, 0.0  ;;  %v11356_v20 = vld [vmem:[#allocation2 + $0x50] ss:$0 sps:$4 sm:$0x11]  }
 0x1e5   : > { %3619 = vrot.lane.b32.xlu1 %v3498_v3, %s11724_s21  ;;  %v2776_v63 = vshrl.u32 %v10189_v33, 16  ;;  %v10190_v14 = vpack.c.bf16 %v2484_v56, %v2484_v56  ;;  %v2779_v39 = vshll.u32 %v10189_v33, 16 }
 0x1e6   : > { %v2759_v22 = vshrl.u32 %v10187_v46, 16  ;;  %v10188_v17 = vpack.c.bf16 %v2482_v31, %v2482_v31  ;;  %v2762_v62 = vshll.u32 %v10187_v46, 16  ;;  %v4624_v46 = vrot.slane %v9857_v7, 1  ;;  %v3275_v31 = vld [vmem:[#allocation2 + $0x48] sm:$0xe] }
 0x1e7   : > { %v2778_v13 = vrot.slane %v2776_v63, 7  ;;  %v2784_v50 = vshrl.u32 %v10190_v14, 16  ;;  %v2787_v58 = vshll.u32 %v10190_v14, 16  ;;  %v9858_v14 = vcombine.low %v3275_v31, %v3232_v59 }
 0x1e8   : > { %v2761_v48 = vrot.slane %v2759_v22, 7  ;;  %v2767_v4 = vshrl.u32 %v10188_v17, 16  ;;  %v2770_v35 = vshll.u32 %v10188_v17, 16  ;;  %v13707_v26 = vsel %vm875_vm0, %v4624_v46, %v4625_v15 }
 0x1e9   : > { %v2781_v0 = vor.u32 %v2779_v39, %v2778_v13  ;;  %v2786_v41 = vrot.slane %v2784_v50, 7  ;;  %v2782_v18 = vrot.slane %v2778_v13, 4  ;;  %16346 = vst [vmem:[#allocation24_spill] sm:$0xff] %v13707_v26  ;;  %v4627_v13 = vrot.slane %v9858_v14, 1  ;;  %v3142_v14 = vld [vmem:[#allocation2] sm:$0xe] }
 0x1ea   : > { %v2764_v21 = vor.u32 %v2762_v62, %v2761_v48  ;;  %v2769_v42 = vrot.slane %v2767_v4, 7  ;;  %v2765_v1 = vrot.slane %v2761_v48, 4  ;;  %v3946_v39 = vshll.u32 %v13665_v29, 16 }
 0x1eb   : > { %v3032_v28 = vsel %vm13506_vm3, %v2781_v0, %v3031_v61  ;;  %v2789_v10 = vor.u32 %v2787_v58, %v2786_v41  ;;  %v2791_v9 = vrot.slane %v2786_v41, 4  ;;  %v4628_v61 = vrot.slane %v11352_v44, 1 }
 0x1ec   : > { %3033 = vst [vmem:[#allocation2 + $0x60] sm:$0xf] %v3032_v28  ;;  %v3025_v33 = vsel %vm13506_vm3, %v2764_v21, %v3024_v16  ;;  %v2772_v56 = vor.u32 %v2770_v35, %v2769_v42  ;;  %v2774_v3 = vrot.slane %v2769_v42, 4  ;;  %v3951_v16 = vshll.u32 %v11353_v5, 16 }
 0x1ed   : > { %3026 = vst [vmem:[#allocation2 + $0x54] sm:$0xf] %v3025_v33  ;;  %v2790_v52 = vsel %vm13513_vm4, %v2782_v18, %v2789_v10  ;;  %v3036_v63 = vsel %vm13520_vm5, %v2791_v9, %v3035_v57  ;;  %v3958_v50 = vshll.u32 %v13673_v60, 16  ;;  %v3956_v44 = vshrl.u32 %v13673_v60, 16 }
 0x1ee   : > { %3034 = vst.msk [vmem:[#allocation2 + $0x64] sm:$0xf] %vm2501_vm12, %v2790_v52  ;;  %3037 = vst [vmem:[#allocation2 + $0x68] sm:$0x1] %v3036_v63  ;;  %v2773_v22 = vsel %vm13513_vm4, %v2765_v1, %v2772_v56  ;;  %v3029_v17 = vsel %vm13520_vm5, %v2774_v3, %v3028_v25  ;;  %v3963_v48 = vshll.u32 %v11356_v20, 16  ;;  %v13714_v62 = vsel %vm875_vm0, %v4627_v13, %v4628_v61  ;;  %v13736_v61 = vld [vmem:[%s16150_s3 + $0x100] sm:$0xff]  }
 0x1ef   : > { %3027 = vst.msk [vmem:[#allocation2 + $0x58] sm:$0xf] %vm2501_vm12, %v2773_v22  ;;  %3030 = vst [vmem:[#allocation2 + $0x5c] sm:$0x1] %v3029_v17  ;;  %v3944_v57 = vshrl.u32 %v13665_v29, 16  ;;  %v3948_v4 = vrot.slane %v3946_v39, 1  ;;  %11012 = vmatprep.subr.bf16.mxu1 %v13736_v61 }
 0x1f0   : > { %16347 = vst [vmem:[#allocation22_spill] sm:$0xff] %v13714_v62  ;;  %v3960_v59 = vrot.slane %v3958_v50, 1  ;;  %v3953_v41 = vrot.slane %v3951_v16, 1  ;;  %v3965_v35 = vrot.slane %v3963_v48, 1 }
 0x1f1   : > { %v3949_v0 = vor.u32 %v3948_v4, %v3944_v57 }
 0x1f2   : > { %v3961_v58 = vor.u32 %v3960_v59, %v3956_v44 }
 0x1f3   : > { %v3110_v15 = vld [vmem:[#allocation2 + $0x60] sm:$0xf]  ;;  %v13718_v60 = vsel %vm602_vm1, %v3949_v0, %v3953_v41 }
 0x1f4   : > { %v3170_v25 = vld [vmem:[#allocation2 + $0x54] sm:$0xf]  ;;  %v3150_v18 = vld [vmem:[#allocation2 + $0x60] sm:$0xe]  ;;  %16348 = vst [vmem:[#allocation4_spill] sm:$0xff] %v13718_v60  ;;  %v13721_v5 = vsel %vm602_vm1, %v3961_v58, %v3965_v35 }
 0x1f5   : > { %v3108_v43 = vld [vmem:[#allocation2 + $0x54] sm:$0xf]  ;;  %v3111_v21 = vld [vmem:[#allocation2 + $0x64] sm:$0xf]  ;;  %16349 = vst [vmem:[#allocation5_spill] sm:$0xff] %v13721_v5 }
 0x1f6   : > { %v3149_v42 = vld [vmem:[#allocation2 + $0x54] sm:$0xe]  ;;  %v3171_v7 = vld [vmem:[#allocation2 + $0x58] sm:$0xf]  ;;  %v13723_v28 = vcombine.low %v3110_v15, %v3111_v21  ;;  %v9766_v1 = vcombine.low %v3150_v18, %v3111_v21  ;;  %v3173_v3 = vld [vmem:[#allocation2 + $0x64] sm:$0xf] }
 0x1f7   : > { %v3109_v29 = vld [vmem:[#allocation2 + $0x58] sm:$0xf]  ;;  %v13725_v10 = vcombine.low %v3170_v25, %v3171_v7  ;;  %v11307_v20 = vld [vmem:[#allocation2 + $0x5c] ss:$0 sps:$4 sm:$0x11]  }
 0x1f8   : > { %v13727_v9 = vcombine.low %v3108_v43, %v3109_v29  ;;  %v11311_v33 = vld [vmem:[#allocation2 + $0x68] ss:$0 sps:$4 sm:$0x11]   ;;  %v9765_v56 = vcombine.low %v3149_v42, %v3109_v29  ;;  %v3514_v46 = vshll.u32 %v13723_v28, 16  ;;  %v3711_v31 = vrot.slane %v9766_v1, 1 }
 0x1f9   : > { %3827 = vrot.lane.b32.xlu0 %v13725_v10, %s11724_s21  ;;  %v3507_v63 = vshll.u32 %v11307_v20, 16  ;;  %v3172_v22 = vld [vmem:[#allocation2 + $0x60] sm:$0xf]  ;;  %v3709_v13 = vrot.slane %v11307_v20, 1  ;;  %v3712_v39 = vrot.slane %v11311_v33, 1  ;;  %v3512_v0 = vshrl.u32 %v13723_v28, 16 }
 0x1fa   : > { %v3502_v52 = vshll.u32 %v13727_v9, 16  ;;  %v3708_v17 = vrot.slane %v9765_v56, 1  ;;  %v13738_v16 = vcombine.low %v3172_v22, %v3173_v3  ;;  %v3500_v50 = vshrl.u32 %v13727_v9, 16  ;;  %v11642_v35 = vld [vmem:[#allocation2 + $0x4] sm:$0xf] }
 0x1fb   : > { %v3516_v48 = vrot.slane %v3514_v46, 1  ;;  %v13746_v4 = vsel %vm875_vm0, %v3711_v31, %v3712_v39  ;;  %v3509_v15 = vrot.slane %v3507_v63, 1  ;;  %v3519_v41 = vshll.u32 %v11311_v33, 16  ;;  %v13754_v43 = vld [vmem:[%s16149_s2] ss:$0 sm:$0xff] }
 0x1fc   : > { %v3504_v44 = vrot.slane %v3502_v52, 1  ;;  %v13743_v57 = vsel %vm875_vm0, %v3708_v17, %v3709_v13  ;;  %v9758_v25 = vcombine.low %v3142_v14, %v11642_v35  ;;  %v11644_v63 = vld [vmem:[#allocation2 + $0x8] ss:$0 sps:$4 sm:$0x11]   ;;  %v3276_v5 = vld [vmem:[#allocation2 + $0x54] sm:$0xe] }
 0x1fd   : > { %3829 = vrot.lane.b32.xlu0 %v13738_v16, %s11724_s21  ;;  %v3517_v7 = vor.u32 %v3516_v48, %v3512_v0  ;;  %v3521_v3 = vrot.slane %v3519_v41, 1  ;;  %v3688_v14 = vrot.slane %v11644_v63, 1  ;;  %v11355_v48 = vld [vmem:[#allocation2 + $0x5c] ss:$0 sps:$4 sm:$0x11]  }
 0x1fe   : > { %v3505_v59 = vor.u32 %v3504_v44, %v3500_v50  ;;  %v3687_v52 = vrot.slane %v9758_v25, 1  ;;  %v3608_v44 = vpop.permute.xlu1 %3607  ;;  %v3045_v0 = vld [vmem:[#allocation2 + $0x78] sm:$0xf]  ;;  %v3236_v60 = vld [vmem:[#allocation2 + $0x64] sm:$0xf] }
 0x1ff   : > { %v3522_v13 = vsel %vm602_vm1, %v3517_v7, %v3521_v3  ;;  %v4665_v7 = vsel %vm4663_vm6, %v13366_v37, %v3608_v44  ;;  %v4631_v3 = vrot.slane %v11355_v48, 1  ;;  %v11359_v40 = vld [vmem:[#allocation2 + $0x5c] ss:$0 sps:$4 sm:$0x11]  }
 0x200   : > { %v3510_v42 = vsel %vm602_vm1, %v3505_v59, %v3509_v15  ;;  %v3689_v35 = vsel %vm875_vm0, %v3687_v52, %v3688_v14 }
 0x201   : > { %3621 = vrot.lane.b32.xlu1 %v3510_v42, %s11724_s21 }
 0x205   : > { %3623 = vrot.lane.b32.xlu1 %v3522_v13, %s11724_s21  ;;  %v3042_v13 = vld [vmem:[#allocation2 + $0x74] sm:$0x1] }
 0x206   : > { %v10998_v58 = vpop.f32.mrb[0].mxu1 }
 0x207   : > { %v2415_v18 = vadd.f32 %v13754_v43, %v10998_v58  ;;  %v2406_v21 = vpop.f32.mrb[1].mxu1 }
 0x208   : > { %v2407_v29 = vadd.f32 %v13754_v43, %v2406_v21  ;;  %v10999_v1 = vpop.f32.mrb[2].mxu1  ;;  %v3038_v21 = vld [vmem:[#allocation2 + $0x6c] sm:$0xf] }
 0x209   : > { %v2487_v20 = vmax.f32 %v2415_v18, 0.0  ;;  %v2418_v33 = vadd.f32 %v13754_v43, %v10999_v1  ;;  %v2409_v56 = vpop.f32.mrb[3].mxu1 }
 0x20a   : > { %v2485_v46 = vmax.f32 %v2407_v29, 0.0  ;;  %v2410_v31 = vadd.f32 %v13754_v43, %v2409_v56  ;;  %v3234_v56 = vld [vmem:[#allocation2 + $0x58] sm:$0xf] }
 0x20b   : > { %v10193_v22 = vpack.c.bf16 %v2487_v20, %v2487_v20  ;;  %v2488_v17 = vmax.f32 %v2418_v33, 0.0  ;;  %v3049_v20 = vld [vmem:[#allocation2 + $0x80] sm:$0x1]  ;;  %v9859_v48 = vcombine.low %v3276_v5, %v3234_v56 }
 0x20c   : > { %v10191_v39 = vpack.c.bf16 %v2485_v46, %v2485_v46  ;;  %v2486_v50 = vmax.f32 %v2410_v31, 0.0 }
 0x20d   : > { %v2810_v59 = vshrl.u32 %v10193_v22, 16  ;;  %v10194_v15 = vpack.c.bf16 %v2488_v17, %v2488_v17  ;;  %v2813_v18 = vshll.u32 %v10193_v22, 16 }
 0x20e   : > { %v2793_v41 = vshrl.u32 %v10191_v39, 16  ;;  %v10192_v58 = vpack.c.bf16 %v2486_v50, %v2486_v50  ;;  %v2796_v1 = vshll.u32 %v10191_v39, 16  ;;  %v11358_v50 = vld [vmem:[#allocation2 + $0x68] ss:$0 sps:$4 sm:$0x11]  }
 0x20f   : > { %v2812_v25 = vrot.slane %v2810_v59, 7  ;;  %v2818_v42 = vshrl.u32 %v10194_v15, 16  ;;  %v2821_v63 = vshll.u32 %v10194_v15, 16  ;;  %v4634_v56 = vrot.slane %v11358_v50, 1 }
 0x210   : > { %v2795_v29 = vrot.slane %v2793_v41, 7  ;;  %v2801_v33 = vshrl.u32 %v10192_v58, 16  ;;  %v2804_v17 = vshll.u32 %v10192_v58, 16  ;;  %v3816_v41 = vpop.permute.xlu0 %3815  ;;  %v3968_v50 = vshrl.u32 %v13725_v10, 16 }
 0x211   : > { %v2815_v46 = vor.u32 %v2813_v18, %v2812_v25  ;;  %v2820_v31 = vrot.slane %v2818_v42, 7  ;;  %v2816_v52 = vrot.slane %v2812_v25, 4  ;;  %v4714_v25 = vsel %vm4663_vm6, %v3689_v35, %v3816_v41  ;;  %v11363_v42 = vld [vmem:[#allocation2 + $0x68] ss:$0 sps:$4 sm:$0x11]  }
 0x212   : > { %v2798_v14 = vor.u32 %v2796_v1, %v2795_v29  ;;  %v2799_v22 = vrot.slane %v2795_v29, 4  ;;  %v2803_v59 = vrot.slane %v2801_v33, 7  ;;  %5263 = vmatprep.mubr.bf16.mxu1 %v4714_v25  ;;  %v4630_v1 = vrot.slane %v9859_v48, 1  ;;  %v3277_v33 = vld [vmem:[#allocation2 + $0x60] sm:$0xe] }
 0x213   : > { %v3046_v37 = vsel %vm13506_vm3, %v2815_v46, %v3045_v0  ;;  %v2823_v44 = vor.u32 %v2821_v63, %v2820_v31  ;;  %v2825_v39 = vrot.slane %v2820_v31, 4  ;;  %5264 = vmatmul.mubr.bf16.vlgmr.msra.gmra.mrb[16].mxu1 %v4665_v7  ;;  %v3970_v31 = vshll.u32 %v13725_v10, 16 }
 0x214   : > { %3047 = vst [vmem:[#allocation2 + $0x78] sm:$0xf] %v3046_v37  ;;  %v3039_v15 = vsel %vm13506_vm3, %v2798_v14, %v3038_v21  ;;  %v2806_v58 = vor.u32 %v2804_v17, %v2803_v59  ;;  %v2808_v18 = vrot.slane %v2803_v59, 4  ;;  %v9860_v21 = vcombine.low %v3277_v33, %v3236_v60  ;;  %v3818_v46 = vpop.permute.xlu0 %3817  ;;  %11013 = vmatpush3.bf16.msra.mxu1 %v13736_v61 }
 0x215   : > { %3040 = vst [vmem:[#allocation2 + $0x6c] sm:$0xf] %v3039_v15  ;;  %v2824_v29 = vsel %vm13513_vm4, %v2816_v52, %v2823_v44  ;;  %v3050_v0 = vsel %vm13520_vm5, %v2825_v39, %v3049_v20  ;;  %v13784_v20 = vsel %vm875_vm0, %v4630_v1, %v4631_v3  ;;  %v3975_v63 = vshll.u32 %v11359_v40, 16 }
 0x216   : > { %3048 = vst.msk [vmem:[#allocation2 + $0x7c] sm:$0xf] %vm2501_vm12, %v2824_v29  ;;  %3051 = vst [vmem:[#allocation2 + $0x80] sm:$0x1] %v3050_v0  ;;  %v2807_v5 = vsel %vm13513_vm4, %v2799_v22, %v2806_v58  ;;  %v3043_v35 = vsel %vm13520_vm5, %v2808_v18, %v3042_v13  ;;  %v3982_v17 = vshll.u32 %v13738_v16, 16  ;;  %v4718_v13 = vsel %vm4663_vm6, %v13560_v6, %v3818_v46  ;;  %v3610_v22 = vpop.permute.xlu1 %3609 }
 0x217   : > { %3041 = vst.msk [vmem:[#allocation2 + $0x70] sm:$0xf] %vm2501_vm12, %v2807_v5  ;;  %3044 = vst [vmem:[#allocation2 + $0x74] sm:$0x1] %v3043_v35  ;;  %v4633_v7 = vrot.slane %v9860_v21, 1  ;;  %v3987_v60 = vshll.u32 %v11363_v42, 16  ;;  %5271 = vmatprep.mubr.bf16.mxu1 %v4718_v13  ;;  %v4668_v48 = vsel %vm4663_vm6, %v13550_v11, %v3610_v22 }
 0x218   : > { %16350 = vst [vmem:[#allocation23_spill] sm:$0xff] %v13784_v20  ;;  %v3972_v52 = vrot.slane %v3970_v31, 1  ;;  %v3980_v14 = vshrl.u32 %v13738_v16, 16  ;;  %v3984_v61 = vrot.slane %v3982_v17, 1  ;;  %v3977_v40 = vrot.slane %v3975_v63, 1 }
 0x219   : > { %v13793_v3 = vsel %vm875_vm0, %v4633_v7, %v4634_v56  ;;  %v3989_v44 = vrot.slane %v3987_v60, 1 }
 0x21a   : > { %16351 = vst [vmem:[#allocation25_spill] sm:$0xff] %v13793_v3  ;;  %v3973_v59 = vor.u32 %v3972_v52, %v3968_v50  ;;  %v3985_v37 = vor.u32 %v3984_v61, %v3980_v14 }
 0x21b   : > { %v3114_v6 = vld [vmem:[#allocation2 + $0x78] sm:$0xf]  ;;  %5272 = vmatmul.mubr.bf16.gmra.mrb[20].mxu1 %v4668_v48 }
 0x21c   : > { %v3174_v39 = vld [vmem:[#allocation2 + $0x6c] sm:$0xf]  ;;  %v13800_v16 = vsel %vm602_vm1, %v3973_v59, %v3977_v40  ;;  %v13803_v58 = vsel %vm602_vm1, %v3985_v37, %v3989_v44  ;;  %v3176_v46 = vld [vmem:[#allocation2 + $0x78] sm:$0xf] }
 0x21d   : > { %v3112_v41 = vld [vmem:[#allocation2 + $0x6c] sm:$0xf]  ;;  %v13797_v15 = vld [vmem:[#allocation2 + $0x7c] sm:$0xf]  ;;  %16352 = vst [vmem:[#allocation28_spill] sm:$0xff] %v13800_v16  ;;  %16353 = vst [vmem:[#allocation29_spill] sm:$0xff] %v13803_v58 }
 0x21e   : > { %v3151_v10 = vld [vmem:[#allocation2 + $0x6c] sm:$0xe]  ;;  %v3175_v18 = vld [vmem:[#allocation2 + $0x70] sm:$0xf]  ;;  %v13806_v42 = vcombine.low %v3114_v6, %v13797_v15  ;;  %v3177_v33 = vld [vmem:[#allocation2 + $0x7c] sm:$0xf] }
 0x21f   : > { %v3113_v25 = vld [vmem:[#allocation2 + $0x70] sm:$0xf]  ;;  %v13808_v29 = vcombine.low %v3174_v39, %v3175_v18  ;;  %v11319_v11 = vld [vmem:[#allocation2 + $0x74] ss:$0 sps:$4 sm:$0x11]   ;;  %v13818_v17 = vcombine.low %v3176_v46, %v3177_v33  ;;  %v11362_v59 = vld [vmem:[%s16150_s3 + $0x108] sm:$0xff]  }
 0x220   : > { %v13810_v0 = vcombine.low %v3112_v41, %v3113_v25  ;;  %v9767_v1 = vcombine.low %v3151_v10, %v3113_v25  ;;  %v13812_v5 = vld [vmem:[#allocation2 + $0x80] ss:$0 sps:$4 sm:$0x11]   ;;  %v3538_v35 = vshll.u32 %v13806_v42, 16  ;;  %v3531_v56 = vshll.u32 %v11319_v11, 16  ;;  %11014 = vmatprep.subr.bf16.mxu1 %v11362_v59 }
 0x221   : > { %3831 = vrot.lane.b32.xlu0 %v13808_v29, %s11724_s21  ;;  %v3715_v63 = vrot.slane %v11319_v11, 1  ;;  %v3536_v61 = vshrl.u32 %v13806_v42, 16  ;;  %v3543_v22 = vshll.u32 %v13812_v5, 16  ;;  %11015 = vmatpush3.bf16.msra.mxu1 %v11362_v59  ;;  %v3718_v59 = vrot.slane %v13812_v5, 1 }
 0x222   : > { %v3526_v21 = vshll.u32 %v13810_v0, 16  ;;  %v3714_v31 = vrot.slane %v9767_v1, 1  ;;  %v3524_v13 = vshrl.u32 %v13810_v0, 16  ;;  %v3540_v60 = vrot.slane %v3538_v35, 1  ;;  %v3612_v35 = vpop.permute.xlu1 %3611 }
 0x223   : > { %v3533_v14 = vrot.slane %v3531_v56, 1  ;;  %v3545_v11 = vrot.slane %v3543_v22, 1  ;;  %v4671_v22 = vsel %vm4663_vm6, %v13546_v49, %v3612_v35  ;;  %v3240_v49 = vld [vmem:[#allocation2 + $0x7c] sm:$0xf] }
 0x224   : > { %v3528_v7 = vrot.slane %v3526_v21, 1  ;;  %v13822_v50 = vsel %vm875_vm0, %v3714_v31, %v3715_v63  ;;  %v3541_v41 = vor.u32 %v3540_v60, %v3536_v61  ;;  %v13838_v31 = vld [vmem:[#allocation2 + $0x74] ss:$0 sps:$4 sm:$0x11]  }
 0x225   : > { %3833 = vrot.lane.b32.xlu0 %v13818_v17, %s11724_s21  ;;  %v11365_v16 = vld [vmem:[#allocation2 + $0x80] ss:$0 sps:$4 sm:$0x11]   ;;  %v11366_v3 = vld [vmem:[#allocation2 + $0x74] ss:$0 sps:$4 sm:$0x11]  }
 0x226   : > { %v3529_v52 = vor.u32 %v3528_v7, %v3524_v13  ;;  %v11002_v40 = vpop.f32.mrb[4].mxu1  ;;  %v3546_v46 = vsel %vm602_vm1, %v3541_v41, %v3545_v11  ;;  %v4637_v41 = vrot.slane %v13838_v31, 1  ;;  %v3152_v11 = vld [vmem:[#allocation2 + $0x78] sm:$0xe] }
 0x227   : > { %v2431_v37 = vadd.f32 %v13754_v43, %v11002_v40  ;;  %v2422_v44 = vpop.f32.mrb[5].mxu1  ;;  %v9768_v5 = vcombine.low %v3152_v11, %v13797_v15  ;;  %v4640_v11 = vrot.slane %v11365_v16, 1 }
 0x228   : > { %v3534_v39 = vsel %vm602_vm1, %v3529_v52, %v3533_v14  ;;  %v2423_v6 = vadd.f32 %v13754_v43, %v2422_v44  ;;  %v11003_v48 = vpop.f32.mrb[6].mxu1  ;;  %v3059_v52 = vld [vmem:[#allocation2 + $0x90] sm:$0xf]  ;;  %v3052_v44 = vld [vmem:[#allocation2 + $0x84] sm:$0xf] }
 0x229   : > { %3625 = vrot.lane.b32.xlu1 %v3534_v39, %s11724_s21  ;;  %v2491_v10 = vmax.f32 %v2431_v37, 0.0  ;;  %v2434_v18 = vadd.f32 %v13754_v43, %v11003_v48  ;;  %v2425_v25 = vpop.f32.mrb[7].mxu1 }
 0x22a   : > { %v2489_v1 = vmax.f32 %v2423_v6, 0.0  ;;  %v2426_v33 = vadd.f32 %v13754_v43, %v2425_v25 }
 0x22b   : > { %v10197_v21 = vpack.c.bf16 %v2491_v10, %v2491_v10  ;;  %v2492_v56 = vmax.f32 %v2434_v18, 0.0  ;;  %v3063_v18 = vld [vmem:[#allocation2 + $0x98] sm:$0x1] }
 0x22c   : > { %v10195_v63 = vpack.c.bf16 %v2489_v1, %v2489_v1  ;;  %v2490_v13 = vmax.f32 %v2426_v33, 0.0 }
 0x22d   : > { %3627 = vrot.lane.b32.xlu1 %v3546_v46, %s11724_s21  ;;  %v2844_v7 = vshrl.u32 %v10197_v21, 16  ;;  %v10198_v60 = vpack.c.bf16 %v2492_v56, %v2492_v56  ;;  %v2847_v37 = vshll.u32 %v10197_v21, 16  ;;  %v3056_v46 = vld [vmem:[#allocation2 + $0x8c] sm:$0x1] }
 0x22e   : > { %v2827_v14 = vshrl.u32 %v10195_v63, 16  ;;  %v10196_v61 = vpack.c.bf16 %v2490_v13, %v2490_v13  ;;  %v2830_v48 = vshll.u32 %v10195_v63, 16  ;;  %v3238_v13 = vld [vmem:[#allocation2 + $0x70] sm:$0xf] }
 0x22f   : > { %v2846_v40 = vrot.slane %v2844_v7, 7  ;;  %v2852_v39 = vshrl.u32 %v10198_v60, 16  ;;  %v2855_v10 = vshll.u32 %v10198_v60, 16 }
 0x230   : > { %v2829_v6 = vrot.slane %v2827_v14, 7  ;;  %v2835_v25 = vshrl.u32 %v10196_v61, 16  ;;  %v2838_v56 = vshll.u32 %v10196_v61, 16  ;;  %v3820_v14 = vpop.permute.xlu0 %3819 }
 0x231   : > { %v2849_v1 = vor.u32 %v2847_v37, %v2846_v40  ;;  %v2854_v33 = vrot.slane %v2852_v39, 7  ;;  %v2850_v35 = vrot.slane %v2846_v40, 4  ;;  %v3717_v37 = vrot.slane %v9768_v5, 1  ;;  %v3278_v40 = vld [vmem:[#allocation2 + $0x6c] sm:$0xe] }
 0x232   : > { %v2832_v21 = vor.u32 %v2830_v48, %v2829_v6  ;;  %v2833_v7 = vrot.slane %v2829_v6, 4  ;;  %v2837_v58 = vrot.slane %v2835_v25, 7  ;;  %v4722_v15 = vsel %vm4663_vm6, %v13563_v45, %v3820_v14  ;;  %v3279_v25 = vld [vmem:[#allocation2 + $0x78] sm:$0xe] }
 0x233   : > { %v3060_v31 = vsel %vm13506_vm3, %v2849_v1, %v3059_v52  ;;  %v2857_v63 = vor.u32 %v2855_v10, %v2854_v33  ;;  %v2859_v60 = vrot.slane %v2854_v33, 4  ;;  %5279 = vmatprep.mubr.bf16.mxu1 %v4722_v15  ;;  %v13857_v48 = vsel %vm875_vm0, %v3717_v37, %v3718_v59  ;;  %v3614_v16 = vpop.permute.xlu1 %3613 }
 0x234   : > { %3061 = vst [vmem:[#allocation2 + $0x90] sm:$0xf] %v3060_v31  ;;  %v3053_v61 = vsel %vm13506_vm3, %v2832_v21, %v3052_v44  ;;  %v2840_v39 = vor.u32 %v2838_v56, %v2837_v58  ;;  %v2842_v20 = vrot.slane %v2837_v58, 4  ;;  %v9861_v10 = vcombine.low %v3278_v40, %v3238_v13  ;;  %5280 = vmatmul.mubr.bf16.gmra.mrb[24].mxu1 %v4671_v22 }
 0x235   : > { %3054 = vst [vmem:[#allocation2 + $0x84] sm:$0xf] %v3053_v61  ;;  %v2858_v6 = vsel %vm13513_vm4, %v2850_v35, %v2857_v63  ;;  %v3064_v52 = vsel %vm13520_vm5, %v2859_v60, %v3063_v18  ;;  %v9862_v44 = vcombine.low %v3279_v25, %v3240_v49  ;;  %v3822_v18 = vpop.permute.xlu0 %3821  ;;  %v3994_v1 = vshll.u32 %v13808_v29, 16 }
 0x236   : > { %3062 = vst.msk [vmem:[#allocation2 + $0x94] sm:$0xf] %vm2501_vm12, %v2858_v6  ;;  %3065 = vst [vmem:[#allocation2 + $0x98] sm:$0x1] %v3064_v52  ;;  %v2841_v45 = vsel %vm13513_vm4, %v2833_v7, %v2840_v39  ;;  %v3057_v58 = vsel %vm13520_vm5, %v2842_v20, %v3056_v46  ;;  %v4636_v59 = vrot.slane %v9861_v10, 1  ;;  %v3999_v33 = vshll.u32 %v11366_v3, 16 }
 0x237   : > { %3055 = vst.msk [vmem:[#allocation2 + $0x88] sm:$0xf] %vm2501_vm12, %v2841_v45  ;;  %3058 = vst [vmem:[#allocation2 + $0x8c] sm:$0x1] %v3057_v58  ;;  %v4726_v56 = vsel %vm4663_vm6, %v13617_v2, %v3822_v18  ;;  %v4639_v13 = vrot.slane %v9862_v44, 1  ;;  %v3992_v20 = vshrl.u32 %v13808_v29, 16  ;;  %v4674_v3 = vsel %vm4663_vm6, %v13607_v23, %v3614_v16 }
 0x238   : > { %5287 = vmatprep.mubr.bf16.mxu1 %v4726_v56  ;;  %v13869_v5 = vsel %vm875_vm0, %v4636_v59, %v4637_v41  ;;  %v3996_v22 = vrot.slane %v3994_v1, 1  ;;  %v4001_v35 = vrot.slane %v3999_v33, 1  ;;  %v11386_v44 = vld [vmem:[%s16150_s3 + $0x110] sm:$0xff]  }
 0x239   : > { %16354 = vst [vmem:[#allocation26_spill] sm:$0xff] %v13869_v5  ;;  %v13873_v46 = vsel %vm875_vm0, %v4639_v13, %v4640_v11  ;;  %v4006_v11 = vshll.u32 %v13818_v17, 16  ;;  %11016 = vmatprep.subr.bf16.mxu1 %v11386_v44 }
 0x23a   : > { %16355 = vst [vmem:[#allocation30_spill] sm:$0xff] %v13873_v46  ;;  %v3997_v49 = vor.u32 %v3996_v22, %v3992_v20  ;;  %11017 = vmatpush3.bf16.msra.mxu1 %v11386_v44  ;;  %v14038_v46 = vld [vmem:[#allocation2 + $0x18] sm:$0xe] }
 0x23b   : > { %v3118_v7 = vld [vmem:[#allocation2 + $0x90] sm:$0xf] }
 0x23c   : > { %v3178_v21 = vld [vmem:[#allocation2 + $0x84] sm:$0xf]  ;;  %v13880_v41 = vsel %vm602_vm1, %v3997_v49, %v4001_v35  ;;  %5288 = vmatmul.mubr.bf16.gmra.mrb[28].mxu1 %v4674_v3  ;;  %v3180_v52 = vld [vmem:[#allocation2 + $0x90] sm:$0xf] }
 0x23d   : > { %v3116_v2 = vld [vmem:[#allocation2 + $0x84] sm:$0xf]  ;;  %v13877_v31 = vld [vmem:[#allocation2 + $0x94] sm:$0xf]  ;;  %16356 = vst [vmem:[#allocation27_spill] sm:$0xff] %v13880_v41 }
 0x23e   : > { %v3179_v29 = vld [vmem:[#allocation2 + $0x88] sm:$0xf]  ;;  %v13885_v60 = vcombine.low %v3118_v7, %v13877_v31  ;;  %v13892_v61 = vld [vmem:[#allocation2 + $0x8c] ss:$0 sps:$4 sm:$0x11]   ;;  %v4008_v7 = vrot.slane %v4006_v11, 1 }
 0x23f   : > { %v13882_v63 = vld [vmem:[#allocation2 + $0x88] sm:$0xf]  ;;  %v13887_v14 = vcombine.low %v3178_v21, %v3179_v29  ;;  %v3181_v23 = vld [vmem:[#allocation2 + $0x94] sm:$0xf]  ;;  %v3555_v40 = vshll.u32 %v13892_v61, 16 }
 0x240   : > { %16357 = vst [vmem:[#allocation31_spill] sm:$0xff] %v13885_v60  ;;  %v13890_v37 = vcombine.low %v3116_v2, %v13882_v63  ;;  %v3562_v39 = vshll.u32 %v13885_v60, 16  ;;  %v13899_v6 = vld [vmem:[#allocation2 + $0x98] ss:$0 sps:$4 sm:$0x11]   ;;  %v13901_v10 = vcombine.low %v3180_v52, %v3181_v23  ;;  %v3560_v1 = vshrl.u32 %v13885_v60, 16 }
 0x241   : > { %3835 = vrot.lane.b32.xlu0 %v13887_v14, %s11724_s21  ;;  %v3557_v59 = vrot.slane %v3555_v40, 1  ;;  %v3567_v33 = vshll.u32 %v13899_v6, 16  ;;  %v13914_v49 = vld [vmem:[#allocation2 + $0x80] ss:$0 sps:$4 sm:$0x11]   ;;  %v4004_v52 = vshrl.u32 %v13818_v17, 16 }
 0x242   : > { %16358 = vst [vmem:[#allocation32_spill] sm:$0xff] %v13890_v37  ;;  %v3550_v15 = vshll.u32 %v13890_v37, 16  ;;  %v3548_v25 = vshrl.u32 %v13890_v37, 16  ;;  %v3564_v58 = vrot.slane %v3562_v39, 1  ;;  %v3616_v39 = vpop.permute.xlu1 %3615  ;;  %v3153_v44 = vld [vmem:[#allocation2 + $0x84] sm:$0xe] }
 0x243   : > { %v3569_v23 = vrot.slane %v3567_v33, 1  ;;  %v13925_v33 = vor.u32 %v4008_v7, %v4004_v52  ;;  %v4677_v17 = vsel %vm4663_vm6, %v13603_v55, %v3616_v39  ;;  %v3077_v52 = vld [vmem:[#allocation2 + $0xb0] sm:$0x1]  ;;  %v3084_v60 = vld [vmem:[#allocation2 + $0xbc] sm:$0x1] }
 0x244   : > { %v3552_v45 = vrot.slane %v3550_v15, 1  ;;  %v3565_v16 = vor.u32 %v3564_v58, %v3560_v1  ;;  %v9769_v1 = vcombine.low %v3153_v44, %v13882_v63  ;;  %v3154_v63 = vld [vmem:[#allocation2 + $0x90] sm:$0xe] }
 0x245   : > { %3837 = vrot.lane.b32.xlu0 %v13901_v10, %s11724_s21  ;;  %v9770_v44 = vcombine.low %v3154_v63, %v13877_v31  ;;  %v3724_v63 = vrot.slane %v13899_v6, 1 }
 0x246   : > { %v3553_v18 = vor.u32 %v3552_v45, %v3548_v25  ;;  %v11006_v56 = vpop.f32.mrb[8].mxu1  ;;  %v3570_v58 = vsel %vm602_vm1, %v3565_v16, %v3569_v23  ;;  %v3073_v16 = vld [vmem:[#allocation2 + $0xa8] sm:$0xf] }
 0x247   : > { %v2447_v13 = vadd.f32 %v13754_v43, %v11006_v56  ;;  %v2438_v20 = vpop.f32.mrb[9].mxu1  ;;  %v3723_v41 = vrot.slane %v9770_v44, 1  ;;  %v3280_v44 = vld [vmem:[#allocation2 + $0x84] sm:$0xe] }
 0x248   : > { %v3558_v22 = vsel %vm602_vm1, %v3553_v18, %v3557_v59  ;;  %v2439_v35 = vadd.f32 %v13754_v43, %v2438_v20  ;;  %v11007_v21 = vpop.f32.mrb[10].mxu1  ;;  %v3721_v20 = vrot.slane %v13892_v61, 1  ;;  %v13931_v18 = vld [vmem:[#allocation2 + $0x88] sm:$0xf] }
 0x249   : > { %3629 = vrot.lane.b32.xlu1 %v3558_v22, %s11724_s21  ;;  %v2495_v3 = vmax.f32 %v2447_v13, 0.0  ;;  %v2450_v2 = vadd.f32 %v13754_v43, %v11007_v21  ;;  %v2441_v29 = vpop.f32.mrb[11].mxu1  ;;  %v13956_v6 = vsel %vm875_vm0, %v3723_v41, %v3724_v63 }
 0x24a   : > { %v2493_v15 = vmax.f32 %v2439_v35, 0.0  ;;  %v2442_v40 = vadd.f32 %v13754_v43, %v2441_v29  ;;  %v3066_v29 = vld [vmem:[#allocation2 + $0x9c] sm:$0xf]  ;;  %16359 = vst [vmem:[#allocation35_spill] sm:$0xff] %v13956_v6 }
 0x24b   : > { %v10201_v25 = vpack.c.bf16 %v2495_v3, %v2495_v3  ;;  %v2496_v45 = vmax.f32 %v2450_v2, 0.0 }
 0x24c   : > { %v10199_v59 = vpack.c.bf16 %v2493_v15, %v2493_v15  ;;  %v2494_v11 = vmax.f32 %v2442_v40, 0.0  ;;  %v3720_v40 = vrot.slane %v9769_v1, 1 }
 0x24d   : > { %3631 = vrot.lane.b32.xlu1 %v3570_v58, %s11724_s21  ;;  %v2878_v56 = vshrl.u32 %v10201_v25, 16  ;;  %v10202_v13 = vpack.c.bf16 %v2496_v45, %v2496_v45  ;;  %v2881_v22 = vshll.u32 %v10201_v25, 16  ;;  %v3070_v25 = vld [vmem:[#allocation2 + $0xa4] sm:$0x1] }
 0x24e   : > { %v2861_v35 = vshrl.u32 %v10199_v59, 16  ;;  %v2864_v21 = vshll.u32 %v10199_v59, 16  ;;  %v10200_v3 = vpack.c.bf16 %v2494_v11, %v2494_v11  ;;  %v13933_v59 = vld [vmem:[#allocation2 + $0x94] sm:$0xf]  ;;  %v13936_v11 = vsel %vm875_vm0, %v3720_v40, %v3721_v20 }
 0x24f   : > { %v2880_v2 = vrot.slane %v2878_v56, 7  ;;  %v2886_v23 = vshrl.u32 %v10202_v13, 16  ;;  %v2889_v15 = vshll.u32 %v10202_v13, 16 }
 0x250   : > { %v2863_v7 = vrot.slane %v2861_v35, 7  ;;  %v2869_v58 = vshrl.u32 %v10200_v3, 16  ;;  %v2872_v45 = vshll.u32 %v10200_v3, 16  ;;  %v13938_v35 = vld [vmem:[#allocation2 + $0x8c] ss:$0 sps:$4 sm:$0x11]  }
 0x251   : > { %v2883_v55 = vor.u32 %v2881_v22, %v2880_v2  ;;  %v2884_v39 = vrot.slane %v2880_v2, 4  ;;  %v2888_v61 = vrot.slane %v2886_v23, 7  ;;  %v3824_v2 = vpop.permute.xlu0 %3823  ;;  %v13942_v23 = vld [vmem:[#allocation2 + $0x98] ss:$0 sps:$4 sm:$0x11]  }
 0x252   : > { %v2866_v56 = vor.u32 %v2864_v21, %v2863_v7  ;;  %v2867_v1 = vrot.slane %v2863_v7, 4  ;;  %v2871_v13 = vrot.slane %v2869_v58, 7  ;;  %v4730_v7 = vsel %vm4663_vm6, %v13620_v27, %v3824_v2  ;;  %v13949_v58 = vld [vmem:[#allocation2 + $0x8c] ss:$0 sps:$4 sm:$0x11]  }
 0x253   : > { %v3074_v31 = vsel %vm13506_vm3, %v2883_v55, %v3073_v16  ;;  %v2891_v22 = vor.u32 %v2889_v15, %v2888_v61  ;;  %v2893_v3 = vrot.slane %v2888_v61, 4  ;;  %5295 = vmatprep.mubr.bf16.mxu1 %v4730_v7  ;;  %v3618_v63 = vpop.permute.xlu1 %3617 }
 0x254   : > { %3075 = vst [vmem:[#allocation2 + $0xa8] sm:$0xf] %v3074_v31  ;;  %v3067_v20 = vsel %vm13506_vm3, %v2866_v56, %v3066_v29  ;;  %v2874_v21 = vor.u32 %v2872_v45, %v2871_v13  ;;  %v2876_v40 = vrot.slane %v2871_v13, 4  ;;  %v9863_v29 = vcombine.low %v3280_v44, %v13931_v18  ;;  %v3281_v45 = vld [vmem:[#allocation2 + $0x90] sm:$0xe]  ;;  %5296 = vmatmul.mubr.bf16.gmra.mrb[32].mxu1 %v4677_v17 }
 0x255   : > { %3068 = vst [vmem:[#allocation2 + $0x9c] sm:$0xf] %v3067_v20  ;;  %v2892_v16 = vsel %vm13513_vm4, %v2884_v39, %v2891_v22  ;;  %v3078_v15 = vsel %vm13520_vm5, %v2893_v3, %v3077_v52  ;;  %v4643_v39 = vrot.slane %v13938_v35, 1  ;;  %v9864_v52 = vcombine.low %v3281_v45, %v13933_v59  ;;  %v3826_v41 = vpop.permute.xlu0 %3825 }
 0x256   : > { %3076 = vst.msk [vmem:[#allocation2 + $0xac] sm:$0xf] %vm2501_vm12, %v2892_v16  ;;  %3079 = vst [vmem:[#allocation2 + $0xb0] sm:$0x1] %v3078_v15  ;;  %v2875_v27 = vsel %vm13513_vm4, %v2867_v1, %v2874_v21  ;;  %v3071_v55 = vsel %vm13520_vm5, %v2876_v40, %v3070_v25  ;;  %v4642_v61 = vrot.slane %v9863_v29, 1  ;;  %v4646_v56 = vrot.slane %v13942_v23, 1 }
 0x257   : > { %3069 = vst.msk [vmem:[#allocation2 + $0xa0] sm:$0xf] %vm2501_vm12, %v2875_v27  ;;  %3072 = vst [vmem:[#allocation2 + $0xa4] sm:$0x1] %v3071_v55  ;;  %v16360_v13 = vshll.u32 %v13914_v49, 16  ;;  %v4734_v1 = vsel %vm4663_vm6, %v13677_v53, %v3826_v41  ;;  %v4645_v22 = vrot.slane %v9864_v52, 1  ;;  %v4680_v15 = vsel %vm4663_vm6, %v13667_v36, %v3618_v63 }
 0x258   : > { %v4018_v17 = vshll.u32 %v13887_v14, 16  ;;  %v4023_v25 = vshll.u32 %v13949_v58, 16  ;;  %5303 = vmatprep.mubr.bf16.mxu1 %v4734_v1  ;;  %v13975_v3 = vsel %vm875_vm0, %v4642_v61, %v4643_v39  ;;  %v4016_v20 = vshrl.u32 %v13887_v14, 16  ;;  %v3223_v21 = vld [vmem:[#allocation2 + $0x18] sm:$0xf] }
 0x259   : > { %v4013_v31 = vrot.slane %v16360_v13, 1  ;;  %16361 = vst [vmem:[#allocation33_spill] sm:$0xff] %v13975_v3  ;;  %v13982_v49 = vsel %vm875_vm0, %v4645_v22, %v4646_v56  ;;  %v11645_v14 = vld [vmem:[#allocation2 + $0x1c] sm:$0xf] }
 0x25a   : > { %16363 = vst [vmem:[#allocation6_spill] sm:$0xff] %v13982_v49  ;;  %v4020_v53 = vrot.slane %v4018_v17, 1  ;;  %v4025_v16 = vrot.slane %v4023_v25, 1  ;;  %v13996_v39 = vcombine.low %v3223_v21, %v11645_v14  ;;  %v11646_v63 = vld [vmem:[#allocation2 + $0x20] ss:$0 sps:$4 sm:$0x11]  }
 0x25b   : > { %v13979_v2 = vsel %vm602_vm1, %v13925_v33, %v4013_v31  ;;  %v3122_v7 = vld [vmem:[#allocation2 + $0xa8] sm:$0xf] }
 0x25c   : > { %16362 = vst [vmem:[#allocation34_spill] sm:$0xff] %v13979_v2  ;;  %v3182_v40 = vld [vmem:[#allocation2 + $0x9c] sm:$0xf]  ;;  %v4021_v44 = vor.u32 %v4020_v53, %v4016_v20  ;;  %5304 = vmatmul.mubr.bf16.gmra.mrb[36].mxu1 %v4680_v15  ;;  %16365 = vst [vmem:[#allocation17_spill] sm:$0xff] %v13996_v39  ;;  %v3184_v17 = vld [vmem:[#allocation2 + $0xa8] sm:$0xf] }
 0x25d   : > { %v3120_v29 = vld [vmem:[#allocation2 + $0x9c] sm:$0xf]  ;;  %v13987_v45 = vld [vmem:[#allocation2 + $0xac] sm:$0xf]  ;;  %v4346_v25 = vshll.u32 %v13996_v39, 16  ;;  %v4351_v20 = vshll.u32 %v11646_v63, 16 }
 0x25e   : > { %v13989_v33 = vld [vmem:[#allocation2 + $0xa0] sm:$0xf]  ;;  %v13994_v55 = vcombine.low %v3122_v7, %v13987_v45  ;;  %v13999_v52 = vsel %vm602_vm1, %v4021_v44, %v4025_v16  ;;  %v14007_v61 = vld [vmem:[#allocation2 + $0xa4] ss:$0 sps:$4 sm:$0x11]  }
 0x25f   : > { %v13991_v27 = vld [vmem:[#allocation2 + $0xa0] sm:$0xf]  ;;  %16366 = vst [vmem:[#allocation36_spill] sm:$0xff] %v13999_v52  ;;  %v14002_v41 = vcombine.low %v3182_v40, %v13989_v33  ;;  %v14009_v56 = vld [vmem:[#allocation2 + $0xac] sm:$0xf]  ;;  %v3579_v1 = vshll.u32 %v14007_v61, 16 }
 0x260   : > { %16364 = vst [vmem:[#allocation7_spill] sm:$0xff] %v13994_v55  ;;  %v14005_v36 = vcombine.low %v3120_v29, %v13991_v27  ;;  %v3586_v13 = vshll.u32 %v13994_v55, 16  ;;  %v14016_v22 = vld [vmem:[#allocation2 + $0xb0] ss:$0 sps:$4 sm:$0x11]   ;;  %v14020_v53 = vcombine.low %v3184_v17, %v14009_v56  ;;  %v11389_v29 = vld [vmem:[%s16150_s3 + $0xc0] sm:$0xff]  }
 0x261   : > { %3839 = vrot.lane.b32.xlu0 %v14002_v41, %s11724_s21  ;;  %v3206_v44 = vld [vmem:[#allocation2 + $0xc] sm:$0xe]  ;;  %v11647_v16 = vld [vmem:[#allocation2 + $0x10] sm:$0xf]  ;;  %v3581_v52 = vrot.slane %v3579_v1, 1  ;;  %v3584_v63 = vshrl.u32 %v13994_v55, 16  ;;  %10370 = vmatprep.subr.bf16.mxu0 %v11389_v29 }
 0x262   : > { %16367 = vst [vmem:[#allocation19_spill] sm:$0xff] %v14005_v36  ;;  %v3574_v31 = vshll.u32 %v14005_v36, 16  ;;  %v3572_v21 = vshrl.u32 %v14005_v36, 16  ;;  %v3588_v7 = vrot.slane %v3586_v13, 1  ;;  %v9806_v15 = vcombine.low %v3206_v44, %v11647_v16  ;;  %v3225_v2 = vld [vmem:[#allocation2 + $0x24] sm:$0xf] }
 0x263   : > { %v3591_v17 = vshll.u32 %v14016_v22, 16  ;;  %v11390_v13 = vld [vmem:[%s16150_s3 + $0x80] sm:$0xff]   ;;  %v14034_v16 = vrot.slane %v4346_v25, 1  ;;  %v11648_v49 = vld [vmem:[#allocation2 + $0x28] sm:$0xf]  ;;  %v14042_v19 = vrot.slane %v4351_v20, 1 }
 0x264   : > { %v3576_v40 = vrot.slane %v3574_v31, 1  ;;  %v14036_v3 = vcombine.low %v3225_v2, %v11648_v49  ;;  %v3589_v5 = vor.u32 %v3588_v7, %v3584_v63  ;;  %10371 = vmatpush3.bf16.msra.mxu0 %v11390_v13  ;;  %v11391_v25 = vld [vmem:[%s16150_s3 + $0xc8] sm:$0xff]   ;;  %v14049_v49 = vrot.slane %v9806_v15, 1  ;;  %v14051_v29 = vld [vmem:[#allocation2 + $0x98] ss:$0 sps:$4 sm:$0x11]  }
 0x265   : > { %3841 = vrot.lane.b32.xlu0 %v14020_v53, %s11724_s21  ;;  %v3593_v63 = vrot.slane %v3591_v17, 1  ;;  %v14057_v13 = vld [vmem:[#allocation2 + $0x1c] sm:$0xf]  ;;  %10372 = vmatprep.subr.bf16.mxu0 %v11391_v25  ;;  %v11394_v17 = vld [vmem:[%s16150_s3 + $0xd0] sm:$0xff]   ;;  %v3156_v55 = vld [vmem:[#allocation2 + $0xa8] sm:$0xe] }
 0x266   : > { %v3577_v14 = vor.u32 %v3576_v40, %v3572_v21  ;;  %v11010_v31 = vpop.f32.mrb[12].mxu1  ;;  %16368 = vst [vmem:[#allocation38_spill] sm:$0xff] %v14036_v3  ;;  %v11393_v15 = vld [vmem:[%s16150_s3 + $0x118] sm:$0xff]   ;;  %v14092_v6 = vld [vmem:[#allocation2 + $0xa0] sm:$0xf] }
 0x267   : > { %v2463_v1 = vadd.f32 %v13754_v43, %v11010_v31  ;;  %v2454_v21 = vpop.f32.mrb[13].mxu1  ;;  %v3594_v25 = vsel %vm602_vm1, %v3589_v5, %v3593_v63  ;;  %v3155_v47 = vld [vmem:[#allocation2 + $0x9c] sm:$0xe]  ;;  %11018 = vmatprep.subr.bf16.mxu1 %v11393_v15 }
 0x268   : > { %v3582_v40 = vsel %vm602_vm1, %v3577_v14, %v3581_v52  ;;  %v2455_v44 = vadd.f32 %v13754_v43, %v2454_v21  ;;  %v11011_v2 = vpop.f32.mrb[14].mxu1  ;;  %v11392_v52 = vld [vmem:[%s16150_s3 + $0x88] sm:$0xff]   ;;  %v3227_v21 = vld [vmem:[#allocation2 + $0x30] sm:$0xf]  ;;  %11019 = vmatpush3.bf16.msra.mxu1 %v11393_v15  ;;  %v11396_v5 = vld [vmem:[%s16150_s3 + $0xd8] sm:$0xff]  }
 0x269   : > { %3633 = vrot.lane.b32.xlu1 %v3582_v40, %s11724_s21  ;;  %v2499_v20 = vmax.f32 %v2463_v1, 0.0  ;;  %v2466_v7 = vadd.f32 %v13754_v43, %v11011_v2  ;;  %v2457_v14 = vpop.f32.mrb[15].mxu1  ;;  %v3620_v40 = vpop.permute.xlu1 %3619  ;;  %v11650_v2 = vld [vmem:[#allocation2 + $0x34] sm:$0xf]  ;;  %10373 = vmatpush3.bf16.msra.mxu0 %v11392_v52  ;;  %v3727_v1 = vrot.slane %v14007_v61, 1 }
 0x26a   : > { %v2497_v62 = vmax.f32 %v2455_v44, 0.0  ;;  %v2458_v26 = vadd.f32 %v13754_v43, %v2457_v14  ;;  %v14066_v12 = vcombine.low %v3227_v21, %v11650_v2  ;;  %v11395_v43 = vld [vmem:[%s16150_s3 + $0x90] sm:$0xff]   ;;  %v9771_v2 = vcombine.low %v3155_v47, %v13991_v27  ;;  %10374 = vmatprep.subr.bf16.mxu0 %v11394_v17  ;;  %v11397_v27 = vld [vmem:[%s16150_s3 + $0x98] sm:$0xff]  }
 0x26b   : > { %v10205_v31 = vpack.c.bf16 %v2499_v20, %v2499_v20  ;;  %v2500_v54 = vmax.f32 %v2466_v7, 0.0  ;;  %v4683_v63 = vsel %vm4663_vm6, %v13663_v8, %v3620_v40  ;;  %v3091_v40 = vld [vmem:[#allocation2 + $0xc8] sm:$0x1] }
 0x26c   : > { %16369 = vst [vmem:[#allocation37_spill] sm:$0xff] %v14066_v12  ;;  %v10203_v14 = vpack.c.bf16 %v2497_v62, %v2497_v62  ;;  %v2498_v21 = vmax.f32 %v2458_v26, 0.0  ;;  %v3087_v62 = vld [vmem:[#allocation2 + $0xc0] sm:$0xf] }
 0x26d   : > { %3635 = vrot.lane.b32.xlu1 %v3594_v25, %s11724_s21  ;;  %v2912_v20 = vshrl.u32 %v10205_v31, 16  ;;  %v10206_v7 = vpack.c.bf16 %v2500_v54, %v2500_v54  ;;  %v2915_v26 = vshll.u32 %v10205_v31, 16  ;;  %v3726_v54 = vrot.slane %v9771_v2, 1  ;;  %10375 = vmatpush3.bf16.msra.mxu0 %v11395_v43  ;;  %v11398_v31 = vld [vmem:[%s16150_s3 + $0xe0] sm:$0xff]   ;;  %v14094_v2 = vld [vmem:[#allocation2 + $0xac] sm:$0xf] }
 0x26e   : > { %v2895_v25 = vshrl.u32 %v10203_v14, 16  ;;  %v2898_v44 = vshll.u32 %v10203_v14, 16  ;;  %v10204_v47 = vpack.c.bf16 %v2498_v21, %v2498_v21  ;;  %10376 = vmatprep.subr.bf16.mxu0 %v11396_v5  ;;  %v9772_v14 = vcombine.low %v3156_v55, %v13987_v45 }
 0x26f   : > { %v2914_v15 = vrot.slane %v2912_v20, 7  ;;  %v2920_v52 = vshrl.u32 %v10206_v7, 16  ;;  %v2923_v30 = vshll.u32 %v10206_v7, 16  ;;  %v14097_v43 = vsel %vm875_vm0, %v3726_v54, %v3727_v1  ;;  %v11399_v1 = vld [vmem:[%s16150_s3 + $0xa0] sm:$0xff]  }
 0x270   : > { %v2897_v8 = vrot.slane %v2895_v25, 7  ;;  %v2903_v61 = vshrl.u32 %v10204_v47, 16  ;;  %v2906_v17 = vshll.u32 %v10204_v47, 16  ;;  %16370 = vst [vmem:[#allocation42_spill] sm:$0xff] %v14097_v43  ;;  %v3729_v37 = vrot.slane %v9772_v14, 1 }
 0x271   : > { %v2917_v21 = vor.u32 %v2915_v26, %v2914_v15  ;;  %v2918_v36 = vrot.slane %v2914_v15, 4  ;;  %v2922_v20 = vrot.slane %v2920_v52, 7  ;;  %v14099_v47 = vld [vmem:[#allocation2 + $0xa4] ss:$0 sps:$4 sm:$0x11]   ;;  %v3828_v52 = vpop.permute.xlu0 %3827  ;;  %10377 = vmatpush3.bf16.msra.mxu0 %v11397_v27 }
 0x272   : > { %v2900_v7 = vor.u32 %v2898_v44, %v2897_v8  ;;  %v2901_v25 = vrot.slane %v2897_v8, 4  ;;  %v2905_v5 = vrot.slane %v2903_v61, 7  ;;  %v14103_v15 = vld [vmem:[#allocation2 + $0xb0] ss:$0 sps:$4 sm:$0x11]   ;;  %v3730_v44 = vrot.slane %v14016_v22, 1  ;;  %10378 = vmatprep.subr.bf16.mxu0 %v11398_v31 }
 0x273   : > { %v3088_v45 = vsel %vm13506_vm3, %v2917_v21, %v3087_v62  ;;  %v2925_v55 = vor.u32 %v2923_v30, %v2922_v20  ;;  %v2927_v26 = vrot.slane %v2922_v20, 4  ;;  %v4738_v30 = vsel %vm4663_vm6, %v13680_v38, %v3828_v52  ;;  %v3282_v62 = vld [vmem:[#allocation2 + $0x9c] sm:$0xe]  ;;  %v11400_v31 = vld [vmem:[%s16150_s3 + $0xe8] sm:$0xff]  }
 0x274   : > { %3089 = vst [vmem:[#allocation2 + $0xc0] sm:$0xf] %v3088_v45  ;;  %v3081_v54 = vsel %vm13506_vm3, %v2900_v7, %v3080_v32  ;;  %v2908_v8 = vor.u32 %v2906_v17, %v2905_v5  ;;  %v2910_v61 = vrot.slane %v2905_v5, 4  ;;  %5311 = vmatprep.mubr.bf16.mxu1 %v4738_v30  ;;  %v14118_v22 = vsel %vm875_vm0, %v3729_v37, %v3730_v44  ;;  %v3283_v32 = vld [vmem:[#allocation2 + $0xa8] sm:$0xe] }
 0x275   : > { %3082 = vst [vmem:[#allocation2 + $0xb4] sm:$0xf] %v3081_v54  ;;  %v2926_v27 = vsel %vm13513_vm4, %v2918_v36, %v2925_v55  ;;  %v3092_v14 = vsel %vm13520_vm5, %v2927_v26, %v3091_v40  ;;  %16371 = vst [vmem:[#allocation39_spill] sm:$0xff] %v14118_v22  ;;  %v9865_v51 = vcombine.low %v3282_v62, %v14092_v6  ;;  %5312 = vmatmul.mubr.bf16.gmra.mrb[40].mxu1 %v4683_v63  ;;  %v3830_v37 = vpop.permute.xlu0 %3829  ;;  %v11402_v21 = vld [vmem:[%s16150_s3 + $0xa8] sm:$0xff]   ;;  %v11403_v26 = vld [vmem:[%s16150_s3 + $0xf0] sm:$0xff]  }
 0x276   : > { %3090 = vst.msk [vmem:[#allocation2 + $0xc4] sm:$0xf] %vm2501_vm12, %v2926_v27  ;;  %3093 = vst [vmem:[#allocation2 + $0xc8] sm:$0x1] %v3092_v14  ;;  %v2909_v38 = vsel %vm13513_vm4, %v2901_v25, %v2908_v8  ;;  %v3085_v17 = vsel %vm13520_vm5, %v2910_v61, %v3084_v60  ;;  %v4649_v36 = vrot.slane %v14099_v47, 1  ;;  %v9866_v40 = vcombine.low %v3283_v32, %v14094_v2  ;;  %v3622_v61 = vpop.permute.xlu1 %3621 }
 0x277   : > { %3083 = vst.msk [vmem:[#allocation2 + $0xb8] sm:$0xf] %vm2501_vm12, %v2909_v38  ;;  %3086 = vst [vmem:[#allocation2 + $0xbc] sm:$0x1] %v3085_v17  ;;  %10379 = vmatpush3.bf16.msra.mxu0 %v11399_v1  ;;  %v4648_v24 = vrot.slane %v9865_v51, 1  ;;  %v4652_v60 = vrot.slane %v14103_v15, 1  ;;  %v4742_v25 = vsel %vm4663_vm6, %v13743_v57, %v3830_v37  ;;  %v16375_v62 = vcombine.low %v14038_v46, %v14057_v13 }
 0x278   : > { %v4028_v63 = vshrl.u32 %v13901_v10, 16  ;;  %v16372_v20 = vshll.u32 %v13901_v10, 16  ;;  %v11651_v5 = vld [vmem:[#allocation2 + $0x2c] ss:$0 sps:$4 sm:$0x11]   ;;  %v4370_v55 = vshll.u32 %v14066_v12, 16  ;;  %5319 = vmatprep.mubr.bf16.mxu1 %v4742_v25  ;;  %10380 = vmatprep.subr.bf16.mxu0 %v11400_v31 }
 0x279   : > { %v4363_v45 = vshll.u32 %v11651_v5, 16  ;;  %v4651_v52 = vrot.slane %v9866_v40, 1  ;;  %v14145_v1 = vld [vmem:[#allocation2 + $0x14] ss:$0 sps:$4 sm:$0x11]   ;;  %v14149_v10 = vsel %vm875_vm0, %v4648_v24, %v4649_v36  ;;  %v16374_v57 = vshll.u32 %v14051_v29, 16 }
 0x27a   : > { %v4032_v7 = vrot.slane %v16372_v20, 1  ;;  %16373 = vst [vmem:[#allocation40_spill] sm:$0xff] %v14149_v10  ;;  %v4356_v30 = vshrl.u32 %v14036_v3, 16  ;;  %v14157_v27 = vrot.slane %v16375_v62, 1  ;;  %v3229_v32 = vld [vmem:[#allocation2 + $0x3c] sm:$0xf] }
 0x27b   : > { %v4037_v8 = vrot.slane %v16374_v57, 1  ;;  %v14159_v14 = vld [vmem:[#allocation2 + $0x20] ss:$0 sps:$4 sm:$0x11]   ;;  %v14163_v38 = vsel %vm875_vm0, %v4651_v52, %v4652_v60  ;;  %v16377_v17 = vshll.u32 %v14036_v3, 16  ;;  %10381 = vmatpush3.bf16.msra.mxu0 %v11402_v21  ;;  %v11405_v46 = vld [vmem:[%s16150_s3 + $0xb0] sm:$0xff]   ;;  %v4686_v57 = vsel %vm4663_vm6, %v13727_v9, %v3622_v61 }
 0x27c   : > { %v4033_v54 = vor.u32 %v4032_v7, %v4028_v63  ;;  %16376 = vst [vmem:[#allocation41_spill] sm:$0xff] %v14163_v38  ;;  %v11654_v40 = vld [vmem:[#allocation2 + $0x38] ss:$0 sps:$4 sm:$0x11]   ;;  %v3208_v31 = vld [vmem:[#allocation2 + $0x24] sm:$0xe]  ;;  %10382 = vmatprep.subr.bf16.mxu0 %v11403_v26 }
 0x27d   : > { %v4360_v36 = vrot.slane %v16377_v17, 1  ;;  %v4375_v37 = vshll.u32 %v11654_v40, 16  ;;  %v11655_v24 = vld [vmem:[#allocation2 + $0x40] sm:$0xf]  ;;  %v4365_v20 = vrot.slane %v4363_v45, 1  ;;  %v4368_v60 = vshrl.u32 %v14066_v12, 16  ;;  %5320 = vmatmul.mubr.bf16.gmra.mrb[44].mxu1 %v4686_v57 }
 0x27e   : > { %v14167_v63 = vcombine.low %v3229_v32, %v11655_v24  ;;  %v14173_v13 = vsel %vm602_vm1, %v4033_v54, %v4037_v8  ;;  %v4372_v7 = vrot.slane %v4370_v55, 1  ;;  %v11656_v25 = vld [vmem:[#allocation2 + $0x28] sm:$0xf]  ;;  %v3209_v52 = vld [vmem:[#allocation2 + $0x30] sm:$0xe]  ;;  %v11406_v61 = vld [vmem:[%s16150_s3 + $0xf8] sm:$0xff]  }
 0x27f   : > { %16379 = vst [vmem:[#allocation9_spill] sm:$0xff] %v14173_v13  ;;  %v9808_v5 = vcombine.low %v3208_v31, %v11656_v25  ;;  %v3186_v62 = vld [vmem:[#allocation2 + $0xb4] sm:$0xf]  ;;  %v14178_v40 = vld [vmem:[#allocation2 + $0xb8] sm:$0xf]  ;;  %v4377_v26 = vrot.slane %v4375_v37, 1  ;;  %10383 = vmatpush3.bf16.msra.mxu0 %v11405_v46  ;;  %v4361_v34 = vor.u32 %v4360_v36, %v4356_v30 }
 0x280   : > { %16378 = vst [vmem:[#allocation8_spill] sm:$0xff] %v14167_v63  ;;  %v3124_v21 = vld [vmem:[#allocation2 + $0xb4] sm:$0xf]  ;;  %v14180_v54 = vld [vmem:[#allocation2 + $0xb8] sm:$0xf]  ;;  %v14183_v45 = vcombine.low %v3186_v62, %v14178_v40  ;;  %v4382_v9 = vshll.u32 %v14167_v63, 16  ;;  %10384 = vmatprep.subr.bf16.mxu0 %v11406_v61 }
 0x281   : > { %v11657_v32 = vld [vmem:[#allocation2 + $0x34] sm:$0xf]  ;;  %v14186_v55 = vcombine.low %v3124_v21, %v14180_v54  ;;  %v14188_v8 = vld [vmem:[#allocation2 + $0xbc] ss:$0 sps:$4 sm:$0x11]   ;;  %v16382_v24 = vshrl.u32 %v13996_v39, 16 }
 0x282   : > { %v9809_v17 = vcombine.low %v3209_v52, %v11657_v32  ;;  %v14194_v31 = vld [vmem:[#allocation2 + $0xc4] sm:$0xf]  ;;  %v4141_v52 = vrot.slane %v9808_v5, 1  ;;  %v11658_v57 = vld [vmem:[#allocation2 + $0x2c] ss:$0 sps:$4 sm:$0x11]   ;;  %3843 = vrot.lane.b32.xlu0 %v14183_v45, %s11724_s21 }
 0x283   : > { %16380 = vst [vmem:[#allocation10_spill] sm:$0xff] %v14186_v55  ;;  %16381 = vst [vmem:[#allocation11_spill] sm:$0xff] %v14194_v31  ;;  %v4349_v25 = vor.u32 %v14034_v16, %v16382_v24  ;;  %v4142_v62 = vrot.slane %v11658_v57, 1  ;;  %v3598_v37 = vshll.u32 %v14186_v55, 16  ;;  %v3603_v46 = vshll.u32 %v14188_v8, 16 }
 0x284   : > { %v14203_v21 = vrot.slane %v9809_v17, 1  ;;  %v14205_v32 = vld [vmem:[#allocation2 + $0x38] ss:$0 sps:$4 sm:$0x11]   ;;  %v3188_v44 = vld [vmem:[#allocation2 + $0xc0] sm:$0xf]  ;;  %v4373_v16 = vor.u32 %v4372_v7, %v4368_v60 }
 0x285   : > { %v4380_v5 = vshrl.u32 %v14167_v63, 16  ;;  %v11660_v24 = vld [vmem:[#allocation2 + $0x44] ss:$0 sps:$4 sm:$0x11]   ;;  %v14210_v13 = vcombine.low %v3188_v44, %v14194_v31  ;;  %v3596_v38 = vshrl.u32 %v14186_v55, 16  ;;  %v3600_v10 = vrot.slane %v3598_v37, 1 }
 0x286   : > { %v4387_v57 = vshll.u32 %v11660_v24, 16  ;;  %v4384_v17 = vrot.slane %v4382_v9, 1  ;;  %v3231_v12 = vld [vmem:[#allocation2 + $0x48] sm:$0xf]  ;;  %v11661_v3 = vld [vmem:[#allocation2 + $0x4c] sm:$0xf] }
 0x287   : > { %v14213_v39 = vcombine.low %v3231_v12, %v11661_v3  ;;  %v14215_v51 = vld [vmem:[#allocation2 + $0xa4] ss:$0 sps:$4 sm:$0x11]   ;;  %v14217_v61 = vld [vmem:[#allocation2 + $0xb8] sm:$0xf]  ;;  %v4042_v30 = vshll.u32 %v14002_v41, 16  ;;  %3845 = vrot.lane.b32.xlu0 %v14210_v13, %s11724_s21  ;;  %v3601_v36 = vor.u32 %v3600_v10, %v3596_v38  ;;  %v4354_v12 = vsel %vm602_vm1, %v4349_v25, %v14042_v19 }
 0x288   : > { %v3605_v44 = vrot.slane %v3603_v46, 1  ;;  %v16384_v60 = vrot.slane %v14145_v1, 1  ;;  %v3233_v9 = vld [vmem:[#allocation2 + $0x54] sm:$0xf]  ;;  %v4366_v3 = vsel %vm602_vm1, %v4361_v34, %v4365_v20  ;;  %v16385_v24 = vrot.slane %v14159_v14, 1 }
 0x289   : > { %16383 = vst [vmem:[#allocation43_spill] sm:$0xff] %v14213_v39  ;;  %v14226_v37 = vld [vmem:[#allocation2 + $0xbc] ss:$0 sps:$4 sm:$0x11]   ;;  %v4378_v10 = vsel %vm602_vm1, %v4373_v16, %v4377_v26  ;;  %v3157_v1 = vld [vmem:[#allocation2 + $0xb4] sm:$0xe]  ;;  %v14243_v19 = vsel %vm875_vm0, %v4141_v52, %v4142_v62  ;;  %v4385_v55 = vor.u32 %v4384_v17, %v4380_v5 }
 0x28a   : > { %v4137_v7 = vsel %vm875_vm0, %v14049_v49, %v16384_v60  ;;  %v4140_v63 = vsel %vm875_vm0, %v14157_v27, %v16385_v24  ;;  %v14236_v38 = vld [vmem:[#allocation2 + $0xc8] ss:$0 sps:$4 sm:$0x11]   ;;  %v11407_v49 = vld [vmem:[%s16150_s3 + $0xb8] sm:$0xff]   ;;  %v3606_v46 = vsel %vm602_vm1, %v3601_v36, %v3605_v44  ;;  %v14247_v14 = vld [vmem:[#allocation2 + $0xc4] sm:$0xf]  ;;  %v9773_v27 = vcombine.low %v3157_v1, %v14180_v54 }
 0x28b   : > { %v14245_v34 = vld [vmem:[#allocation2 + $0xb0] ss:$0 sps:$4 sm:$0x11]   ;;  %v3733_v20 = vrot.slane %v14188_v8, 1  ;;  %3637 = vrot.lane.b32.xlu1 %v3606_v46, %s11724_s21  ;;  %v4389_v26 = vrot.slane %v4387_v57, 1  ;;  %v4394_v25 = vshll.u32 %v14213_v39, 16  ;;  %10385 = vmatpush3.bf16.msra.mxu0 %v11407_v49 }
 0x28c   : > { %v11662_v16 = vld [vmem:[#allocation2 + $0x58] sm:$0xf]  ;;  %v3284_v36 = vld [vmem:[#allocation2 + $0xb4] sm:$0xe]  ;;  %v4047_v52 = vshll.u32 %v14215_v51, 16  ;;  %4535 = vrot.lane.b32.xlu0 %v4354_v12, %s11724_s21  ;;  %v3732_v62 = vrot.slane %v9773_v27, 1 }
 0x28d   : > { %v14253_v60 = vcombine.low %v3233_v9, %v11662_v16  ;;  %v9867_v44 = vcombine.low %v3284_v36, %v14217_v61  ;;  %v4655_v54 = vrot.slane %v14226_v37, 1  ;;  %v3285_v8 = vld [vmem:[#allocation2 + $0xc0] sm:$0xe]  ;;  %v4054_v24 = vshll.u32 %v14020_v53, 16 }
 0x28e   : > { %v9868_v57 = vcombine.low %v3285_v8, %v14247_v14  ;;  %v4658_v1 = vrot.slane %v14236_v38, 1  ;;  %v4040_v9 = vshrl.u32 %v14002_v41, 16  ;;  %v4044_v49 = vrot.slane %v4042_v30, 1  ;;  %v14264_v16 = vld [vmem:[#allocation2 + $0xbc] ss:$0 sps:$4 sm:$0x11]  }
 0x28f   : > { %v4392_v46 = vshrl.u32 %v14213_v39, 16  ;;  %v14267_v12 = vsel %vm875_vm0, %v3732_v62, %v3733_v20  ;;  %v4654_v27 = vrot.slane %v9867_v44, 1  ;;  %v4059_v36 = vshll.u32 %v14245_v34, 16  ;;  %4183 = vrot.lane.b32.xlu1 %v4137_v7, %s11724_s21  ;;  %v14271_v22 = vld [vmem:[#allocation2 + $0xc8] ss:$0 sps:$4 sm:$0x11]  }
 0x290   : > { %v4657_v8 = vrot.slane %v9868_v57, 1  ;;  %v4045_v43 = vor.u32 %v4044_v49, %v4040_v9  ;;  %v4049_v31 = vrot.slane %v4047_v52, 1  ;;  %4537 = vrot.lane.b32.xlu0 %v4366_v3, %s11724_s21  ;;  %v4396_v41 = vrot.slane %v4394_v25, 1  ;;  %v3235_v39 = vld [vmem:[#allocation2 + $0x60] sm:$0xf] }
 0x291   : > { %v14275_v30 = vsel %vm875_vm0, %v4654_v27, %v4655_v54  ;;  %v4052_v20 = vshrl.u32 %v14020_v53, 16  ;;  %v4056_v62 = vrot.slane %v4054_v24, 1  ;;  %v4406_v44 = vshll.u32 %v14253_v60, 16  ;;  %v11663_v52 = vld [vmem:[#allocation2 + $0x64] sm:$0xf] }
 0x292   : > { %16386 = vst [vmem:[#allocation44_spill] sm:$0xff] %v14275_v30  ;;  %v14280_v7 = vsel %vm875_vm0, %v4657_v8, %v4658_v1  ;;  %v14283_v5 = vsel %vm602_vm1, %v4045_v43, %v4049_v31  ;;  %v4066_v17 = vshll.u32 %v14183_v45, 16  ;;  %v14286_v3 = vcombine.low %v3235_v39, %v11663_v52  ;;  %v3210_v53 = vld [vmem:[#allocation2 + $0x3c] sm:$0xe]  ;;  %v11665_v27 = vld [vmem:[#allocation2 + $0x40] sm:$0xf] }
 0x293   : > { %16387 = vst [vmem:[#allocation45_spill] sm:$0xff] %v14280_v7  ;;  %16388 = vst [vmem:[#allocation46_spill] sm:$0xff] %v14283_v5  ;;  %v4057_v25 = vor.u32 %v4056_v62, %v4052_v20  ;;  %v4061_v54 = vrot.slane %v4059_v36, 1  ;;  %v4071_v57 = vshll.u32 %v14264_v16, 16  ;;  %4185 = vrot.lane.b32.xlu1 %v4140_v63, %s11724_s21  ;;  %v4064_v24 = vshrl.u32 %v14183_v45, 16  ;;  %v3624_v63 = vpop.permute.xlu1 %3623  ;;  %v3832_v5 = vpop.permute.xlu0 %3831 }
 0x294   : > { %v4068_v9 = vrot.slane %v4066_v17, 1  ;;  %v4078_v1 = vshll.u32 %v14210_v13, 16  ;;  %v4083_v43 = vshll.u32 %v14271_v22, 16  ;;  %4539 = vrot.lane.b32.xlu0 %v4378_v10, %s11724_s21  ;;  %v4390_v31 = vsel %vm602_vm1, %v4385_v55, %v4389_v26  ;;  %v11664_v39 = vld [vmem:[#allocation2 + $0x50] ss:$0 sps:$4 sm:$0x11]  }
 0x295   : > { %v4399_v49 = vshll.u32 %v11664_v39, 16  ;;  %v9810_v36 = vcombine.low %v3210_v53, %v11665_v27  ;;  %v14296_v8 = vsel %vm602_vm1, %v4057_v25, %v4061_v54  ;;  %v3237_v20 = vld [vmem:[#allocation2 + $0x6c] sm:$0xf]  ;;  %v4073_v45 = vrot.slane %v4071_v57, 1  ;;  %v11666_v55 = vld [vmem:[#allocation2 + $0x70] sm:$0xf] }
 0x296   : > { %v4069_v62 = vor.u32 %v4068_v9, %v4064_v24  ;;  %v4076_v17 = vshrl.u32 %v14210_v13, 16  ;;  %v4080_v52 = vrot.slane %v4078_v1, 1  ;;  %v4397_v7 = vor.u32 %v4396_v41, %v4392_v46  ;;  %v3211_v9 = vld [vmem:[#allocation2 + $0x48] sm:$0xe] }
 0x297   : > { %v4408_v30 = vrot.slane %v4406_v44, 1  ;;  %v4418_v10 = vshll.u32 %v14286_v3, 16  ;;  %v14300_v26 = vcombine.low %v3237_v20, %v11666_v55  ;;  %4187 = vrot.lane.b32.xlu1 %v14243_v19, %s11724_s21  ;;  %v4746_v25 = vsel %vm4663_vm6, %v13746_v4, %v3832_v5  ;;  %v11667_v5 = vld [vmem:[#allocation2 + $0x5c] ss:$0 sps:$4 sm:$0x11]  }
 0x298   : > { %v14307_v54 = vsel %vm602_vm1, %v4069_v62, %v4073_v45  ;;  %v4081_v57 = vor.u32 %v4080_v52, %v4076_v17  ;;  %v4085_v13 = vrot.slane %v4083_v43, 1  ;;  %4541 = vrot.lane.b32.xlu0 %v4390_v31, %s11724_s21  ;;  %5327 = vmatprep.mubr.bf16.mxu1 %v4746_v25  ;;  %v4689_v46 = vsel %vm4663_vm6, %v13723_v28, %v3624_v63  ;;  %v3834_v43 = vpop.permute.xlu0 %3833  ;;  %v11668_v28 = vld [vmem:[#allocation2 + $0x44] ss:$0 sps:$4 sm:$0x11]   ;;  %v11670_v62 = vld [vmem:[#allocation2 + $0x7c] sm:$0xf] }
 0x299   : > { %v16389_v41 = vrot.slane %v14205_v32, 1  ;;  %v4401_v19 = vrot.slane %v4399_v49, 1  ;;  %5328 = vmatmul.mubr.bf16.gmra.mrb[48].mxu1 %v4689_v46  ;;  %v4147_v53 = vrot.slane %v9810_v36, 1  ;;  %v4404_v4 = vshrl.u32 %v14253_v60, 16  ;;  %v11669_v32 = vld [vmem:[#allocation2 + $0x4c] sm:$0xf] }
 0x29a   : > { %v4411_v24 = vshll.u32 %v11667_v5, 16  ;;  %v14318_v1 = vsel %vm602_vm1, %v4081_v57, %v4085_v13  ;;  %v4148_v39 = vrot.slane %v11668_v28, 1  ;;  %v9811_v27 = vcombine.low %v3211_v9, %v11669_v32  ;;  %v3239_v49 = vld [vmem:[#allocation2 + $0x78] sm:$0xf] }
 0x29b   : > { %v4146_v44 = vsel %vm875_vm0, %v14203_v21, %v16389_v41  ;;  %v4402_v31 = vsel %vm602_vm1, %v4397_v7, %v4401_v19  ;;  %v4430_v21 = vshll.u32 %v14300_v26, 16  ;;  %v4750_v36 = vsel %vm4663_vm6, %v13822_v50, %v3834_v43  ;;  %v3212_v7 = vld [vmem:[#allocation2 + $0x54] sm:$0xe]  ;;  %v3626_v17 = vpop.permute.xlu1 %3625  ;;  %v11671_v25 = vld [vmem:[#allocation2 + $0x68] ss:$0 sps:$4 sm:$0x11]  }
 0x29c   : > { %4189 = vrot.lane.b32.xlu1 %v4146_v44, %s11724_s21  ;;  %v4409_v63 = vor.u32 %v4408_v30, %v4404_v4  ;;  %v4420_v20 = vrot.slane %v4418_v10, 1  ;;  %v14325_v45 = vcombine.low %v3239_v49, %v11670_v62  ;;  %4543 = vrot.lane.b32.xlu0 %v4402_v31, %s11724_s21  ;;  %v4413_v52 = vrot.slane %v4411_v24, 1  ;;  %v11672_v13 = vld [vmem:[#allocation2 + $0x58] sm:$0xf]  ;;  %v3241_v19 = vld [vmem:[#allocation2 + $0x84] sm:$0xf] }
 0x29d   : > { %5335 = vmatprep.mubr.bf16.mxu1 %v4750_v36  ;;  %v4416_v55 = vshrl.u32 %v14286_v3, 16  ;;  %v4423_v57 = vshll.u32 %v11671_v25, 16  ;;  %v9812_v46 = vcombine.low %v3212_v7, %v11672_v13  ;;  %v4149_v41 = vsel %vm875_vm0, %v4147_v53, %v4148_v39  ;;  %v11673_v30 = vld [vmem:[#allocation2 + $0x50] ss:$0 sps:$4 sm:$0x11]  }
 0x29e   : > { %v4150_v50 = vrot.slane %v9811_v27, 1  ;;  %v4151_v10 = vrot.slane %v11673_v30, 1  ;;  %v4432_v44 = vrot.slane %v4430_v21, 1  ;;  %v4414_v4 = vsel %vm602_vm1, %v4409_v63, %v4413_v52  ;;  %v11674_v31 = vld [vmem:[#allocation2 + $0x74] ss:$0 sps:$4 sm:$0x11]  }
 0x29f   : > { %v4421_v5 = vor.u32 %v4420_v20, %v4416_v55  ;;  %v4442_v24 = vshll.u32 %v14325_v45, 16  ;;  %v14334_v9 = vcombine.low %v3241_v19, %v13931_v18  ;;  %v4692_v53 = vsel %vm4663_vm6, %v13810_v0, %v3626_v17  ;;  %v11675_v27 = vld [vmem:[#allocation2 + $0x5c] ss:$0 sps:$4 sm:$0x11]   ;;  %v3213_v49 = vld [vmem:[#allocation2 + $0x60] sm:$0xe] }
 0x2a0   : > { %4191 = vrot.lane.b32.xlu1 %v4149_v41, %s11724_s21  ;;  %4545 = vrot.lane.b32.xlu0 %v4414_v4, %s11724_s21  ;;  %v4428_v43 = vshrl.u32 %v14300_v26, 16  ;;  %v4435_v28 = vshll.u32 %v11674_v31, 16  ;;  %v4425_v39 = vrot.slane %v4423_v57, 1  ;;  %v4153_v32 = vrot.slane %v9812_v46, 1  ;;  %v11676_v18 = vld [vmem:[#allocation2 + $0x64] sm:$0xf] }
 0x2a1   : > { %5336 = vmatmul.mubr.bf16.gmra.mrb[52].mxu1 %v4692_v53  ;;  %v4154_v21 = vrot.slane %v11675_v27, 1  ;;  %v4152_v36 = vsel %vm875_vm0, %v4150_v50, %v4151_v10  ;;  %v9813_v20 = vcombine.low %v3213_v49, %v11676_v18  ;;  %v3243_v62 = vld [vmem:[#allocation2 + $0x90] sm:$0xf]  ;;  %v4444_v7 = vrot.slane %v4442_v24, 1  ;;  %v3214_v41 = vld [vmem:[#allocation2 + $0x6c] sm:$0xe] }
 0x2a2   : > { %v4433_v63 = vor.u32 %v4432_v44, %v4428_v43  ;;  %v4426_v0 = vsel %vm602_vm1, %v4421_v5, %v4425_v39  ;;  %v4454_v17 = vshll.u32 %v14334_v9, 16  ;;  %v14345_v52 = vcombine.low %v3243_v62, %v13933_v59  ;;  %v11677_v13 = vld [vmem:[#allocation2 + $0x80] ss:$0 sps:$4 sm:$0x11]   ;;  %v11679_v19 = vld [vmem:[#allocation2 + $0x70] sm:$0xf] }
 0x2a3   : > { %v4437_v55 = vrot.slane %v4435_v28, 1  ;;  %v4155_v25 = vsel %vm875_vm0, %v4153_v32, %v4154_v21  ;;  %v4440_v57 = vshrl.u32 %v14325_v45, 16  ;;  %v4447_v46 = vshll.u32 %v11677_v13, 16  ;;  %v11678_v10 = vld [vmem:[#allocation2 + $0x68] ss:$0 sps:$4 sm:$0x11]  }
 0x2a4   : > { %4193 = vrot.lane.b32.xlu1 %v4152_v36, %s11724_s21  ;;  %4547 = vrot.lane.b32.xlu0 %v4426_v0, %s11724_s21  ;;  %v4156_v30 = vrot.slane %v9813_v20, 1  ;;  %v4157_v44 = vrot.slane %v11678_v10, 1  ;;  %v9814_v4 = vcombine.low %v3214_v41, %v11679_v19  ;;  %v3245_v5 = vld [vmem:[#allocation2 + $0x9c] sm:$0xf]  ;;  %v4456_v24 = vrot.slane %v4454_v17, 1 }
 0x2a5   : > { %v4438_v50 = vsel %vm602_vm1, %v4433_v63, %v4437_v55  ;;  %v4445_v59 = vor.u32 %v4444_v7, %v4440_v57  ;;  %v4466_v53 = vshll.u32 %v14345_v52, 16  ;;  %v14354_v43 = vcombine.low %v3245_v5, %v14092_v6  ;;  %v3247_v31 = vld [vmem:[#allocation2 + $0xa8] sm:$0xf]  ;;  %v3215_v27 = vld [vmem:[#allocation2 + $0x78] sm:$0xe] }
 0x2a6   : > { %v4449_v28 = vrot.slane %v4447_v46, 1  ;;  %v4452_v39 = vshrl.u32 %v14334_v9, 16  ;;  %v4459_v32 = vshll.u32 %v13938_v35, 16  ;;  %v14360_v21 = vcombine.low %v3247_v31, %v14094_v2  ;;  %v11680_v63 = vld [vmem:[#allocation2 + $0x74] ss:$0 sps:$4 sm:$0x11]  }
 0x2a7   : > { %v4158_v49 = vsel %vm875_vm0, %v4156_v30, %v4157_v44  ;;  %v4159_v36 = vrot.slane %v9814_v4, 1  ;;  %v4160_v18 = vrot.slane %v11680_v63, 1  ;;  %v11681_v20 = vld [vmem:[#allocation2 + $0x7c] sm:$0xf]  ;;  %v4468_v7 = vrot.slane %v4466_v53, 1 }
 0x2a8   : > { %4195 = vrot.lane.b32.xlu1 %v4155_v25, %s11724_s21  ;;  %4549 = vrot.lane.b32.xlu0 %v4438_v50, %s11724_s21  ;;  %v9815_v6 = vcombine.low %v3215_v27, %v11681_v20  ;;  %v4450_v62 = vsel %vm602_vm1, %v4445_v59, %v4449_v28  ;;  %v4457_v0 = vor.u32 %v4456_v24, %v4452_v39  ;;  %v3216_v17 = vld [vmem:[#allocation2 + $0x84] sm:$0xe]  ;;  %v4478_v35 = vshll.u32 %v14354_v43, 16  ;;  %v11682_v55 = vld [vmem:[#allocation2 + $0x88] sm:$0xf] }
 0x2a9   : > { %v4471_v2 = vshll.u32 %v13942_v23, 16  ;;  %v9816_v25 = vcombine.low %v3216_v17, %v11682_v55  ;;  %v4461_v57 = vrot.slane %v4459_v32, 1  ;;  %v4464_v13 = vshrl.u32 %v14345_v52, 16  ;;  %v11683_v30 = vld [vmem:[#allocation2 + $0x80] ss:$0 sps:$4 sm:$0x11]  }
 0x2aa   : > { %v4490_v46 = vshll.u32 %v14360_v21, 16  ;;  %v4161_v41 = vsel %vm875_vm0, %v4159_v36, %v4160_v18  ;;  %v4162_v50 = vrot.slane %v9815_v6, 1  ;;  %v4163_v10 = vrot.slane %v11683_v30, 1  ;;  %v3249_v44 = vld [vmem:[#allocation2 + $0xb4] sm:$0xf] }
 0x2ab   : > { %v4462_v19 = vsel %vm602_vm1, %v4457_v0, %v4461_v57  ;;  %v4469_v4 = vor.u32 %v4468_v7, %v4464_v13  ;;  %v4480_v5 = vrot.slane %v4478_v35, 1  ;;  %v14374_v23 = vcombine.low %v3249_v44, %v14217_v61  ;;  %v3217_v39 = vld [vmem:[#allocation2 + $0x90] sm:$0xe]  ;;  %v3251_v63 = vld [vmem:[#allocation2 + $0xc0] sm:$0xf]  ;;  %v3628_v7 = vpop.permute.xlu1 %3627 }
 0x2ac   : > { %4197 = vrot.lane.b32.xlu1 %v4158_v49, %s11724_s21  ;;  %4551 = vrot.lane.b32.xlu0 %v4450_v62, %s11724_s21  ;;  %v4473_v59 = vrot.slane %v4471_v2, 1  ;;  %v4165_v24 = vrot.slane %v9816_v25, 1  ;;  %v4166_v53 = vrot.slane %v13949_v58, 1  ;;  %v4476_v31 = vshrl.u32 %v14354_v43, 16  ;;  %v11684_v49 = vld [vmem:[#allocation2 + $0x94] sm:$0xf] }
 0x2ad   : > { %v4483_v28 = vshll.u32 %v14099_v47, 16  ;;  %v4492_v32 = vrot.slane %v4490_v46, 1  ;;  %v4164_v27 = vsel %vm875_vm0, %v4162_v50, %v4163_v10  ;;  %v9817_v36 = vcombine.low %v3217_v39, %v11684_v49  ;;  %v3253_v18 = vld [vmem:[#allocation2 + $0xcc] sm:$0xf]  ;;  %v14381_v61 = vld [vmem:[#allocation2 + $0xd0] sm:$0xf] }
 0x2ae   : > { %v4474_v20 = vsel %vm602_vm1, %v4469_v4, %v4473_v59  ;;  %v4481_v6 = vor.u32 %v4480_v5, %v4476_v31  ;;  %v4502_v58 = vshll.u32 %v14374_v23, 16  ;;  %v14387_v62 = vcombine.low %v3251_v63, %v14247_v14  ;;  %v3218_v2 = vld [vmem:[#allocation2 + $0x9c] sm:$0xe]  ;;  %v3219_v44 = vld [vmem:[#allocation2 + $0xa8] sm:$0xe] }
 0x2af   : > { %v4488_v47 = vshrl.u32 %v14360_v21, 16  ;;  %v4495_v0 = vshll.u32 %v14103_v15, 16  ;;  %v4167_v17 = vsel %vm875_vm0, %v4165_v24, %v4166_v53  ;;  %v4485_v35 = vrot.slane %v4483_v28, 1  ;;  %v14408_v4 = vld [vmem:[#allocation2 + $0xd4] ss:$0 sps:$4 sm:$0x11]  }
 0x2b0   : > { %4199 = vrot.lane.b32.xlu1 %v4161_v41, %s11724_s21  ;;  %4553 = vrot.lane.b32.xlu0 %v4462_v19, %s11724_s21  ;;  %v14394_v55 = vcombine.low %v3253_v18, %v14381_v61  ;;  %v4168_v57 = vrot.slane %v9817_v36, 1  ;;  %v4169_v13 = vrot.slane %v14051_v29, 1  ;;  %v9818_v46 = vcombine.low %v3218_v2, %v13989_v33  ;;  %v3220_v36 = vld [vmem:[#allocation2 + $0xb4] sm:$0xe] }
 0x2b1   : > { %v4493_v14 = vor.u32 %v4492_v32, %v4488_v47  ;;  %v4486_v41 = vsel %vm602_vm1, %v4481_v6, %v4485_v35  ;;  %v4504_v50 = vrot.slane %v4502_v58, 1  ;;  %v4514_v30 = vshll.u32 %v14387_v62, 16  ;;  %v3221_v35 = vld [vmem:[#allocation2 + $0xc0] sm:$0xe] }
 0x2b2   : > { %v4695_v10 = vsel %vm4663_vm6, %v13806_v42, %v3628_v7  ;;  %v4497_v29 = vrot.slane %v4495_v0, 1  ;;  %v4500_v33 = vshrl.u32 %v14374_v23, 16  ;;  %v4507_v19 = vshll.u32 %v14226_v37, 16  ;;  %v16390_v0 = vld [vmem:[#allocation32_spill] sm:$0xff] }
 0x2b3   : > { %v3836_v25 = vpop.permute.xlu0 %3835  ;;  %v4170_v59 = vsel %vm875_vm0, %v4168_v57, %v4169_v13  ;;  %v4171_v24 = vrot.slane %v9818_v46, 1  ;;  %v4172_v53 = vrot.slane %v14215_v51, 1  ;;  %v9819_v31 = vcombine.low %v3219_v44, %v14009_v56  ;;  %v16391_v13 = vld [vmem:[#allocation11_spill] sm:$0xff] }
 0x2b4   : > { %4201 = vrot.lane.b32.xlu1 %v4164_v27, %s11724_s21  ;;  %4555 = vrot.lane.b32.xlu0 %v4474_v20, %s11724_s21  ;;  %v4754_v15 = vsel %vm4663_vm6, %v13857_v48, %v3836_v25  ;;  %v4526_v48 = vshll.u32 %v14394_v55, 16  ;;  %v4498_v42 = vsel %vm602_vm1, %v4493_v14, %v4497_v29  ;;  %v4505_v37 = vor.u32 %v4504_v50, %v4500_v33  ;;  %v16392_v44 = vld [vmem:[#allocation35_spill] sm:$0xff] }
 0x2b5   : > { %5343 = vmatprep.mubr.bf16.mxu1 %v4754_v15  ;;  %v4516_v39 = vrot.slane %v4514_v30, 1  ;;  %v4512_v32 = vshrl.u32 %v14387_v62, 16  ;;  %v4519_v27 = vshll.u32 %v14236_v38, 16  ;;  %v4509_v51 = vrot.slane %v4507_v19, 1  ;;  %v16393_v19 = vld [vmem:[#allocation31_spill] sm:$0xff] }
 0x2b6   : > { %5344 = vmatmul.mubr.bf16.gmra.mrb[56].mxu1 %v4695_v10  ;;  %v4524_v56 = vshrl.u32 %v14394_v55, 16  ;;  %v4528_v63 = vrot.slane %v4526_v48, 1  ;;  %v4531_v18 = vshll.u32 %v14408_v4, 16  ;;  %v4173_v20 = vsel %vm875_vm0, %v4171_v24, %v4172_v53  ;;  %v16395_v53 = vld [vmem:[#allocation19_spill] sm:$0xff] }
 0x2b7   : > { %v3838_v5 = vpop.permute.xlu0 %3837  ;;  %v4175_v6 = vrot.slane %v14245_v34, 1  ;;  %v9820_v58 = vcombine.low %v3220_v36, %v14178_v40  ;;  %v4510_v47 = vsel %vm602_vm1, %v4505_v37, %v4509_v51  ;;  %v4517_v38 = vor.u32 %v4516_v39, %v4512_v32 }
 0x2b8   : > { %4203 = vrot.lane.b32.xlu1 %v4167_v17, %s11724_s21  ;;  %4557 = vrot.lane.b32.xlu0 %v4486_v41, %s11724_s21  ;;  %v4758_v28 = vsel %vm4663_vm6, %v13936_v11, %v3838_v5  ;;  %v4174_v11 = vrot.slane %v9819_v31, 1  ;;  %v4521_v17 = vrot.slane %v4519_v27, 1  ;;  %v4529_v2 = vor.u32 %v4528_v63, %v4524_v56 }
 0x2b9   : > { %5351 = vmatprep.mubr.bf16.mxu1 %v4758_v28  ;;  %v4533_v25 = vrot.slane %v4531_v18, 1  ;;  %v4177_v34 = vrot.slane %v9820_v58, 1  ;;  %v4178_v40 = vrot.slane %v14264_v16, 1  ;;  %v9821_v14 = vcombine.low %v3221_v35, %v16391_v13  ;;  %v11427_v13 = vld [vmem:[%s16152_s5] sm:$0xff]  }
 0x2ba   : > { %v4176_v57 = vsel %vm875_vm0, %v4174_v11, %v4175_v6  ;;  %v4522_v46 = vsel %vm602_vm1, %v4517_v38, %v4521_v17  ;;  %v4181_v30 = vrot.slane %v14271_v22, 1  ;;  %v16394_v22 = vld [vmem:[#allocation42_spill] sm:$0xff]  ;;  %v16396_v11 = vld [vmem:[#allocation39_spill] sm:$0xff] }
 0x2bb   : > { %v3630_v49 = vpop.permute.xlu1 %3629  ;;  %v4534_v41 = vsel %vm602_vm1, %v4529_v2, %v4533_v25  ;;  %v4179_v15 = vsel %vm875_vm0, %v4177_v34, %v4178_v40  ;;  %v4180_v50 = vrot.slane %v9821_v14, 1  ;;  %v16398_v25 = vld [vmem:[#allocation17_spill] sm:$0xff]  ;;  %v16399_v34 = vld [vmem:[#allocation10_spill] sm:$0xff] }
 0x2bc   : > { %4205 = vrot.lane.b32.xlu1 %v4170_v59, %s11724_s21  ;;  %4559 = vrot.lane.b32.xlu0 %v4498_v42, %s11724_s21  ;;  %v4698_v7 = vsel %vm4663_vm6, %v16390_v0, %v3630_v49  ;;  %v11426_v0 = vld [vmem:[%s16152_s5 + $0x40] sm:$0xff]  }
 0x2bd   : > { %v4182_v16 = vsel %vm875_vm0, %v4180_v50, %v4181_v30  ;;  %10502 = vmatprep.subr.bf16.mxu0 %v11426_v0  ;;  %v16402_v30 = vld [vmem:[#allocation38_spill] sm:$0xff] }
 0x2be   : > { %5352 = vmatmul.mubr.bf16.gmra.mrb[60].mxu1 %v4698_v7 }
 0x2bf   : > { %v3632_v10 = vpop.permute.xlu1 %3631 }
 0x2c0   : > { %4207 = vrot.lane.b32.xlu1 %v4173_v20, %s11724_s21  ;;  %4561 = vrot.lane.b32.xlu0 %v4510_v47, %s11724_s21  ;;  %v4701_v48 = vsel %vm4663_vm6, %v16393_v19, %v3632_v10  ;;  %v16397_v47 = vld [vmem:[#allocation7_spill] sm:$0xff]  ;;  %v16404_v19 = vld [vmem:[#allocation18_spill] sm:$0xff] }
 0x2c1   : > { %v11429_v10 = vld [vmem:[%s16152_s5 + $0x8] sm:$0xff]  }
 0x2c4   : > { %4209 = vrot.lane.b32.xlu1 %v4176_v57, %s11724_s21  ;;  %4563 = vrot.lane.b32.xlu0 %v4522_v46, %s11724_s21  ;;  %v16400_v46 = vld [vmem:[#allocation16_spill] sm:$0xff] }
 0x2c8   : > { %4211 = vrot.lane.b32.xlu1 %v4179_v15, %s11724_s21  ;;  %4565 = vrot.lane.b32.xlu0 %v4534_v41, %s11724_s21  ;;  %v16401_v15 = vld [vmem:[#allocation14_spill] sm:$0xff] }
 0x2cc   : > { %4213 = vrot.lane.b32.xlu1 %v4182_v16, %s11724_s21 }
 0x2d3   : > { %v3840_v29 = vpop.permute.xlu0 %3839 }
 0x2d4   : > { %v4762_v33 = vsel %vm4663_vm6, %v16392_v44, %v3840_v29 }
 0x2d5   : > { %5359 = vmatprep.mubr.bf16.mxu1 %v4762_v33  ;;  %v16403_v33 = vld [vmem:[#allocation13_spill] sm:$0xff] }
 0x2d6   : > { %5360 = vmatmul.mubr.bf16.gmra.mrb[64].mxu1 %v4701_v48  ;;  %v16405_v48 = vld [vmem:[#allocation20_spill] sm:$0xff] }
 0x2d7   : > { %v3842_v5 = vpop.permute.xlu0 %3841 }
 0x2d8   : > { %v4766_v59 = vsel %vm4663_vm6, %v16394_v22, %v3842_v5  ;;  %v16406_v22 = vld [vmem:[#allocation37_spill] sm:$0xff] }
 0x2d9   : > { %5367 = vmatprep.mubr.bf16.mxu1 %v4766_v59 }
 0x2db   : > { %v3634_v24 = vpop.permute.xlu1 %3633 }
 0x2dc   : > { %v4704_v31 = vsel %vm4663_vm6, %v16395_v53, %v3634_v24 }
 0x2de   : > { %5368 = vmatmul.mubr.bf16.gmra.mrb[68].mxu1 %v4704_v31 }
 0x2df   : > { %v3636_v51 = vpop.permute.xlu1 %3635 }
 0x2e0   : > { %v4707_v38 = vsel %vm4663_vm6, %v16397_v47, %v3636_v51  ;;  %v16407_v51 = vld [vmem:[#allocation24_spill] sm:$0xff] }
 0x2e6   : > { %v10274_v42 = vpop.f32.mrb[16].mxu1 }
 0x2e7   : > { %v10275_v28 = vpop.f32.mrb[17].mxu1 }
 0x2e8   : > { %v14452_v37 = vadd.f32 %v10275_v28, %v10274_v42  ;;  %v10277_v39 = vpop.f32.mrb[18].mxu1 }
 0x2e9   : > { %v10278_v32 = vpop.f32.mrb[19].mxu1 }
 0x2ea   : > { %v14454_v27 = vadd.f32 %v10278_v32, %v10277_v39 }
 0x2ee   : > { %v10280_v49 = vpop.f32.mrb[20].mxu1 }
 0x2ef   : > { %v10281_v36 = vpop.f32.mrb[21].mxu1 }
 0x2f0   : > { %v14456_v56 = vadd.f32 %v10281_v36, %v10280_v49  ;;  %v10283_v63 = vpop.f32.mrb[22].mxu1  ;;  %v16408_v36 = vld [vmem:[#allocation22_spill] sm:$0xff] }
 0x2f1   : > { %v10284_v20 = vpop.f32.mrb[23].mxu1 }
 0x2f2   : > { %v14460_v58 = vadd.f32 %v10284_v20, %v10283_v63  ;;  %v16409_v63 = vld [vmem:[#allocation21_spill] sm:$0xff]  ;;  %v16410_v20 = vld [vmem:[#allocation8_spill] sm:$0xff] }
 0x2f4   : > { %v3844_v18 = vpop.permute.xlu0 %3843 }
 0x2f5   : > { %v4770_v6 = vsel %vm4663_vm6, %v16396_v11, %v3844_v18 }
 0x2f6   : > { %5375 = vmatprep.mubr.bf16.mxu1 %v4770_v6 }
 0x2f7   : > { %5376 = vmatmul.mubr.bf16.gmra.mrb[72].mxu1 %v4707_v38 }
 0x2f9   : > { %v3846_v7 = vpop.permute.xlu0 %3845 }
 0x2fa   : > { %v4774_v17 = vsel %vm4663_vm6, %v14267_v12, %v3846_v7  ;;  %v11428_v12 = vld [vmem:[%s16152_s5 + $0x48] sm:$0xff]  }
 0x2fb   : > { %5383 = vmatprep.mubr.bf16.mxu1 %v4774_v17 }
 0x2fd   : > { %v3638_v35 = vpop.permute.xlu1 %3637 }
 0x2fe   : > { %v4536_v2 = vpop.permute.xlu0 %4535  ;;  %v4710_v40 = vsel %vm4663_vm6, %v16399_v34, %v3638_v35  ;;  %v16412_v34 = vld [vmem:[#allocation25_spill] sm:$0xff] }
 0x2ff   : > { %v4841_v57 = vsel %vm4663_vm6, %v16398_v25, %v4536_v2  ;;  %5384 = vmatmul.mubr.bf16.gmra.mrb[76].mxu1 %v4710_v40  ;;  %v11430_v25 = vld [vmem:[%s16152_s5 + $0x50] sm:$0xff]   ;;  %v16413_v40 = vld [vmem:[#allocation15_spill] sm:$0xff] }
 0x300   : > { %5424 = vmatprep.mubr.bf16.mxu0 %v4841_v57  ;;  %11020 = vmatprep.mubr.msk.bf16.mxu1 %vm4663_vm6, %v16401_v15  ;;  %v16411_v57 = vld [vmem:[#allocation23_spill] sm:$0xff]  ;;  %v11433_v15 = vld [vmem:[%s16152_s5 + $0x18] sm:$0xff]  }
 0x301   : > { %v4184_v14 = vpop.permute.xlu1 %4183 }
 0x302   : > { %v4778_v41 = vsel %vm4663_vm6, %v16400_v46, %v4184_v14  ;;  %v4538_v50 = vpop.permute.xlu0 %4537  ;;  %v11431_v14 = vld [vmem:[%s16152_s5 + $0x10] sm:$0xff]   ;;  %v16414_v46 = vld [vmem:[#allocation43_spill] sm:$0xff] }
 0x303   : > { %5425 = vmatmul.mubr.bf16.vlgmr.msra.gmra.mrb[16].mxu0 %v4778_v41  ;;  %v4844_v16 = vsel %vm4663_vm6, %v16402_v30, %v4538_v50 }
 0x304   : > { %5432 = vmatprep.mubr.bf16.mxu0 %v4844_v16  ;;  %10503 = vmatpush3.bf16.msra.mxu0 %v11427_v13  ;;  %v16415_v16 = vld [vmem:[#allocation26_spill] sm:$0xff] }
 0x305   : > { %10504 = vmatprep.subr.bf16.mxu0 %v11428_v12  ;;  %v4186_v29 = vpop.permute.xlu1 %4185  ;;  %v11432_v12 = vld [vmem:[%s16152_s5 + $0x58] sm:$0xff]  }
 0x306   : > { %v4540_v44 = vpop.permute.xlu0 %4539  ;;  %v4782_v5 = vsel %vm4663_vm6, %v16405_v48, %v4186_v29  ;;  %v16417_v29 = vld [vmem:[#allocation4_spill] sm:$0xff] }
 0x307   : > { %11021 = vmatmul.mubr.msk.bf16.vlgmr.msra.gmra.mrb[80].mxu1 %vm4663_vm6, %v16403_v33  ;;  %v4847_v59 = vsel %vm4663_vm6, %v16406_v22, %v4540_v44  ;;  %v10286_v24 = vpop.f32.mrb[24].mxu1  ;;  %v16419_v22 = vld [vmem:[#allocation6_spill] sm:$0xff] }
 0x308   : > { %10505 = vmatpush3.bf16.msra.mxu0 %v11429_v10  ;;  %11024 = vmatprep.mubr.msk.bf16.mxu1 %vm4663_vm6, %v16404_v19  ;;  %v10287_v53 = vpop.f32.mrb[25].mxu1  ;;  %v16416_v10 = vld [vmem:[#allocation30_spill] sm:$0xff] }
 0x309   : > { %v14496_v31 = vadd.f32 %v10287_v53, %v10286_v24  ;;  %v10289_v42 = vpop.f32.mrb[26].mxu1  ;;  %v4188_v28 = vpop.permute.xlu1 %4187  ;;  %10506 = vmatprep.subr.bf16.mxu0 %v11430_v25 }
 0x30a   : > { %v10290_v39 = vpop.f32.mrb[27].mxu1  ;;  %v4542_v32 = vpop.permute.xlu0 %4541  ;;  %v4786_v18 = vsel %vm4663_vm6, %v16409_v63, %v4188_v28 }
 0x30b   : > { %5433 = vmatmul.mubr.bf16.gmra.mrb[20].mxu0 %v4782_v5  ;;  %v14498_v49 = vadd.f32 %v10290_v39, %v10289_v42  ;;  %v4850_v11 = vsel %vm4663_vm6, %v16410_v20, %v4542_v32  ;;  %v16418_v5 = vld [vmem:[#allocation33_spill] sm:$0xff] }
 0x30c   : > { %5440 = vmatprep.mubr.bf16.mxu0 %v4847_v59  ;;  %10507 = vmatpush3.bf16.msra.mxu0 %v11431_v14  ;;  %v16420_v59 = vld [vmem:[#allocation5_spill] sm:$0xff]  ;;  %v11434_v14 = vld [vmem:[%s16152_s5 + $0x60] sm:$0xff]  }
 0x30d   : > { %10508 = vmatprep.subr.bf16.mxu0 %v11432_v12  ;;  %v16422_v20 = vld [vmem:[#allocation41_spill] sm:$0xff]  ;;  %v16424_v12 = vld [vmem:[#allocation44_spill] sm:$0xff] }
 0x30e   : > { %v4190_v7 = vpop.permute.xlu1 %4189  ;;  %v4544_v35 = vpop.permute.xlu0 %4543 }
 0x30f   : > { %11025 = vmatmul.mubr.msk.bf16.gmra.mrb[84].mxu1 %vm4663_vm6, %v16407_v51  ;;  %v10292_v6 = vpop.f32.mrb[28].mxu1  ;;  %v4790_v13 = vsel %vm4663_vm6, %v16413_v40, %v4190_v7  ;;  %v4853_v41 = vsel %vm4663_vm6, %v16414_v46, %v4544_v35  ;;  %v16426_v46 = vld [vmem:[#allocation29_spill] sm:$0xff] }
 0x310   : > { %11028 = vmatprep.mubr.msk.bf16.mxu1 %vm4663_vm6, %v16408_v36  ;;  %v10293_v47 = vpop.f32.mrb[29].mxu1  ;;  %10509 = vmatpush3.bf16.msra.mxu0 %v11433_v15 }
 0x311   : > { %v14508_v38 = vadd.f32 %v10293_v47, %v10292_v6  ;;  %v10295_v0 = vpop.f32.mrb[30].mxu1  ;;  %v3286_v47 = vld [vmem:[#allocation2 + $0xcc] sm:$0xe]  ;;  %10510 = vmatprep.subr.bf16.mxu0 %v11434_v14  ;;  %v11440_v14 = vld [vmem:[%s16152_s5 + $0xc0] sm:$0xff]  }
 0x312   : > { %v10296_v17 = vpop.f32.mrb[31].mxu1  ;;  %v4192_v50 = vpop.permute.xlu1 %4191  ;;  %v9869_v25 = vcombine.low %v3286_v47, %v14381_v61  ;;  %v4661_v61 = vrot.slane %v14408_v4, 1  ;;  %10614 = vmatprep.subr.bf16.mxu1 %v11440_v14 }
 0x313   : > { %5441 = vmatmul.mubr.bf16.gmra.mrb[24].mxu0 %v4786_v18  ;;  %v14510_v2 = vadd.f32 %v10296_v17, %v10295_v0  ;;  %v4546_v30 = vpop.permute.xlu0 %4545  ;;  %v4794_v44 = vsel %vm4663_vm6, %v16417_v29, %v4192_v50  ;;  %v16421_v18 = vld [vmem:[#allocation40_spill] sm:$0xff]  ;;  %v11435_v50 = vld [vmem:[%s16152_s5 + $0x20] sm:$0xff]  }
 0x314   : > { %5448 = vmatprep.mubr.bf16.mxu0 %v4850_v11  ;;  %v4856_v33 = vsel %vm4663_vm6, %v14253_v60, %v4546_v30  ;;  %v16423_v11 = vld [vmem:[#allocation28_spill] sm:$0xff]  ;;  %v4660_v15 = vrot.slane %v9869_v25, 1  ;;  %v11436_v30 = vld [vmem:[%s16152_s5 + $0x68] sm:$0xff]   ;;  %10511 = vmatpush3.bf16.msra.mxu0 %v11435_v50 }
 0x315   : > { %10512 = vmatprep.subr.bf16.mxu0 %v11436_v30 }
 0x316   : > { %v4194_v19 = vpop.permute.xlu1 %4193  ;;  %v4662_v4 = vsel %vm875_vm0, %v4660_v15, %v4661_v61  ;;  %v16431_v61 = vld [vmem:[#allocation46_spill] sm:$0xff] }
 0x317   : > { %11029 = vmatmul.mubr.msk.bf16.gmra.mrb[88].mxu1 %vm4663_vm6, %v16411_v57  ;;  %v4548_v48 = vpop.permute.xlu0 %4547  ;;  %v4798_v24 = vsel %vm4663_vm6, %v16420_v59, %v4194_v19 }
 0x318   : > { %11032 = vmatprep.mubr.msk.bf16.mxu1 %vm4663_vm6, %v16412_v34  ;;  %v4859_v53 = vsel %vm4663_vm6, %v14286_v3, %v4548_v48 }
 0x31a   : > { %v4196_v32 = vpop.permute.xlu1 %4195 }
 0x31b   : > { %5449 = vmatmul.mubr.bf16.gmra.mrb[28].mxu0 %v4790_v13  ;;  %v4550_v36 = vpop.permute.xlu0 %4549  ;;  %v4802_v3 = vsel %vm4663_vm6, %v16423_v11, %v4196_v32 }
 0x31c   : > { %5456 = vmatprep.mubr.bf16.mxu0 %v4853_v41  ;;  %v4862_v6 = vsel %vm4663_vm6, %v14300_v26, %v4550_v36  ;;  %v16425_v26 = vld [vmem:[#allocation45_spill] sm:$0xff] }
 0x31e   : > { %v4198_v57 = vpop.permute.xlu1 %4197 }
 0x31f   : > { %11033 = vmatmul.mubr.msk.bf16.gmra.mrb[92].mxu1 %vm4663_vm6, %v16415_v16  ;;  %v4552_v40 = vpop.permute.xlu0 %4551  ;;  %v4806_v41 = vsel %vm4663_vm6, %v16426_v46, %v4198_v57  ;;  %v11438_v57 = vld [vmem:[%s16152_s5 + $0x70] sm:$0xff]   ;;  %v11442_v46 = vld [vmem:[%s16152_s5 + $0xc8] sm:$0xff]  }
 0x320   : > { %11036 = vmatprep.mubr.msk.bf16.mxu1 %vm4663_vm6, %v16416_v10  ;;  %v4865_v16 = vsel %vm4663_vm6, %v14325_v45, %v4552_v40  ;;  %v11437_v10 = vld [vmem:[%s16152_s5 + $0x28] sm:$0xff]  }
 0x321   : > { %10513 = vmatpush3.bf16.msra.mxu0 %v11437_v10 }
 0x322   : > { %v4200_v29 = vpop.permute.xlu1 %4199  ;;  %10514 = vmatprep.subr.bf16.mxu0 %v11438_v57  ;;  %v6333_v57 = vld [vmem:[#allocation3] sm:$0xf] }
 0x323   : > { %5457 = vmatmul.mubr.bf16.gmra.mrb[32].mxu0 %v4794_v44  ;;  %v4554_v44 = vpop.permute.xlu0 %4553 }
 0x324   : > { %5464 = vmatprep.mubr.bf16.mxu0 %v4856_v33  ;;  %v16427_v33 = vld [vmem:[#allocation27_spill] sm:$0xff]  ;;  %v4868_v45 = vsel %vm4663_vm6, %v14334_v9, %v4554_v44 }
 0x325   : > { %v4810_v19 = vsel %vm4663_vm6, %v16427_v33, %v4200_v29  ;;  %v11443_v29 = vld [vmem:[%s16152_s5 + $0x88] sm:$0xff]  }
 0x326   : > { %v4202_v48 = vpop.permute.xlu1 %4201 }
 0x327   : > { %11037 = vmatmul.mubr.msk.bf16.gmra.mrb[96].mxu1 %vm4663_vm6, %v16418_v5  ;;  %v10298_v42 = vpop.f32.mrb[32].mxu1  ;;  %v4556_v5 = vpop.permute.xlu0 %4555 }
 0x328   : > { %11040 = vmatprep.mubr.msk.bf16.mxu1 %vm4663_vm6, %v16419_v22  ;;  %v10299_v28 = vpop.f32.mrb[33].mxu1  ;;  %v16428_v22 = vld [vmem:[#allocation34_spill] sm:$0xff] }
 0x329   : > { %v14548_v60 = vadd.f32 %v10299_v28, %v10298_v42  ;;  %v10301_v39 = vpop.f32.mrb[34].mxu1  ;;  %v4814_v59 = vsel %vm4663_vm6, %v16428_v22, %v4202_v48 }
 0x32a   : > { %v10302_v51 = vpop.f32.mrb[35].mxu1  ;;  %v4204_v32 = vpop.permute.xlu1 %4203 }
 0x32b   : > { %5465 = vmatmul.mubr.bf16.gmra.mrb[36].mxu0 %v4798_v24  ;;  %v14550_v63 = vadd.f32 %v10302_v51, %v10301_v39  ;;  %v4871_v24 = vsel %vm4663_vm6, %v14345_v52, %v4556_v5  ;;  %v4558_v36 = vpop.permute.xlu0 %4557 }
 0x32c   : > { %5472 = vmatprep.mubr.bf16.mxu0 %v4859_v53  ;;  %v4874_v11 = vsel %vm4663_vm6, %v14354_v43, %v4558_v36  ;;  %v11439_v43 = vld [vmem:[%s16152_s5 + $0x30] sm:$0xff]  }
 0x32d   : > { %10515 = vmatpush3.bf16.msra.mxu0 %v11439_v43  ;;  %v11458_v43 = vld [vmem:[%s16152_s5 + $0xf8] sm:$0xff]  }
 0x32f   : > { %11041 = vmatmul.mubr.msk.bf16.gmra.mrb[100].mxu1 %vm4663_vm6, %v16421_v18  ;;  %v10304_v0 = vpop.f32.mrb[36].mxu1  ;;  %v16429_v18 = vld [vmem:[#allocation36_spill] sm:$0xff] }
 0x330   : > { %11044 = vmatprep.mubr.msk.bf16.mxu1 %vm4663_vm6, %v16422_v20  ;;  %v10305_v7 = vpop.f32.mrb[37].mxu1  ;;  %v4818_v20 = vsel %vm4663_vm6, %v16429_v18, %v4204_v32 }
 0x331   : > { %v14560_v17 = vadd.f32 %v10305_v7, %v10304_v0  ;;  %v10307_v35 = vpop.f32.mrb[38].mxu1  ;;  %v4206_v0 = vpop.permute.xlu1 %4205 }
 0x332   : > { %v10308_v34 = vpop.f32.mrb[39].mxu1 }
 0x333   : > { %5473 = vmatmul.mubr.bf16.gmra.mrb[40].mxu0 %v4802_v3  ;;  %v14563_v13 = vadd.f32 %v10308_v34, %v10307_v35  ;;  %v4560_v35 = vpop.permute.xlu0 %4559  ;;  %v16430_v34 = vld [vmem:[#allocation9_spill] sm:$0xff] }
 0x334   : > { %5480 = vmatprep.mubr.bf16.mxu0 %v4862_v6  ;;  %v4822_v40 = vsel %vm4663_vm6, %v16430_v34, %v4206_v0  ;;  %v11453_v0 = vld [vmem:[%s16152_s5 + $0xa8] sm:$0xff]   ;;  %v6334_v34 = vld [vmem:[#allocation3 + $0x4] sm:$0xf] }
 0x335   : > { %v9955_v14 = vcombine.low %v6333_v57, %v6334_v34 }
 0x337   : > { %11045 = vmatmul.mubr.msk.bf16.gmra.mrb[104].mxu1 %vm4663_vm6, %v16424_v12  ;;  %v11441_v12 = vld [vmem:[%s16152_s5 + $0x80] sm:$0xff]   ;;  %v4562_v15 = vpop.permute.xlu0 %4561 }
 0x338   : > { %11048 = vmatprep.mubr.msk.bf16.mxu1 %vm4663_vm6, %v16425_v26  ;;  %v4877_v26 = vsel %vm4663_vm6, %v14360_v21, %v4560_v35  ;;  %10615 = vmatpush3.bf16.msra.mxu1 %v11441_v12  ;;  %v4880_v30 = vsel %vm4663_vm6, %v14374_v23, %v4562_v15  ;;  %v11455_v35 = vld [vmem:[%s16152_s5 + $0xb0] sm:$0xff]   ;;  %v11460_v12 = vld [vmem:[%s16152_s5 + $0x140] sm:$0xff]   ;;  %v6673_v15 = vshll.u32 %v9955_v14, 16 }
 0x339   : > { %10616 = vmatprep.subr.bf16.mxu1 %v11442_v46  ;;  %v11459_v46 = vld [vmem:[%s16152_s5 + $0xb8] sm:$0xff]  }
 0x33b   : > { %5481 = vmatmul.mubr.bf16.gmra.mrb[44].mxu0 %v4806_v41  ;;  %v4208_v41 = vpop.permute.xlu1 %4207 }
 0x33c   : > { %5488 = vmatprep.mubr.bf16.mxu0 %v4865_v16  ;;  %v4826_v50 = vsel %vm4663_vm6, %v16431_v61, %v4208_v41  ;;  %v4564_v16 = vpop.permute.xlu0 %4563  ;;  %10617 = vmatpush3.bf16.msra.mxu1 %v11443_v29  ;;  %v6671_v41 = vshrl.u32 %v9955_v14, 16  ;;  %v6675_v61 = vrot.slane %v6673_v15, 1 }
 0x33f   : > { %11049 = vmatmul.mubr.msk.bf16.gmra.mrb[108].mxu1 %vm4663_vm6, %v4662_v4  ;;  %v4210_v21 = vpop.permute.xlu1 %4209  ;;  %v4883_v4 = vsel %vm4663_vm6, %v14387_v62, %v4564_v16  ;;  %v11444_v62 = vld [vmem:[%s16152_s5 + $0xd0] sm:$0xff]  }
 0x340   : > { %v4830_v10 = vsel %vm4663_vm6, %v14296_v8, %v4210_v21  ;;  %10618 = vmatprep.subr.bf16.mxu1 %v11444_v62 }
 0x343   : > { %5489 = vmatmul.mubr.bf16.gmra.mrb[48].mxu0 %v4810_v19  ;;  %v4212_v48 = vpop.permute.xlu1 %4211 }
 0x344   : > { %5496 = vmatprep.mubr.bf16.mxu0 %v4868_v45  ;;  %v4566_v45 = vpop.permute.xlu0 %4565 }
 0x345   : > { %v4886_v8 = vsel %vm4663_vm6, %v14394_v55, %v4566_v45 }
 0x347   : > { %v4214_v36 = vpop.permute.xlu1 %4213 }
 0x348   : > { %v10310_v53 = vpop.f32.mrb[40].mxu1 }
 0x349   : > { %v10311_v42 = vpop.f32.mrb[41].mxu1 }
 0x34a   : > { %v14596_v28 = vadd.f32 %v10311_v42, %v10310_v53  ;;  %v10313_v39 = vpop.f32.mrb[42].mxu1  ;;  %v11445_v53 = vld [vmem:[%s16152_s5 + $0x90] sm:$0xff]   ;;  %v11446_v42 = vld [vmem:[%s16152_s5 + $0xd8] sm:$0xff]  }
 0x34b   : > { %5497 = vmatmul.mubr.bf16.gmra.mrb[52].mxu0 %v4814_v59  ;;  %v10314_v51 = vpop.f32.mrb[43].mxu1  ;;  %v4834_v59 = vsel %vm4663_vm6, %v14307_v54, %v4212_v48  ;;  %10619 = vmatpush3.bf16.msra.mxu1 %v11445_v53 }
 0x34c   : > { %5504 = vmatprep.mubr.bf16.mxu0 %v4871_v24  ;;  %v14598_v9 = vadd.f32 %v10314_v51, %v10313_v39  ;;  %v11448_v39 = vld [vmem:[%s16152_s5 + $0x78] sm:$0xff]   ;;  %10620 = vmatprep.subr.bf16.mxu1 %v11446_v42 }
 0x34d   : > { %v11447_v51 = vld [vmem:[%s16152_s5 + $0x98] sm:$0xff]   ;;  %10516 = vmatprep.subr.bf16.mxu0 %v11448_v39 }
 0x34f   : > { %10621 = vmatpush3.bf16.msra.mxu1 %v11447_v51  ;;  %v11475_v51 = vld [vmem:[%s16152_s5 + $0x108] sm:$0xff]  }
 0x350   : > { %v10316_v3 = vpop.f32.mrb[44].mxu1 }
 0x351   : > { %v10317_v52 = vpop.f32.mrb[45].mxu1 }
 0x352   : > { %v14604_v6 = vadd.f32 %v10317_v52, %v10316_v3  ;;  %v10319_v47 = vpop.f32.mrb[46].mxu1  ;;  %v11449_v3 = vld [vmem:[%s16152_s5 + $0x38] sm:$0xff]   ;;  %v11450_v52 = vld [vmem:[%s16152_s5 + $0xe0] sm:$0xff]  }
 0x353   : > { %5505 = vmatmul.mubr.bf16.gmra.mrb[56].mxu0 %v4818_v20  ;;  %v10320_v7 = vpop.f32.mrb[47].mxu1  ;;  %10622 = vmatprep.subr.bf16.mxu1 %v11450_v52 }
 0x354   : > { %5512 = vmatprep.mubr.bf16.mxu0 %v4874_v11  ;;  %v14606_v25 = vadd.f32 %v10320_v7, %v10319_v47  ;;  %v4838_v11 = vsel %vm4663_vm6, %v14318_v1, %v4214_v36  ;;  %10517 = vmatpush3.bf16.msra.mxu0 %v11449_v3  ;;  %v11451_v47 = vld [vmem:[%s16152_s5 + $0xa0] sm:$0xff]   ;;  %v11452_v1 = vld [vmem:[%s16152_s5 + $0xe8] sm:$0xff]   ;;  %v11454_v7 = vld [vmem:[%s16152_s5 + $0xf0] sm:$0xff]  }
 0x355   : > { %10623 = vmatpush3.bf16.msra.mxu1 %v11451_v47  ;;  %10726 = vmatprep.subr.bf16.mxu0 %v11460_v12  ;;  %v11486_v36 = vld [vmem:[%s16152_s5 + $0x150] sm:$0xff]   ;;  %v11499_v12 = vld [vmem:[%s16152_s5 + $0x118] sm:$0xff]  }
 0x356   : > { %10624 = vmatprep.subr.bf16.mxu1 %v11452_v1 }
 0x359   : > { %10625 = vmatpush3.bf16.msra.mxu1 %v11453_v0  ;;  %v11487_v0 = vld [vmem:[%s16152_s5 + $0x110] sm:$0xff]  }
 0x35a   : > { %10626 = vmatprep.subr.bf16.mxu1 %v11454_v7 }
 0x35b   : > { %5513 = vmatmul.mubr.bf16.gmra.mrb[60].mxu0 %v4822_v40  ;;  %v11457_v40 = vld [vmem:[#allocation3 + $0x8] ss:$0 sps:$4 sm:$0x11]  }
 0x35c   : > { %5520 = vmatprep.mubr.bf16.mxu0 %v4877_v26  ;;  %v6678_v26 = vshll.u32 %v11457_v40, 16  ;;  %v6927_v16 = vrot.slane %v11457_v40, 1 }
 0x35d   : > { %10627 = vmatpush3.bf16.msra.mxu1 %v11455_v35 }
 0x35e   : > { %10628 = vmatprep.subr.bf16.mxu1 %v11458_v43 }
 0x361   : > { %10629 = vmatpush3.bf16.msra.mxu1 %v11459_v46 }
 0x363   : > { %5521 = vmatmul.mubr.bf16.gmra.mrb[64].mxu0 %v4826_v50  ;;  %v6680_v50 = vrot.slane %v6678_v26, 1 }
 0x364   : > { %5528 = vmatprep.mubr.bf16.mxu0 %v4880_v30  ;;  %v6381_v30 = vld [vmem:[#allocation3] sm:$0xe] }
 0x365   : > { %v9987_v21 = vcombine.low %v6381_v30, %v6334_v34  ;;  %v11512_v30 = vld [vmem:[%s16152_s5 + $0x160] sm:$0xff]  }
 0x36b   : > { %5529 = vmatmul.mubr.bf16.gmra.mrb[68].mxu0 %v4830_v10 }
 0x36c   : > { %v10322_v44 = vpop.f32.mrb[48].mxu1  ;;  %5536 = vmatprep.mubr.bf16.mxu0 %v4883_v4  ;;  %v6676_v4 = vor.u32 %v6675_v61, %v6671_v41  ;;  %v11506_v61 = vld [vmem:[%s16152_s5 + $0x1c0] sm:$0xff]  }
 0x36d   : > { %v10323_v33 = vpop.f32.mrb[49].mxu1  ;;  %10838 = vmatprep.subr.bf16.mxu1 %v11506_v61 }
 0x36e   : > { %v14638_v19 = vadd.f32 %v10323_v33, %v10322_v44  ;;  %v10325_v23 = vpop.f32.mrb[50].mxu1  ;;  %v11463_v44 = vld [vmem:[%s16152_s5 + $0x100] sm:$0xff]   ;;  %v6926_v33 = vrot.slane %v9987_v21, 1  ;;  %v6681_v48 = vsel %vm602_vm1, %v6676_v4, %v6680_v50 }
 0x36f   : > { %v10326_v5 = vpop.f32.mrb[51].mxu1 }
 0x370   : > { %v14640_v22 = vadd.f32 %v10326_v5, %v10325_v23 }
 0x373   : > { %5537 = vmatmul.mubr.bf16.gmra.mrb[72].mxu0 %v4834_v59 }
 0x374   : > { %v10328_v24 = vpop.f32.mrb[52].mxu1  ;;  %5544 = vmatprep.mubr.bf16.mxu0 %v4886_v8  ;;  %v14704_v8 = vsel %vm875_vm0, %v6926_v33, %v6927_v16  ;;  %v11513_v33 = vld [vmem:[%s16152_s5 + $0x120] sm:$0xff]  }
 0x375   : > { %v10329_v55 = vpop.f32.mrb[53].mxu1 }
 0x376   : > { %v14658_v32 = vadd.f32 %v10329_v55, %v10328_v24  ;;  %v10331_v54 = vpop.f32.mrb[54].mxu1  ;;  %v11474_v55 = vld [vmem:[%s16152_s5 + $0x148] sm:$0xff]  }
 0x377   : > { %v10332_v18 = vpop.f32.mrb[55].mxu1 }
 0x378   : > { %v14663_v20 = vadd.f32 %v10332_v18, %v10331_v54 }
 0x37b   : > { %5545 = vmatmul.mubr.bf16.gmra.mrb[76].mxu0 %v4838_v11 }
 0x37c   : > { %8533 = vmatprep.mubr.bf16.mxu0 %v6681_v48 }
 0x383   : > { %8534 = vmatmul.mubr.bf16.vlgmr.msra.gmra.mrb[80].mxu0 %v9955_v14  ;;  %v11498_v14 = vld [vmem:[%s16152_s5 + $0x158] sm:$0xff]  }
 0x384   : > { %10727 = vmatpush3.bf16.msra.mxu0 %v11463_v44 }
 0x385   : > { %10728 = vmatprep.subr.bf16.mxu0 %v11474_v55 }
 0x388   : > { %10729 = vmatpush3.bf16.msra.mxu0 %v11475_v51 }
 0x389   : > { %v10334_v10 = vpop.f32.mrb[56].mxu1  ;;  %10730 = vmatprep.subr.bf16.mxu0 %v11486_v36 }
 0x38a   : > { %v10335_v29 = vpop.f32.mrb[57].mxu1 }
 0x38b   : > { %v14700_v23 = vadd.f32 %v10335_v29, %v10334_v10  ;;  %v10337_v45 = vpop.f32.mrb[58].mxu1 }
 0x38c   : > { %v10338_v5 = vpop.f32.mrb[59].mxu1  ;;  %10731 = vmatpush3.bf16.msra.mxu0 %v11487_v0 }
 0x38d   : > { %v14706_v62 = vadd.f32 %v10338_v5, %v10337_v45  ;;  %10732 = vmatprep.subr.bf16.mxu0 %v11498_v14  ;;  %v14756_v45 = vld [vmem:[%s16151_s4] ss:$0 sm:$0xff] }
 0x38e   : > { %v5269_v51 = vadd.f32 %v14454_v27, %v14756_v45 }
 0x390   : > { %10733 = vmatpush3.bf16.msra.mxu0 %v11499_v12 }
 0x391   : > { %v10340_v59 = vpop.f32.mrb[60].mxu1  ;;  %10734 = vmatprep.subr.bf16.mxu0 %v11512_v30 }
 0x392   : > { %v10341_v24 = vpop.f32.mrb[61].mxu1 }
 0x393   : > { %v14708_v53 = vadd.f32 %v10341_v24, %v10340_v59  ;;  %v10343_v42 = vpop.f32.mrb[62].mxu1  ;;  %v5266_v59 = vadd.f32 %v14452_v37, %v14756_v45  ;;  %v5274_v37 = vadd.f32 %v14456_v56, %v14756_v45  ;;  %v11527_v56 = vld [vmem:[%s16152_s5 + $0x128] sm:$0xff]  }
 0x394   : > { %v10344_v39 = vpop.f32.mrb[63].mxu1  ;;  %10735 = vmatpush3.bf16.msra.mxu0 %v11513_v33 }
 0x395   : > { %v14713_v54 = vadd.f32 %v10344_v39, %v10343_v42 }
 0x3a9   : > { %v10346_v18 = vpop.f32.mrb[64].mxu1 }
 0x3aa   : > { %v10347_v11 = vpop.f32.mrb[65].mxu1 }
 0x3ab   : > { %v14721_v3 = vadd.f32 %v10347_v11, %v10346_v18  ;;  %v10349_v52 = vpop.f32.mrb[66].mxu1 }
 0x3ac   : > { %v10350_v47 = vpop.f32.mrb[67].mxu1 }
 0x3ad   : > { %v14723_v1 = vadd.f32 %v10350_v47, %v10349_v52 }
 0x3b1   : > { %v10352_v7 = vpop.f32.mrb[68].mxu1 }
 0x3b2   : > { %v10353_v35 = vpop.f32.mrb[69].mxu1 }
 0x3b3   : > { %v14728_v57 = vadd.f32 %v10353_v35, %v10352_v7  ;;  %v10355_v34 = vpop.f32.mrb[70].mxu1 }
 0x3b4   : > { %v10356_v40 = vpop.f32.mrb[71].mxu1 }
 0x3b5   : > { %v14730_v43 = vadd.f32 %v10356_v40, %v10355_v34 }
 0x3ca   : > { %v10358_v26 = vpop.f32.mrb[72].mxu1 }
 0x3cb   : > { %v10359_v46 = vpop.f32.mrb[73].mxu1 }
 0x3cc   : > { %v14738_v41 = vadd.f32 %v10359_v46, %v10358_v26  ;;  %v10361_v15 = vpop.f32.mrb[74].mxu1 }
 0x3cd   : > { %v10362_v50 = vpop.f32.mrb[75].mxu1 }
 0x3ce   : > { %16432 = vst [vmem:[#allocation32_spill] sm:$0xff] %v14738_v41  ;;  %v14746_v21 = vadd.f32 %v10362_v50, %v10361_v15 }
 0x3d0   : > { %16433 = vst [vmem:[#allocation11_spill] sm:$0xff] %v14746_v21  ;;  %v6256_v21 = vld [vmem:[#allocation3 + $0x48] sm:$0xf] }
 0x3d2   : > { %v10364_v16 = vpop.f32.mrb[76].mxu1 }
 0x3d3   : > { %v10365_v10 = vpop.f32.mrb[77].mxu1 }
 0x3d4   : > { %v14748_v4 = vadd.f32 %v10365_v10, %v10364_v16  ;;  %v10367_v29 = vpop.f32.mrb[78].mxu1  ;;  %v5277_v16 = vadd.f32 %v14460_v58, %v14756_v45  ;;  %v11526_v10 = vld [vmem:[%s16152_s5 + $0x168] sm:$0xff]  }
 0x3d5   : > { %v10368_v48 = vpop.f32.mrb[79].mxu1  ;;  %10736 = vmatprep.subr.bf16.mxu0 %v11526_v10 }
 0x3d6   : > { %16434 = vst [vmem:[#allocation35_spill] sm:$0xff] %v14748_v4  ;;  %v10386_v44 = vpop.f32.mrb[16].mxu0  ;;  %v14760_v24 = vadd.f32 %v10368_v48, %v10367_v29  ;;  %10737 = vmatpush3.bf16.msra.mxu0 %v11527_v56 }
 0x3d7   : > { %v10387_v5 = vpop.f32.mrb[17].mxu0 }
 0x3d8   : > { %16435 = vst [vmem:[#allocation31_spill] sm:$0xff] %v14760_v24  ;;  %v10388_v42 = vadd.f32 %v10387_v5, %v10386_v44  ;;  %v10389_v55 = vpop.f32.mrb[18].mxu0 }
 0x3d9   : > { %v10390_v39 = vpop.f32.mrb[19].mxu0 }
 0x3da   : > { %v10391_v36 = vadd.f32 %v10390_v39, %v10389_v55  ;;  %v5427_v18 = vadd.f32 %v10388_v42, %v5266_v59  ;;  %v11022_v11 = vpop.f32.mrb[80].mxu1 }
 0x3db   : > { %v5587_v47 = vpop.f32.mrb[81].mxu1 }
 0x3dc   : > { %v5430_v52 = vadd.f32 %v10391_v36, %v5269_v51  ;;  %v5588_v0 = vadd.f32 %v5587_v47, %v5427_v18  ;;  %v11023_v35 = vpop.f32.mrb[82].mxu1 }
 0x3dd   : > { %v5590_v40 = vpop.f32.mrb[83].mxu1 }
 0x3de   : > { %v10392_v7 = vpop.f32.mrb[20].mxu0  ;;  %v5714_v14 = vmax.f32 %v5588_v0, 0.0  ;;  %v5591_v26 = vadd.f32 %v5590_v40, %v5430_v52 }
 0x3df   : > { %v10393_v34 = vpop.f32.mrb[21].mxu0 }
 0x3e0   : > { %v10394_v12 = vadd.f32 %v10393_v34, %v10392_v7  ;;  %v10395_v46 = vpop.f32.mrb[22].mxu0  ;;  %v10207_v61 = vpack.c.bf16 %v5714_v14, %v5714_v14  ;;  %v5715_v50 = vmax.f32 %v5591_v26, 0.0 }
 0x3e1   : > { %v10396_v15 = vpop.f32.mrb[23].mxu0 }
 0x3e2   : > { %v5435_v27 = vadd.f32 %v10394_v12, %v5274_v37  ;;  %v10397_v30 = vadd.f32 %v10396_v15, %v10395_v46  ;;  %v5897_v29 = vshrl.u32 %v10207_v61, 16  ;;  %v10208_v33 = vpack.c.bf16 %v5715_v50, %v5715_v50  ;;  %v14774_v48 = vpop.f32.mrb[84].mxu1 }
 0x3e3   : > { %v5603_v59 = vpop.f32.mrb[85].mxu1  ;;  %v5900_v55 = vshll.u32 %v10207_v61, 16  ;;  %v5282_v12 = vadd.f32 %v14496_v31, %v14756_v45 }
 0x3e4   : > { %v5596_v44 = vadd.f32 %v11022_v11, %v5435_v27  ;;  %v5438_v5 = vadd.f32 %v10397_v30, %v5277_v16  ;;  %v5899_v42 = vrot.slane %v5897_v29, 7  ;;  %v5905_v39 = vshrl.u32 %v10208_v33, 16  ;;  %v14776_v36 = vpop.f32.mrb[86].mxu1  ;;  %v6219_v11 = vld [vmem:[#allocation3 + $0xc] sm:$0xf] }
 0x3e5   : > { %v5606_v0 = vpop.f32.mrb[87].mxu1  ;;  %v5908_v37 = vshll.u32 %v10208_v33, 16  ;;  %v6225_v16 = vld [vmem:[#allocation3 + $0x14] sm:$0x1] }
 0x3e6   : > { %v5716_v58 = vmax.f32 %v5596_v44, 0.0  ;;  %v10398_v51 = vpop.f32.mrb[24].mxu0  ;;  %v5599_v52 = vadd.f32 %v11023_v35, %v5438_v5  ;;  %v5902_v7 = vor.u32 %v5900_v55, %v5899_v42  ;;  %v5907_v40 = vrot.slane %v5905_v39, 7  ;;  %v6228_v39 = vld [vmem:[#allocation3 + $0x18] sm:$0xf] }
 0x3e7   : > { %v10399_v47 = vpop.f32.mrb[25].mxu0  ;;  %v5903_v61 = vrot.slane %v5899_v42, 4  ;;  %v5285_v44 = vadd.f32 %v14498_v49, %v14756_v45 }
 0x3e8   : > { %v10209_v34 = vpack.c.bf16 %v5716_v58, %v5716_v58  ;;  %v10401_v14 = vpop.f32.mrb[26].mxu0  ;;  %v5717_v26 = vmax.f32 %v5599_v52, 0.0  ;;  %v10400_v46 = vadd.f32 %v10399_v47, %v10398_v51  ;;  %v6220_v27 = vsel %vm14779_vm8, %v5902_v7, %v6219_v11 }
 0x3e9   : > { %v10402_v15 = vpop.f32.mrb[27].mxu0  ;;  %v5910_v30 = vor.u32 %v5908_v37, %v5907_v40  ;;  %6221 = vst [vmem:[#allocation3 + $0xc] sm:$0xf] %v6220_v27  ;;  %v5912_v10 = vrot.slane %v5907_v40, 4 }
 0x3ea   : > { %v5914_v50 = vshrl.u32 %v10209_v34, 16  ;;  %v10210_v56 = vpack.c.bf16 %v5717_v26, %v5717_v26  ;;  %v5443_v31 = vadd.f32 %v10400_v46, %v5282_v12  ;;  %v10403_v29 = vadd.f32 %v10402_v15, %v10401_v14  ;;  %v14797_v58 = vpop.f32.mrb[88].mxu1 }
 0x3eb   : > { %v5917_v5 = vshll.u32 %v10209_v34, 16  ;;  %v5911_v55 = vsel %vm13513_vm4, %v5903_v61, %v5910_v30  ;;  %v6226_v51 = vsel %vm14789_vm10, %v5912_v10, %v6225_v16  ;;  %v14801_v47 = vpop.f32.mrb[89].mxu1  ;;  %v5290_v15 = vadd.f32 %v14508_v38, %v14756_v45  ;;  %v6232_v61 = vld [vmem:[#allocation3 + $0x20] sm:$0x1] }
 0x3ec   : > { %v5916_v33 = vrot.slane %v5914_v50, 7  ;;  %6222 = vst [vmem:[#allocation3 + $0x10] sm:$0xf] %v5911_v55  ;;  %v5922_v11 = vshrl.u32 %v10210_v56, 16  ;;  %v5604_v52 = vadd.f32 %v5603_v59, %v5443_v31  ;;  %6227 = vst [vmem:[#allocation3 + $0x14] sm:$0x1] %v6226_v51  ;;  %v5446_v40 = vadd.f32 %v10403_v29, %v5285_v44 }
 0x3ed   : > { %v14803_v37 = vpop.f32.mrb[90].mxu1  ;;  %v5925_v14 = vshll.u32 %v10210_v56, 16  ;;  %v5293_v44 = vadd.f32 %v14510_v2, %v14756_v45 }
 0x3ee   : > { %v5919_v7 = vor.u32 %v5917_v5, %v5916_v33  ;;  %v10404_v49 = vpop.f32.mrb[28].mxu0  ;;  %v5924_v34 = vrot.slane %v5922_v11, 7  ;;  %v5718_v12 = vmax.f32 %v5604_v52, 0.0  ;;  %v14805_v46 = vpop.f32.mrb[91].mxu1  ;;  %v5607_v27 = vadd.f32 %v5606_v0, %v5446_v40  ;;  %v6235_v52 = vld [vmem:[#allocation3 + $0x24] sm:$0xf] }
 0x3ef   : > { %v10405_v26 = vpop.f32.mrb[29].mxu0  ;;  %v5920_v16 = vrot.slane %v5916_v33, 4 }
 0x3f0   : > { %v6229_v59 = vsel %vm14779_vm8, %v5919_v7, %v6228_v39  ;;  %v10406_v50 = vadd.f32 %v10405_v26, %v10404_v49  ;;  %v10407_v30 = vpop.f32.mrb[30].mxu0  ;;  %v5927_v10 = vor.u32 %v5925_v14, %v5924_v34  ;;  %v5929_v31 = vrot.slane %v5924_v34, 4  ;;  %v6397_v11 = vld [vmem:[#allocation3 + $0xc] sm:$0xf] }
 0x3f1   : > { %6230 = vst [vmem:[#allocation3 + $0x18] sm:$0xf] %v6229_v59  ;;  %v10211_v29 = vpack.c.bf16 %v5718_v12, %v5718_v12  ;;  %v10408_v56 = vpop.f32.mrb[31].mxu0  ;;  %v5719_v5 = vmax.f32 %v5607_v27, 0.0  ;;  %v6335_v33 = vld [vmem:[#allocation3 + $0xc] sm:$0xf] }
 0x3f2   : > { %v5451_v55 = vadd.f32 %v10406_v50, %v5290_v15  ;;  %v10409_v51 = vadd.f32 %v10408_v56, %v10407_v30  ;;  %v5928_v38 = vsel %vm13513_vm4, %v5920_v16, %v5927_v10  ;;  %v6233_v0 = vsel %vm14789_vm10, %v5929_v31, %v6232_v61  ;;  %v14818_v2 = vpop.f32.mrb[92].mxu1  ;;  %v11507_v27 = vld [vmem:[%s16152_s5 + $0x180] sm:$0xff]   ;;  %v11520_v31 = vld [vmem:[%s16152_s5 + $0x1c8] sm:$0xff]  }
 0x3f3   : > { %v5931_v39 = vshrl.u32 %v10211_v29, 16  ;;  %6231 = vst [vmem:[#allocation3 + $0x1c] sm:$0xf] %v5928_v38  ;;  %6234 = vst [vmem:[#allocation3 + $0x20] sm:$0x1] %v6233_v0  ;;  %v10212_v7 = vpack.c.bf16 %v5719_v5, %v5719_v5  ;;  %v5934_v26 = vshll.u32 %v10211_v29, 16  ;;  %v5298_v29 = vadd.f32 %v14548_v60, %v14756_v45 }
 0x3f4   : > { %v5612_v40 = vadd.f32 %v14774_v48, %v5451_v55  ;;  %v5454_v49 = vadd.f32 %v10409_v51, %v5293_v44  ;;  %v6398_v34 = vld [vmem:[#allocation3 + $0x10] sm:$0xf]  ;;  %v14822_v15 = vpop.f32.mrb[93].mxu1  ;;  %v5301_v56 = vadd.f32 %v14550_v63, %v14756_v45  ;;  %v11541_v60 = vld [vmem:[%s16152_s5 + $0x130] sm:$0xff]   ;;  %v14854_v63 = vadd.f32 %v14560_v17, %v14756_v45 }
 0x3f5   : > { %v14820_v14 = vld [vmem:[#allocation3 + $0x10] sm:$0xf]  ;;  %v5933_v12 = vrot.slane %v5931_v39, 7  ;;  %v14824_v59 = vcombine.low %v6397_v11, %v6398_v34  ;;  %v5939_v48 = vshrl.u32 %v10212_v7, 16  ;;  %v14833_v10 = vpop.f32.mrb[94].mxu1  ;;  %v5942_v5 = vshll.u32 %v10212_v7, 16 }
 0x3f6   : > { %v14827_v61 = vcombine.low %v6335_v33, %v14820_v14  ;;  %v5720_v50 = vmax.f32 %v5612_v40, 0.0  ;;  %v5615_v30 = vadd.f32 %v14776_v36, %v5454_v49  ;;  %v10410_v16 = vpop.f32.mrb[32].mxu0  ;;  %v14842_v51 = vpop.f32.mrb[95].mxu1  ;;  %v11540_v36 = vld [vmem:[%s16152_s5 + $0x170] sm:$0xff]   ;;  %v6239_v49 = vld [vmem:[#allocation3 + $0x2c] sm:$0x1] }
 0x3f7   : > { %16441 = vst [vmem:[#allocation42_spill] sm:$0xff] %v14824_v59  ;;  %v5936_v44 = vor.u32 %v5934_v26, %v5933_v12  ;;  %v10411_v55 = vpop.f32.mrb[33].mxu0  ;;  %8694 = vmatprep.mubr.bf16.mxu1 %v14824_v59  ;;  %v5941_v38 = vrot.slane %v5939_v48, 7  ;;  %v5937_v7 = vrot.slane %v5933_v12, 4  ;;  %10738 = vmatprep.subr.bf16.mxu0 %v11540_v36 }
 0x3f8   : > { %v10213_v0 = vpack.c.bf16 %v5720_v50, %v5720_v50  ;;  %v5721_v39 = vmax.f32 %v5615_v30, 0.0  ;;  %v10412_v11 = vadd.f32 %v10411_v55, %v10410_v16  ;;  %v10413_v33 = vpop.f32.mrb[34].mxu0  ;;  %8695 = vmatmul.mubr.bf16.vlgmr.msra.gmra.mrb[112].mxu1 %v14704_v8  ;;  %v6685_v26 = vshll.u32 %v14827_v61, 16  ;;  %v11521_v8 = vld [vmem:[%s16152_s5 + $0x188] sm:$0xff]   ;;  %v6399_v16 = vld [vmem:[#allocation3 + $0x18] sm:$0xf]  ;;  %10739 = vmatpush3.bf16.msra.mxu0 %v11541_v60 }
 0x3f9   : > { %v6236_v40 = vsel %vm14779_vm8, %v5936_v44, %v6235_v52  ;;  %v10414_v34 = vpop.f32.mrb[35].mxu0  ;;  %10839 = vmatpush3.bf16.msra.mxu1 %v11507_v27  ;;  %v5944_v48 = vor.u32 %v5942_v5, %v5941_v38  ;;  %v5946_v50 = vrot.slane %v5941_v38, 4  ;;  %v11534_v52 = vld [vmem:[%s16152_s5 + $0x1d0] sm:$0xff]   ;;  %v14865_v59 = vld [vmem:[#allocation3 + $0x14] ss:$0 sps:$4 sm:$0x11]  }
 0x3fa   : > { %6237 = vst [vmem:[#allocation3 + $0x24] sm:$0xf] %v6236_v40  ;;  %v5948_v30 = vshrl.u32 %v10213_v0, 16  ;;  %v5951_v17 = vshll.u32 %v10213_v0, 16  ;;  %10840 = vmatprep.subr.bf16.mxu1 %v11520_v31  ;;  %v10214_v12 = vpack.c.bf16 %v5721_v39, %v5721_v39  ;;  %v5459_v44 = vadd.f32 %v10412_v11, %v5298_v29  ;;  %v6400_v55 = vld [vmem:[#allocation3 + $0x1c] sm:$0xf] }
 0x3fb   : > { %v10415_v27 = vadd.f32 %v10414_v34, %v10413_v33  ;;  %v6687_v24 = vrot.slane %v6685_v26, 1  ;;  %v5945_v5 = vsel %vm13513_vm4, %v5937_v7, %v5944_v48  ;;  %v6240_v36 = vsel %vm14789_vm10, %v5946_v50, %v6239_v49  ;;  %v6242_v31 = vld [vmem:[#allocation3 + $0x30] sm:$0xf]  ;;  %v14871_v0 = vpop.f32.mrb[96].mxu1  ;;  %v6382_v7 = vld [vmem:[#allocation3 + $0xc] sm:$0xe] }
 0x3fc   : > { %v5950_v38 = vrot.slane %v5948_v30, 7  ;;  %v14873_v40 = vcombine.low %v6399_v16, %v6400_v55  ;;  %6238 = vst [vmem:[#allocation3 + $0x28] sm:$0xf] %v5945_v5  ;;  %6241 = vst [vmem:[#allocation3 + $0x2c] sm:$0x1] %v6240_v36  ;;  %v5956_v29 = vshrl.u32 %v10214_v12, 16  ;;  %v5620_v39 = vadd.f32 %v14801_v47, %v5459_v44 }
 0x3fd   : > { %v5462_v11 = vadd.f32 %v10415_v27, %v5301_v56  ;;  %v14876_v33 = vpop.f32.mrb[97].mxu1  ;;  %v6683_v60 = vshrl.u32 %v14827_v61, 16  ;;  %10841 = vmatpush3.bf16.msra.mxu1 %v11521_v8  ;;  %v11535_v49 = vld [vmem:[%s16152_s5 + $0x190] sm:$0xff]   ;;  %v14884_v34 = vadd.f32 %v14563_v13, %v14756_v45  ;;  %v5959_v50 = vshll.u32 %v10214_v12, 16  ;;  %v11548_v8 = vld [vmem:[%s16152_s5 + $0x1d8] sm:$0xff]  }
 0x3fe   : > { %16442 = vst [vmem:[#allocation19_spill] sm:$0xff] %v14873_v40  ;;  %v5953_v26 = vor.u32 %v5951_v17, %v5950_v38  ;;  %v5954_v48 = vrot.slane %v5950_v38, 4  ;;  %8702 = vmatprep.mubr.bf16.mxu1 %v14873_v40  ;;  %v10416_v47 = vpop.f32.mrb[36].mxu0  ;;  %v14887_v56 = vpop.f32.mrb[98].mxu1  ;;  %10842 = vmatprep.subr.bf16.mxu1 %v11534_v52  ;;  %v5958_v30 = vrot.slane %v5956_v29, 7  ;;  %v5722_v16 = vmax.f32 %v5620_v39, 0.0 }
 0x3ff   : > { %v5623_v44 = vadd.f32 %v14805_v46, %v5462_v11  ;;  %v6688_v27 = vor.u32 %v6687_v24, %v6683_v60  ;;  %v10417_v13 = vpop.f32.mrb[37].mxu0  ;;  %v14893_v55 = vpop.f32.mrb[99].mxu1  ;;  %v11554_v17 = vld [vmem:[%s16152_s5 + $0x178] sm:$0xff]   ;;  %v6246_v52 = vld [vmem:[#allocation3 + $0x38] sm:$0x1]  ;;  %v6690_v5 = vshll.u32 %v14865_v59, 16  ;;  %v9988_v29 = vcombine.low %v6382_v7, %v14820_v14 }
 0x400   : > { %v6243_v12 = vsel %vm14779_vm8, %v5953_v26, %v6242_v31  ;;  %v10418_v36 = vadd.f32 %v10417_v13, %v10416_v47  ;;  %v10419_v38 = vpop.f32.mrb[38].mxu0  ;;  %v11555_v24 = vld [vmem:[%s16152_s5 + $0x138] sm:$0xff]   ;;  %v5961_v46 = vor.u32 %v5959_v50, %v5958_v30  ;;  %v5963_v39 = vrot.slane %v5958_v30, 4  ;;  %10740 = vmatprep.subr.bf16.mxu0 %v11554_v17  ;;  %v14909_v7 = vld [vmem:[#allocation3 + $0x1c] sm:$0xf] }
 0x401   : > { %6244 = vst [vmem:[#allocation3 + $0x30] sm:$0xf] %v6243_v12  ;;  %v10215_v11 = vpack.c.bf16 %v5722_v16, %v5722_v16  ;;  %v5723_v60 = vmax.f32 %v5623_v44, 0.0  ;;  %v10420_v40 = vpop.f32.mrb[39].mxu0  ;;  %10843 = vmatpush3.bf16.msra.mxu1 %v11535_v49  ;;  %v6692_v31 = vrot.slane %v6690_v5, 1  ;;  %v6929_v47 = vrot.slane %v9988_v29, 1  ;;  %10741 = vmatpush3.bf16.msra.mxu0 %v11555_v24 }
 0x402   : > { %v14905_v4 = vld [vmem:[#allocation3 + $0x20] ss:$0 sps:$4 sm:$0x11]   ;;  %v5467_v26 = vadd.f32 %v10418_v36, %v14854_v63  ;;  %v6930_v14 = vrot.slane %v14865_v59, 1  ;;  %10844 = vmatprep.subr.bf16.mxu1 %v11548_v8  ;;  %v5962_v30 = vsel %vm13513_vm4, %v5954_v48, %v5961_v46  ;;  %v6247_v49 = vsel %vm14789_vm10, %v5963_v39, %v6246_v52  ;;  %v6337_v63 = vld [vmem:[#allocation3 + $0x18] sm:$0xf] }
 0x403   : > { %v11549_v50 = vld [vmem:[%s16152_s5 + $0x198] sm:$0xff]   ;;  %v5965_v16 = vshrl.u32 %v10215_v11, 16  ;;  %v5968_v44 = vshll.u32 %v10215_v11, 16  ;;  %v11557_v59 = vld [vmem:[%s16152_s5 + $0x1e0] sm:$0xff]   ;;  %6245 = vst [vmem:[#allocation3 + $0x34] sm:$0xf] %v5962_v30  ;;  %v10216_v13 = vpack.c.bf16 %v5723_v60, %v5723_v60  ;;  %v6693_v17 = vsel %vm602_vm1, %v6688_v27, %v6692_v31 }
 0x404   : > { %6248 = vst [vmem:[#allocation3 + $0x38] sm:$0x1] %v6247_v49  ;;  %v6249_v8 = vld [vmem:[#allocation3 + $0x3c] sm:$0xf]  ;;  %v5628_v12 = vadd.f32 %v14797_v58, %v5467_v26  ;;  %v6931_v48 = vsel %vm875_vm0, %v6929_v47, %v6930_v14  ;;  %v14924_v5 = vpop.f32.mrb[100].mxu1  ;;  %8541 = vmatprep.mubr.bf16.mxu0 %v6693_v17  ;;  %v10421_v24 = vadd.f32 %v10420_v40, %v10419_v38  ;;  %v6702_v39 = vshll.u32 %v14905_v4, 16 }
 0x405   : > { %v6401_v52 = vld [vmem:[#allocation3 + $0x24] sm:$0xf]  ;;  %v6402_v36 = vld [vmem:[#allocation3 + $0x28] sm:$0xf]  ;;  %v5967_v29 = vrot.slane %v5965_v16, 7  ;;  %8703 = vmatmul.mubr.bf16.gmra.mrb[116].mxu1 %v6931_v48  ;;  %v14927_v46 = vcombine.low %v6337_v63, %v14909_v7  ;;  %v14930_v11 = vpop.f32.mrb[101].mxu1  ;;  %v5314_v58 = vadd.f32 %v14596_v28, %v14756_v45  ;;  %8542 = vmatmul.mubr.bf16.gmra.mrb[84].mxu0 %v14827_v61  ;;  %v14944_v38 = vadd.f32 %v14598_v9, %v14756_v45 }
 0x406   : > { %v5973_v27 = vshrl.u32 %v10216_v13, 16  ;;  %v5724_v60 = vmax.f32 %v5628_v12, 0.0  ;;  %v14935_v31 = vcombine.low %v6401_v52, %v6402_v36  ;;  %v10422_v26 = vpop.f32.mrb[40].mxu0  ;;  %v14937_v47 = vpop.f32.mrb[102].mxu1  ;;  %10845 = vmatpush3.bf16.msra.mxu1 %v11549_v50  ;;  %v11558_v40 = vld [vmem:[%s16152_s5 + $0x1a0] sm:$0xff]   ;;  %v5976_v28 = vshll.u32 %v10216_v13, 16 }
 0x407   : > { %v5970_v14 = vor.u32 %v5968_v44, %v5967_v29  ;;  %v5470_v30 = vadd.f32 %v10421_v24, %v14884_v34  ;;  %v10423_v49 = vpop.f32.mrb[41].mxu0  ;;  %v14947_v61 = vpop.f32.mrb[103].mxu1  ;;  %10846 = vmatprep.subr.bf16.mxu1 %v11557_v59  ;;  %v11561_v50 = vld [vmem:[%s16152_s5 + $0x1e8] sm:$0xff]   ;;  %v5971_v16 = vrot.slane %v5967_v29, 4  ;;  %v6697_v12 = vshll.u32 %v14927_v46, 16 }
 0x408   : > { %16443 = vst [vmem:[#allocation39_spill] sm:$0xff] %v14935_v31  ;;  %v5975_v63 = vrot.slane %v5973_v27, 7  ;;  %v10217_v17 = vpack.c.bf16 %v5724_v60, %v5724_v60  ;;  %8710 = vmatprep.mubr.bf16.mxu1 %v14935_v31  ;;  %v10425_v9 = vpop.f32.mrb[42].mxu0  ;;  %v6253_v34 = vld [vmem:[#allocation3 + $0x44] sm:$0x1]  ;;  %v6695_v59 = vshrl.u32 %v14927_v46, 16  ;;  %v10424_v41 = vadd.f32 %v10423_v49, %v10422_v26 }
 0x409   : > { %v6250_v44 = vsel %vm14779_vm8, %v5970_v14, %v6249_v8  ;;  %v5631_v13 = vadd.f32 %v14803_v37, %v5470_v30  ;;  %v6704_v48 = vrot.slane %v6702_v39, 1  ;;  %v10426_v52 = vpop.f32.mrb[43].mxu0  ;;  %v6383_v60 = vld [vmem:[#allocation3 + $0x18] sm:$0xe]  ;;  %v11564_v31 = vld [vmem:[%s16152_s5 + $0x1a8] sm:$0xff]   ;;  %v6699_v14 = vrot.slane %v6697_v12, 1 }
 0x40a   : > { %6251 = vst [vmem:[#allocation3 + $0x3c] sm:$0xf] %v6250_v44  ;;  %v5978_v36 = vor.u32 %v5976_v28, %v5975_v63  ;;  %v5980_v29 = vrot.slane %v5975_v63, 4  ;;  %v5982_v24 = vshrl.u32 %v10217_v17, 16  ;;  %v5985_v27 = vshll.u32 %v10217_v17, 16  ;;  %10847 = vmatpush3.bf16.msra.mxu1 %v11558_v40  ;;  %v11567_v39 = vld [vmem:[%s16152_s5 + $0x1f0] sm:$0xff]  }
 0x40b   : > { %v5725_v8 = vmax.f32 %v5631_v13, 0.0  ;;  %v9989_v37 = vcombine.low %v6383_v60, %v14909_v7  ;;  %v14962_v30 = vld [vmem:[#allocation3 + $0x28] sm:$0xf]  ;;  %10848 = vmatprep.subr.bf16.mxu1 %v11561_v50  ;;  %v6933_v17 = vrot.slane %v14905_v4, 1  ;;  %v14974_v26 = vpop.f32.mrb[104].mxu1  ;;  %v6700_v50 = vor.u32 %v6699_v14, %v6695_v59 }
 0x40c   : > { %v5979_v40 = vsel %vm13513_vm4, %v5971_v16, %v5978_v36  ;;  %v6254_v28 = vsel %vm14789_vm10, %v5980_v29, %v6253_v34  ;;  %v14971_v63 = vrot.slane %v5982_v24, 7  ;;  %v14976_v7 = vld [vmem:[#allocation3 + $0x2c] ss:$0 sps:$4 sm:$0x11]   ;;  %v5475_v12 = vadd.f32 %v10424_v41, %v5314_v58  ;;  %v6339_v13 = vld [vmem:[#allocation3 + $0x24] sm:$0xf] }
 0x40d   : > { %6252 = vst [vmem:[#allocation3 + $0x40] sm:$0xf] %v5979_v40  ;;  %6255 = vst [vmem:[#allocation3 + $0x44] sm:$0x1] %v6254_v28  ;;  %v10218_v49 = vpack.c.bf16 %v5725_v8, %v5725_v8  ;;  %v6932_v44 = vrot.slane %v9989_v37, 1  ;;  %v14978_v60 = vpop.f32.mrb[105].mxu1  ;;  %v5322_v16 = vadd.f32 %v14604_v6, %v14756_v45  ;;  %v10427_v36 = vadd.f32 %v10426_v52, %v10425_v9 }
 0x40e   : > { %v5987_v34 = vor.u32 %v5985_v27, %v14971_v63  ;;  %v14984_v4 = vcombine.low %v6339_v13, %v14962_v30  ;;  %v10428_v29 = vpop.f32.mrb[44].mxu0  ;;  %v14986_v24 = vpop.f32.mrb[106].mxu1  ;;  %10849 = vmatpush3.bf16.msra.mxu1 %v11564_v31  ;;  %v11568_v41 = vld [vmem:[%s16152_s5 + $0x1b0] sm:$0xff]   ;;  %v14993_v58 = vadd.f32 %v14606_v25, %v14756_v45  ;;  %v6705_v6 = vsel %vm602_vm1, %v6700_v50, %v6704_v48  ;;  %v6404_v52 = vld [vmem:[#allocation3 + $0x34] sm:$0xf]  ;;  %v11571_v31 = vld [vmem:[%s16152_s5 + $0x1f8] sm:$0xff]  }
 0x40f   : > { %16444 = vst [vmem:[#allocation7_spill] sm:$0xff] %v14986_v24  ;;  %v5990_v59 = vshrl.u32 %v10218_v49, 16  ;;  %v5636_v9 = vadd.f32 %v14822_v15, %v5475_v12  ;;  %v10429_v27 = vpop.f32.mrb[45].mxu0  ;;  %v14997_v8 = vpop.f32.mrb[107].mxu1  ;;  %10850 = vmatprep.subr.bf16.mxu1 %v11567_v39  ;;  %v5993_v37 = vshll.u32 %v10218_v49, 16  ;;  %8549 = vmatprep.mubr.bf16.mxu0 %v6705_v6  ;;  %v6934_v25 = vsel %vm875_vm0, %v6932_v44, %v6933_v17 }
 0x410   : > { %v6257_v14 = vsel %vm14779_vm8, %v5987_v34, %v6256_v21  ;;  %v5478_v48 = vadd.f32 %v10427_v36, %v14944_v38  ;;  %v6403_v40 = vld [vmem:[#allocation3 + $0x30] sm:$0xf]  ;;  %v10431_v15 = vpop.f32.mrb[46].mxu0  ;;  %8550 = vmatmul.mubr.bf16.gmra.mrb[88].mxu0 %v14927_v46  ;;  %8711 = vmatmul.mubr.bf16.gmra.mrb[120].mxu1 %v6934_v25  ;;  %v6709_v39 = vshll.u32 %v14984_v4, 16  ;;  %v6714_v12 = vshll.u32 %v14976_v7, 16  ;;  %v11573_v21 = vld [vmem:[%s16152_s5 + $0x200] sm:$0xff]  }
 0x411   : > { %6258 = vst [vmem:[#allocation3 + $0x48] sm:$0xf] %v6257_v14  ;;  %v5992_v28 = vrot.slane %v5990_v59, 7  ;;  %v5726_v50 = vmax.f32 %v5636_v9, 0.0  ;;  %v10432_v13 = vpop.f32.mrb[47].mxu0  ;;  %v5988_v17 = vrot.slane %v14971_v63, 4  ;;  %v15014_v44 = vcombine.low %v6403_v40, %v6404_v52  ;;  %11052 = vmatprep.subr.bf16.mxu0 %v11573_v21 }
 0x412   : > { %v6260_v38 = vld [vmem:[#allocation3 + $0x50] sm:$0x1]  ;;  %v5639_v49 = vadd.f32 %v14842_v51, %v5478_v48  ;;  %v10430_v34 = vadd.f32 %v10429_v27, %v10428_v29  ;;  %10851 = vmatpush3.bf16.msra.mxu1 %v11568_v41  ;;  %v11572_v46 = vld [vmem:[%s16152_s5 + $0x1b8] sm:$0xff]   ;;  %v6711_v9 = vrot.slane %v6709_v39, 1  ;;  %v6707_v63 = vshrl.u32 %v14984_v4, 16  ;;  %v15023_v41 = vpop.f32.mrb[108].mxu1 }
 0x413   : > { %16445 = vst [vmem:[#allocation17_spill] sm:$0xff] %v15014_v44  ;;  %v5995_v36 = vor.u32 %v5993_v37, %v5992_v28  ;;  %v5997_v59 = vrot.slane %v5992_v28, 4  ;;  %v10219_v6 = vpack.c.bf16 %v5726_v50, %v5726_v50  ;;  %v6384_v14 = vld [vmem:[#allocation3 + $0x24] sm:$0xe]  ;;  %10852 = vmatprep.subr.bf16.mxu1 %v11571_v31  ;;  %v6716_v24 = vrot.slane %v6714_v12, 1  ;;  %8718 = vmatprep.mubr.bf16.mxu1 %v15014_v44  ;;  %v15033_v21 = vpop.f32.mrb[109].mxu1 }
 0x414   : > { %v5727_v25 = vmax.f32 %v5639_v49, 0.0  ;;  %v5483_v51 = vadd.f32 %v10430_v34, %v5322_v16  ;;  %v15021_v29 = vld [vmem:[#allocation3 + $0x34] sm:$0xf]  ;;  %v6341_v48 = vld [vmem:[#allocation3 + $0x30] sm:$0xf]  ;;  %v6712_v28 = vor.u32 %v6711_v9, %v6707_v63  ;;  %v9990_v16 = vcombine.low %v6384_v14, %v14962_v30 }
 0x415   : > { %v5996_v52 = vsel %vm13513_vm4, %v5988_v17, %v5995_v36  ;;  %v6261_v27 = vsel %vm14789_vm10, %v5997_v59, %v6260_v38  ;;  %v5999_v37 = vshrl.u32 %v10219_v6, 16  ;;  %v6002_v31 = vshll.u32 %v10219_v6, 16  ;;  %v15031_v39 = vld [vmem:[#allocation3 + $0x38] ss:$0 sps:$4 sm:$0x11]   ;;  %v15039_v59 = vpop.f32.mrb[110].mxu1 }
 0x416   : > { %6259 = vst [vmem:[#allocation3 + $0x4c] sm:$0xf] %v5996_v52  ;;  %6262 = vst [vmem:[#allocation3 + $0x50] sm:$0x1] %v6261_v27  ;;  %v10220_v40 = vpack.c.bf16 %v5727_v25, %v5727_v25  ;;  %v5644_v50 = vadd.f32 %v14818_v2, %v5483_v51  ;;  %v10434_v12 = vpop.f32.mrb[48].mxu0  ;;  %10853 = vmatpush3.bf16.msra.mxu1 %v11572_v46  ;;  %v6936_v38 = vrot.slane %v14976_v7, 1 }
 0x417   : > { %v6001_v17 = vrot.slane %v5999_v37, 7  ;;  %v10433_v49 = vadd.f32 %v10432_v13, %v10431_v15  ;;  %v15037_v34 = vcombine.low %v6341_v48, %v15021_v29  ;;  %v10435_v36 = vpop.f32.mrb[49].mxu0  ;;  %v5330_v2 = vadd.f32 %v14638_v19, %v14756_v45  ;;  %v6263_v30 = vld [vmem:[#allocation3 + $0x54] sm:$0xf]  ;;  %v15049_v51 = vpop.f32.mrb[111].mxu1 }
 0x418   : > { %v6007_v6 = vshrl.u32 %v10220_v40, 16  ;;  %v6717_v9 = vsel %vm602_vm1, %v6712_v28, %v6716_v24  ;;  %v5728_v14 = vmax.f32 %v5644_v50, 0.0  ;;  %v10437_v25 = vpop.f32.mrb[50].mxu0  ;;  %v15046_v46 = vadd.f32 %v14640_v22, %v14756_v45  ;;  %v6406_v37 = vld [vmem:[#allocation3 + $0x40] sm:$0xf] }
 0x419   : > { %v6004_v7 = vor.u32 %v6002_v31, %v6001_v17  ;;  %8557 = vmatprep.mubr.bf16.mxu0 %v6717_v9  ;;  %v6935_v15 = vrot.slane %v9990_v16, 1  ;;  %v5486_v13 = vadd.f32 %v10433_v49, %v14993_v58  ;;  %v10438_v63 = vpop.f32.mrb[51].mxu0  ;;  %v6010_v19 = vshll.u32 %v10220_v40, 16  ;;  %v6267_v48 = vld [vmem:[#allocation3 + $0x5c] sm:$0x1] }
 0x41a   : > { %v6009_v52 = vrot.slane %v6007_v6, 7  ;;  %v10221_v27 = vpack.c.bf16 %v5728_v14, %v5728_v14  ;;  %8558 = vmatmul.mubr.bf16.gmra.mrb[92].mxu0 %v14984_v4  ;;  %v6721_v24 = vshll.u32 %v15037_v34, 16  ;;  %v6726_v58 = vshll.u32 %v15031_v39, 16  ;;  %v6405_v50 = vld [vmem:[#allocation3 + $0x3c] sm:$0xf] }
 0x41b   : > { %v6264_v22 = vsel %vm14779_vm8, %v6004_v7, %v6263_v30  ;;  %v6937_v31 = vsel %vm875_vm0, %v6935_v15, %v6936_v38  ;;  %v5647_v28 = vadd.f32 %v14833_v10, %v5486_v13  ;;  %v6005_v16 = vrot.slane %v6001_v17, 4  ;;  %v6270_v4 = vld [vmem:[#allocation3 + $0x60] sm:$0xf]  ;;  %v6385_v7 = vld [vmem:[#allocation3 + $0x30] sm:$0xe] }
 0x41c   : > { %6265 = vst [vmem:[#allocation3 + $0x54] sm:$0xf] %v6264_v22  ;;  %v6012_v40 = vor.u32 %v6010_v19, %v6009_v52  ;;  %v6014_v49 = vrot.slane %v6009_v52, 4  ;;  %v6016_v6 = vshrl.u32 %v10221_v27, 16  ;;  %8719 = vmatmul.mubr.bf16.gmra.mrb[124].mxu1 %v6937_v31  ;;  %v6719_v14 = vshrl.u32 %v15037_v34, 16 }
 0x41d   : > { %v5729_v9 = vmax.f32 %v5647_v28, 0.0  ;;  %v6723_v44 = vrot.slane %v6721_v24, 1  ;;  %v15059_v30 = vcombine.low %v6405_v50, %v6406_v37  ;;  %v15061_v38 = vld [vmem:[#allocation3 + $0x40] sm:$0xf]  ;;  %v6019_v13 = vshll.u32 %v10221_v27, 16 }
 0x41e   : > { %v6013_v10 = vsel %vm13513_vm4, %v6005_v16, %v6012_v40  ;;  %v6268_v17 = vsel %vm14789_vm10, %v6014_v49, %v6267_v48  ;;  %v6018_v15 = vrot.slane %v6016_v6, 7  ;;  %v10440_v52 = vpop.f32.mrb[52].mxu0  ;;  %v6728_v31 = vrot.slane %v6726_v58, 1  ;;  %v15068_v37 = vld [vmem:[#allocation3 + $0x44] ss:$0 sps:$4 sm:$0x11]  }
 0x41f   : > { %6266 = vst [vmem:[#allocation3 + $0x58] sm:$0xf] %v6013_v10  ;;  %6269 = vst [vmem:[#allocation3 + $0x5c] sm:$0x1] %v6268_v17  ;;  %v10222_v19 = vpack.c.bf16 %v5729_v9, %v5729_v9  ;;  %v6724_v22 = vor.u32 %v6723_v44, %v6719_v14  ;;  %8726 = vmatprep.mubr.bf16.mxu1 %v15059_v30  ;;  %v10436_v24 = vadd.f32 %v10435_v36, %v10434_v12  ;;  %v10441_v28 = vpop.f32.mrb[53].mxu0 }
 0x420   : > { %v5338_v50 = vadd.f32 %v14658_v32, %v14756_v45  ;;  %v6021_v16 = vor.u32 %v6019_v13, %v6018_v15  ;;  %v9991_v48 = vcombine.low %v6385_v7, %v15021_v29  ;;  %v6939_v27 = vrot.slane %v15031_v39, 1  ;;  %v6408_v40 = vld [vmem:[#allocation3 + $0x4c] sm:$0xf]  ;;  %v10443_v49 = vpop.f32.mrb[54].mxu0  ;;  %v6343_v14 = vld [vmem:[#allocation3 + $0x3c] sm:$0xf] }
 0x421   : > { %v6024_v6 = vshrl.u32 %v10222_v19, 16  ;;  %v6027_v9 = vshll.u32 %v10222_v19, 16  ;;  %v6729_v44 = vsel %vm602_vm1, %v6724_v22, %v6728_v31  ;;  %v5491_v58 = vadd.f32 %v10436_v24, %v5330_v2  ;;  %v10444_v12 = vpop.f32.mrb[55].mxu0  ;;  %v6407_v29 = vld [vmem:[#allocation3 + $0x48] sm:$0xf] }
 0x422   : > { %v6271_v36 = vsel %vm14779_vm8, %v6021_v16, %v6270_v4  ;;  %8565 = vmatprep.mubr.bf16.mxu0 %v6729_v44  ;;  %v6938_v10 = vrot.slane %v9991_v48, 1  ;;  %v10439_v32 = vadd.f32 %v10438_v63, %v10437_v25  ;;  %v9960_v17 = vcombine.low %v6343_v14, %v15061_v38  ;;  %v6274_v4 = vld [vmem:[#allocation3 + $0x68] sm:$0x1]  ;;  %v6386_v44 = vld [vmem:[#allocation3 + $0x3c] sm:$0xe] }
 0x423   : > { %6272 = vst [vmem:[#allocation3 + $0x60] sm:$0xf] %v6271_v36  ;;  %v6026_v39 = vrot.slane %v6024_v6, 7  ;;  %v5652_v7 = vadd.f32 %v14876_v33, %v5491_v58  ;;  %8566 = vmatmul.mubr.bf16.gmra.mrb[96].mxu0 %v15037_v34  ;;  %v6738_v13 = vshll.u32 %v15068_v37, 16  ;;  %v15081_v2 = vcombine.low %v6407_v29, %v6408_v40  ;;  %v15095_v58 = vld [vmem:[#allocation3 + $0x4c] sm:$0xf] }
 0x424   : > { %v5341_v19 = vadd.f32 %v14663_v20, %v14756_v45  ;;  %v6940_v22 = vsel %vm875_vm0, %v6938_v10, %v6939_v27  ;;  %v5494_v25 = vadd.f32 %v10439_v32, %v15046_v46  ;;  %v6733_v63 = vshll.u32 %v9960_v17, 16  ;;  %v15099_v29 = vld [vmem:[#allocation3 + $0x50] ss:$0 sps:$4 sm:$0x11]   ;;  %v6463_v35 = vld [vmem:[#allocation3 + $0x1c] sm:$0xf] }
 0x425   : > { %v6022_v31 = vrot.slane %v6018_v15, 4  ;;  %v6029_v24 = vor.u32 %v6027_v9, %v6026_v39  ;;  %v6031_v16 = vrot.slane %v6026_v39, 4  ;;  %v5730_v48 = vmax.f32 %v5652_v7, 0.0  ;;  %8727 = vmatmul.mubr.bf16.gmra.mrb[128].mxu1 %v6940_v22 }
 0x426   : > { %v5655_v33 = vadd.f32 %v14893_v55, %v5494_v25  ;;  %v6731_v34 = vshrl.u32 %v9960_v17, 16  ;;  %v6735_v6 = vrot.slane %v6733_v63, 1  ;;  %v6740_v40 = vrot.slane %v6738_v13, 1  ;;  %8734 = vmatprep.mubr.bf16.mxu1 %v15081_v2  ;;  %v15089_v20 = vpop.f32.mrb[56].mxu0 }
 0x427   : > { %v6030_v27 = vsel %vm13513_vm4, %v6022_v31, %v6029_v24  ;;  %v6275_v46 = vsel %vm14789_vm10, %v6031_v16, %v6274_v4  ;;  %v10223_v15 = vpack.c.bf16 %v5730_v48, %v5730_v48  ;;  %v10442_v9 = vadd.f32 %v10441_v28, %v10440_v52  ;;  %v10447_v14 = vpop.f32.mrb[57].mxu0  ;;  %v6345_v4 = vld [vmem:[#allocation3 + $0x48] sm:$0xf] }
 0x428   : > { %6273 = vst [vmem:[#allocation3 + $0x64] sm:$0xf] %v6030_v27  ;;  %6276 = vst [vmem:[#allocation3 + $0x68] sm:$0x1] %v6275_v46  ;;  %v5731_v55 = vmax.f32 %v5655_v33, 0.0  ;;  %v6736_v36 = vor.u32 %v6735_v6, %v6731_v34  ;;  %v9992_v10 = vcombine.low %v6386_v44, %v15061_v38  ;;  %v6942_v32 = vrot.slane %v15068_v37, 1 }
 0x429   : > { %v15101_v39 = vpop.f32.mrb[58].mxu0  ;;  %v15105_v7 = vadd.f32 %v14700_v23, %v14756_v45  ;;  %v6033_v52 = vshrl.u32 %v10223_v15, 16  ;;  %v5499_v28 = vadd.f32 %v10442_v9, %v5338_v50  ;;  %v10445_v13 = vadd.f32 %v10444_v12, %v10443_v49  ;;  %v6410_v45 = vld [vmem:[#allocation3 + $0x58] sm:$0xf]  ;;  %v15117_v50 = vld [vmem:[%s16151_s4] ss:$0 sm:$0xff] }
 0x42a   : > { %v15107_v22 = vpop.f32.mrb[59].mxu0  ;;  %v10224_v25 = vpack.c.bf16 %v5731_v55, %v5731_v55  ;;  %v6741_v63 = vsel %vm602_vm1, %v6736_v36, %v6740_v40  ;;  %v6941_v38 = vrot.slane %v9992_v10, 1  ;;  %v15111_v37 = vcombine.low %v6345_v4, %v15095_v58  ;;  %v6277_v12 = vld [vmem:[#allocation3 + $0x6c] sm:$0xf]  ;;  %v6409_v44 = vld [vmem:[#allocation3 + $0x54] sm:$0xf] }
 0x42b   : > { %v6035_v31 = vrot.slane %v6033_v52, 7  ;;  %v6036_v24 = vshll.u32 %v10223_v15, 16  ;;  %8573 = vmatprep.mubr.bf16.mxu0 %v6741_v63  ;;  %v5660_v16 = vadd.f32 %v14871_v0, %v5499_v28  ;;  %v5502_v23 = vadd.f32 %v10445_v13, %v5341_v19  ;;  %v6281_v36 = vld [vmem:[#allocation3 + $0x74] sm:$0x1] }
 0x42c   : > { %v15121_v49 = vadd.f32 %v15117_v50, %v14706_v62  ;;  %v6041_v48 = vshrl.u32 %v10224_v25, 16  ;;  %8574 = vmatmul.mubr.bf16.gmra.mrb[100].mxu0 %v9960_v17  ;;  %v6943_v33 = vsel %vm875_vm0, %v6941_v38, %v6942_v32  ;;  %v6750_v34 = vshll.u32 %v15099_v29, 16 }
 0x42d   : > { %v6038_v6 = vor.u32 %v6036_v24, %v6035_v31  ;;  %v6044_v0 = vshll.u32 %v10224_v25, 16  ;;  %v5732_v19 = vmax.f32 %v5660_v16, 0.0  ;;  %8735 = vmatmul.mubr.bf16.gmra.mrb[132].mxu1 %v6943_v33  ;;  %v5663_v40 = vadd.f32 %v14887_v56, %v5502_v23  ;;  %v6387_v16 = vld [vmem:[#allocation3 + $0x48] sm:$0xe] }
 0x42e   : > { %v6043_v27 = vrot.slane %v6041_v48, 7  ;;  %v6743_v46 = vshrl.u32 %v15111_v37, 16  ;;  %v6745_v62 = vshll.u32 %v15111_v37, 16  ;;  %v15128_v15 = vcombine.low %v6409_v44, %v6410_v45  ;;  %v15130_v9 = vpop.f32.mrb[60].mxu0 }
 0x42f   : > { %v6039_v17 = vrot.slane %v6035_v31, 4  ;;  %v6278_v55 = vsel %vm14779_vm8, %v6038_v6, %v6277_v12  ;;  %v10225_v10 = vpack.c.bf16 %v5732_v19, %v5732_v19  ;;  %v5733_v32 = vmax.f32 %v5663_v40, 0.0  ;;  %v15134_v52 = vpop.f32.mrb[61].mxu0  ;;  %v6284_v40 = vld [vmem:[#allocation3 + $0x78] sm:$0xf] }
 0x430   : > { %6279 = vst [vmem:[#allocation3 + $0x6c] sm:$0xf] %v6278_v55  ;;  %v6046_v56 = vor.u32 %v6044_v0, %v6043_v27  ;;  %v6048_v28 = vrot.slane %v6043_v27, 4  ;;  %v6747_v13 = vrot.slane %v6745_v62, 1  ;;  %v6752_v4 = vrot.slane %v6750_v34, 1  ;;  %8742 = vmatprep.mubr.bf16.mxu1 %v15128_v15  ;;  %v15137_v25 = vpop.f32.mrb[62].mxu0 }
 0x431   : > { %v6050_v63 = vshrl.u32 %v10225_v10, 16  ;;  %v6053_v38 = vshll.u32 %v10225_v10, 16  ;;  %v10226_v31 = vpack.c.bf16 %v5733_v32, %v5733_v32  ;;  %v10448_v24 = vadd.f32 %v10447_v14, %v15089_v20  ;;  %v15140_v23 = vpop.f32.mrb[63].mxu0  ;;  %v15147_v34 = vld [vmem:[#allocation3 + $0x5c] ss:$0 sps:$4 sm:$0x11]  }
 0x432   : > { %v6047_v45 = vsel %vm13513_vm4, %v6039_v17, %v6046_v56  ;;  %v6282_v12 = vsel %vm14789_vm10, %v6048_v28, %v6281_v36  ;;  %v6748_v48 = vor.u32 %v6747_v13, %v6743_v46  ;;  %v9993_v33 = vcombine.low %v6387_v16, %v15095_v58  ;;  %v6348_v14 = vld [vmem:[#allocation3 + $0x58] sm:$0xf]  ;;  %v6347_v58 = vld [vmem:[#allocation3 + $0x54] sm:$0xf]  ;;  %v6288_v32 = vld [vmem:[#allocation3 + $0x80] sm:$0x1] }
 0x433   : > { %6280 = vst [vmem:[#allocation3 + $0x70] sm:$0xf] %v6047_v45  ;;  %6283 = vst [vmem:[#allocation3 + $0x74] sm:$0x1] %v6282_v12  ;;  %v6052_v6 = vrot.slane %v6050_v63, 7  ;;  %v6058_v0 = vshrl.u32 %v10226_v31, 16  ;;  %v5507_v20 = vadd.f32 %v10448_v24, %v15105_v7  ;;  %v10451_v46 = vadd.f32 %v15107_v22, %v15101_v39 }
 0x434   : > { %v6061_v19 = vshll.u32 %v10226_v31, 16  ;;  %v6753_v44 = vsel %vm602_vm1, %v6748_v48, %v6752_v4  ;;  %v6944_v27 = vrot.slane %v9993_v33, 1  ;;  %v6945_v62 = vrot.slane %v15099_v29, 1  ;;  %v6412_v13 = vld [vmem:[#allocation3 + $0x64] sm:$0xf] }
 0x435   : > { %v6055_v17 = vor.u32 %v6053_v38, %v6052_v6  ;;  %v6056_v55 = vrot.slane %v6052_v6, 4  ;;  %v6060_v36 = vrot.slane %v6058_v0, 7  ;;  %8581 = vmatprep.mubr.bf16.mxu0 %v6753_v44  ;;  %v5668_v10 = vadd.f32 %v14930_v11, %v5507_v20  ;;  %v6411_v24 = vld [vmem:[#allocation3 + $0x60] sm:$0xf]  ;;  %v15180_v20 = vld [vmem:[#allocation3 + $0x64] sm:$0xf] }
 0x436   : > { %8582 = vmatmul.mubr.bf16.gmra.mrb[104].mxu0 %v15111_v37  ;;  %v6946_v7 = vsel %vm875_vm0, %v6944_v27, %v6945_v62  ;;  %v5510_v56 = vadd.f32 %v10451_v46, %v15121_v49  ;;  %v9962_v28 = vcombine.low %v6347_v58, %v6348_v14  ;;  %v6762_v29 = vshll.u32 %v15147_v34, 16  ;;  %v15159_v4 = vpop.f32.mrb[64].mxu0  ;;  %v6291_v58 = vld [vmem:[#allocation3 + $0x84] sm:$0xf] }
 0x437   : > { %v6285_v39 = vsel %vm14779_vm8, %v6055_v17, %v6284_v40  ;;  %v6063_v22 = vor.u32 %v6061_v19, %v6060_v36  ;;  %v6065_v63 = vrot.slane %v6060_v36, 4  ;;  %v5734_v38 = vmax.f32 %v5668_v10, 0.0  ;;  %8743 = vmatmul.mubr.bf16.gmra.mrb[136].mxu1 %v6946_v7  ;;  %v15168_v16 = vpop.f32.mrb[65].mxu0 }
 0x438   : > { %v5354_v11 = vadd.f32 %v15117_v50, %v14708_v53  ;;  %v5357_v37 = vadd.f32 %v15117_v50, %v14713_v54  ;;  %6286 = vst [vmem:[#allocation3 + $0x78] sm:$0xf] %v6285_v39  ;;  %v5671_v49 = vadd.f32 %v14947_v61, %v5510_v56  ;;  %v6757_v31 = vshll.u32 %v9962_v28, 16  ;;  %v6388_v53 = vld [vmem:[#allocation3 + $0x54] sm:$0xe]  ;;  %v15176_v6 = vpop.f32.mrb[66].mxu0 }
 0x439   : > { %v6064_v45 = vsel %vm13513_vm4, %v6056_v55, %v6063_v22  ;;  %v6289_v12 = vsel %vm14789_vm10, %v6065_v63, %v6288_v32  ;;  %v10227_v48 = vpack.c.bf16 %v5734_v38, %v5734_v38  ;;  %v15174_v33 = vcombine.low %v6411_v24, %v6412_v13  ;;  %v15182_v40 = vpop.f32.mrb[67].mxu0  ;;  %v6349_v32 = vld [vmem:[#allocation3 + $0x60] sm:$0xf]  ;;  %v15191_v13 = vld [vmem:[#allocation3 + $0x68] ss:$0 sps:$4 sm:$0x11]  }
 0x43a   : > { %6287 = vst [vmem:[#allocation3 + $0x7c] sm:$0xf] %v6064_v45  ;;  %6290 = vst [vmem:[#allocation3 + $0x80] sm:$0x1] %v6289_v12  ;;  %v5735_v54 = vmax.f32 %v5671_v49, 0.0  ;;  %v6755_v61 = vshrl.u32 %v9962_v28, 16  ;;  %v10454_v19 = vadd.f32 %v15134_v52, %v15130_v9  ;;  %v9994_v46 = vcombine.low %v6388_v53, %v6348_v14 }
 0x43b   : > { %v6759_v0 = vrot.slane %v6757_v31, 1  ;;  %v6067_v44 = vshrl.u32 %v10227_v48, 16  ;;  %v6070_v27 = vshll.u32 %v10227_v48, 16  ;;  %v6764_v62 = vrot.slane %v6762_v29, 1  ;;  %8750 = vmatprep.mubr.bf16.mxu1 %v15174_v33  ;;  %v6413_v49 = vld [vmem:[#allocation3 + $0x6c] sm:$0xf] }
 0x43c   : > { %v10228_v17 = vpack.c.bf16 %v5735_v54, %v5735_v54  ;;  %v5515_v36 = vadd.f32 %v10454_v19, %v5354_v11  ;;  %v6948_v10 = vrot.slane %v15147_v34, 1  ;;  %v6947_v56 = vrot.slane %v9994_v46, 1  ;;  %v6414_v34 = vld [vmem:[#allocation3 + $0x70] sm:$0xf]  ;;  %v6295_v53 = vld [vmem:[#allocation3 + $0x8c] sm:$0x1] }
 0x43d   : > { %v6760_v55 = vor.u32 %v6759_v0, %v6755_v61  ;;  %v6069_v7 = vrot.slane %v6067_v44, 7  ;;  %v10457_v9 = vadd.f32 %v15140_v23, %v15137_v25  ;;  %v15189_v52 = vcombine.low %v6349_v32, %v15180_v20 }
 0x43e   : > { %v5362_v14 = vadd.f32 %v15117_v50, %v14721_v3  ;;  %v6075_v29 = vshrl.u32 %v10228_v17, 16  ;;  %v5676_v22 = vadd.f32 %v14924_v5, %v5515_v36  ;;  %v15197_v63 = vpop.f32.mrb[68].mxu0  ;;  %v6078_v11 = vshll.u32 %v10228_v17, 16 }
 0x43f   : > { %v6765_v39 = vsel %vm602_vm1, %v6760_v55, %v6764_v62  ;;  %v6072_v38 = vor.u32 %v6070_v27, %v6069_v7  ;;  %v6949_v25 = vsel %vm875_vm0, %v6947_v56, %v6948_v10  ;;  %v5518_v23 = vadd.f32 %v10457_v9, %v5357_v37  ;;  %v15200_v31 = vpop.f32.mrb[69].mxu0 }
 0x440   : > { %8589 = vmatprep.mubr.bf16.mxu0 %v6765_v39  ;;  %v6073_v24 = vrot.slane %v6069_v7, 4  ;;  %v6077_v45 = vrot.slane %v6075_v29, 7  ;;  %v5736_v3 = vmax.f32 %v5676_v22, 0.0  ;;  %8751 = vmatmul.mubr.bf16.gmra.mrb[140].mxu1 %v6949_v25  ;;  %v6769_v12 = vshll.u32 %v15189_v52, 16  ;;  %v15203_v5 = vpop.f32.mrb[70].mxu0 }
 0x441   : > { %8590 = vmatmul.mubr.bf16.gmra.mrb[108].mxu0 %v9962_v28  ;;  %v6292_v48 = vsel %vm14779_vm8, %v6072_v38, %v6291_v58  ;;  %v5679_v54 = vadd.f32 %v14937_v47, %v5518_v23  ;;  %v6774_v37 = vshll.u32 %v15191_v13, 16  ;;  %v15209_v61 = vcombine.low %v6413_v49, %v6414_v34  ;;  %v15211_v0 = vpop.f32.mrb[71].mxu0  ;;  %v15217_v47 = vld [vmem:[#allocation3 + $0x70] sm:$0xf]  ;;  %v6389_v7 = vld [vmem:[#allocation3 + $0x60] sm:$0xe] }
 0x442   : > { %6293 = vst [vmem:[#allocation3 + $0x84] sm:$0xf] %v6292_v48  ;;  %v6080_v19 = vor.u32 %v6078_v11, %v6077_v45  ;;  %v6082_v28 = vrot.slane %v6077_v45, 4  ;;  %v10229_v44 = vpack.c.bf16 %v5736_v3, %v5736_v3  ;;  %v6771_v27 = vrot.slane %v6769_v12, 1  ;;  %v6351_v39 = vld [vmem:[#allocation3 + $0x6c] sm:$0xf] }
 0x443   : > { %v5365_v62 = vadd.f32 %v15117_v50, %v14723_v1  ;;  %v5737_v46 = vmax.f32 %v5679_v54, 0.0  ;;  %v6767_v58 = vshrl.u32 %v15189_v52, 16  ;;  %v6776_v17 = vrot.slane %v6774_v37, 1  ;;  %8758 = vmatprep.mubr.bf16.mxu1 %v15209_v61  ;;  %v15232_v25 = vld [vmem:[#allocation3 + $0x74] ss:$0 sps:$4 sm:$0x11]  }
 0x444   : > { %v6081_v55 = vsel %vm13513_vm4, %v6073_v24, %v6080_v19  ;;  %v6296_v36 = vsel %vm14789_vm10, %v6082_v28, %v6295_v53  ;;  %v6084_v10 = vshrl.u32 %v10229_v44, 16  ;;  %v6087_v32 = vshll.u32 %v10229_v44, 16  ;;  %v6298_v49 = vld [vmem:[#allocation3 + $0x90] sm:$0xf]  ;;  %v6416_v19 = vld [vmem:[#allocation3 + $0x7c] sm:$0xf] }
 0x445   : > { %6294 = vst [vmem:[#allocation3 + $0x88] sm:$0xf] %v6081_v55  ;;  %6297 = vst [vmem:[#allocation3 + $0x8c] sm:$0x1] %v6296_v36  ;;  %v10230_v1 = vpack.c.bf16 %v5737_v46, %v5737_v46  ;;  %v6772_v56 = vor.u32 %v6771_v27, %v6767_v58  ;;  %v10460_v9 = vadd.f32 %v15168_v16, %v15159_v4  ;;  %v6951_v34 = vrot.slane %v15191_v13, 1 }
 0x446   : > { %v9995_v29 = vcombine.low %v6389_v7, %v15180_v20  ;;  %v6086_v22 = vrot.slane %v6084_v10, 7  ;;  %v10463_v38 = vadd.f32 %v15182_v40, %v15176_v6  ;;  %v15230_v11 = vcombine.low %v6351_v39, %v15217_v47  ;;  %v15234_v23 = vpop.f32.mrb[72].mxu0  ;;  %v6302_v44 = vld [vmem:[#allocation3 + $0x98] sm:$0x1]  ;;  %v15260_v39 = vld [vmem:[#allocation3 + $0x7c] sm:$0xf] }
 0x447   : > { %v6092_v24 = vshrl.u32 %v10230_v1, 16  ;;  %v6095_v45 = vshll.u32 %v10230_v1, 16  ;;  %v6777_v4 = vsel %vm602_vm1, %v6772_v56, %v6776_v17  ;;  %v5523_v16 = vadd.f32 %v10460_v9, %v5362_v14  ;;  %v15237_v20 = vpop.f32.mrb[73].mxu0  ;;  %v6415_v55 = vld [vmem:[#allocation3 + $0x78] sm:$0xf] }
 0x448   : > { %v6089_v3 = vor.u32 %v6087_v32, %v6086_v22  ;;  %v6090_v13 = vrot.slane %v6086_v22, 4  ;;  %8597 = vmatprep.mubr.bf16.mxu0 %v6777_v4  ;;  %v6950_v12 = vrot.slane %v9995_v29, 1  ;;  %v5526_v6 = vadd.f32 %v10463_v38, %v5365_v62  ;;  %v15239_v40 = vpop.f32.mrb[74].mxu0  ;;  %v6390_v29 = vld [vmem:[#allocation3 + $0x6c] sm:$0xe]  ;;  %v16446_v4 = vld [vmem:[#allocation32_spill] sm:$0xff] }
 0x449   : > { %v6094_v48 = vrot.slane %v6092_v24, 7  ;;  %v5684_v53 = vadd.f32 %v14978_v60, %v5523_v16  ;;  %8598 = vmatmul.mubr.bf16.gmra.mrb[112].mxu0 %v15189_v52  ;;  %v6779_v54 = vshrl.u32 %v15230_v11, 16  ;;  %v6781_v37 = vshll.u32 %v15230_v11, 16  ;;  %v15245_v14 = vpop.f32.mrb[75].mxu0 }
 0x44a   : > { %v6299_v28 = vsel %vm14779_vm8, %v6089_v3, %v6298_v49  ;;  %v6952_v27 = vsel %vm875_vm0, %v6950_v12, %v6951_v34  ;;  %v5687_v62 = vadd.f32 %v14997_v8, %v5526_v6  ;;  %v6786_v46 = vshll.u32 %v15232_v25, 16  ;;  %v15268_v49 = vld [vmem:[#allocation3 + $0x80] ss:$0 sps:$4 sm:$0x11]  }
 0x44b   : > { %6300 = vst [vmem:[#allocation3 + $0x90] sm:$0xf] %v6299_v28  ;;  %v6097_v60 = vor.u32 %v6095_v45, %v6094_v48  ;;  %v6099_v52 = vrot.slane %v6094_v48, 4  ;;  %v5738_v58 = vmax.f32 %v5684_v53, 0.0  ;;  %8759 = vmatmul.mubr.bf16.gmra.mrb[144].mxu1 %v6952_v27  ;;  %v6783_v17 = vrot.slane %v6781_v37, 1 }
 0x44c   : > { %v5370_v36 = vadd.f32 %v15117_v50, %v14728_v57  ;;  %v5739_v10 = vmax.f32 %v5687_v62, 0.0  ;;  %v6788_v32 = vrot.slane %v6786_v46, 1  ;;  %v15254_v7 = vcombine.low %v6415_v55, %v6416_v19  ;;  %v15270_v24 = vld [vmem:[#allocation3 + $0x88] sm:$0xf]  ;;  %v6353_v48 = vld [vmem:[#allocation3 + $0x78] sm:$0xf] }
 0x44d   : > { %v6098_v1 = vsel %vm13513_vm4, %v6090_v13, %v6097_v60  ;;  %v6303_v8 = vsel %vm14789_vm10, %v6099_v52, %v6302_v44  ;;  %v10231_v56 = vpack.c.bf16 %v5738_v58, %v5738_v58  ;;  %v6784_v9 = vor.u32 %v6783_v17, %v6779_v54  ;;  %v6305_v27 = vld [vmem:[#allocation3 + $0x9c] sm:$0xf] }
 0x44e   : > { %v5373_v22 = vadd.f32 %v15117_v50, %v14730_v43  ;;  %6301 = vst [vmem:[#allocation3 + $0x94] sm:$0xf] %v6098_v1  ;;  %6304 = vst [vmem:[#allocation3 + $0x98] sm:$0x1] %v6303_v8  ;;  %v10232_v57 = vpack.c.bf16 %v5739_v10, %v5739_v10  ;;  %8766 = vmatprep.mubr.bf16.mxu1 %v15254_v7  ;;  %v10466_v34 = vadd.f32 %v15200_v31, %v15197_v63  ;;  %v15272_v45 = vpop.f32.mrb[76].mxu0  ;;  %v16447_v1 = vld [vmem:[#allocation11_spill] sm:$0xff] }
 0x44f   : > { %v9996_v38 = vcombine.low %v6390_v29, %v15217_v47  ;;  %v5378_v16 = vadd.f32 %v15117_v50, %v16446_v4  ;;  %v6101_v43 = vshrl.u32 %v10231_v56, 16  ;;  %v6789_v3 = vsel %vm602_vm1, %v6784_v9, %v6788_v32  ;;  %v15278_v12 = vpop.f32.mrb[77].mxu0 }
 0x450   : > { %v6954_v13 = vrot.slane %v15232_v25, 1  ;;  %v6104_v6 = vshll.u32 %v10231_v56, 16  ;;  %v6109_v63 = vshrl.u32 %v10232_v57, 16  ;;  %8605 = vmatprep.mubr.bf16.mxu0 %v6789_v3  ;;  %v5531_v31 = vadd.f32 %v10466_v34, %v5370_v36  ;;  %v15280_v53 = vpop.f32.mrb[78].mxu0  ;;  %v6417_v25 = vld [vmem:[#allocation3 + $0x84] sm:$0xf] }
 0x451   : > { %v6953_v47 = vrot.slane %v9996_v38, 1  ;;  %v6103_v54 = vrot.slane %v6101_v43, 7  ;;  %v6112_v37 = vshll.u32 %v10232_v57, 16  ;;  %8606 = vmatmul.mubr.bf16.gmra.mrb[116].mxu0 %v15230_v11  ;;  %v10469_v19 = vadd.f32 %v15211_v0, %v15203_v5  ;;  %v15286_v44 = vpop.f32.mrb[79].mxu0  ;;  %v6309_v11 = vld [vmem:[#allocation3 + $0xa4] sm:$0x1] }
 0x452   : > { %v9965_v28 = vcombine.low %v6353_v48, %v15260_v39  ;;  %v6111_v62 = vrot.slane %v6109_v63, 7  ;;  %v5692_v46 = vadd.f32 %v14974_v26, %v5531_v31  ;;  %v15291_v52 = vcombine.low %v6417_v25, %v15270_v24  ;;  %v16448_v56 = vld [vmem:[#allocation7_spill] sm:$0xff]  ;;  %v6391_v57 = vld [vmem:[#allocation3 + $0x78] sm:$0xe]  ;;  %v15304_v43 = vld [vmem:[#allocation3 + $0x88] sm:$0xf] }
 0x453   : > { %v6955_v60 = vsel %vm875_vm0, %v6953_v47, %v6954_v13  ;;  %v6106_v58 = vor.u32 %v6104_v6, %v6103_v54  ;;  %v6107_v17 = vrot.slane %v6103_v54, 4  ;;  %v5534_v55 = vadd.f32 %v10469_v19, %v5373_v22  ;;  %v16449_v3 = vld [vmem:[#allocation35_spill] sm:$0xff]  ;;  %v15313_v47 = vld [vmem:[#allocation3 + $0x8c] ss:$0 sps:$4 sm:$0x11]  }
 0x454   : > { %8767 = vmatmul.mubr.bf16.gmra.mrb[148].mxu1 %v6955_v60  ;;  %v6798_v5 = vshll.u32 %v15268_v49, 16  ;;  %v6114_v0 = vor.u32 %v6112_v37, %v6111_v62  ;;  %v6116_v36 = vrot.slane %v6111_v62, 4  ;;  %v5740_v10 = vmax.f32 %v5692_v46, 0.0  ;;  %v6355_v60 = vld [vmem:[#allocation3 + $0x84] sm:$0xf] }
 0x455   : > { %v6793_v32 = vshll.u32 %v9965_v28, 16  ;;  %8774 = vmatprep.mubr.bf16.mxu1 %v15291_v52  ;;  %v5381_v26 = vadd.f32 %v15117_v50, %v16447_v1  ;;  %v6306_v8 = vsel %vm14779_vm8, %v6106_v58, %v6305_v27  ;;  %v5695_v9 = vadd.f32 %v16448_v56, %v5534_v55  ;;  %v6312_v55 = vld [vmem:[#allocation3 + $0xa8] sm:$0xf]  ;;  %v6419_v56 = vld [vmem:[#allocation3 + $0x90] sm:$0xf] }
 0x456   : > { %v6791_v29 = vshrl.u32 %v9965_v28, 16  ;;  %6307 = vst [vmem:[#allocation3 + $0x9c] sm:$0xf] %v6306_v8  ;;  %v6115_v22 = vsel %vm13513_vm4, %v6107_v17, %v6114_v0  ;;  %v6310_v34 = vsel %vm14789_vm10, %v6116_v36, %v6309_v11  ;;  %v10233_v38 = vpack.c.bf16 %v5740_v10, %v5740_v10 }
 0x457   : > { %v6795_v4 = vrot.slane %v6793_v32, 1  ;;  %v15308_v13 = vadd.f32 %v15117_v50, %v16449_v3  ;;  %6308 = vst [vmem:[#allocation3 + $0xa0] sm:$0xf] %v6115_v22  ;;  %6311 = vst [vmem:[#allocation3 + $0xa4] sm:$0x1] %v6310_v34  ;;  %v5741_v6 = vmax.f32 %v5695_v9, 0.0  ;;  %v10472_v63 = vadd.f32 %v15237_v20, %v15234_v23 }
 0x458   : > { %v9997_v31 = vcombine.low %v6391_v57, %v15260_v39  ;;  %v6118_v48 = vshrl.u32 %v10233_v38, 16  ;;  %v6800_v37 = vrot.slane %v6798_v5, 1  ;;  %v6957_v19 = vrot.slane %v15268_v49, 1  ;;  %v16450_v39 = vld [vmem:[#allocation31_spill] sm:$0xff] }
 0x459   : > { %v6796_v54 = vor.u32 %v6795_v4, %v6791_v29  ;;  %v10234_v25 = vpack.c.bf16 %v5741_v6, %v5741_v6  ;;  %v10475_v62 = vadd.f32 %v15245_v14, %v15239_v40  ;;  %v5539_v46 = vadd.f32 %v10472_v63, %v5378_v16  ;;  %v6420_v14 = vld [vmem:[#allocation3 + $0x94] sm:$0xf]  ;;  %v6316_v29 = vld [vmem:[#allocation3 + $0xb0] sm:$0x1]  ;;  %v6392_v4 = vld [vmem:[#allocation3 + $0x84] sm:$0xe] }
 0x45a   : > { %v6956_v27 = vrot.slane %v9997_v31, 1  ;;  %v6120_v58 = vrot.slane %v6118_v48, 7  ;;  %v6121_v17 = vshll.u32 %v10233_v38, 16  ;;  %v15320_v20 = vcombine.low %v6355_v60, %v15304_v43 }
 0x45b   : > { %v6801_v23 = vsel %vm602_vm1, %v6796_v54, %v6800_v37  ;;  %v15324_v11 = vadd.f32 %v15117_v50, %v16450_v39  ;;  %v6126_v49 = vshrl.u32 %v10234_v25, 16  ;;  %v5700_v40 = vadd.f32 %v15033_v21, %v5539_v46  ;;  %v15355_v39 = vpop.f32.mrb[80].mxu0 }
 0x45c   : > { %8613 = vmatprep.mubr.bf16.mxu0 %v6801_v23  ;;  %v6958_v5 = vsel %vm875_vm0, %v6956_v27, %v6957_v19  ;;  %v6123_v16 = vor.u32 %v6121_v17, %v6120_v58  ;;  %v6129_v0 = vshll.u32 %v10234_v25, 16  ;;  %v5542_v36 = vadd.f32 %v10475_v62, %v5381_v26  ;;  %v6319_v25 = vld [vmem:[#allocation3 + $0xb4] sm:$0xf]  ;;  %v15353_v23 = vld [vmem:[#allocation3 + $0x98] ss:$0 sps:$4 sm:$0x11]  }
 0x45d   : > { %8614 = vmatmul.mubr.bf16.gmra.mrb[120].mxu0 %v9965_v28  ;;  %8775 = vmatmul.mubr.bf16.gmra.mrb[152].mxu1 %v6958_v5  ;;  %v6810_v10 = vshll.u32 %v15313_v47, 16  ;;  %v6124_v32 = vrot.slane %v6120_v58, 4  ;;  %v6128_v1 = vrot.slane %v6126_v49, 7  ;;  %v5742_v8 = vmax.f32 %v5700_v40, 0.0 }
 0x45e   : > { %v6805_v50 = vshll.u32 %v15320_v20, 16  ;;  %v6313_v9 = vsel %vm14779_vm8, %v6123_v16, %v6312_v55  ;;  %v5703_v21 = vadd.f32 %v15049_v51, %v5542_v36  ;;  %v6803_v57 = vshrl.u32 %v15320_v20, 16  ;;  %v15340_v51 = vld [vmem:[#allocation3 + $0x94] sm:$0xf]  ;;  %v6422_v5 = vld [vmem:[#allocation3 + $0xa0] sm:$0xf] }
 0x45f   : > { %v15334_v22 = vcombine.low %v6419_v56, %v6420_v14  ;;  %6314 = vst [vmem:[#allocation3 + $0xa8] sm:$0xf] %v6313_v9  ;;  %v6131_v28 = vor.u32 %v6129_v0, %v6128_v1  ;;  %v6133_v26 = vrot.slane %v6128_v1, 4  ;;  %v10235_v34 = vpack.c.bf16 %v5742_v8, %v5742_v8  ;;  %v6323_v16 = vld [vmem:[#allocation3 + $0xbc] sm:$0x1] }
 0x460   : > { %v6807_v38 = vrot.slane %v6805_v50, 1  ;;  %v5743_v3 = vmax.f32 %v5703_v21, 0.0  ;;  %v6812_v6 = vrot.slane %v6810_v10, 1  ;;  %v10478_v63 = vadd.f32 %v15278_v12, %v15272_v45  ;;  %v6357_v12 = vld [vmem:[#allocation3 + $0x90] sm:$0xf] }
 0x461   : > { %8782 = vmatprep.mubr.bf16.mxu1 %v15334_v22  ;;  %v9998_v31 = vcombine.low %v6392_v4, %v15304_v43  ;;  %v6132_v48 = vsel %vm13513_vm4, %v6124_v32, %v6131_v28  ;;  %v6317_v54 = vsel %vm14789_vm10, %v6133_v26, %v6316_v29  ;;  %v6135_v37 = vshrl.u32 %v10235_v34, 16  ;;  %v6421_v32 = vld [vmem:[#allocation3 + $0x9c] sm:$0xf]  ;;  %v15369_v56 = vld [vmem:[#allocation3 + $0xa4] ss:$0 sps:$4 sm:$0x11]  }
 0x462   : > { %v6138_v19 = vshll.u32 %v10235_v34, 16  ;;  %6315 = vst [vmem:[#allocation3 + $0xac] sm:$0xf] %v6132_v48  ;;  %6318 = vst [vmem:[#allocation3 + $0xb0] sm:$0x1] %v6317_v54  ;;  %v10236_v27 = vpack.c.bf16 %v5743_v3, %v5743_v3  ;;  %v6808_v62 = vor.u32 %v6807_v38, %v6803_v57  ;;  %v5547_v46 = vadd.f32 %v10478_v63, %v15308_v13 }
 0x463   : > { %v6959_v45 = vrot.slane %v9998_v31, 1  ;;  %v6137_v43 = vrot.slane %v6135_v37, 7  ;;  %v6960_v60 = vrot.slane %v15313_v47, 1  ;;  %v10481_v58 = vadd.f32 %v15286_v44, %v15280_v53  ;;  %v6393_v57 = vld [vmem:[#allocation3 + $0x90] sm:$0xe] }
 0x464   : > { %v15351_v17 = vcombine.low %v6357_v12, %v15340_v51  ;;  %v6143_v55 = vshrl.u32 %v10236_v27, 16  ;;  %v6813_v49 = vsel %vm602_vm1, %v6808_v62, %v6812_v6  ;;  %v5708_v13 = vadd.f32 %v15023_v41, %v5547_v46 }
 0x465   : > { %v6140_v40 = vor.u32 %v6138_v19, %v6137_v43  ;;  %v6146_v14 = vshll.u32 %v10236_v27, 16  ;;  %8621 = vmatprep.mubr.bf16.mxu0 %v6813_v49  ;;  %v6961_v47 = vsel %vm875_vm0, %v6959_v45, %v6960_v60  ;;  %v5550_v53 = vadd.f32 %v10481_v58, %v15324_v11  ;;  %v15371_v11 = vpop.f32.mrb[81].mxu0  ;;  %v6359_v19 = vld [vmem:[#allocation3 + $0x9c] sm:$0xf] }
 0x466   : > { %v6141_v44 = vrot.slane %v6137_v43, 4  ;;  %v6145_v0 = vrot.slane %v6143_v55, 7  ;;  %v5744_v36 = vmax.f32 %v5708_v13, 0.0  ;;  %8622 = vmatmul.mubr.bf16.gmra.mrb[124].mxu0 %v15320_v20  ;;  %8783 = vmatmul.mubr.bf16.gmra.mrb[156].mxu1 %v6961_v47  ;;  %v6817_v10 = vshll.u32 %v15351_v17, 16  ;;  %v15375_v34 = vpop.f32.mrb[82].mxu0 }
 0x467   : > { %v6320_v41 = vsel %vm14779_vm8, %v6140_v40, %v6319_v25  ;;  %v5711_v1 = vadd.f32 %v15039_v59, %v5550_v53  ;;  %v6822_v8 = vshll.u32 %v15353_v23, 16  ;;  %v15367_v50 = vcombine.low %v6421_v32, %v6422_v5  ;;  %v6360_v59 = vld [vmem:[#allocation3 + $0xa0] sm:$0xf]  ;;  %v6423_v45 = vld [vmem:[#allocation3 + $0xa8] sm:$0xf]  ;;  %v15384_v12 = vpop.f32.mrb[83].mxu0 }
 0x468   : > { %6321 = vst [vmem:[#allocation3 + $0xb4] sm:$0xf] %v6320_v41  ;;  %v6148_v9 = vor.u32 %v6146_v14, %v6145_v0  ;;  %v6150_v20 = vrot.slane %v6145_v0, 4  ;;  %v10237_v29 = vpack.c.bf16 %v5744_v36, %v5744_v36  ;;  %v6819_v21 = vrot.slane %v6817_v10, 1  ;;  %v6326_v43 = vld [vmem:[#allocation3 + $0xc0] sm:$0xf] }
 0x469   : > { %v5745_v28 = vmax.f32 %v5711_v1, 0.0  ;;  %v6815_v26 = vshrl.u32 %v15351_v17, 16  ;;  %8790 = vmatprep.mubr.bf16.mxu1 %v15367_v50  ;;  %v6824_v6 = vrot.slane %v6822_v8, 1  ;;  %v6424_v63 = vld [vmem:[#allocation3 + $0xac] sm:$0xf]  ;;  %v9999_v54 = vcombine.low %v6393_v57, %v15340_v51 }
 0x46a   : > { %v6149_v38 = vsel %vm13513_vm4, %v6141_v44, %v6148_v9  ;;  %v6324_v4 = vsel %vm14789_vm10, %v6150_v20, %v6323_v16  ;;  %v6152_v3 = vshrl.u32 %v10237_v29, 16  ;;  %v6963_v37 = vrot.slane %v15353_v23, 1  ;;  %v6394_v23 = vld [vmem:[#allocation3 + $0x9c] sm:$0xe]  ;;  %v6362_v5 = vld [vmem:[#allocation3 + $0xac] sm:$0xf] }
 0x46b   : > { %6322 = vst [vmem:[#allocation3 + $0xb8] sm:$0xf] %v6149_v38  ;;  %6325 = vst [vmem:[#allocation3 + $0xbc] sm:$0x1] %v6324_v4  ;;  %v10238_v31 = vpack.c.bf16 %v5745_v28, %v5745_v28  ;;  %v6820_v48 = vor.u32 %v6819_v21, %v6815_v26  ;;  %v6155_v27 = vshll.u32 %v10237_v29, 16  ;;  %v9968_v62 = vcombine.low %v6359_v19, %v6360_v59 }
 0x46c   : > { %v6154_v25 = vrot.slane %v6152_v3, 7  ;;  %v6834_v46 = vshll.u32 %v15369_v56, 16  ;;  %v6962_v55 = vrot.slane %v9999_v54, 1  ;;  %v15387_v49 = vcombine.low %v6423_v45, %v6424_v63  ;;  %v15391_v53 = vld [vmem:[#allocation3 + $0xb0] ss:$0 sps:$4 sm:$0x11]  }
 0x46d   : > { %v6160_v60 = vshrl.u32 %v10238_v31, 16  ;;  %v6825_v58 = vsel %vm602_vm1, %v6820_v48, %v6824_v6  ;;  %v6829_v51 = vshll.u32 %v9968_v62, 16  ;;  %v6163_v16 = vshll.u32 %v10238_v31, 16  ;;  %v6330_v0 = vld [vmem:[#allocation3 + $0xc8] sm:$0x1] }
 0x46e   : > { %v6157_v13 = vor.u32 %v6155_v27, %v6154_v25  ;;  %8629 = vmatprep.mubr.bf16.mxu0 %v6825_v58  ;;  %v6158_v40 = vrot.slane %v6154_v25, 4  ;;  %v6964_v47 = vsel %vm875_vm0, %v6962_v55, %v6963_v37  ;;  %v6827_v36 = vshrl.u32 %v9968_v62, 16  ;;  %v6361_v41 = vld [vmem:[#allocation3 + $0xa8] sm:$0xf] }
 0x46f   : > { %v6162_v14 = vrot.slane %v6160_v60, 7  ;;  %8630 = vmatmul.mubr.bf16.gmra.mrb[128].mxu0 %v15351_v17  ;;  %8791 = vmatmul.mubr.bf16.gmra.mrb[160].mxu1 %v6964_v47  ;;  %v6831_v10 = vrot.slane %v6829_v51, 1  ;;  %v10000_v32 = vcombine.low %v6394_v23, %v6360_v59  ;;  %v6836_v9 = vrot.slane %v6834_v46, 1  ;;  %v6425_v3 = vld [vmem:[#allocation3 + $0xb4] sm:$0xf] }
 0x470   : > { %v6327_v44 = vsel %vm14779_vm8, %v6157_v13, %v6326_v43  ;;  %8798 = vmatprep.mubr.bf16.mxu1 %v15387_v49  ;;  %v9969_v17 = vcombine.low %v6361_v41, %v6362_v5  ;;  %v6966_v21 = vrot.slane %v15369_v56, 1  ;;  %v6846_v38 = vshll.u32 %v15391_v53, 16  ;;  %v6363_v42 = vld [vmem:[#allocation3 + $0xb4] sm:$0xf]  ;;  %v6395_v48 = vld [vmem:[#allocation3 + $0xa8] sm:$0xe] }
 0x471   : > { %6328 = vst [vmem:[#allocation3 + $0xc0] sm:$0xf] %v6327_v44  ;;  %v6165_v1 = vor.u32 %v6163_v16, %v6162_v14  ;;  %v6167_v8 = vrot.slane %v6162_v14, 4  ;;  %v6832_v20 = vor.u32 %v6831_v10, %v6827_v36  ;;  %v6965_v29 = vrot.slane %v10000_v32, 1  ;;  %v6462_v43 = vld [vmem:[#allocation3 + $0x18] sm:$0xf] }
 0x472   : > { %v6426_v57 = vld [vmem:[#allocation3 + $0xb8] sm:$0xf]  ;;  %v6841_v59 = vshll.u32 %v9969_v17, 16  ;;  %v15403_v6 = vld [vmem:[#allocation3 + $0xbc] ss:$0 sps:$4 sm:$0x11]   ;;  %v10001_v27 = vcombine.low %v6395_v48, %v6362_v5  ;;  %v15411_v58 = vcombine.low %v6462_v43, %v6463_v35 }
 0x473   : > { %v6364_v18 = vld [vmem:[#allocation3 + $0xb8] sm:$0xf]  ;;  %v6166_v28 = vsel %vm13513_vm4, %v6158_v40, %v6165_v1  ;;  %v6331_v26 = vsel %vm14789_vm10, %v6167_v8, %v6330_v0  ;;  %v6837_v4 = vsel %vm602_vm1, %v6832_v20, %v6836_v9  ;;  %v6839_v56 = vshrl.u32 %v9969_v17, 16  ;;  %v6445_v47 = vld [vmem:[#allocation3 + $0xc] sm:$0xe] }
 0x474   : > { %6329 = vst [vmem:[#allocation3 + $0xc4] sm:$0xf] %v6166_v28  ;;  %6332 = vst [vmem:[#allocation3 + $0xc8] sm:$0x1] %v6331_v26  ;;  %8637 = vmatprep.mubr.bf16.mxu0 %v6837_v4  ;;  %v6843_v63 = vrot.slane %v6841_v59, 1  ;;  %v15405_v31 = vcombine.low %v6425_v3, %v6426_v57  ;;  %v9970_v54 = vcombine.low %v6363_v42, %v6364_v18  ;;  %v6848_v25 = vrot.slane %v6846_v38, 1 }
 0x475   : > { %v6967_v37 = vsel %vm875_vm0, %v6965_v29, %v6966_v21  ;;  %v6858_v45 = vshll.u32 %v15403_v6, 16  ;;  %v6969_v51 = vrot.slane %v15391_v53, 1  ;;  %v7601_v16 = vshll.u32 %v15411_v58, 16  ;;  %v11570_v0 = vld [vmem:[#allocation3 + $0x20] ss:$0 sps:$4 sm:$0x11]  }
 0x476   : > { %v6844_v19 = vor.u32 %v6843_v63, %v6839_v56  ;;  %v6853_v46 = vshll.u32 %v9970_v54, 16  ;;  %v6851_v55 = vshrl.u32 %v9970_v54, 16  ;;  %v6396_v10 = vld [vmem:[#allocation3 + $0xb4] sm:$0xe]  ;;  %v6465_v32 = vld [vmem:[#allocation3 + $0x28] sm:$0xf] }
 0x477   : > { %8638 = vmatmul.mubr.bf16.gmra.mrb[132].mxu0 %v9968_v62  ;;  %8799 = vmatmul.mubr.bf16.gmra.mrb[164].mxu1 %v6967_v37  ;;  %v6968_v62 = vrot.slane %v10001_v27, 1  ;;  %v6860_v5 = vrot.slane %v6858_v45, 1  ;;  %v11686_v41 = vld [vmem:[#allocation3 + $0x10] sm:$0xf]  ;;  %v10002_v53 = vcombine.low %v6396_v10, %v6364_v18  ;;  %v7603_v20 = vrot.slane %v7601_v16, 1  ;;  %v16451_v57 = vld [vmem:[#allocation42_spill] sm:$0xff] }
 0x478   : > { %v6849_v60 = vsel %vm602_vm1, %v6844_v19, %v6848_v25  ;;  %8806 = vmatprep.mubr.bf16.mxu1 %v15405_v31  ;;  %v6855_v13 = vrot.slane %v6853_v46, 1  ;;  %v6427_v14 = vld [vmem:[#allocation3 + $0xc0] sm:$0xf]  ;;  %v10035_v1 = vcombine.low %v6445_v47, %v11686_v41  ;;  %v11566_v9 = vld [vmem:[#allocation3 + $0x14] ss:$0 sps:$4 sm:$0x11]  }
 0x479   : > { %8645 = vmatprep.mubr.bf16.mxu0 %v6849_v60  ;;  %v6970_v8 = vsel %vm875_vm0, %v6968_v62, %v6969_v51  ;;  %v6464_v29 = vld [vmem:[#allocation3 + $0x24] sm:$0xf]  ;;  %v7137_v28 = vshll.u32 %v16451_v57, 16  ;;  %v7599_v26 = vshrl.u32 %v15411_v58, 16  ;;  %v7606_v59 = vshll.u32 %v11570_v0, 16 }
 0x47a   : > { %v6856_v40 = vor.u32 %v6855_v13, %v6851_v55  ;;  %v15420_v21 = vcombine.low %v6464_v29, %v6465_v32  ;;  %v6971_v38 = vrot.slane %v10002_v53, 1  ;;  %v7390_v4 = vrot.slane %v10035_v1, 1  ;;  %v6446_v42 = vld [vmem:[#allocation3 + $0x18] sm:$0xe]  ;;  %v15426_v35 = vld [vmem:[#allocation3 + $0x34] sm:$0xf] }
 0x47b   : > { %v6428_v23 = vld [vmem:[#allocation3 + $0xc4] sm:$0xf]  ;;  %v7391_v3 = vrot.slane %v11566_v9, 1  ;;  %v7604_v18 = vor.u32 %v7603_v20, %v7599_v26  ;;  %v7139_v63 = vrot.slane %v7137_v28, 1  ;;  %v7608_v48 = vrot.slane %v7606_v59, 1  ;;  %v11580_v32 = vld [vmem:[%s16152_s5 + $0x208] sm:$0xff]  }
 0x47c   : > { %v15415_v44 = vcombine.low %v6427_v14, %v6428_v23  ;;  %v6861_v36 = vsel %vm602_vm1, %v6856_v40, %v6860_v5  ;;  %v7613_v56 = vshll.u32 %v15420_v21, 16  ;;  %v11687_v37 = vld [vmem:[#allocation3 + $0x1c] sm:$0xf]  ;;  %v11574_v46 = vld [vmem:[#allocation3 + $0x20] ss:$0 sps:$4 sm:$0x11]  }
 0x47d   : > { %v10036_v19 = vcombine.low %v6446_v42, %v11687_v37  ;;  %v7392_v27 = vsel %vm875_vm0, %v7390_v4, %v7391_v3  ;;  %v11576_v45 = vld [vmem:[#allocation3 + $0x2c] ss:$0 sps:$4 sm:$0x11]   ;;  %v7142_v43 = vshll.u32 %v11566_v9, 16  ;;  %v7609_v60 = vsel %vm602_vm1, %v7604_v18, %v7608_v48  ;;  %v6466_v55 = vld [vmem:[#allocation3 + $0x30] sm:$0xf] }
 0x47e   : > { %v7615_v13 = vrot.slane %v7613_v56, 1  ;;  %v15433_v62 = vcombine.low %v6466_v55, %v15426_v35  ;;  %v7394_v5 = vrot.slane %v11574_v46, 1  ;;  %v7611_v14 = vshrl.u32 %v15420_v21, 16  ;;  %v6447_v0 = vld [vmem:[#allocation3 + $0x24] sm:$0xe]  ;;  %v11689_v26 = vld [vmem:[%s16152_s5 + $0x200] sm:$0xff]  }
 0x47f   : > { %8646 = vmatmul.mubr.bf16.gmra.mrb[136].mxu0 %v9969_v17  ;;  %8807 = vmatmul.mubr.bf16.gmra.mrb[168].mxu1 %v6970_v8  ;;  %v6972_v17 = vrot.slane %v15403_v6, 1  ;;  %v7135_v6 = vshrl.u32 %v16451_v57, 16  ;;  %v7393_v40 = vrot.slane %v10036_v19, 1  ;;  %v7618_v16 = vshll.u32 %v11576_v45, 16  ;;  %v15442_v53 = vld [vmem:[#allocation3 + $0x40] sm:$0xf] }
 0x480   : > { %8653 = vmatprep.mubr.bf16.mxu0 %v6861_v36  ;;  %8814 = vmatprep.mubr.bf16.mxu1 %v15415_v44  ;;  %v7144_v47 = vrot.slane %v7142_v43, 1  ;;  %v7616_v36 = vor.u32 %v7615_v13, %v7611_v14  ;;  %v7625_v10 = vshll.u32 %v15433_v62, 16  ;;  %v11577_v8 = vld [vmem:[#allocation3 + $0x2c] ss:$0 sps:$4 sm:$0x11]   ;;  %v11587_v56 = vld [vmem:[%s16152_s5 + $0x210] sm:$0xff]  }
 0x481   : > { %v6973_v25 = vsel %vm875_vm0, %v6971_v38, %v6972_v17  ;;  %v7140_v23 = vor.u32 %v7139_v63, %v7135_v6  ;;  %v11688_v9 = vld [vmem:[#allocation3 + $0x28] sm:$0xf]  ;;  %v7395_v29 = vsel %vm875_vm0, %v7393_v40, %v7394_v5  ;;  %v7620_v57 = vrot.slane %v7618_v16, 1  ;;  %v15445_v28 = vld [vmem:[#allocation3 + $0x38] ss:$0 sps:$4 sm:$0x11]  }
 0x482   : > { %v10037_v20 = vcombine.low %v6447_v0, %v11688_v9  ;;  %v7154_v38 = vshll.u32 %v11574_v46, 16  ;;  %v6468_v17 = vld [vmem:[#allocation3 + $0x3c] sm:$0xf]  ;;  %v7627_v3 = vrot.slane %v7625_v10, 1  ;;  %v16453_v63 = vld [vmem:[#allocation39_spill] sm:$0xff]  ;;  %v7397_v19 = vrot.slane %v11577_v8, 1 }
 0x483   : > { %v7145_v41 = vsel %vm602_vm1, %v7140_v23, %v7144_v47  ;;  %v7621_v4 = vsel %vm602_vm1, %v7616_v36, %v7620_v57  ;;  %v15454_v18 = vcombine.low %v6468_v17, %v15442_v53  ;;  %v7161_v42 = vshll.u32 %v16453_v63, 16  ;;  %v6448_v46 = vld [vmem:[#allocation3 + $0x30] sm:$0xe]  ;;  %v11594_v43 = vld [vmem:[%s16152_s5 + $0x218] sm:$0xff]   ;;  %v6470_v0 = vld [vmem:[#allocation3 + $0x48] sm:$0xf] }
 0x484   : > { %v7396_v37 = vrot.slane %v10037_v20, 1  ;;  %v11581_v13 = vld [vmem:[#allocation3 + $0x38] ss:$0 sps:$4 sm:$0x11]   ;;  %v7159_v16 = vshrl.u32 %v16453_v63, 16  ;;  %v7166_v47 = vshll.u32 %v11577_v8, 16 }
 0x485   : > { %v7637_v6 = vshll.u32 %v15454_v18, 16  ;;  %v7163_v55 = vrot.slane %v7161_v42, 1  ;;  %v15470_v14 = vld [vmem:[#allocation3 + $0x44] ss:$0 sps:$4 sm:$0x11]   ;;  %v7635_v57 = vshrl.u32 %v15454_v18, 16 }
 0x486   : > { %v7398_v40 = vsel %vm875_vm0, %v7396_v37, %v7397_v19  ;;  %v15489_v63 = vld [vmem:[#allocation3 + $0x44] ss:$0 sps:$4 sm:$0x11]   ;;  %v15491_v42 = vld [vmem:[#allocation3 + $0x58] sm:$0xf] }
 0x487   : > { %8654 = vmatmul.mubr.bf16.gmra.mrb[140].mxu0 %v9970_v54  ;;  %8815 = vmatmul.mubr.bf16.gmra.mrb[172].mxu1 %v6973_v25  ;;  %v16452_v54 = vld [vmem:[#allocation19_spill] sm:$0xff]  ;;  %v7623_v25 = vshrl.u32 %v15433_v62, 16  ;;  %v7639_v10 = vrot.slane %v7637_v6, 1  ;;  %v7164_v20 = vor.u32 %v7163_v55, %v7159_v16  ;;  %v11615_v55 = vld [vmem:[%s16152_s5 + $0x230] sm:$0xff]  }
 0x488   : > { %8855 = vmatprep.mubr.bf16.mxu0 %v7392_v27  ;;  %9016 = vmatprep.mubr.bf16.mxu1 %v7609_v60  ;;  %v7149_v51 = vshll.u32 %v16452_v54, 16  ;;  %v7147_v59 = vshrl.u32 %v16452_v54, 16  ;;  %v7156_v27 = vrot.slane %v7154_v38, 1  ;;  %v15467_v54 = vld [vmem:[#allocation3 + $0x4c] sm:$0xf] }
 0x489   : > { %v7628_v45 = vor.u32 %v7627_v3, %v7623_v25  ;;  %v7640_v38 = vor.u32 %v7639_v10, %v7635_v57  ;;  %v11622_v10 = vld [vmem:[%s16152_s5 + $0x238] sm:$0xff]  }
 0x48a   : > { %v7151_v1 = vrot.slane %v7149_v51, 1  ;;  %v11690_v51 = vld [vmem:[#allocation3 + $0x34] sm:$0xf] }
 0x48b   : > { %v10038_v23 = vcombine.low %v6448_v46, %v11690_v51  ;;  %v7178_v46 = vshll.u32 %v11581_v13, 16  ;;  %v7185_v51 = vshll.u32 %v15059_v30, 16 }
 0x48c   : > { %v7152_v48 = vor.u32 %v7151_v1, %v7147_v59  ;;  %v16454_v1 = vld [vmem:[#allocation17_spill] sm:$0xff]  ;;  %v6449_v59 = vld [vmem:[#allocation3 + $0x3c] sm:$0xe] }
 0x48d   : > { %v7173_v9 = vshll.u32 %v16454_v1, 16  ;;  %v7399_v8 = vrot.slane %v10038_v23, 1  ;;  %v7180_v16 = vrot.slane %v7178_v46, 1  ;;  %v15542_v46 = vld [vmem:[#allocation3 + $0x70] sm:$0xf] }
 0x48e   : > { %v7157_v60 = vsel %vm602_vm1, %v7152_v48, %v7156_v27  ;;  %v11691_v48 = vld [vmem:[#allocation3 + $0x40] sm:$0xf]  ;;  %v7171_v27 = vshrl.u32 %v16454_v1, 16  ;;  %v7187_v1 = vrot.slane %v7185_v51, 1 }
 0x48f   : > { %8856 = vmatmul.mubr.bf16.vlgmr.msra.gmra.mrb[144].mxu0 %v7145_v41  ;;  %9017 = vmatmul.mubr.bf16.vlgmr.msra.gmra.mrb[176].mxu1 %v15411_v58  ;;  %v7630_v58 = vshll.u32 %v15445_v28, 16  ;;  %v11601_v41 = vld [vmem:[%s16152_s5 + $0x220] sm:$0xff]   ;;  %v10039_v37 = vcombine.low %v6449_v59, %v11691_v48  ;;  %v15523_v59 = vadd.f32 %v15371_v11, %v15355_v39  ;;  %v6451_v39 = vld [vmem:[#allocation3 + $0x54] sm:$0xe]  ;;  %v15533_v11 = vld [vmem:[#allocation3 + $0x60] sm:$0xe] }
 0x490   : > { %11053 = vmatpush3.bf16.msra.mxu0 %v11689_v26  ;;  %8863 = vmatprep.mubr.bf16.mxu0 %v7395_v29  ;;  %v7400_v29 = vrot.slane %v11581_v13, 1  ;;  %v7168_v26 = vrot.slane %v7166_v47, 1  ;;  %v6450_v47 = vld [vmem:[#allocation3 + $0x48] sm:$0xe] }
 0x491   : > { %11054 = vmatprep.subr.bf16.mxu0 %v11580_v32  ;;  %9024 = vmatprep.mubr.bf16.mxu1 %v7621_v4  ;;  %v7632_v5 = vrot.slane %v7630_v58, 1  ;;  %v11608_v4 = vld [vmem:[%s16152_s5 + $0x228] sm:$0xff]   ;;  %v7402_v13 = vrot.slane %v10039_v37, 1 }
 0x492   : > { %v7169_v3 = vsel %vm602_vm1, %v7164_v20, %v7168_v26  ;;  %v7401_v19 = vsel %vm875_vm0, %v7399_v8, %v7400_v29  ;;  %v15494_v58 = vld [vmem:[#allocation3 + $0x50] ss:$0 sps:$4 sm:$0x11]   ;;  %v15516_v20 = vld [vmem:[#allocation3 + $0x64] sm:$0xf] }
 0x493   : > { %v7633_v36 = vsel %vm602_vm1, %v7628_v45, %v7632_v5  ;;  %v6472_v45 = vld [vmem:[#allocation3 + $0x54] sm:$0xf]  ;;  %v7654_v5 = vshll.u32 %v15494_v58, 16  ;;  %v11692_v8 = vld [vmem:[#allocation3 + $0x4c] sm:$0xf] }
 0x494   : > { %11055 = vmatpush3.bf16.msra.mxu0 %v11580_v32  ;;  %v15476_v32 = vcombine.low %v6470_v0, %v15467_v54  ;;  %v10040_v29 = vcombine.low %v6450_v47, %v11692_v8  ;;  %v15519_v26 = vld [vmem:[#allocation3 + $0x5c] ss:$0 sps:$4 sm:$0x11]   ;;  %v7195_v47 = vshrl.u32 %v15081_v2, 16  ;;  %v7233_v8 = vshll.u32 %v15209_v61, 16 }
 0x495   : > { %11056 = vmatprep.subr.bf16.mxu0 %v11587_v56 }
 0x496   : > { %v7649_v17 = vshll.u32 %v15476_v32, 16 }
 0x497   : > { %8864 = vmatmul.mubr.bf16.gmra.mrb[148].mxu0 %v7157_v60  ;;  %9025 = vmatmul.mubr.bf16.gmra.mrb[180].mxu1 %v15420_v21  ;;  %v7642_v21 = vshll.u32 %v15470_v14, 16  ;;  %v15500_v60 = vcombine.low %v6472_v45, %v15491_v42  ;;  %v7209_v45 = vshll.u32 %v15128_v15, 16 }
 0x498   : > { %8871 = vmatprep.mubr.bf16.mxu0 %v7398_v40  ;;  %11057 = vmatpush3.bf16.msra.mxu0 %v11587_v56  ;;  %v7175_v56 = vrot.slane %v7173_v9, 1  ;;  %v7403_v40 = vrot.slane %v15489_v63, 1  ;;  %v15514_v9 = vld [vmem:[#allocation3 + $0x50] ss:$0 sps:$4 sm:$0x11]  }
 0x499   : > { %11058 = vmatprep.subr.bf16.mxu0 %v11594_v43  ;;  %9032 = vmatprep.mubr.bf16.mxu1 %v7633_v36  ;;  %v7644_v25 = vrot.slane %v7642_v21, 1  ;;  %v7661_v36 = vshll.u32 %v15500_v60, 16  ;;  %v7656_v21 = vrot.slane %v7654_v5, 1  ;;  %v6476_v5 = vld [vmem:[#allocation3 + $0x6c] sm:$0xf] }
 0x49a   : > { %v7176_v23 = vor.u32 %v7175_v56, %v7171_v27  ;;  %v7404_v57 = vsel %vm875_vm0, %v7402_v13, %v7403_v40  ;;  %v7666_v27 = vshll.u32 %v15519_v26, 16  ;;  %v11694_v13 = vld [vmem:[#allocation3 + $0x64] sm:$0xf]  ;;  %v15546_v40 = vld [vmem:[#allocation3 + $0x68] ss:$0 sps:$4 sm:$0x11]  }
 0x49b   : > { %v7645_v6 = vsel %vm602_vm1, %v7640_v38, %v7644_v25  ;;  %v7197_v38 = vshll.u32 %v15081_v2, 16  ;;  %v7663_v48 = vrot.slane %v7661_v36, 1  ;;  %v7406_v25 = vrot.slane %v15514_v9, 1  ;;  %v15562_v2 = vld [vmem:[#allocation3 + $0x84] sm:$0xe] }
 0x49c   : > { %11059 = vmatpush3.bf16.msra.mxu0 %v11594_v43  ;;  %v7651_v43 = vrot.slane %v7649_v17, 1  ;;  %v7183_v17 = vshrl.u32 %v15059_v30, 16  ;;  %v15537_v30 = vadd.f32 %v15384_v12, %v15375_v34  ;;  %v10042_v34 = vcombine.low %v15533_v11, %v11694_v13 }
 0x49d   : > { %11060 = vmatprep.subr.bf16.mxu0 %v11601_v41  ;;  %v7199_v51 = vrot.slane %v7197_v38, 1  ;;  %v15553_v36 = vcombine.low %v6476_v5, %v15542_v46  ;;  %v7678_v11 = vshll.u32 %v15546_v40, 16  ;;  %v11598_v5 = vld [vmem:[#allocation3 + $0x74] ss:$0 sps:$4 sm:$0x11]  }
 0x49f   : > { %8872 = vmatmul.mubr.bf16.gmra.mrb[152].mxu0 %v7169_v3  ;;  %9033 = vmatmul.mubr.bf16.gmra.mrb[184].mxu1 %v15433_v62  ;;  %v7647_v62 = vshrl.u32 %v15476_v32, 16  ;;  %v6474_v3 = vld [vmem:[#allocation3 + $0x60] sm:$0xf] }
 0x4a0   : > { %8879 = vmatprep.mubr.bf16.mxu0 %v7401_v19  ;;  %11061 = vmatpush3.bf16.msra.mxu0 %v11601_v41  ;;  %v7181_v41 = vsel %vm602_vm1, %v7176_v23, %v7180_v16  ;;  %v15531_v37 = vcombine.low %v6474_v3, %v15516_v20  ;;  %v7188_v19 = vor.u32 %v7187_v1, %v7183_v17  ;;  %v11591_v23 = vld [vmem:[#allocation3 + $0x5c] ss:$0 sps:$4 sm:$0x11]   ;;  %v6453_v1 = vld [vmem:[#allocation3 + $0x6c] sm:$0xe] }
 0x4a1   : > { %11062 = vmatprep.subr.bf16.mxu0 %v11608_v4  ;;  %9040 = vmatprep.mubr.bf16.mxu1 %v7645_v6  ;;  %v7652_v0 = vor.u32 %v7651_v43, %v7647_v62  ;;  %v11693_v6 = vld [vmem:[#allocation3 + $0x58] sm:$0xf]  ;;  %v7409_v3 = vrot.slane %v11591_v23, 1 }
 0x4a2   : > { %v10041_v43 = vcombine.low %v6451_v39, %v11693_v6  ;;  %v7673_v62 = vshll.u32 %v15531_v37, 16  ;;  %v15560_v17 = vld [vmem:[#allocation3 + $0x78] sm:$0xe]  ;;  %v7214_v6 = vshll.u32 %v11591_v23, 16  ;;  %v7207_v23 = vshrl.u32 %v15128_v15, 16 }
 0x4a3   : > { %v7657_v56 = vsel %vm602_vm1, %v7652_v0, %v7656_v21  ;;  %v7202_v0 = vshll.u32 %v15514_v9, 16  ;;  %v11695_v21 = vld [vmem:[#allocation3 + $0x70] sm:$0xf]  ;;  %v7200_v9 = vor.u32 %v7199_v51, %v7195_v47  ;;  %v11696_v51 = vld [vmem:[#allocation3 + $0x7c] sm:$0xf]  ;;  %v7411_v15 = vrot.slane %v10042_v34, 1 }
 0x4a4   : > { %11063 = vmatpush3.bf16.msra.mxu0 %v11608_v4  ;;  %v7190_v4 = vshll.u32 %v15489_v63, 16  ;;  %v7405_v63 = vrot.slane %v10040_v29, 1  ;;  %v10043_v38 = vcombine.low %v6453_v1, %v11695_v21  ;;  %v7675_v39 = vrot.slane %v7673_v62, 1 }
 0x4a5   : > { %11064 = vmatprep.subr.bf16.mxu0 %v11615_v55  ;;  %v10044_v13 = vcombine.low %v15560_v17, %v11696_v51  ;;  %v7671_v62 = vshrl.u32 %v15531_v37, 16 }
 0x4a6   : > { %v7407_v29 = vsel %vm875_vm0, %v7405_v63, %v7406_v25  ;;  %v15567_v63 = vld [vmem:[#allocation3 + $0x74] ss:$0 sps:$4 sm:$0x11]  }
 0x4a7   : > { %8880 = vmatmul.mubr.bf16.gmra.mrb[156].mxu0 %v7181_v41  ;;  %9041 = vmatmul.mubr.bf16.gmra.mrb[188].mxu1 %v15454_v18  ;;  %v7659_v18 = vshrl.u32 %v15500_v60, 16  ;;  %v15555_v41 = vld [vmem:[#allocation3 + $0x7c] sm:$0xf]  ;;  %v7676_v1 = vor.u32 %v7675_v39, %v7671_v62  ;;  %v7683_v39 = vshrl.u32 %v15553_v36, 16  ;;  %v7414_v62 = vrot.slane %v10043_v38, 1 }
 0x4a8   : > { %8887 = vmatprep.mubr.bf16.mxu0 %v7404_v57  ;;  %11065 = vmatpush3.bf16.msra.mxu0 %v11615_v55  ;;  %v7192_v55 = vrot.slane %v7190_v4, 1  ;;  %v7668_v57 = vrot.slane %v7666_v27, 1  ;;  %v7408_v4 = vrot.slane %v10041_v43, 1  ;;  %v7211_v27 = vrot.slane %v7209_v45, 1 }
 0x4a9   : > { %11066 = vmatprep.subr.bf16.mxu0 %v11622_v10  ;;  %9048 = vmatprep.mubr.bf16.mxu1 %v7657_v56  ;;  %v7664_v12 = vor.u32 %v7663_v48, %v7659_v18  ;;  %v6478_v56 = vld [vmem:[#allocation3 + $0x78] sm:$0xf]  ;;  %v7204_v18 = vrot.slane %v7202_v0, 1  ;;  %v7685_v43 = vshll.u32 %v15553_v36, 16  ;;  %v6480_v0 = vld [vmem:[#allocation3 + $0x84] sm:$0xf] }
 0x4aa   : > { %v7193_v16 = vsel %vm602_vm1, %v7188_v19, %v7192_v55  ;;  %v11595_v19 = vld [vmem:[#allocation3 + $0x68] ss:$0 sps:$4 sm:$0x11]   ;;  %v15570_v25 = vcombine.low %v6478_v56, %v15555_v41  ;;  %v7410_v45 = vsel %vm875_vm0, %v7408_v4, %v7409_v3  ;;  %v7212_v56 = vor.u32 %v7211_v27, %v7207_v23  ;;  %v15599_v23 = vld [vmem:[#allocation3 + $0x8c] ss:$0 sps:$4 sm:$0x11]  }
 0x4ab   : > { %v7669_v48 = vsel %vm602_vm1, %v7664_v12, %v7668_v57  ;;  %v15573_v55 = vld [vmem:[#allocation3 + $0x88] sm:$0xf]  ;;  %v15583_v57 = vld [vmem:[#allocation3 + $0x80] ss:$0 sps:$4 sm:$0x11]   ;;  %v7687_v51 = vrot.slane %v7685_v43, 1 }
 0x4ac   : > { %11067 = vmatpush3.bf16.msra.mxu0 %v11622_v10  ;;  %v7221_v10 = vshll.u32 %v15174_v33, 16  ;;  %v7697_v21 = vshll.u32 %v15570_v25, 16  ;;  %v15587_v17 = vcombine.low %v6480_v0, %v15573_v55  ;;  %v7690_v4 = vshll.u32 %v15567_v63, 16 }
 0x4ad   : > { %v7226_v3 = vshll.u32 %v11595_v19, 16  ;;  %v7235_v0 = vrot.slane %v7233_v8, 1  ;;  %v7688_v34 = vor.u32 %v7687_v51, %v7683_v39  ;;  %v7695_v8 = vshrl.u32 %v15570_v25, 16  ;;  %v15605_v51 = vld [vmem:[#allocation3 + $0x94] sm:$0xf] }
 0x4ae   : > { %v7223_v47 = vrot.slane %v7221_v10, 1  ;;  %v7412_v10 = vrot.slane %v11595_v19, 1  ;;  %v7709_v43 = vshll.u32 %v15587_v17, 16  ;;  %v7231_v19 = vshrl.u32 %v15209_v61, 16 }
 0x4af   : > { %8888 = vmatmul.mubr.bf16.gmra.mrb[160].mxu0 %v7193_v16  ;;  %9049 = vmatmul.mubr.bf16.gmra.mrb[192].mxu1 %v15476_v32  ;;  %v7205_v16 = vsel %vm602_vm1, %v7200_v9, %v7204_v18  ;;  %v7219_v9 = vshrl.u32 %v15174_v33, 16  ;;  %v15590_v18 = vld [vmem:[#allocation3 + $0x80] ss:$0 sps:$4 sm:$0x11]   ;;  %v7699_v33 = vrot.slane %v7697_v21, 1  ;;  %v7417_v38 = vrot.slane %v10044_v13, 1 }
 0x4b0   : > { %8895 = vmatprep.mubr.bf16.mxu0 %v7407_v29  ;;  %9056 = vmatprep.mubr.bf16.mxu1 %v7669_v48  ;;  %v7680_v29 = vrot.slane %v7678_v11, 1  ;;  %v7216_v48 = vrot.slane %v7214_v6, 1  ;;  %v7415_v6 = vrot.slane %v11598_v5, 1  ;;  %v7692_v21 = vrot.slane %v7690_v4, 1 }
 0x4b1   : > { %v7224_v11 = vor.u32 %v7223_v47, %v7219_v9  ;;  %v7228_v47 = vrot.slane %v7226_v3, 1  ;;  %v7236_v9 = vor.u32 %v7235_v0, %v7231_v19  ;;  %v7711_v3 = vrot.slane %v7709_v43, 1  ;;  %v6513_v0 = vld [vmem:[#allocation3 + $0x3c] sm:$0xe]  ;;  %v6514_v19 = vld [vmem:[#allocation3 + $0x48] sm:$0xe] }
 0x4b2   : > { %v7681_v27 = vsel %vm602_vm1, %v7676_v1, %v7680_v29  ;;  %v7217_v1 = vsel %vm602_vm1, %v7212_v56, %v7216_v48  ;;  %v7413_v29 = vsel %vm875_vm0, %v7411_v15, %v7412_v10  ;;  %v15609_v61 = vsel %vm875_vm0, %v7414_v62, %v7415_v6  ;;  %v6482_v56 = vld [vmem:[#allocation3 + $0x90] sm:$0xf] }
 0x4b3   : > { %v7229_v39 = vsel %vm602_vm1, %v7224_v11, %v7228_v47  ;;  %v7714_v32 = vshll.u32 %v15599_v23, 16  ;;  %v7707_v15 = vshrl.u32 %v15587_v17, 16  ;;  %v16455_v10 = vshll.u32 %v15254_v7, 16  ;;  %v6512_v62 = vld [vmem:[#allocation3 + $0x30] sm:$0xe] }
 0x4b4   : > { %v15622_v11 = vcombine.low %v6482_v56, %v15605_v51  ;;  %v10085_v43 = vcombine.low %v6512_v62, %v15426_v35  ;;  %v15664_v56 = vld [vmem:[#allocation3 + $0xac] sm:$0xf] }
 0x4b5   : > { %v15619_v4 = vrot.slane %v16455_v10, 1  ;;  %v15637_v47 = vor.u32 %v7711_v3, %v7707_v15  ;;  %v15655_v3 = vld [vmem:[#allocation3 + $0xb0] ss:$0 sps:$4 sm:$0x11]  }
 0x4b6   : > { %v7860_v35 = vrot.slane %v10085_v43, 1  ;;  %v15666_v15 = vld [vmem:[#allocation3 + $0xbc] ss:$0 sps:$4 sm:$0x11]   ;;  %v6518_v43 = vld [vmem:[#allocation3 + $0x78] sm:$0xe] }
 0x4b7   : > { %8896 = vmatmul.mubr.bf16.gmra.mrb[164].mxu0 %v7205_v16  ;;  %9057 = vmatmul.mubr.bf16.gmra.mrb[196].mxu1 %v15500_v60  ;;  %v7702_v16 = vshll.u32 %v15583_v57, 16  ;;  %v7418_v60 = vrot.slane %v15590_v18, 1 }
 0x4b8   : > { %8903 = vmatprep.mubr.bf16.mxu0 %v7410_v45  ;;  %9064 = vmatprep.mubr.bf16.mxu1 %v7681_v27  ;;  %v7238_v45 = vshll.u32 %v11598_v5, 16  ;;  %v7700_v5 = vor.u32 %v7699_v33, %v7695_v8  ;;  %v7693_v27 = vsel %vm602_vm1, %v7688_v34, %v7692_v21  ;;  %v15630_v33 = vld [vmem:[%s16153_s6] ss:$0 sm:$0xff]  ;;  %v7861_v34 = vrot.slane %v15445_v28, 1  ;;  %v15650_v21 = vld [vmem:[#allocation3 + $0xa0] sm:$0xf] }
 0x4b9   : > { %v7704_v13 = vrot.slane %v7702_v16, 1  ;;  %v15614_v48 = vsel %vm875_vm0, %v7417_v38, %v7418_v60  ;;  %v10086_v16 = vcombine.low %v6513_v0, %v15442_v53  ;;  %v10087_v8 = vcombine.low %v6514_v19, %v15467_v54  ;;  %v6515_v38 = vld [vmem:[#allocation3 + $0x54] sm:$0xe]  ;;  %v15641_v60 = vld [vmem:[#allocation3 + $0x98] ss:$0 sps:$4 sm:$0x11]  }
 0x4ba   : > { %v7240_v12 = vrot.slane %v7238_v45, 1  ;;  %v7867_v28 = vrot.slane %v15494_v58, 1  ;;  %v10088_v53 = vcombine.low %v6515_v38, %v15491_v42  ;;  %v15658_v58 = vsel %vm875_vm0, %v7860_v35, %v7861_v34  ;;  %v15674_v34 = vld [vmem:[#allocation3 + $0xb8] sm:$0xf]  ;;  %v6520_v38 = vld [vmem:[#allocation3 + $0x90] sm:$0xe] }
 0x4bb   : > { %v7705_v45 = vsel %vm602_vm1, %v7700_v5, %v7704_v13  ;;  %v7866_v54 = vrot.slane %v10087_v8, 1  ;;  %v6516_v5 = vld [vmem:[#allocation3 + $0x60] sm:$0xe]  ;;  %v6517_v13 = vld [vmem:[#allocation3 + $0x6c] sm:$0xe]  ;;  %v7876_v0 = vrot.slane %v15567_v63, 1  ;;  %v10091_v19 = vcombine.low %v6518_v43, %v15555_v41 }
 0x4bc   : > { %v15625_v6 = vsel %vm602_vm1, %v7236_v9, %v7240_v12  ;;  %v7864_v12 = vrot.slane %v15470_v14, 1  ;;  %v15652_v14 = vld [vmem:[#allocation3 + $0xa4] ss:$0 sps:$4 sm:$0x11]   ;;  %v7870_v9 = vrot.slane %v15519_v26, 1  ;;  %v7873_v26 = vrot.slane %v15546_v40, 1 }
 0x4bd   : > { %v15669_v10 = vsel %vm875_vm0, %v7866_v54, %v7867_v28  ;;  %v10090_v62 = vcombine.low %v6517_v13, %v15542_v46  ;;  %v6519_v8 = vld [vmem:[#allocation3 + $0x84] sm:$0xe]  ;;  %v7882_v63 = vrot.slane %v15599_v23, 1  ;;  %v6521_v28 = vld [vmem:[#allocation3 + $0x9c] sm:$0xe] }
 0x4be   : > { %v15681_v35 = vld [vmem:[#allocation3 + $0xc4] sm:$0xf]  ;;  %v10092_v46 = vcombine.low %v6519_v8, %v15573_v55  ;;  %v10094_v54 = vcombine.low %v6521_v28, %v15650_v21  ;;  %v15695_v55 = vld [vmem:[#allocation3 + $0xd4] ss:$0 sps:$4 sm:$0x11]  }
 0x4bf   : > { %8904 = vmatmul.mubr.bf16.gmra.mrb[168].mxu0 %v7217_v1  ;;  %9065 = vmatmul.mubr.bf16.gmra.mrb[200].mxu1 %v15531_v37  ;;  %v7863_v1 = vrot.slane %v10086_v16, 1  ;;  %v7721_v37 = vshll.u32 %v15622_v11, 16  ;;  %v7875_v40 = vrot.slane %v10090_v62, 1  ;;  %v7891_v62 = vrot.slane %v15655_v3, 1  ;;  %v6525_v43 = vld [vmem:[#allocation3 + $0xcc] sm:$0xe] }
 0x4c0   : > { %8911 = vmatprep.mubr.bf16.mxu0 %v7413_v29  ;;  %9072 = vmatprep.mubr.bf16.mxu1 %v7693_v27  ;;  %v15648_v29 = vadd.f32 %v15523_v59, %v15630_v33  ;;  %v7869_v27 = vrot.slane %v10088_v53, 1  ;;  %v10089_v59 = vcombine.low %v6516_v5, %v15516_v20  ;;  %v15687_v53 = vld [vmem:[#allocation3 + $0xc8] ss:$0 sps:$4 sm:$0x11]   ;;  %v7887_v13 = vrot.slane %v10094_v54, 1 }
 0x4c1   : > { %v15661_v42 = vsel %vm875_vm0, %v7863_v1, %v7864_v12  ;;  %v7879_v12 = vrot.slane %v15583_v57, 1  ;;  %v10093_v1 = vcombine.low %v6520_v38, %v15605_v51  ;;  %v7878_v57 = vrot.slane %v10091_v19, 1 }
 0x4c2   : > { %v15677_v16 = vsel %vm875_vm0, %v7869_v27, %v7870_v9  ;;  %v7872_v20 = vrot.slane %v10089_v59, 1  ;;  %v15698_v9 = vsel %vm875_vm0, %v7875_v40, %v7876_v0  ;;  %v7881_v51 = vrot.slane %v10092_v46, 1  ;;  %v6522_v27 = vld [vmem:[#allocation3 + $0xa8] sm:$0xe]  ;;  %v15714_v40 = vld [vmem:[#allocation3 + $0xd0] sm:$0xf] }
 0x4c3   : > { %v7884_v5 = vrot.slane %v10093_v1, 1  ;;  %v15702_v59 = vsel %vm875_vm0, %v7878_v57, %v7879_v12  ;;  %v6524_v12 = vld [vmem:[#allocation3 + $0xc0] sm:$0xe] }
 0x4c4   : > { %v15690_v41 = vsel %vm875_vm0, %v7872_v20, %v7873_v26  ;;  %v10095_v26 = vcombine.low %v6522_v27, %v15664_v56  ;;  %v15707_v0 = vsel %vm875_vm0, %v7881_v51, %v7882_v63  ;;  %v10097_v28 = vcombine.low %v6524_v12, %v15681_v35 }
 0x4c5   : > { %v7897_v63 = vrot.slane %v15687_v53, 1  ;;  %v10098_v51 = vcombine.low %v6525_v43, %v15714_v40  ;;  %v7716_v27 = vrot.slane %v7714_v32, 1  ;;  %v7243_v32 = vshrl.u32 %v15254_v7, 16 }
 0x4c6   : > { %v7890_v1 = vrot.slane %v10095_v26, 1  ;;  %v7896_v26 = vrot.slane %v10097_v28, 1  ;;  %v7257_v7 = vshll.u32 %v15291_v52, 16 }
 0x4c7   : > { %8912 = vmatmul.mubr.bf16.gmra.mrb[172].mxu0 %v7229_v39  ;;  %v7885_v39 = vrot.slane %v15641_v60, 1  ;;  %9073 = vmatmul.mubr.bf16.gmra.mrb[204].mxu1 %v15553_v36  ;;  %v6523_v36 = vld [vmem:[#allocation3 + $0xb4] sm:$0xe]  ;;  %v7899_v23 = vrot.slane %v10098_v51, 1 }
 0x4c8   : > { %8919 = vmatprep.mubr.bf16.mxu0 %v15609_v61  ;;  %v7888_v61 = vrot.slane %v15652_v14, 1  ;;  %9080 = vmatprep.mubr.bf16.mxu1 %v7705_v45  ;;  %v10096_v8 = vcombine.low %v6523_v36, %v15674_v34  ;;  %v7894_v45 = vrot.slane %v15666_v15, 1  ;;  %v8539_v36 = vadd.f32 %v15537_v30, %v15630_v33  ;;  %v11697_v51 = vld [vmem:[#allocation3 + $0x94] sm:$0xf] }
 0x4c9   : > { %v15710_v19 = vsel %vm875_vm0, %v7884_v5, %v7885_v39  ;;  %v7900_v5 = vrot.slane %v15695_v55, 1  ;;  %v7717_v30 = vsel %vm602_vm1, %v15637_v47, %v7716_v27 }
 0x4ca   : > { %v15717_v46 = vsel %vm875_vm0, %v7887_v13, %v7888_v61  ;;  %v7893_v39 = vrot.slane %v10096_v8, 1  ;;  %v15728_v13 = vsel %vm875_vm0, %v7890_v1, %v7891_v62  ;;  %v7250_v62 = vshll.u32 %v15590_v18, 16 }
 0x4cb   : > { %v10630_v20 = vpop.f32.mrb[112].mxu1  ;;  %v15754_v47 = vsel %vm875_vm0, %v7899_v23, %v7900_v5  ;;  %v7248_v18 = vor.u32 %v15619_v4, %v7243_v32  ;;  %v16456_v1 = vcombine.low %v15562_v2, %v15270_v24  ;;  %v11609_v2 = vld [vmem:[#allocation3 + $0x98] ss:$0 sps:$4 sm:$0x11]  }
 0x4cc   : > { %v10631_v38 = vpop.f32.mrb[113].mxu1  ;;  %v15735_v12 = vsel %vm875_vm0, %v7893_v39, %v7894_v45 }
 0x4cd   : > { %v10632_v57 = vadd.f32 %v10631_v38, %v10630_v20  ;;  %v10633_v54 = vpop.f32.mrb[114].mxu1  ;;  %v11605_v20 = vld [vmem:[#allocation3 + $0x8c] ss:$0 sps:$4 sm:$0x11]   ;;  %v6484_v38 = vld [vmem:[#allocation3 + $0x9c] sm:$0xf] }
 0x4ce   : > { %v10634_v61 = vpop.f32.mrb[115].mxu1  ;;  %v15749_v45 = vcombine.low %v6484_v38, %v15650_v21  ;;  %v7421_v28 = vrot.slane %v11605_v20, 1  ;;  %v7726_v21 = vshll.u32 %v15641_v60, 16  ;;  %v6486_v60 = vld [vmem:[#allocation3 + $0xa8] sm:$0xf] }
 0x4cf   : > { %8920 = vmatmul.mubr.bf16.gmra.mrb[176].mxu0 %v15625_v6  ;;  %v15732_v8 = vadd.f32 %v10632_v57, %v15648_v29  ;;  %v10635_v43 = vadd.f32 %v10634_v61, %v10633_v54  ;;  %v15743_v6 = vsel %vm875_vm0, %v7896_v26, %v7897_v63  ;;  %9081 = vmatmul.mubr.bf16.gmra.mrb[208].mxu1 %v15570_v25  ;;  %v7723_v29 = vrot.slane %v7721_v37, 1  ;;  %v6456_v57 = vld [vmem:[#allocation3 + $0x90] sm:$0xe] }
 0x4d0   : > { %8927 = vmatprep.mubr.bf16.mxu0 %v15614_v48  ;;  %9088 = vmatprep.mubr.bf16.mxu1 %v7717_v30  ;;  %v7420_v25 = vrot.slane %v16456_v1, 1  ;;  %v7719_v37 = vshrl.u32 %v15622_v11, 16  ;;  %v7252_v63 = vrot.slane %v7250_v62, 1  ;;  %v7733_v39 = vshll.u32 %v15749_v45, 16 }
 0x4d1   : > { %v15751_v48 = vadd.f32 %v10635_v43, %v8539_v36  ;;  %v10046_v5 = vcombine.low %v6456_v57, %v11697_v51  ;;  %v7259_v36 = vrot.slane %v7257_v7, 1  ;;  %v7728_v24 = vrot.slane %v7726_v21, 1 }
 0x4d2   : > { %v7724_v54 = vor.u32 %v7723_v29, %v7719_v37  ;;  %v7253_v27 = vsel %vm602_vm1, %v7248_v18, %v7252_v63  ;;  %v7422_v4 = vsel %vm875_vm0, %v7420_v25, %v7421_v28  ;;  %v7255_v61 = vshrl.u32 %v15291_v52, 16 }
 0x4d3   : > { %v7262_v26 = vshll.u32 %v11605_v20, 16  ;;  %v7735_v30 = vrot.slane %v7733_v39, 1  ;;  %v15770_v32 = vcombine.low %v6486_v60, %v15664_v56  ;;  %v7269_v29 = vshll.u32 %v15334_v22, 16  ;;  %v6457_v39 = vld [vmem:[#allocation3 + $0x9c] sm:$0xe] }
 0x4d4   : > { %v7729_v23 = vsel %vm602_vm1, %v7724_v54, %v7728_v24  ;;  %v7260_v7 = vor.u32 %v7259_v36, %v7255_v61  ;;  %v7423_v18 = vrot.slane %v10046_v5, 1  ;;  %v7424_v25 = vrot.slane %v11609_v2, 1 }
 0x4d5   : > { %v7731_v28 = vshrl.u32 %v15749_v45, 16  ;;  %v7264_v56 = vrot.slane %v7262_v26, 1  ;;  %v7271_v60 = vrot.slane %v7269_v29, 1 }
 0x4d7   : > { %8928 = vmatmul.mubr.bf16.gmra.mrb[180].mxu0 %v7253_v27  ;;  %9089 = vmatmul.mubr.bf16.gmra.mrb[212].mxu1 %v15587_v17  ;;  %v7738_v17 = vshll.u32 %v15652_v14, 16  ;;  %v7736_v51 = vor.u32 %v7735_v30, %v7731_v28  ;;  %v7745_v27 = vshll.u32 %v15770_v32, 16  ;;  %v7265_v61 = vsel %vm602_vm1, %v7260_v7, %v7264_v56  ;;  %v6488_v30 = vld [vmem:[#allocation3 + $0xb4] sm:$0xf]  ;;  %v6458_v56 = vld [vmem:[#allocation3 + $0xa8] sm:$0xe] }
 0x4d8   : > { %8935 = vmatprep.mubr.bf16.mxu0 %v7422_v4  ;;  %v10636_v43 = vpop.f32.mrb[116].mxu1  ;;  %v10524_v62 = vpop.f32.mrb[84].mxu0  ;;  %9096 = vmatprep.mubr.bf16.mxu1 %v7729_v23  ;;  %v11698_v4 = vld [vmem:[#allocation3 + $0xa0] sm:$0xf]  ;;  %v7425_v14 = vsel %vm875_vm0, %v7423_v18, %v7424_v25  ;;  %v7281_v7 = vshll.u32 %v15367_v50, 16 }
 0x4d9   : > { %v10637_v38 = vpop.f32.mrb[117].mxu1  ;;  %v10525_v1 = vpop.f32.mrb[85].mxu0  ;;  %v10047_v24 = vcombine.low %v6457_v39, %v11698_v4  ;;  %v11612_v23 = vld [vmem:[#allocation3 + $0xa4] ss:$0 sps:$4 sm:$0x11]   ;;  %v7747_v18 = vrot.slane %v7745_v27, 1 }
 0x4da   : > { %v10638_v52 = vadd.f32 %v10637_v38, %v10636_v43  ;;  %v10639_v20 = vpop.f32.mrb[118].mxu1  ;;  %v10526_v37 = vadd.f32 %v10525_v1, %v10524_v62  ;;  %v10527_v21 = vpop.f32.mrb[86].mxu0  ;;  %v7740_v43 = vrot.slane %v7738_v17, 1  ;;  %v7267_v38 = vshrl.u32 %v15334_v22, 16  ;;  %v11699_v27 = vld [vmem:[#allocation3 + $0xac] sm:$0xf] }
 0x4db   : > { %v10640_v63 = vpop.f32.mrb[119].mxu1  ;;  %v10528_v57 = vpop.f32.mrb[87].mxu0  ;;  %v7274_v1 = vshll.u32 %v11609_v2, 16  ;;  %v7426_v28 = vrot.slane %v10047_v24, 1  ;;  %v7427_v17 = vrot.slane %v11612_v23, 1  ;;  %v7750_v22 = vshll.u32 %v15655_v3, 16 }
 0x4dc   : > { %v10641_v54 = vadd.f32 %v10640_v63, %v10639_v20  ;;  %v8544_v5 = vadd.f32 %v10526_v37, %v15630_v33  ;;  %v10529_v36 = vadd.f32 %v10528_v57, %v10527_v21  ;;  %v15784_v20 = vcombine.low %v6488_v30, %v15674_v34  ;;  %v15796_v4 = vld [vmem:[#allocation3 + $0xb0] ss:$0 sps:$4 sm:$0x11]  }
 0x4dd   : > { %v7741_v29 = vsel %vm602_vm1, %v7736_v51, %v7740_v43  ;;  %v7743_v37 = vshrl.u32 %v15770_v32, 16  ;;  %v7276_v2 = vrot.slane %v7274_v1, 1  ;;  %v7283_v39 = vrot.slane %v7281_v7, 1 }
 0x4de   : > { %v15779_v26 = vadd.f32 %v10638_v52, %v8544_v5  ;;  %v8547_v62 = vadd.f32 %v10529_v36, %v15630_v33  ;;  %v7272_v52 = vor.u32 %v7271_v60, %v7267_v38  ;;  %v7757_v34 = vshll.u32 %v15784_v20, 16 }
 0x4df   : > { %8936 = vmatmul.mubr.bf16.gmra.mrb[184].mxu0 %v7265_v61  ;;  %9097 = vmatmul.mubr.bf16.gmra.mrb[216].mxu1 %v15622_v11  ;;  %v7293_v11 = vshll.u32 %v15387_v49, 16  ;;  %v7748_v57 = vor.u32 %v7747_v18, %v7743_v37  ;;  %v10048_v5 = vcombine.low %v6458_v56, %v11699_v27  ;;  %v7752_v43 = vrot.slane %v7750_v22, 1  ;;  %v6490_v37 = vld [vmem:[#allocation3 + $0xc0] sm:$0xf] }
 0x4e0   : > { %8943 = vmatprep.mubr.bf16.mxu0 %v7425_v14  ;;  %v15789_v25 = vadd.f32 %v10641_v54, %v8547_v62  ;;  %9104 = vmatprep.mubr.bf16.mxu1 %v7741_v29  ;;  %v7277_v36 = vsel %vm602_vm1, %v7272_v52, %v7276_v2  ;;  %v7428_v14 = vsel %vm875_vm0, %v7426_v28, %v7427_v17  ;;  %v7279_v62 = vshrl.u32 %v15367_v50, 16 }
 0x4e1   : > { %v7286_v30 = vshll.u32 %v11612_v23, 16  ;;  %v7759_v7 = vrot.slane %v7757_v34, 1  ;;  %v7753_v2 = vsel %vm602_vm1, %v7748_v57, %v7752_v43  ;;  %v15804_v28 = vcombine.low %v6490_v37, %v15681_v35  ;;  %v6459_v35 = vld [vmem:[#allocation3 + $0xb4] sm:$0xe] }
 0x4e2   : > { %v7755_v50 = vshrl.u32 %v15784_v20, 16  ;;  %v7762_v23 = vshll.u32 %v15666_v15, 16  ;;  %v7429_v34 = vrot.slane %v10048_v5, 1  ;;  %v7295_v57 = vrot.slane %v7293_v11, 1 }
 0x4e3   : > { %v10530_v21 = vpop.f32.mrb[88].mxu0  ;;  %v10642_v63 = vpop.f32.mrb[120].mxu1  ;;  %v7288_v56 = vrot.slane %v7286_v30, 1  ;;  %v15817_v5 = vld [vmem:[#allocation3 + $0xbc] ss:$0 sps:$4 sm:$0x11]  }
 0x4e4   : > { %v10531_v54 = vpop.f32.mrb[89].mxu0  ;;  %v10643_v51 = vpop.f32.mrb[121].mxu1 }
 0x4e5   : > { %v10532_v24 = vadd.f32 %v10531_v54, %v10530_v21  ;;  %v10533_v3 = vpop.f32.mrb[90].mxu0  ;;  %v10644_v61 = vadd.f32 %v10643_v51, %v10642_v63  ;;  %v10645_v60 = vpop.f32.mrb[122].mxu1  ;;  %v7284_v21 = vor.u32 %v7283_v39, %v7279_v62  ;;  %v7430_v63 = vrot.slane %v15796_v4, 1  ;;  %v6492_v39 = vld [vmem:[#allocation3 + $0xcc] sm:$0xf] }
 0x4e6   : > { %v10534_v38 = vpop.f32.mrb[91].mxu0  ;;  %v10646_v1 = vpop.f32.mrb[123].mxu1  ;;  %v7769_v51 = vshll.u32 %v15804_v28, 16  ;;  %v15821_v30 = vcombine.low %v6492_v39, %v15714_v40  ;;  %v6460_v39 = vld [vmem:[#allocation3 + $0xc0] sm:$0xe] }
 0x4e7   : > { %8944 = vmatmul.mubr.bf16.gmra.mrb[188].mxu0 %v7277_v36  ;;  %v8552_v29 = vadd.f32 %v10532_v24, %v15630_v33  ;;  %v10535_v18 = vadd.f32 %v10534_v38, %v10533_v3  ;;  %v10647_v52 = vadd.f32 %v10646_v1, %v10645_v60  ;;  %9105 = vmatmul.mubr.bf16.gmra.mrb[220].mxu1 %v15749_v45  ;;  %v11700_v36 = vld [vmem:[#allocation3 + $0xb8] sm:$0xf]  ;;  %v7764_v3 = vrot.slane %v7762_v23, 1 }
 0x4e8   : > { %8951 = vmatprep.mubr.bf16.mxu0 %v7428_v14  ;;  %9112 = vmatprep.mubr.bf16.mxu1 %v7753_v2  ;;  %v7760_v45 = vor.u32 %v7759_v7, %v7755_v50  ;;  %v10049_v24 = vcombine.low %v6459_v35, %v11700_v36  ;;  %v7289_v15 = vsel %vm602_vm1, %v7284_v21, %v7288_v56  ;;  %v7305_v38 = vshll.u32 %v15405_v31, 16 }
 0x4e9   : > { %v15808_v17 = vadd.f32 %v10644_v61, %v8552_v29  ;;  %v8555_v22 = vadd.f32 %v10535_v18, %v15630_v33  ;;  %v7291_v61 = vshrl.u32 %v15387_v49, 16  ;;  %v7431_v14 = vsel %vm875_vm0, %v7429_v34, %v7430_v63 }
 0x4ea   : > { %v7765_v1 = vsel %vm602_vm1, %v7760_v45, %v7764_v3  ;;  %v7298_v49 = vshll.u32 %v15796_v4, 16  ;;  %v7432_v40 = vrot.slane %v10049_v24, 1  ;;  %v7433_v23 = vrot.slane %v15817_v5, 1  ;;  %v15839_v3 = vld [vmem:[#allocation3 + $0xc8] ss:$0 sps:$4 sm:$0x11]  }
 0x4eb   : > { %v15812_v54 = vadd.f32 %v10647_v52, %v8555_v22  ;;  %v7296_v7 = vor.u32 %v7295_v57, %v7291_v61  ;;  %v7771_v52 = vrot.slane %v7769_v51, 1  ;;  %v7767_v22 = vshrl.u32 %v15804_v28, 16 }
 0x4ec   : > { %v7774_v34 = vshll.u32 %v15687_v53, 16  ;;  %v7781_v45 = vshll.u32 %v15821_v30, 16  ;;  %v7300_v57 = vrot.slane %v7298_v49, 1  ;;  %v7307_v53 = vrot.slane %v7305_v38, 1 }
 0x4ed   : > { %v10536_v27 = vpop.f32.mrb[92].mxu0  ;;  %v7772_v35 = vor.u32 %v7771_v52, %v7767_v22  ;;  %v7310_v49 = vshll.u32 %v15817_v5, 16  ;;  %v7317_v38 = vshll.u32 %v15415_v44, 16  ;;  %v7436_v5 = vrot.slane %v15839_v3, 1 }
 0x4ee   : > { %v10537_v60 = vpop.f32.mrb[93].mxu0  ;;  %v7301_v24 = vsel %vm602_vm1, %v7296_v7, %v7300_v57 }
 0x4ef   : > { %8952 = vmatmul.mubr.bf16.gmra.mrb[192].mxu0 %v7289_v15  ;;  %v10538_v43 = vadd.f32 %v10537_v60, %v10536_v27  ;;  %v10648_v11 = vpop.f32.mrb[124].mxu1  ;;  %v10539_v62 = vpop.f32.mrb[94].mxu0  ;;  %9113 = vmatmul.mubr.bf16.gmra.mrb[224].mxu1 %v15770_v32  ;;  %v11701_v27 = vld [vmem:[#allocation3 + $0xc4] sm:$0xf]  ;;  %v7434_v15 = vsel %vm875_vm0, %v7432_v40, %v7433_v23  ;;  %v7776_v60 = vrot.slane %v7774_v34, 1 }
 0x4f0   : > { %8959 = vmatprep.mubr.bf16.mxu0 %v7431_v14  ;;  %v10649_v29 = vpop.f32.mrb[125].mxu1  ;;  %v10540_v18 = vpop.f32.mrb[95].mxu0  ;;  %9120 = vmatprep.mubr.bf16.mxu1 %v7765_v1  ;;  %v10050_v36 = vcombine.low %v6460_v39, %v11701_v27  ;;  %v7303_v1 = vshrl.u32 %v15405_v31, 16  ;;  %v6510_v27 = vld [vmem:[#allocation3 + $0x18] sm:$0xe] }
 0x4f1   : > { %v8560_v37 = vadd.f32 %v10538_v43, %v15630_v33  ;;  %v10650_v2 = vadd.f32 %v10649_v29, %v10648_v11  ;;  %v10541_v21 = vadd.f32 %v10540_v18, %v10539_v62  ;;  %v10651_v50 = vpop.f32.mrb[126].mxu1  ;;  %v7779_v43 = vshrl.u32 %v15821_v30, 16 }
 0x4f2   : > { %v10652_v63 = vpop.f32.mrb[127].mxu1  ;;  %v7783_v11 = vrot.slane %v7781_v45, 1  ;;  %v7786_v62 = vshll.u32 %v15695_v55, 16  ;;  %v7777_v52 = vsel %vm602_vm1, %v7772_v35, %v7776_v60  ;;  %v7435_v23 = vrot.slane %v10050_v36, 1 }
 0x4f3   : > { %v15831_v4 = vadd.f32 %v10650_v2, %v8560_v37  ;;  %v8563_v56 = vadd.f32 %v10541_v21, %v15630_v33  ;;  %v10653_v32 = vadd.f32 %v10652_v63, %v10651_v50  ;;  %v7308_v21 = vor.u32 %v7307_v53, %v7303_v1 }
 0x4f4   : > { %v7784_v34 = vor.u32 %v7783_v11, %v7779_v43  ;;  %v7788_v63 = vrot.slane %v7786_v62, 1  ;;  %v7319_v35 = vrot.slane %v7317_v38, 1  ;;  %v7437_v36 = vsel %vm875_vm0, %v7435_v23, %v7436_v5  ;;  %v11704_v5 = vld [vmem:[#allocation3 + $0x28] sm:$0xf] }
 0x4f5   : > { %v15835_v51 = vadd.f32 %v10653_v32, %v8563_v56  ;;  %v7312_v56 = vrot.slane %v7310_v49, 1  ;;  %v7315_v60 = vshrl.u32 %v15415_v44, 16 }
 0x4f6   : > { %v10542_v61 = vpop.f32.mrb[96].mxu0 }
 0x4f7   : > { %8960 = vmatmul.mubr.bf16.gmra.mrb[196].mxu0 %v7301_v24  ;;  %v10543_v14 = vpop.f32.mrb[97].mxu0  ;;  %9121 = vmatmul.mubr.bf16.gmra.mrb[228].mxu1 %v15784_v20  ;;  %v7313_v57 = vsel %vm602_vm1, %v7308_v21, %v7312_v56  ;;  %v7789_v24 = vsel %vm602_vm1, %v7784_v34, %v7788_v63 }
 0x4f8   : > { %8967 = vmatprep.mubr.bf16.mxu0 %v7434_v15  ;;  %v10544_v7 = vadd.f32 %v10543_v14, %v10542_v61  ;;  %v10654_v29 = vpop.f32.mrb[128].mxu1  ;;  %v10545_v18 = vpop.f32.mrb[98].mxu0  ;;  %9128 = vmatprep.mubr.bf16.mxu1 %v7777_v52  ;;  %v11702_v15 = vld [vmem:[#allocation3 + $0x1c] sm:$0xf]  ;;  %v7322_v14 = vshll.u32 %v15839_v3, 16 }
 0x4f9   : > { %v10655_v37 = vpop.f32.mrb[129].mxu1  ;;  %v10546_v2 = vpop.f32.mrb[99].mxu0  ;;  %v10083_v53 = vcombine.low %v6510_v27, %v11702_v15 }
 0x4fa   : > { %v8568_v55 = vadd.f32 %v10544_v7, %v15630_v33  ;;  %v10656_v50 = vadd.f32 %v10655_v37, %v10654_v29  ;;  %v10547_v40 = vadd.f32 %v10546_v2, %v10545_v18  ;;  %v10657_v31 = vpop.f32.mrb[130].mxu1  ;;  %v7320_v7 = vor.u32 %v7319_v35, %v7315_v60  ;;  %v11703_v37 = vld [vmem:[#allocation3 + $0x20] ss:$0 sps:$4 sm:$0x11]  }
 0x4fb   : > { %v10658_v22 = vpop.f32.mrb[131].mxu1  ;;  %v7854_v52 = vrot.slane %v10083_v53, 1  ;;  %v7855_v2 = vrot.slane %v11703_v37, 1  ;;  %v7324_v3 = vrot.slane %v7322_v14, 1 }
 0x4fc   : > { %v15850_v32 = vadd.f32 %v10656_v50, %v8568_v55  ;;  %v8571_v20 = vadd.f32 %v10547_v40, %v15630_v33  ;;  %v10659_v45 = vadd.f32 %v10658_v22, %v10657_v31  ;;  %v6511_v31 = vld [vmem:[#allocation3 + $0x24] sm:$0xe] }
 0x4fd   : > { %v7325_v23 = vsel %vm602_vm1, %v7320_v7, %v7324_v3  ;;  %v10084_v22 = vcombine.low %v6511_v31, %v11704_v5  ;;  %v7856_v34 = vsel %vm875_vm0, %v7854_v52, %v7855_v2 }
 0x4fe   : > { %v15854_v39 = vadd.f32 %v10659_v45, %v8571_v20  ;;  %v11705_v45 = vld [vmem:[#allocation3 + $0x2c] ss:$0 sps:$4 sm:$0x11]  }
 0x4ff   : > { %8968 = vmatmul.mubr.bf16.gmra.mrb[200].mxu0 %v7313_v57  ;;  %v10548_v61 = vpop.f32.mrb[100].mxu0  ;;  %9129 = vmatmul.mubr.bf16.gmra.mrb[232].mxu1 %v15804_v28  ;;  %v7857_v20 = vrot.slane %v10084_v22, 1  ;;  %v7858_v57 = vrot.slane %v11705_v45, 1 }
 0x500   : > { %8975 = vmatprep.mubr.bf16.mxu0 %v7437_v36  ;;  %v10549_v43 = vpop.f32.mrb[101].mxu0  ;;  %v10660_v11 = vpop.f32.mrb[132].mxu1  ;;  %9136 = vmatprep.mubr.bf16.mxu1 %v7789_v24 }
 0x501   : > { %v10550_v62 = vadd.f32 %v10549_v43, %v10548_v61  ;;  %v10551_v1 = vpop.f32.mrb[102].mxu0  ;;  %v10661_v49 = vpop.f32.mrb[133].mxu1 }
 0x502   : > { %v10662_v29 = vadd.f32 %v10661_v49, %v10660_v11  ;;  %v10552_v18 = vpop.f32.mrb[103].mxu0  ;;  %v10663_v38 = vpop.f32.mrb[134].mxu1 }
 0x503   : > { %v8576_v21 = vadd.f32 %v10550_v62, %v15630_v33  ;;  %v10553_v44 = vadd.f32 %v10552_v18, %v10551_v1  ;;  %v10664_v55 = vpop.f32.mrb[135].mxu1  ;;  %v7859_v62 = vsel %vm875_vm0, %v7857_v20, %v7858_v57  ;;  %vm9306_vm0 = vcmask 23552  }
 0x504   : > { %v10665_v50 = vadd.f32 %v10664_v55, %v10663_v38 }
 0x505   : > { %v15862_v40 = vadd.f32 %v10662_v29, %v8576_v21  ;;  %v8579_v28 = vadd.f32 %v10553_v44, %v15630_v33 }
 0x507   : > { %8976 = vmatmul.mubr.bf16.gmra.mrb[204].mxu0 %v7325_v23  ;;  %v15867_v63 = vadd.f32 %v10665_v50, %v8579_v28  ;;  %9137 = vmatmul.mubr.bf16.gmra.mrb[236].mxu1 %v15821_v30 }
 0x508   : > { %11068 = vmatprep.mubr.bf16.mxu0 %v7856_v34 }
 0x509   : > { %v10554_v56 = vpop.f32.mrb[104].mxu0 }
 0x50a   : > { %v10555_v35 = vpop.f32.mrb[105].mxu0  ;;  %v10666_v27 = vpop.f32.mrb[136].mxu1 }
 0x50b   : > { %v10556_v36 = vadd.f32 %v10555_v35, %v10554_v56  ;;  %v10557_v24 = vpop.f32.mrb[106].mxu0  ;;  %v10667_v15 = vpop.f32.mrb[137].mxu1 }
 0x50c   : > { %v10668_v53 = vadd.f32 %v10667_v15, %v10666_v27  ;;  %v10558_v61 = vpop.f32.mrb[107].mxu0  ;;  %v10669_v60 = vpop.f32.mrb[138].mxu1 }
 0x50d   : > { %v8584_v14 = vadd.f32 %v10556_v36, %v15630_v33  ;;  %v10559_v43 = vadd.f32 %v10558_v61, %v10557_v24  ;;  %v10670_v11 = vpop.f32.mrb[139].mxu1 }
 0x50e   : > { %v10671_v1 = vadd.f32 %v10670_v11, %v10669_v60 }
 0x50f   : > { %11069 = vmatmul.mubr.bf16.vlgmr.msra.gmra.mrb[208].mxu0 %v7859_v62  ;;  %v15872_v30 = vadd.f32 %v10668_v53, %v8584_v14  ;;  %v8587_v49 = vadd.f32 %v10559_v43, %v15630_v33 }
 0x510   : > { %11072 = vmatprep.mubr.bf16.mxu0 %v15658_v58 }
 0x511   : > { %v15876_v7 = vadd.f32 %v10671_v1, %v8587_v49 }
 0x513   : > { %v10672_v18 = vpop.f32.mrb[140].mxu1 }
 0x514   : > { %v10560_v29 = vpop.f32.mrb[108].mxu0  ;;  %v10673_v52 = vpop.f32.mrb[141].mxu1 }
 0x515   : > { %v10561_v38 = vpop.f32.mrb[109].mxu0  ;;  %v10674_v21 = vadd.f32 %v10673_v52, %v10672_v18  ;;  %v10675_v44 = vpop.f32.mrb[142].mxu1 }
 0x516   : > { %v10562_v37 = vadd.f32 %v10561_v38, %v10560_v29  ;;  %v10563_v2 = vpop.f32.mrb[110].mxu0  ;;  %v10676_v3 = vpop.f32.mrb[143].mxu1 }
 0x517   : > { %v10564_v55 = vpop.f32.mrb[111].mxu0  ;;  %11073 = vmatmul.mubr.bf16.gmra.mrb[212].mxu0 %v15661_v42  ;;  %v10677_v31 = vadd.f32 %v10676_v3, %v10675_v44 }
 0x518   : > { %v8592_v50 = vadd.f32 %v10562_v37, %v15630_v33  ;;  %v10565_v28 = vadd.f32 %v10564_v55, %v10563_v2  ;;  %11076 = vmatprep.mubr.bf16.mxu0 %v15669_v10 }
 0x51a   : > { %v15881_v58 = vadd.f32 %v10674_v21, %v8592_v50  ;;  %v8595_v23 = vadd.f32 %v10565_v28, %v15630_v33 }
 0x51c   : > { %v15884_v5 = vadd.f32 %v10677_v31, %v8595_v23  ;;  %v10566_v22 = vpop.f32.mrb[112].mxu0 }
 0x51d   : > { %v10567_v34 = vpop.f32.mrb[113].mxu0 }
 0x51e   : > { %v10568_v56 = vadd.f32 %v10567_v34, %v10566_v22  ;;  %v10678_v20 = vpop.f32.mrb[144].mxu1  ;;  %v10569_v45 = vpop.f32.mrb[114].mxu0 }
 0x51f   : > { %11077 = vmatmul.mubr.bf16.gmra.mrb[216].mxu0 %v15677_v16  ;;  %v10679_v42 = vpop.f32.mrb[145].mxu1  ;;  %v10570_v57 = vpop.f32.mrb[115].mxu0 }
 0x520   : > { %11080 = vmatprep.mubr.bf16.mxu0 %v15690_v41  ;;  %v8600_v35 = vadd.f32 %v10568_v56, %v15630_v33  ;;  %v10680_v10 = vadd.f32 %v10679_v42, %v10678_v20  ;;  %v10571_v27 = vadd.f32 %v10570_v57, %v10569_v45  ;;  %v10681_v36 = vpop.f32.mrb[146].mxu1 }
 0x521   : > { %v10682_v24 = vpop.f32.mrb[147].mxu1 }
 0x522   : > { %v15889_v15 = vadd.f32 %v10680_v10, %v8600_v35  ;;  %v8603_v53 = vadd.f32 %v10571_v27, %v15630_v33  ;;  %v10683_v61 = vadd.f32 %v10682_v24, %v10681_v36 }
 0x524   : > { %v15892_v60 = vadd.f32 %v10683_v61, %v8603_v53  ;;  %v10572_v14 = vpop.f32.mrb[116].mxu0 }
 0x525   : > { %v10573_v43 = vpop.f32.mrb[117].mxu0 }
 0x526   : > { %v10574_v16 = vadd.f32 %v10573_v43, %v10572_v14  ;;  %v10575_v62 = vpop.f32.mrb[118].mxu0 }
 0x527   : > { %v10684_v11 = vpop.f32.mrb[148].mxu1  ;;  %11081 = vmatmul.mubr.bf16.gmra.mrb[220].mxu0 %v15698_v9  ;;  %v10576_v1 = vpop.f32.mrb[119].mxu0 }
 0x528   : > { %v10685_v41 = vpop.f32.mrb[149].mxu1  ;;  %11084 = vmatprep.mubr.bf16.mxu0 %v15702_v59  ;;  %v8608_v49 = vadd.f32 %v10574_v16, %v15630_v33  ;;  %v10577_v18 = vadd.f32 %v10576_v1, %v10575_v62 }
 0x529   : > { %v10686_v29 = vadd.f32 %v10685_v41, %v10684_v11  ;;  %v10687_v38 = vpop.f32.mrb[150].mxu1 }
 0x52a   : > { %v10688_v52 = vpop.f32.mrb[151].mxu1  ;;  %v8611_v2 = vadd.f32 %v10577_v18, %v15630_v33 }
 0x52b   : > { %v15897_v37 = vadd.f32 %v10686_v29, %v8608_v49  ;;  %v10689_v21 = vadd.f32 %v10688_v52, %v10687_v38 }
 0x52d   : > { %v15900_v44 = vadd.f32 %v10689_v21, %v8611_v2 }
 0x52f   : > { %11085 = vmatmul.mubr.bf16.gmra.mrb[224].mxu0 %v15707_v0 }
 0x530   : > { %v10578_v9 = vpop.f32.mrb[120].mxu0  ;;  %v10690_v55 = vpop.f32.mrb[152].mxu1  ;;  %11088 = vmatprep.mubr.bf16.mxu0 %v15710_v19 }
 0x531   : > { %v10579_v59 = vpop.f32.mrb[121].mxu0  ;;  %v10691_v3 = vpop.f32.mrb[153].mxu1 }
 0x532   : > { %v10580_v50 = vadd.f32 %v10579_v59, %v10578_v9  ;;  %v10581_v28 = vpop.f32.mrb[122].mxu0  ;;  %v10692_v31 = vadd.f32 %v10691_v3, %v10690_v55  ;;  %v10693_v23 = vpop.f32.mrb[154].mxu1 }
 0x533   : > { %v10582_v22 = vpop.f32.mrb[123].mxu0  ;;  %v10694_v34 = vpop.f32.mrb[155].mxu1 }
 0x534   : > { %v8616_v56 = vadd.f32 %v10580_v50, %v15630_v33  ;;  %v10583_v20 = vadd.f32 %v10582_v22, %v10581_v28  ;;  %v10695_v45 = vadd.f32 %v10694_v34, %v10693_v23 }
 0x536   : > { %v15905_v42 = vadd.f32 %v10692_v31, %v8616_v56  ;;  %v8619_v0 = vadd.f32 %v10583_v20, %v15630_v33 }
 0x537   : > { %11089 = vmatmul.mubr.bf16.gmra.mrb[228].mxu0 %v15717_v46 }
 0x538   : > { %v15908_v57 = vadd.f32 %v10695_v45, %v8619_v0  ;;  %11092 = vmatprep.mubr.bf16.mxu0 %v15728_v13 }
 0x539   : > { %v10584_v19 = vpop.f32.mrb[124].mxu0  ;;  %v10696_v35 = vpop.f32.mrb[156].mxu1 }
 0x53a   : > { %v10585_v10 = vpop.f32.mrb[125].mxu0  ;;  %v10697_v27 = vpop.f32.mrb[157].mxu1 }
 0x53b   : > { %v10586_v36 = vadd.f32 %v10585_v10, %v10584_v19  ;;  %v10587_v24 = vpop.f32.mrb[126].mxu0  ;;  %v10698_v53 = vadd.f32 %v10697_v27, %v10696_v35  ;;  %v10699_v61 = vpop.f32.mrb[158].mxu1 }
 0x53c   : > { %v10588_v14 = vpop.f32.mrb[127].mxu0  ;;  %v10700_v43 = vpop.f32.mrb[159].mxu1 }
 0x53d   : > { %v8624_v16 = vadd.f32 %v10586_v36, %v15630_v33  ;;  %v10589_v11 = vadd.f32 %v10588_v14, %v10587_v24  ;;  %v10701_v62 = vadd.f32 %v10700_v43, %v10699_v61 }
 0x53f   : > { %v15913_v41 = vadd.f32 %v10698_v53, %v8624_v16  ;;  %v8627_v46 = vadd.f32 %v10589_v11, %v15630_v33  ;;  %11093 = vmatmul.mubr.bf16.gmra.mrb[232].mxu0 %v15735_v12 }
 0x540   : > { %11096 = vmatprep.mubr.bf16.mxu0 %v15743_v6 }
 0x541   : > { %v15918_v13 = vadd.f32 %v10701_v62, %v8627_v46 }
 0x542   : > { %v10590_v1 = vpop.f32.mrb[128].mxu0  ;;  %v10702_v29 = vpop.f32.mrb[160].mxu1 }
 0x543   : > { %v10591_v49 = vpop.f32.mrb[129].mxu0  ;;  %v10703_v52 = vpop.f32.mrb[161].mxu1 }
 0x544   : > { %v10592_v18 = vadd.f32 %v10591_v49, %v10590_v1  ;;  %v10593_v38 = vpop.f32.mrb[130].mxu0  ;;  %v10704_v2 = vadd.f32 %v10703_v52, %v10702_v29  ;;  %v10705_v9 = vpop.f32.mrb[162].mxu1 }
 0x545   : > { %v10594_v21 = vpop.f32.mrb[131].mxu0  ;;  %v10706_v3 = vpop.f32.mrb[163].mxu1 }
 0x546   : > { %v8632_v55 = vadd.f32 %v10592_v18, %v15630_v33  ;;  %v10595_v59 = vadd.f32 %v10594_v21, %v10593_v38  ;;  %v10707_v50 = vadd.f32 %v10706_v3, %v10705_v9 }
 0x547   : > { %11097 = vmatmul.mubr.bf16.gmra.mrb[236].mxu0 %v15754_v47 }
 0x548   : > { %v15922_v12 = vadd.f32 %v10704_v2, %v8632_v55  ;;  %v8635_v6 = vadd.f32 %v10595_v59, %v15630_v33 }
 0x54a   : > { %v15925_v28 = vadd.f32 %v10707_v50, %v8635_v6  ;;  %v10596_v31 = vpop.f32.mrb[132].mxu0  ;;  %v10708_v22 = vpop.f32.mrb[164].mxu1 }
 0x54b   : > { %v10597_v23 = vpop.f32.mrb[133].mxu0  ;;  %v10709_v20 = vpop.f32.mrb[165].mxu1 }
 0x54c   : > { %v10598_v34 = vadd.f32 %v10597_v23, %v10596_v31  ;;  %v10599_v56 = vpop.f32.mrb[134].mxu0  ;;  %v10710_v45 = vadd.f32 %v10709_v20, %v10708_v22  ;;  %v10711_v19 = vpop.f32.mrb[166].mxu1 }
 0x54d   : > { %v10600_v0 = vpop.f32.mrb[135].mxu0  ;;  %v10712_v27 = vpop.f32.mrb[167].mxu1 }
 0x54e   : > { %v8640_v35 = vadd.f32 %v10598_v34, %v15630_v33  ;;  %v10601_v10 = vadd.f32 %v10600_v0, %v10599_v56  ;;  %v10713_v47 = vadd.f32 %v10712_v27, %v10711_v19  ;;  %v11706_v56 = vld [vmem:[%s16153_s6] ss:$0 sm:$0xff] }
 0x550   : > { %v15928_v36 = vadd.f32 %v10710_v45, %v8640_v35  ;;  %v8643_v24 = vadd.f32 %v10601_v10, %v15630_v33 }
 0x552   : > { %v15931_v53 = vadd.f32 %v10713_v47, %v8643_v24  ;;  %v10602_v61 = vpop.f32.mrb[136].mxu0  ;;  %v10714_v43 = vpop.f32.mrb[168].mxu1 }
 0x553   : > { %v10603_v14 = vpop.f32.mrb[137].mxu0  ;;  %v10715_v62 = vpop.f32.mrb[169].mxu1 }
 0x554   : > { %v10604_v16 = vadd.f32 %v10603_v14, %v10602_v61  ;;  %v10605_v11 = vpop.f32.mrb[138].mxu0  ;;  %v10716_v46 = vadd.f32 %v10715_v62, %v10714_v43  ;;  %v10717_v49 = vpop.f32.mrb[170].mxu1 }
 0x555   : > { %v10606_v1 = vpop.f32.mrb[139].mxu0  ;;  %v10718_v38 = vpop.f32.mrb[171].mxu1 }
 0x556   : > { %v8648_v29 = vadd.f32 %v10604_v16, %v15630_v33  ;;  %v10607_v18 = vadd.f32 %v10606_v1, %v10605_v11  ;;  %v10719_v52 = vadd.f32 %v10718_v38, %v10717_v49 }
 0x558   : > { %v15934_v2 = vadd.f32 %v10716_v46, %v8648_v29  ;;  %v8651_v21 = vadd.f32 %v10607_v18, %v15630_v33 }
 0x55a   : > { %v15937_v9 = vadd.f32 %v10719_v52, %v8651_v21  ;;  %v10608_v55 = vpop.f32.mrb[140].mxu0  ;;  %v10720_v3 = vpop.f32.mrb[172].mxu1 }
 0x55b   : > { %v10609_v59 = vpop.f32.mrb[141].mxu0  ;;  %v10721_v31 = vpop.f32.mrb[173].mxu1 }
 0x55c   : > { %v10610_v50 = vadd.f32 %v10609_v59, %v10608_v55  ;;  %v10611_v6 = vpop.f32.mrb[142].mxu0  ;;  %v10722_v23 = vadd.f32 %v10721_v31, %v10720_v3  ;;  %v10723_v34 = vpop.f32.mrb[174].mxu1 }
 0x55d   : > { %v10612_v22 = vpop.f32.mrb[143].mxu0  ;;  %v10724_v0 = vpop.f32.mrb[175].mxu1 }
 0x55e   : > { %v8656_v20 = vadd.f32 %v11706_v56, %v10610_v50  ;;  %v10613_v45 = vadd.f32 %v10612_v22, %v10611_v6  ;;  %v10725_v19 = vadd.f32 %v10724_v0, %v10723_v34 }
 0x560   : > { %v15942_v33 = vadd.f32 %v10722_v23, %v8656_v20  ;;  %v8659_v35 = vadd.f32 %v11706_v56, %v10613_v45 }
 0x562   : > { %v15944_v10 = vadd.f32 %v10725_v19, %v8659_v35  ;;  %v10742_v27 = vpop.f32.mrb[144].mxu0  ;;  %v10854_v61 = vpop.f32.mrb[176].mxu1 }
 0x563   : > { %v10743_v47 = vpop.f32.mrb[145].mxu0  ;;  %v10855_v43 = vpop.f32.mrb[177].mxu1 }
 0x564   : > { %v10744_v24 = vadd.f32 %v10743_v47, %v10742_v27  ;;  %v10745_v14 = vpop.f32.mrb[146].mxu0  ;;  %v10856_v62 = vadd.f32 %v10855_v43, %v10854_v61  ;;  %v10857_v1 = vpop.f32.mrb[178].mxu1 }
 0x565   : > { %v10746_v16 = vpop.f32.mrb[147].mxu0  ;;  %v10858_v49 = vpop.f32.mrb[179].mxu1 }
 0x566   : > { %v8858_v11 = vadd.f32 %v10744_v24, %v15732_v8  ;;  %v10747_v46 = vadd.f32 %v10746_v16, %v10745_v14  ;;  %v10859_v18 = vadd.f32 %v10858_v49, %v10857_v1 }
 0x568   : > { %v8861_v29 = vadd.f32 %v10747_v46, %v15751_v48  ;;  %v15948_v38 = vadd.f32 %v10856_v62, %v8858_v11 }
 0x56a   : > { %v10748_v52 = vpop.f32.mrb[148].mxu0  ;;  %v15950_v21 = vadd.f32 %v10859_v18, %v8861_v29  ;;  %v10860_v3 = vpop.f32.mrb[180].mxu1 }
 0x56b   : > { %v10749_v55 = vpop.f32.mrb[149].mxu0  ;;  %v10861_v6 = vpop.f32.mrb[181].mxu1 }
 0x56c   : > { %v10750_v59 = vadd.f32 %v10749_v55, %v10748_v52  ;;  %v10751_v50 = vpop.f32.mrb[150].mxu0  ;;  %v10862_v23 = vadd.f32 %v10861_v6, %v10860_v3  ;;  %v10863_v34 = vpop.f32.mrb[182].mxu1 }
 0x56d   : > { %v10752_v31 = vpop.f32.mrb[151].mxu0  ;;  %v10864_v56 = vpop.f32.mrb[183].mxu1 }
 0x56e   : > { %v8866_v8 = vadd.f32 %v10750_v59, %v15779_v26  ;;  %v10753_v22 = vadd.f32 %v10752_v31, %v10751_v50  ;;  %v10865_v20 = vadd.f32 %v10864_v56, %v10863_v34 }
 0x570   : > { %v8869_v48 = vadd.f32 %v10753_v22, %v15789_v25  ;;  %v15954_v45 = vadd.f32 %v10862_v23, %v8866_v8 }
 0x572   : > { %v10754_v0 = vpop.f32.mrb[152].mxu0  ;;  %v15956_v19 = vadd.f32 %v10865_v20, %v8869_v48  ;;  %v10866_v47 = vpop.f32.mrb[184].mxu1 }
 0x573   : > { %v10755_v35 = vpop.f32.mrb[153].mxu0  ;;  %v10867_v61 = vpop.f32.mrb[185].mxu1 }
 0x574   : > { %v10756_v27 = vadd.f32 %v10755_v35, %v10754_v0  ;;  %v10757_v24 = vpop.f32.mrb[154].mxu0  ;;  %v10868_v43 = vadd.f32 %v10867_v61, %v10866_v47  ;;  %v10869_v11 = vpop.f32.mrb[186].mxu1 }
 0x575   : > { %v10758_v14 = vpop.f32.mrb[155].mxu0  ;;  %v10870_v62 = vpop.f32.mrb[187].mxu1 }
 0x576   : > { %v8874_v26 = vadd.f32 %v10756_v27, %v15808_v17  ;;  %v10759_v16 = vadd.f32 %v10758_v14, %v10757_v24  ;;  %v10871_v46 = vadd.f32 %v10870_v62, %v10869_v11 }
 0x578   : > { %v8877_v25 = vadd.f32 %v10759_v16, %v15812_v54  ;;  %v15960_v1 = vadd.f32 %v10868_v43, %v8874_v26 }
 0x57a   : > { %v10760_v49 = vpop.f32.mrb[156].mxu0  ;;  %v15962_v29 = vadd.f32 %v10871_v46, %v8877_v25  ;;  %v10872_v55 = vpop.f32.mrb[188].mxu1 }
 0x57b   : > { %v10761_v18 = vpop.f32.mrb[157].mxu0  ;;  %v10873_v3 = vpop.f32.mrb[189].mxu1 }
 0x57c   : > { %v10762_v52 = vadd.f32 %v10761_v18, %v10760_v49  ;;  %v10763_v59 = vpop.f32.mrb[158].mxu0  ;;  %v10874_v6 = vadd.f32 %v10873_v3, %v10872_v55  ;;  %v10875_v8 = vpop.f32.mrb[190].mxu1 }
 0x57d   : > { %v10764_v50 = vpop.f32.mrb[159].mxu0  ;;  %v10876_v23 = vpop.f32.mrb[191].mxu1 }
 0x57e   : > { %v8882_v17 = vadd.f32 %v10762_v52, %v15831_v4  ;;  %v10765_v31 = vadd.f32 %v10764_v50, %v10763_v59  ;;  %v10877_v22 = vadd.f32 %v10876_v23, %v10875_v8 }
 0x580   : > { %v8885_v54 = vadd.f32 %v10765_v31, %v15835_v51  ;;  %v15966_v34 = vadd.f32 %v10874_v6, %v8882_v17 }
 0x582   : > { %v10766_v56 = vpop.f32.mrb[160].mxu0  ;;  %v15968_v48 = vadd.f32 %v10877_v22, %v8885_v54  ;;  %v10878_v35 = vpop.f32.mrb[192].mxu1 }
 0x583   : > { %v10767_v20 = vpop.f32.mrb[161].mxu0  ;;  %v10879_v47 = vpop.f32.mrb[193].mxu1 }
 0x584   : > { %v10768_v0 = vadd.f32 %v10767_v20, %v10766_v56  ;;  %v10769_v27 = vpop.f32.mrb[162].mxu0  ;;  %v10880_v61 = vadd.f32 %v10879_v47, %v10878_v35  ;;  %v10881_v26 = vpop.f32.mrb[194].mxu1 }
 0x585   : > { %v10770_v24 = vpop.f32.mrb[163].mxu0  ;;  %v10882_v43 = vpop.f32.mrb[195].mxu1 }
 0x586   : > { %v8890_v4 = vadd.f32 %v10768_v0, %v15850_v32  ;;  %v10771_v14 = vadd.f32 %v10770_v24, %v10769_v27  ;;  %v10883_v16 = vadd.f32 %v10882_v43, %v10881_v26 }
 0x588   : > { %v8893_v51 = vadd.f32 %v10771_v14, %v15854_v39  ;;  %v15972_v11 = vadd.f32 %v10880_v61, %v8890_v4 }
 0x58a   : > { %v10772_v62 = vpop.f32.mrb[164].mxu0  ;;  %v15974_v25 = vadd.f32 %v10883_v16, %v8893_v51  ;;  %v10884_v18 = vpop.f32.mrb[196].mxu1 }
 0x58b   : > { %v10773_v46 = vpop.f32.mrb[165].mxu0  ;;  %v10885_v55 = vpop.f32.mrb[197].mxu1 }
 0x58c   : > { %v10774_v49 = vadd.f32 %v10773_v46, %v10772_v62  ;;  %v10775_v52 = vpop.f32.mrb[166].mxu0  ;;  %v10886_v3 = vadd.f32 %v10885_v55, %v10884_v18  ;;  %v10887_v17 = vpop.f32.mrb[198].mxu1 }
 0x58d   : > { %v10776_v59 = vpop.f32.mrb[167].mxu0  ;;  %v10888_v6 = vpop.f32.mrb[199].mxu1 }
 0x58e   : > { %v8898_v32 = vadd.f32 %v10774_v49, %v15862_v40  ;;  %v10777_v50 = vadd.f32 %v10776_v59, %v10775_v52  ;;  %v10889_v31 = vadd.f32 %v10888_v6, %v10887_v17 }
 0x590   : > { %v8901_v39 = vadd.f32 %v10777_v50, %v15867_v63  ;;  %v15978_v8 = vadd.f32 %v10886_v3, %v8898_v32 }
 0x592   : > { %v10778_v23 = vpop.f32.mrb[168].mxu0  ;;  %v15980_v54 = vadd.f32 %v10889_v31, %v8901_v39  ;;  %v10890_v20 = vpop.f32.mrb[200].mxu1 }
 0x593   : > { %v10779_v22 = vpop.f32.mrb[169].mxu0  ;;  %v10891_v35 = vpop.f32.mrb[201].mxu1 }
 0x594   : > { %v10780_v56 = vadd.f32 %v10779_v22, %v10778_v23  ;;  %v10781_v0 = vpop.f32.mrb[170].mxu0  ;;  %v10892_v47 = vadd.f32 %v10891_v35, %v10890_v20  ;;  %v10893_v4 = vpop.f32.mrb[202].mxu1 }
 0x595   : > { %v10782_v27 = vpop.f32.mrb[171].mxu0  ;;  %v10894_v61 = vpop.f32.mrb[203].mxu1 }
 0x596   : > { %v8906_v40 = vadd.f32 %v10780_v56, %v15872_v30  ;;  %v10783_v24 = vadd.f32 %v10782_v27, %v10781_v0  ;;  %v10895_v14 = vadd.f32 %v10894_v61, %v10893_v4 }
 0x598   : > { %v8909_v63 = vadd.f32 %v10783_v24, %v15876_v7  ;;  %v15984_v26 = vadd.f32 %v10892_v47, %v8906_v40 }
 0x59a   : > { %v10784_v43 = vpop.f32.mrb[172].mxu0  ;;  %v15986_v51 = vadd.f32 %v10895_v14, %v8909_v63  ;;  %v10896_v46 = vpop.f32.mrb[204].mxu1 }
 0x59b   : > { %v10785_v16 = vpop.f32.mrb[173].mxu0  ;;  %v10897_v18 = vpop.f32.mrb[205].mxu1 }
 0x59c   : > { %v10786_v62 = vadd.f32 %v10785_v16, %v10784_v43  ;;  %v10787_v49 = vpop.f32.mrb[174].mxu0  ;;  %v10898_v55 = vadd.f32 %v10897_v18, %v10896_v46  ;;  %v10899_v32 = vpop.f32.mrb[206].mxu1 }
 0x59d   : > { %v10788_v52 = vpop.f32.mrb[175].mxu0  ;;  %v10900_v3 = vpop.f32.mrb[207].mxu1 }
 0x59e   : > { %v8914_v30 = vadd.f32 %v10786_v62, %v15881_v58  ;;  %v10789_v59 = vadd.f32 %v10788_v52, %v10787_v49  ;;  %v10901_v50 = vadd.f32 %v10900_v3, %v10899_v32 }
 0x5a0   : > { %v8917_v7 = vadd.f32 %v10789_v59, %v15884_v5  ;;  %v15990_v17 = vadd.f32 %v10898_v55, %v8914_v30 }
 0x5a2   : > { %v10790_v6 = vpop.f32.mrb[176].mxu0  ;;  %v15992_v39 = vadd.f32 %v10901_v50, %v8917_v7  ;;  %v10902_v22 = vpop.f32.mrb[208].mxu1 }
 0x5a3   : > { %v10791_v31 = vpop.f32.mrb[177].mxu0  ;;  %v10903_v20 = vpop.f32.mrb[209].mxu1 }
 0x5a4   : > { %v10792_v23 = vadd.f32 %v10791_v31, %v10790_v6  ;;  %v10793_v56 = vpop.f32.mrb[178].mxu0  ;;  %v10904_v35 = vadd.f32 %v10903_v20, %v10902_v22  ;;  %v10905_v40 = vpop.f32.mrb[210].mxu1 }
 0x5a5   : > { %v10794_v0 = vpop.f32.mrb[179].mxu0  ;;  %v10906_v47 = vpop.f32.mrb[211].mxu1 }
 0x5a6   : > { %v8922_v58 = vadd.f32 %v10792_v23, %v15889_v15  ;;  %v10795_v27 = vadd.f32 %v10794_v0, %v10793_v56  ;;  %v10907_v24 = vadd.f32 %v10906_v47, %v10905_v40 }
 0x5a8   : > { %v8925_v5 = vadd.f32 %v10795_v27, %v15892_v60  ;;  %v15996_v4 = vadd.f32 %v10904_v35, %v8922_v58 }
 0x5aa   : > { %v10796_v61 = vpop.f32.mrb[180].mxu0  ;;  %v15998_v63 = vadd.f32 %v10907_v24, %v8925_v5  ;;  %v10908_v16 = vpop.f32.mrb[212].mxu1 }
 0x5ab   : > { %v10797_v14 = vpop.f32.mrb[181].mxu0  ;;  %v10909_v46 = vpop.f32.mrb[213].mxu1 }
 0x5ac   : > { %v10798_v43 = vadd.f32 %v10797_v14, %v10796_v61  ;;  %v10799_v62 = vpop.f32.mrb[182].mxu0  ;;  %v10910_v18 = vadd.f32 %v10909_v46, %v10908_v16  ;;  %v10911_v30 = vpop.f32.mrb[214].mxu1 }
 0x5ad   : > { %v10800_v49 = vpop.f32.mrb[183].mxu0  ;;  %v10912_v55 = vpop.f32.mrb[215].mxu1 }
 0x5ae   : > { %v8930_v15 = vadd.f32 %v10798_v43, %v15897_v37  ;;  %v10801_v52 = vadd.f32 %v10800_v49, %v10799_v62  ;;  %v10913_v59 = vadd.f32 %v10912_v55, %v10911_v30 }
 0x5b0   : > { %v8933_v60 = vadd.f32 %v10801_v52, %v15900_v44  ;;  %v16002_v32 = vadd.f32 %v10910_v18, %v8930_v15 }
 0x5b2   : > { %v10802_v3 = vpop.f32.mrb[184].mxu0  ;;  %v16004_v7 = vadd.f32 %v10913_v59, %v8933_v60  ;;  %v10914_v31 = vpop.f32.mrb[216].mxu1 }
 0x5b3   : > { %v10803_v50 = vpop.f32.mrb[185].mxu0  ;;  %v10915_v22 = vpop.f32.mrb[217].mxu1 }
 0x5b4   : > { %v10804_v6 = vadd.f32 %v10803_v50, %v10802_v3  ;;  %v10805_v23 = vpop.f32.mrb[186].mxu0  ;;  %v10916_v20 = vadd.f32 %v10915_v22, %v10914_v31  ;;  %v10917_v58 = vpop.f32.mrb[218].mxu1 }
 0x5b5   : > { %v10806_v56 = vpop.f32.mrb[187].mxu0  ;;  %v10918_v35 = vpop.f32.mrb[219].mxu1 }
 0x5b6   : > { %v8938_v37 = vadd.f32 %v10804_v6, %v15905_v42  ;;  %v10807_v0 = vadd.f32 %v10806_v56, %v10805_v23  ;;  %v10919_v27 = vadd.f32 %v10918_v35, %v10917_v58 }
 0x5b8   : > { %v8941_v44 = vadd.f32 %v10807_v0, %v15908_v57  ;;  %v16008_v40 = vadd.f32 %v10916_v20, %v8938_v37 }
 0x5ba   : > { %v10808_v47 = vpop.f32.mrb[188].mxu0  ;;  %v16010_v5 = vadd.f32 %v10919_v27, %v8941_v44  ;;  %v10920_v14 = vpop.f32.mrb[220].mxu1 }
 0x5bb   : > { %v10809_v24 = vpop.f32.mrb[189].mxu0  ;;  %v10921_v16 = vpop.f32.mrb[221].mxu1 }
 0x5bc   : > { %v10810_v61 = vadd.f32 %v10809_v24, %v10808_v47  ;;  %v10811_v43 = vpop.f32.mrb[190].mxu0  ;;  %v10922_v46 = vadd.f32 %v10921_v16, %v10920_v14  ;;  %v10923_v15 = vpop.f32.mrb[222].mxu1 }
 0x5bd   : > { %v10812_v62 = vpop.f32.mrb[191].mxu0  ;;  %v10924_v18 = vpop.f32.mrb[223].mxu1 }
 0x5be   : > { %v8946_v42 = vadd.f32 %v10810_v61, %v15913_v41  ;;  %v10813_v49 = vadd.f32 %v10812_v62, %v10811_v43  ;;  %v10925_v52 = vadd.f32 %v10924_v18, %v10923_v15 }
 0x5c0   : > { %v8949_v57 = vadd.f32 %v10813_v49, %v15918_v13  ;;  %v16014_v30 = vadd.f32 %v10922_v46, %v8946_v42 }
 0x5c2   : > { %v10814_v55 = vpop.f32.mrb[192].mxu0  ;;  %v16016_v60 = vadd.f32 %v10925_v52, %v8949_v57  ;;  %v10926_v50 = vpop.f32.mrb[224].mxu1 }
 0x5c3   : > { %v10815_v59 = vpop.f32.mrb[193].mxu0  ;;  %v10927_v31 = vpop.f32.mrb[225].mxu1 }
 0x5c4   : > { %v10816_v3 = vadd.f32 %v10815_v59, %v10814_v55  ;;  %v10817_v6 = vpop.f32.mrb[194].mxu0  ;;  %v10928_v22 = vadd.f32 %v10927_v31, %v10926_v50  ;;  %v10929_v37 = vpop.f32.mrb[226].mxu1 }
 0x5c5   : > { %v10818_v23 = vpop.f32.mrb[195].mxu0  ;;  %v10930_v20 = vpop.f32.mrb[227].mxu1 }
 0x5c6   : > { %v8954_v41 = vadd.f32 %v10816_v3, %v15922_v12  ;;  %v10819_v56 = vadd.f32 %v10818_v23, %v10817_v6  ;;  %v10931_v0 = vadd.f32 %v10930_v20, %v10929_v37 }
 0x5c8   : > { %v8957_v13 = vadd.f32 %v10819_v56, %v15925_v28  ;;  %v16020_v58 = vadd.f32 %v10928_v22, %v8954_v41 }
 0x5ca   : > { %v10820_v35 = vpop.f32.mrb[196].mxu0  ;;  %v16022_v44 = vadd.f32 %v10931_v0, %v8957_v13  ;;  %v10932_v24 = vpop.f32.mrb[228].mxu1 }
 0x5cb   : > { %v10821_v27 = vpop.f32.mrb[197].mxu0  ;;  %v10933_v14 = vpop.f32.mrb[229].mxu1 }
 0x5cc   : > { %v10822_v47 = vadd.f32 %v10821_v27, %v10820_v35  ;;  %v10823_v61 = vpop.f32.mrb[198].mxu0  ;;  %v10934_v16 = vadd.f32 %v10933_v14, %v10932_v24  ;;  %v10935_v42 = vpop.f32.mrb[230].mxu1 }
 0x5cd   : > { %v10824_v43 = vpop.f32.mrb[199].mxu0  ;;  %v10936_v46 = vpop.f32.mrb[231].mxu1 }
 0x5ce   : > { %v8962_v12 = vadd.f32 %v10822_v47, %v15928_v36  ;;  %v10825_v62 = vadd.f32 %v10824_v43, %v10823_v61  ;;  %v10937_v49 = vadd.f32 %v10936_v46, %v10935_v42 }
 0x5d0   : > { %v8965_v28 = vadd.f32 %v10825_v62, %v15931_v53  ;;  %v16026_v15 = vadd.f32 %v10934_v16, %v8962_v12 }
 0x5d2   : > { %v10826_v18 = vpop.f32.mrb[200].mxu0  ;;  %v16028_v57 = vadd.f32 %v10937_v49, %v8965_v28  ;;  %v10938_v59 = vpop.f32.mrb[232].mxu1 }
 0x5d3   : > { %v10827_v52 = vpop.f32.mrb[201].mxu0  ;;  %v10939_v50 = vpop.f32.mrb[233].mxu1 }
 0x5d4   : > { %v10828_v55 = vadd.f32 %v10827_v52, %v10826_v18  ;;  %v10829_v3 = vpop.f32.mrb[202].mxu0  ;;  %v10940_v31 = vadd.f32 %v10939_v50, %v10938_v59  ;;  %v10941_v41 = vpop.f32.mrb[234].mxu1 }
 0x5d5   : > { %v10830_v6 = vpop.f32.mrb[203].mxu0  ;;  %v10942_v22 = vpop.f32.mrb[235].mxu1 }
 0x5d6   : > { %v8970_v36 = vadd.f32 %v10828_v55, %v15934_v2  ;;  %v10831_v23 = vadd.f32 %v10830_v6, %v10829_v3  ;;  %v10943_v56 = vadd.f32 %v10942_v22, %v10941_v41 }
 0x5d8   : > { %v8973_v53 = vadd.f32 %v10831_v23, %v15937_v9  ;;  %v16032_v37 = vadd.f32 %v10940_v31, %v8970_v36 }
 0x5da   : > { %v10832_v20 = vpop.f32.mrb[204].mxu0  ;;  %v16034_v13 = vadd.f32 %v10943_v56, %v8973_v53  ;;  %v10944_v47 = vpop.f32.mrb[236].mxu1 }
 0x5db   : > { %v10833_v0 = vpop.f32.mrb[205].mxu0  ;;  %v10945_v61 = vpop.f32.mrb[237].mxu1 }
 0x5dc   : > { %v10834_v35 = vadd.f32 %v10833_v0, %v10832_v20  ;;  %v10835_v27 = vpop.f32.mrb[206].mxu0  ;;  %v10946_v43 = vadd.f32 %v10945_v61, %v10944_v47  ;;  %v10947_v12 = vpop.f32.mrb[238].mxu1 }
 0x5dd   : > { %v10836_v24 = vpop.f32.mrb[207].mxu0  ;;  %v10948_v16 = vpop.f32.mrb[239].mxu1 }
 0x5de   : > { %v8978_v2 = vadd.f32 %v10834_v35, %v15942_v33  ;;  %v10837_v14 = vadd.f32 %v10836_v24, %v10835_v27  ;;  %v10949_v62 = vadd.f32 %v10948_v16, %v10947_v12 }
 0x5e0   : > { %v8981_v9 = vadd.f32 %v10837_v14, %v15944_v10  ;;  %v16039_v42 = vadd.f32 %v10946_v43, %v8978_v2 }
 0x5e2   : > { %v11070_v33 = vpop.f32.mrb[208].mxu0  ;;  %v16046_v46 = vadd.f32 %v10949_v62, %v8981_v9 }
 0x5e3   : > { %v9188_v28 = vadd.f32 %v11070_v33, %v15954_v45  ;;  %v9179_v10 = vpop.f32.mrb[209].mxu0 }
 0x5e4   : > { %v9180_v49 = vadd.f32 %v9179_v10, %v15948_v38  ;;  %v11071_v18 = vpop.f32.mrb[210].mxu0 }
 0x5e5   : > { %9309 = vst.msk [vmem:[%s16044_s29 + $0x10] sm:$0xff] %vm9306_vm0, %v9188_v28  ;;  %v9191_v52 = vadd.f32 %v11071_v18, %v15956_v19  ;;  %v9182_v55 = vpop.f32.mrb[211].mxu0 }
 0x5e6   : > { %9307 = vst.msk [vmem:[%s16044_s29] sm:$0xff] %vm9306_vm0, %v9180_v49  ;;  %v9183_v59 = vadd.f32 %v9182_v55, %v15950_v21 }
 0x5e7   : > { %9310 = vst.msk [vmem:[%s16044_s29 + $0x18] sm:$0xff] %vm9306_vm0, %v9191_v52 }
 0x5e8   : > { %9308 = vst.msk [vmem:[%s16044_s29 + $0x8] sm:$0xff] %vm9306_vm0, %v9183_v59 }
 0x5ea   : > { %v11074_v45 = vpop.f32.mrb[212].mxu0 }
 0x5eb   : > { %v9204_v38 = vadd.f32 %v11074_v45, %v15966_v34  ;;  %v9195_v3 = vpop.f32.mrb[213].mxu0 }
 0x5ec   : > { %v9196_v50 = vadd.f32 %v9195_v3, %v15960_v1  ;;  %v11075_v6 = vpop.f32.mrb[214].mxu0 }
 0x5ed   : > { %9313 = vst.msk [vmem:[%s16044_s29 + $0x30] sm:$0xff] %vm9306_vm0, %v9204_v38  ;;  %v9207_v19 = vadd.f32 %v11075_v6, %v15968_v48  ;;  %v9198_v36 = vpop.f32.mrb[215].mxu0 }
 0x5ee   : > { %9311 = vst.msk [vmem:[%s16044_s29 + $0x20] sm:$0xff] %vm9306_vm0, %v9196_v50  ;;  %v9199_v21 = vadd.f32 %v9198_v36, %v15962_v29 }
 0x5ef   : > { %9314 = vst.msk [vmem:[%s16044_s29 + $0x38] sm:$0xff] %vm9306_vm0, %v9207_v19 }
 0x5f0   : > { %9312 = vst.msk [vmem:[%s16044_s29 + $0x28] sm:$0xff] %vm9306_vm0, %v9199_v21 }
 0x5f2   : > { %v11078_v34 = vpop.f32.mrb[216].mxu0 }
 0x5f3   : > { %v9220_v1 = vadd.f32 %v11078_v34, %v15978_v8  ;;  %v9211_v31 = vpop.f32.mrb[217].mxu0 }
 0x5f4   : > { %v9212_v23 = vadd.f32 %v9211_v31, %v15972_v11  ;;  %v11079_v41 = vpop.f32.mrb[218].mxu0 }
 0x5f5   : > { %9317 = vst.msk [vmem:[%s16044_s29 + $0x50] sm:$0xff] %vm9306_vm0, %v9220_v1  ;;  %v9223_v48 = vadd.f32 %v11079_v41, %v15980_v54  ;;  %v9214_v22 = vpop.f32.mrb[219].mxu0 }
 0x5f6   : > { %9315 = vst.msk [vmem:[%s16044_s29 + $0x40] sm:$0xff] %vm9306_vm0, %v9212_v23  ;;  %v9215_v29 = vadd.f32 %v9214_v22, %v15974_v25 }
 0x5f7   : > { %9318 = vst.msk [vmem:[%s16044_s29 + $0x58] sm:$0xff] %vm9306_vm0, %v9223_v48 }
 0x5f8   : > { %9316 = vst.msk [vmem:[%s16044_s29 + $0x48] sm:$0xff] %vm9306_vm0, %v9215_v29 }
 0x5fa   : > { %v11082_v8 = vpop.f32.mrb[220].mxu0 }
 0x5fb   : > { %v9236_v11 = vadd.f32 %v11082_v8, %v15990_v17  ;;  %v9227_v53 = vpop.f32.mrb[221].mxu0 }
 0x5fc   : > { %v9228_v56 = vadd.f32 %v9227_v53, %v15984_v26  ;;  %v11083_v20 = vpop.f32.mrb[222].mxu0 }
 0x5fd   : > { %9321 = vst.msk [vmem:[%s16044_s29 + $0x70] sm:$0xff] %vm9306_vm0, %v9236_v11  ;;  %v9239_v54 = vadd.f32 %v11083_v20, %v15992_v39  ;;  %v9230_v0 = vpop.f32.mrb[223].mxu0 }
 0x5fe   : > { %9319 = vst.msk [vmem:[%s16044_s29 + $0x60] sm:$0xff] %vm9306_vm0, %v9228_v56  ;;  %v9231_v25 = vadd.f32 %v9230_v0, %v15986_v51 }
 0x5ff   : > { %9322 = vst.msk [vmem:[%s16044_s29 + $0x78] sm:$0xff] %vm9306_vm0, %v9239_v54 }
 0x600   : > { %9320 = vst.msk [vmem:[%s16044_s29 + $0x68] sm:$0xff] %vm9306_vm0, %v9231_v25 }
 0x602   : > { %v11086_v17 = vpop.f32.mrb[224].mxu0 }
 0x603   : > { %v9252_v26 = vadd.f32 %v11086_v17, %v16002_v32  ;;  %v9243_v35 = vpop.f32.mrb[225].mxu0 }
 0x604   : > { %v9244_v27 = vadd.f32 %v9243_v35, %v15996_v4  ;;  %v11087_v47 = vpop.f32.mrb[226].mxu0 }
 0x605   : > { %9325 = vst.msk [vmem:[%s16044_s29 + $0x90] sm:$0xff] %vm9306_vm0, %v9252_v26  ;;  %v9255_v39 = vadd.f32 %v11087_v47, %v16004_v7  ;;  %v9246_v24 = vpop.f32.mrb[227].mxu0 }
 0x606   : > { %9323 = vst.msk [vmem:[%s16044_s29 + $0x80] sm:$0xff] %vm9306_vm0, %v9244_v27  ;;  %v9247_v51 = vadd.f32 %v9246_v24, %v15998_v63 }
 0x607   : > { %9326 = vst.msk [vmem:[%s16044_s29 + $0x98] sm:$0xff] %vm9306_vm0, %v9255_v39 }
 0x608   : > { %9324 = vst.msk [vmem:[%s16044_s29 + $0x88] sm:$0xff] %vm9306_vm0, %v9247_v51 }
 0x60a   : > { %v11090_v32 = vpop.f32.mrb[228].mxu0 }
 0x60b   : > { %v9268_v4 = vadd.f32 %v11090_v32, %v16014_v30  ;;  %v9259_v61 = vpop.f32.mrb[229].mxu0 }
 0x60c   : > { %v9260_v2 = vadd.f32 %v9259_v61, %v16008_v40  ;;  %v11091_v14 = vpop.f32.mrb[230].mxu0 }
 0x60d   : > { %9329 = vst.msk [vmem:[%s16044_s29 + $0xb0] sm:$0xff] %vm9306_vm0, %v9268_v4  ;;  %v9271_v7 = vadd.f32 %v11091_v14, %v16016_v60  ;;  %v9262_v43 = vpop.f32.mrb[231].mxu0 }
 0x60e   : > { %9327 = vst.msk [vmem:[%s16044_s29 + $0xa0] sm:$0xff] %vm9306_vm0, %v9260_v2  ;;  %v9263_v63 = vadd.f32 %v9262_v43, %v16010_v5 }
 0x60f   : > { %9330 = vst.msk [vmem:[%s16044_s29 + $0xb8] sm:$0xff] %vm9306_vm0, %v9271_v7 }
 0x610   : > { %9328 = vst.msk [vmem:[%s16044_s29 + $0xa8] sm:$0xff] %vm9306_vm0, %v9263_v63 }
 0x612   : > { %v11094_v30 = vpop.f32.mrb[232].mxu0 }
 0x613   : > { %v9284_v40 = vadd.f32 %v11094_v30, %v16026_v15  ;;  %v9275_v12 = vpop.f32.mrb[233].mxu0 }
 0x614   : > { %v9276_v16 = vadd.f32 %v9275_v12, %v16020_v58  ;;  %v11095_v9 = vpop.f32.mrb[234].mxu0 }
 0x615   : > { %9333 = vst.msk [vmem:[%s16044_s29 + $0xd0] sm:$0xff] %vm9306_vm0, %v9284_v40  ;;  %v9287_v60 = vadd.f32 %v11095_v9, %v16028_v57  ;;  %v9278_v62 = vpop.f32.mrb[235].mxu0 }
 0x616   : > { %9331 = vst.msk [vmem:[%s16044_s29 + $0xc0] sm:$0xff] %vm9306_vm0, %v9276_v16  ;;  %v9279_v5 = vadd.f32 %v9278_v62, %v16022_v44 }
 0x617   : > { %9334 = vst.msk [vmem:[%s16044_s29 + $0xd8] sm:$0xff] %vm9306_vm0, %v9287_v60 }
 0x618   : > { %9332 = vst.msk [vmem:[%s16044_s29 + $0xc8] sm:$0xff] %vm9306_vm0, %v9279_v5 }
 0x61a   : > { %v11098_v15 = vpop.f32.mrb[236].mxu0 }
 0x61b   : > { %v9300_v58 = vadd.f32 %v11098_v15, %v16039_v42  ;;  %v9291_v33 = vpop.f32.mrb[237].mxu0 }
 0x61c   : > { %v9292_v28 = vadd.f32 %v9291_v33, %v16032_v37  ;;  %v11099_v10 = vpop.f32.mrb[238].mxu0 }
 0x61d   : > { %9337 = vst.msk [vmem:[%s16044_s29 + $0xf0] sm:$0xff] %vm9306_vm0, %v9300_v58  ;;  %v9303_v57 = vadd.f32 %v11099_v10, %v16046_v46  ;;  %v9294_v49 = vpop.f32.mrb[239].mxu0 }
 0x61e   : > { %9335 = vst.msk [vmem:[%s16044_s29 + $0xe0] sm:$0xff] %vm9306_vm0, %v9292_v28  ;;  %v9295_v44 = vadd.f32 %v9294_v49, %v16034_v13 }
 0x61f   : > { %9338 = vst.msk [vmem:[%s16044_s29 + $0xf8] sm:$0xff] %vm9306_vm0, %v9303_v57 }
 0x620   : > { %9336 = vst.msk [vmem:[%s16044_s29 + $0xe8] sm:$0xff] %vm9306_vm0, %v9295_v44 }
 0x621 PF: > { %s17_s24 = sadd.s32 1, %s11713_s24  }
 0x622   : > { %p14_p4 = scmp.ge.s32.totalorder %s17_s24, 4  }
 0x624   :  { %16 = sbr.rel (!%p14_p4) target bundleno = 1 (0x1), region = 84 }

</bundles_post_ra>
